<compile_context>
chip_gen: v7x
topology: tpu7x:2x2x1
jax: 0.10.0
libtpu: 0.0.40
codegen_flags: <defaults>
</compile_context>

<pallas_src>
import functools
import math

import jax
import jax.numpy as jnp
from jax.experimental import pallas as pl
from jax.experimental.pallas import tpu as pltpu

# Reference defaults are CONV_DIM=32, FC_DIM=512 — shrunk here for the small smoke test.
CONV_DIM = 8
FC_DIM = 32
FC_DROPOUT = 0.2
WINDOW_STRIDE = 8
WINDOW_WIDTH = 16


def _round_up(x, m):
    return (x + m - 1) // m * m


@functools.lru_cache(maxsize=None)
def _vmem_limit_bytes():
    """Per-generation VMEM budget: ~60% of physical (≈76 MiB on 128 MiB v5e/v6e,
    ≈38 MiB on 64 MiB v7x), leaving headroom for double buffers and (8,128) padding."""
    cap = 128 * 1024 * 1024
    try:
        cap = int(getattr(pltpu.get_tpu_info(), "vmem_capacity_bytes", cap))
    except Exception:  # defensive: interpret mode / unknown chip
        pass
    return max(32 * 1024 * 1024, min(96 * 1024 * 1024, cap * 6 // 10))


def _pick_row_block(Hout, Wout, target_m=512):
    """Largest divisor of Hout so the per-step matmul M = RB*Wout is ~target_m while the
    output block's second-minor dim stays 8-aligned (or covers the whole array)."""
    want = max(1, min(Hout, target_m // max(Wout, 1)))
    for rb in range(want, 0, -1):
        if Hout % rb == 0 and (rb == Hout or (rb * Wout) % 8 == 0):
            return rb
    return Hout


# ----------------------------- fused conv kernel -------------------------------

def _conv_kernel(x_ref, w_ref, b_ref, o_ref, *,
                 KH, KW, sh, sw, Hq, RB, Wout, apply_relu):
    """One row block of one image: direct conv + bias + ReLU.

    x_ref: (1, sh*sw*Hq, Wq, Cin)  padded, stride-phase-split image (VMEM resident across
           the row-block grid axis).  Row (ph*sw + pw)*Hq + qh, column qw holds padded
           pixel (qh*sh + ph, qw*sw + pw), so every tap read is a unit-stride slice.
    w_ref: (KH, KW*Cin, Cout) bf16, kw folded into the contraction dim (resident).
    b_ref: (1, Cout) f32 (resident).
    o_ref: (1, RB*Wout, Cout)  output row block (rows collapsed -> one dense store).
    """
    Cin = x_ref.shape[3]
    Cout = o_ref.shape[2]
    h0 = pl.program_id(1) * RB                        # first output row of this block

    def slab(kh, kw):                                 # (RB, Wout, Cin) for tap (kh, kw)
        phase = (kh % sh) * sw + (kw % sw)
        row0 = phase * Hq + h0 + kh // sh
        return x_ref[0, pl.ds(row0, RB), pl.ds(kw // sw, Wout), :]

    acc = jnp.zeros((RB * Wout, Cout), jnp.float32)
    if Cin == 1:
        # First layer (Cin==1): K would be <= KW, so use VPU broadcast outer products
        # instead of a degenerate MXU matmul.  Weights hoisted & cast once.
        w_all = w_ref[...].astype(jnp.float32)        # (KH, KW, Cout)
        for kh in range(KH):
            for kw in range(KW):
                v = slab(kh, kw).reshape(RB * Wout, 1).astype(jnp.float32)
                acc = acc + v * w_all[kh, kw][None, :]
    else:
        # KH matmuls with M = RB*Wout and K = KW*Cin (kw taps fused into contraction).
        for kh in range(KH):
            lhs = jnp.concatenate([slab(kh, kw) for kw in range(KW)], axis=-1)
            lhs = lhs.reshape(RB * Wout, KW * Cin)
            acc = acc + jnp.dot(lhs, w_ref[kh], preferred_element_type=jnp.float32)

    acc = acc + b_ref[...]
    if apply_relu:
        acc = jnp.maximum(acc, 0.0)
    o_ref[0] = acc.astype(o_ref.dtype)


def conv_block(x, w, b, stride=(1, 1), padding=(1, 1), apply_relu=True):
    """Conv2d + bias + ReLU as one Pallas kernel (direct conv, no HBM im2col).

    x: (B, H, W, Cin) bf16;  w: (KH, KW, Cin, Cout) f32;  b: (Cout,) f32.
    """
    B, H, W, Cin = x.shape
    KH, KW, _, Cout = w.shape
    sh, sw = stride
    ph, pw = padding
    Hout = (H + 2 * ph - KH) // sh + 1
    Wout = (W + 2 * pw - KW) // sw + 1

    # Padded + stride-phase-split layout: (p_h, p_w, qh, qw) <- padded pixel
    # (qh*sh + p_h, qw*sw + p_w).  Hq/Wq cover exactly what the taps can touch.
    Hq = Hout + (KH - 1) // sh
    Wq = Wout + (KW - 1) // sw
    Hs, Ws = Hq * sh, Wq * sw
    # TODO(synk): fold this pad/interleave pass into the previous layer's kernel (emit a
    # pre-padded, pre-phase-split output) to remove one full HBM round trip per layer.
    xp = jnp.pad(x, ((0, 0),
                     (ph, max(0, Hs - H - ph)),
                     (pw, max(0, Ws - W - pw)),
                     (0, 0)))[:, :Hs, :Ws, :]
    x_r = (xp.reshape(B, Hq, sh, Wq, sw, Cin)
             .transpose(0, 2, 4, 1, 3, 5)
             .reshape(B, sh * sw * Hq, Wq, Cin)
             .astype(jnp.bfloat16))
    w_r = w.reshape(KH, KW * Cin, Cout).astype(jnp.bfloat16)    # kw folded into K
    b_r = b.reshape(1, Cout).astype(jnp.float32)

    RB = _pick_row_block(Hout, Wout)
    n_rb = Hout // RB

    kernel = functools.partial(_conv_kernel, KH=KH, KW=KW, sh=sh, sw=sw,
                               Hq=Hq, RB=RB, Wout=Wout, apply_relu=apply_relu)
    # TODO(synk): the Cin==1 first layer still loads a lane-sparse (..., 1) block; a
    # dedicated W-in-lanes layout would avoid wasting 127/128 lanes on its DMA/loads.
    out = pl.pallas_call(
        kernel,
        out_shape=jax.ShapeDtypeStruct((B, Hout * Wout, Cout), jnp.bfloat16),
        grid=(B, n_rb),
        in_specs=[
            pl.BlockSpec((1, sh * sw * Hq, Wq, Cin), lambda bi, ri: (bi, 0, 0, 0)),
            pl.BlockSpec((KH, KW * Cin, Cout), lambda bi, ri: (0, 0, 0)),   # resident
            pl.BlockSpec((1, Cout), lambda bi, ri: (0, 0)),                  # resident
        ],
        out_specs=pl.BlockSpec((1, RB * Wout, Cout), lambda bi, ri: (bi, ri, 0)),
        compiler_params=pltpu.CompilerParams(
            dimension_semantics=("parallel", "parallel"),
            vmem_limit_bytes=_vmem_limit_bytes()),
    )(x_r, w_r, b_r)
    return out.reshape(B, Hout, Wout, Cout)


# ----------------------------- fused FC head (fc1 + ReLU + fc2) ----------------

def _mlp_kernel(x_ref, w1_ref, b1_ref, w2_ref, b2_ref, o_ref):
    h = jnp.dot(x_ref[...], w1_ref[...], preferred_element_type=jnp.float32)
    h = jnp.maximum(h + b1_ref[...], 0.0)
    # TODO(synk): nn.Dropout(FC_DROPOUT) is identity at inference; training-mode dropout
    # (pltpu.prng_seed / prng_random_bits) intentionally omitted.
    o = jnp.dot(h.astype(w2_ref.dtype), w2_ref[...], preferred_element_type=jnp.float32)
    o_ref[...] = (o + b2_ref[...]).astype(o_ref.dtype)


def mlp_head(x, w1, b1, w2, b2):
    """logits = relu(x @ w1 + b1) @ w2 + b2 in one pallas_call; hidden never leaves VMEM.

    N1/N2 are zero-padded to 128 lanes (dense stores, padding sliced off outside); M is
    padded to a fixed 8-aligned tile with >=2 grid steps whenever there is enough work.
    """
    M, K = x.shape
    N1, N2 = w1.shape[1], w2.shape[1]
    N1p, N2p = _round_up(N1, 128), _round_up(N2, 128)

    Mp0 = _round_up(M, 8)
    tm = 256 if Mp0 >= 512 else max(8, (Mp0 // 16) * 8)
    Mp = _round_up(Mp0, tm)

    xw = jnp.pad(x, ((0, Mp - M), (0, 0))).astype(jnp.bfloat16)
    w1p = jnp.pad(w1, ((0, 0), (0, N1p - N1))).astype(jnp.bfloat16)
    b1p = jnp.pad(b1, (0, N1p - N1)).reshape(1, N1p).astype(jnp.float32)
    w2p = jnp.pad(w2, ((0, N1p - N1), (0, N2p - N2))).astype(jnp.bfloat16)
    b2p = jnp.pad(b2, (0, N2p - N2)).reshape(1, N2p).astype(jnp.float32)

    out = pl.pallas_call(
        _mlp_kernel,
        out_shape=jax.ShapeDtypeStruct((Mp, N2p), jnp.float32),
        grid=(Mp // tm,),
        in_specs=[
            pl.BlockSpec((tm, K), lambda i: (i, 0)),
            pl.BlockSpec((K, N1p), lambda i: (0, 0)),     # resident across the M grid
            pl.BlockSpec((1, N1p), lambda i: (0, 0)),
            pl.BlockSpec((N1p, N2p), lambda i: (0, 0)),
            pl.BlockSpec((1, N2p), lambda i: (0, 0)),
        ],
        out_specs=pl.BlockSpec((tm, N2p), lambda i: (i, 0)),
        compiler_params=pltpu.CompilerParams(
            dimension_semantics=("parallel",),
            vmem_limit_bytes=_vmem_limit_bytes()),
    )(xw, w1p, b1p, w2p, b2p)
    return out[:M, :N2]


# ----------------------------- CNN model ---------------------------------------

def init_cnn_params(key, C, H, num_classes, conv_dim, fc_dim, ww, ws):
    """Mirrors the reference _init_weights: kaiming_normal (fan_out, relu) weights and
    bias ~ Normal(mean=-bound, std=bound) with bound = 1/sqrt(fan_out)."""
    conv_specs = [
        (3, 3, C, conv_dim, (1, 1), (1, 1)),
        (3, 3, conv_dim, conv_dim, (1, 1), (1, 1)),
        (3, 3, conv_dim, conv_dim, (2, 2), (1, 1)),
        (3, 3, conv_dim, conv_dim, (1, 1), (1, 1)),
        (3, 3, conv_dim, conv_dim * 2, (2, 2), (1, 1)),
        (3, 3, conv_dim * 2, conv_dim * 2, (1, 1), (1, 1)),
        (3, 3, conv_dim * 2, conv_dim * 4, (2, 2), (1, 1)),
        (3, 3, conv_dim * 4, conv_dim * 4, (1, 1), (1, 1)),
        (H // 8, ww // 8, conv_dim * 4, fc_dim, (H // 8, ws // 8), (0, 0)),
    ]
    params = {"convs": []}
    for (kh, kw, cin, cout, stride, pad) in conv_specs:
        key, k_w, k_b = jax.random.split(key, 3)
        fan_out = cout * kh * kw
        std = math.sqrt(2.0 / fan_out)
        w = std * jax.random.normal(k_w, (kh, kw, cin, cout), jnp.float32)
        bound = 1.0 / math.sqrt(fan_out)
        b = -bound + bound * jax.random.normal(k_b, (cout,), jnp.float32)
        params["convs"].append({"w": w, "b": b, "stride": stride, "pad": pad})
    for name, (fin, fout) in (("fc1", (fc_dim, fc_dim)), ("fc2", (fc_dim, num_classes))):
        key, k_w, k_b = jax.random.split(key, 3)
        std = math.sqrt(2.0 / fout)
        w = std * jax.random.normal(k_w, (fin, fout), jnp.float32)
        bound = 1.0 / math.sqrt(fout)
        b = -bound + bound * jax.random.normal(k_b, (fout,), jnp.float32)
        params[name] = {"w": w, "b": b}
    return params


def cnn_forward(params, x_nchw):
    """Matches CNN.forward: (B, C, H, W) -> (B, num_classes, S).
    Note: activations are bf16 between layers (f32 MXU accumulation), so expect slightly
    looser tolerances than the f32 PyTorch reference."""
    x = jnp.transpose(x_nchw, (0, 2, 3, 1)).astype(jnp.bfloat16)     # NCHW -> NHWC
    for layer in params["convs"]:
        x = conv_block(x, layer["w"], layer["b"], layer["stride"], layer["pad"])
    # NHWC result is (B, 1, S, fc_dim) == torch's (B, fc_dim, 1, S) after layout swap.
    B, Hf, S, Fd = x.shape
    assert Hf == 1, "final conv must collapse the H dimension"
    x2 = x.reshape(B * S, Fd)                                        # squeeze(2).permute(0,2,1)
    logits = mlp_head(x2, params["fc1"]["w"], params["fc1"]["b"],
                      params["fc2"]["w"], params["fc2"]["b"])
    logits = logits.reshape(B, S, -1)
    return jnp.transpose(logits, (0, 2, 1))                          # (B, num_classes, S)


# ----------------------------- demo ---------------------------------------------

if __name__ == "__main__":
    B, C, H, W = 2, 1, 16, 32
    num_classes = 10

    key = jax.random.PRNGKey(0)
    key, k_x, k_p = jax.random.split(key, 3)
    x = jax.random.normal(k_x, (B, C, H, W), jnp.float32)            # NCHW like the reference

    params = init_cnn_params(k_p, C, H, num_classes,
                             conv_dim=CONV_DIM, fc_dim=FC_DIM,
                             ww=WINDOW_WIDTH, ws=WINDOW_STRIDE)

    out = cnn_forward(params, x)
    out = jax.block_until_ready(out)

    # expected sequence length: W//8 spatial cols, kernel WW//8, stride WS//8
    S_expected = (W // 8 - WINDOW_WIDTH // 8) // (WINDOW_STRIDE // 8) + 1
    assert out.shape == (B, num_classes, S_expected), out.shape
    assert bool(jnp.all(jnp.isfinite(out)))
    print("KERNEL_OK")
</pallas_src>

<mosaic_0001>
module attributes {stable_mosaic.version = 11 : i64} {
  func.func @_conv_kernel(%arg0: i32, %arg1: i32, %arg2: memref<1x18x34x1xbf16, #tpu.memory_space<vmem>>, %arg3: memref<3x3x8xbf16, #tpu.memory_space<vmem>>, %arg4: memref<1x8xf32, #tpu.memory_space<vmem>>, %arg5: memref<1x512x8xbf16, #tpu.memory_space<vmem>>) attributes {dimension_semantics = [#tpu.dimension_semantics<parallel>, #tpu.dimension_semantics<parallel>], iteration_bounds = array<i64: 2, 1>, scalar_prefetch = 0 : i64, scratch_operands = 0 : i64, tpu.core_type = #tpu.core_type<tc>, window_params = [{transform_indices = @transform_0, window_bounds = array<i64: 1, 18, 34, 1>}, {pipeline_mode = #tpu.pipeline_mode<synchronous>, transform_indices = @transform_1, window_bounds = array<i64: 3, 3, 8>}, {pipeline_mode = #tpu.pipeline_mode<synchronous>, transform_indices = @transform_2, window_bounds = array<i64: 1, 8>}, {transform_indices = @transform_3, window_bounds = array<i64: 1, 512, 8>}]} {
    %c16_i32 = arith.constant 16 : i32
    %0 = arith.muli %arg1, %c16_i32 : i32
    %cst = arith.constant 0.000000e+00 : f32
    %1 = vector.broadcast %cst : f32 to vector<512x8xf32>
    %c0 = arith.constant 0 : index
    %c0_0 = arith.constant 0 : index
    %c0_1 = arith.constant 0 : index
    %2 = vector.load %arg3[%c0, %c0_0, %c0_1] : memref<3x3x8xbf16, #tpu.memory_space<vmem>>, vector<3x3x8xbf16>
    %3 = arith.extf %2 : vector<3x3x8xbf16> to vector<3x3x8xf32>
    %c0_i32 = arith.constant 0 : i32
    %4 = arith.addi %c0_i32, %0 : i32
    %c0_i32_2 = arith.constant 0 : i32
    %5 = arith.addi %4, %c0_i32_2 : i32
    %c0_3 = arith.constant 0 : index
    %6 = arith.index_cast %5 : i32 to index
    %c0_4 = arith.constant 0 : index
    %c0_5 = arith.constant 0 : index
    %7 = vector.load %arg2[%c0_3, %6, %c0_4, %c0_5] : memref<1x18x34x1xbf16, #tpu.memory_space<vmem>>, vector<1x16x32x1xbf16>
    %8 = vector.shape_cast %7 : vector<1x16x32x1xbf16> to vector<16x32x1xbf16>
    %9 = vector.shape_cast %8 : vector<16x32x1xbf16> to vector<512x1xbf16>
    %10 = arith.extf %9 : vector<512x1xbf16> to vector<512x1xf32>
    %11 = vector.extract_strided_slice %3 {offsets = [0, 0, 0], sizes = [1, 1, 8], strides = [1, 1, 1]} : vector<3x3x8xf32> to vector<1x1x8xf32>
    %12 = vector.shape_cast %11 : vector<1x1x8xf32> to vector<8xf32>
    %13 = vector.shape_cast %12 : vector<8xf32> to vector<1x8xf32>
    %14 = vector.broadcast %10 : vector<512x1xf32> to vector<512x8xf32>
    %15 = vector.broadcast %13 : vector<1x8xf32> to vector<512x8xf32>
    %16 = arith.mulf %14, %15 : vector<512x8xf32>
    %17 = arith.addf %1, %16 : vector<512x8xf32>
    %c0_i32_6 = arith.constant 0 : i32
    %18 = arith.addi %c0_i32_6, %0 : i32
    %c0_i32_7 = arith.constant 0 : i32
    %19 = arith.addi %18, %c0_i32_7 : i32
    %c0_8 = arith.constant 0 : index
    %20 = arith.index_cast %19 : i32 to index
    %c1 = arith.constant 1 : index
    %c0_9 = arith.constant 0 : index
    %21 = vector.load %arg2[%c0_8, %20, %c1, %c0_9] : memref<1x18x34x1xbf16, #tpu.memory_space<vmem>>, vector<1x16x32x1xbf16>
    %22 = vector.shape_cast %21 : vector<1x16x32x1xbf16> to vector<16x32x1xbf16>
    %23 = vector.shape_cast %22 : vector<16x32x1xbf16> to vector<512x1xbf16>
    %24 = arith.extf %23 : vector<512x1xbf16> to vector<512x1xf32>
    %25 = vector.extract_strided_slice %3 {offsets = [0, 1, 0], sizes = [1, 1, 8], strides = [1, 1, 1]} : vector<3x3x8xf32> to vector<1x1x8xf32>
    %26 = vector.shape_cast %25 : vector<1x1x8xf32> to vector<8xf32>
    %27 = vector.shape_cast %26 : vector<8xf32> to vector<1x8xf32>
    %28 = vector.broadcast %24 : vector<512x1xf32> to vector<512x8xf32>
    %29 = vector.broadcast %27 : vector<1x8xf32> to vector<512x8xf32>
    %30 = arith.mulf %28, %29 : vector<512x8xf32>
    %31 = arith.addf %17, %30 : vector<512x8xf32>
    %c0_i32_10 = arith.constant 0 : i32
    %32 = arith.addi %c0_i32_10, %0 : i32
    %c0_i32_11 = arith.constant 0 : i32
    %33 = arith.addi %32, %c0_i32_11 : i32
    %c0_12 = arith.constant 0 : index
    %34 = arith.index_cast %33 : i32 to index
    %c2 = arith.constant 2 : index
    %c0_13 = arith.constant 0 : index
    %35 = vector.load %arg2[%c0_12, %34, %c2, %c0_13] : memref<1x18x34x1xbf16, #tpu.memory_space<vmem>>, vector<1x16x32x1xbf16>
    %36 = vector.shape_cast %35 : vector<1x16x32x1xbf16> to vector<16x32x1xbf16>
    %37 = vector.shape_cast %36 : vector<16x32x1xbf16> to vector<512x1xbf16>
    %38 = arith.extf %37 : vector<512x1xbf16> to vector<512x1xf32>
    %39 = vector.extract_strided_slice %3 {offsets = [0, 2, 0], sizes = [1, 1, 8], strides = [1, 1, 1]} : vector<3x3x8xf32> to vector<1x1x8xf32>
    %40 = vector.shape_cast %39 : vector<1x1x8xf32> to vector<8xf32>
    %41 = vector.shape_cast %40 : vector<8xf32> to vector<1x8xf32>
    %42 = vector.broadcast %38 : vector<512x1xf32> to vector<512x8xf32>
    %43 = vector.broadcast %41 : vector<1x8xf32> to vector<512x8xf32>
    %44 = arith.mulf %42, %43 : vector<512x8xf32>
    %45 = arith.addf %31, %44 : vector<512x8xf32>
    %c0_i32_14 = arith.constant 0 : i32
    %46 = arith.addi %c0_i32_14, %0 : i32
    %c1_i32 = arith.constant 1 : i32
    %47 = arith.addi %46, %c1_i32 : i32
    %c0_15 = arith.constant 0 : index
    %48 = arith.index_cast %47 : i32 to index
    %c0_16 = arith.constant 0 : index
    %c0_17 = arith.constant 0 : index
    %49 = vector.load %arg2[%c0_15, %48, %c0_16, %c0_17] : memref<1x18x34x1xbf16, #tpu.memory_space<vmem>>, vector<1x16x32x1xbf16>
    %50 = vector.shape_cast %49 : vector<1x16x32x1xbf16> to vector<16x32x1xbf16>
    %51 = vector.shape_cast %50 : vector<16x32x1xbf16> to vector<512x1xbf16>
    %52 = arith.extf %51 : vector<512x1xbf16> to vector<512x1xf32>
    %53 = vector.extract_strided_slice %3 {offsets = [1, 0, 0], sizes = [1, 1, 8], strides = [1, 1, 1]} : vector<3x3x8xf32> to vector<1x1x8xf32>
    %54 = vector.shape_cast %53 : vector<1x1x8xf32> to vector<8xf32>
    %55 = vector.shape_cast %54 : vector<8xf32> to vector<1x8xf32>
    %56 = vector.broadcast %52 : vector<512x1xf32> to vector<512x8xf32>
    %57 = vector.broadcast %55 : vector<1x8xf32> to vector<512x8xf32>
    %58 = arith.mulf %56, %57 : vector<512x8xf32>
    %59 = arith.addf %45, %58 : vector<512x8xf32>
    %c0_i32_18 = arith.constant 0 : i32
    %60 = arith.addi %c0_i32_18, %0 : i32
    %c1_i32_19 = arith.constant 1 : i32
    %61 = arith.addi %60, %c1_i32_19 : i32
    %c0_20 = arith.constant 0 : index
    %62 = arith.index_cast %61 : i32 to index
    %c1_21 = arith.constant 1 : index
    %c0_22 = arith.constant 0 : index
    %63 = vector.load %arg2[%c0_20, %62, %c1_21, %c0_22] : memref<1x18x34x1xbf16, #tpu.memory_space<vmem>>, vector<1x16x32x1xbf16>
    %64 = vector.shape_cast %63 : vector<1x16x32x1xbf16> to vector<16x32x1xbf16>
    %65 = vector.shape_cast %64 : vector<16x32x1xbf16> to vector<512x1xbf16>
    %66 = arith.extf %65 : vector<512x1xbf16> to vector<512x1xf32>
    %67 = vector.extract_strided_slice %3 {offsets = [1, 1, 0], sizes = [1, 1, 8], strides = [1, 1, 1]} : vector<3x3x8xf32> to vector<1x1x8xf32>
    %68 = vector.shape_cast %67 : vector<1x1x8xf32> to vector<8xf32>
    %69 = vector.shape_cast %68 : vector<8xf32> to vector<1x8xf32>
    %70 = vector.broadcast %66 : vector<512x1xf32> to vector<512x8xf32>
    %71 = vector.broadcast %69 : vector<1x8xf32> to vector<512x8xf32>
    %72 = arith.mulf %70, %71 : vector<512x8xf32>
    %73 = arith.addf %59, %72 : vector<512x8xf32>
    %c0_i32_23 = arith.constant 0 : i32
    %74 = arith.addi %c0_i32_23, %0 : i32
    %c1_i32_24 = arith.constant 1 : i32
    %75 = arith.addi %74, %c1_i32_24 : i32
    %c0_25 = arith.constant 0 : index
    %76 = arith.index_cast %75 : i32 to index
    %c2_26 = arith.constant 2 : index
    %c0_27 = arith.constant 0 : index
    %77 = vector.load %arg2[%c0_25, %76, %c2_26, %c0_27] : memref<1x18x34x1xbf16, #tpu.memory_space<vmem>>, vector<1x16x32x1xbf16>
    %78 = vector.shape_cast %77 : vector<1x16x32x1xbf16> to vector<16x32x1xbf16>
    %79 = vector.shape_cast %78 : vector<16x32x1xbf16> to vector<512x1xbf16>
    %80 = arith.extf %79 : vector<512x1xbf16> to vector<512x1xf32>
    %81 = vector.extract_strided_slice %3 {offsets = [1, 2, 0], sizes = [1, 1, 8], strides = [1, 1, 1]} : vector<3x3x8xf32> to vector<1x1x8xf32>
    %82 = vector.shape_cast %81 : vector<1x1x8xf32> to vector<8xf32>
    %83 = vector.shape_cast %82 : vector<8xf32> to vector<1x8xf32>
    %84 = vector.broadcast %80 : vector<512x1xf32> to vector<512x8xf32>
    %85 = vector.broadcast %83 : vector<1x8xf32> to vector<512x8xf32>
    %86 = arith.mulf %84, %85 : vector<512x8xf32>
    %87 = arith.addf %73, %86 : vector<512x8xf32>
    %c0_i32_28 = arith.constant 0 : i32
    %88 = arith.addi %c0_i32_28, %0 : i32
    %c2_i32 = arith.constant 2 : i32
    %89 = arith.addi %88, %c2_i32 : i32
    %c0_29 = arith.constant 0 : index
    %90 = arith.index_cast %89 : i32 to index
    %c0_30 = arith.constant 0 : index
    %c0_31 = arith.constant 0 : index
    %91 = vector.load %arg2[%c0_29, %90, %c0_30, %c0_31] : memref<1x18x34x1xbf16, #tpu.memory_space<vmem>>, vector<1x16x32x1xbf16>
    %92 = vector.shape_cast %91 : vector<1x16x32x1xbf16> to vector<16x32x1xbf16>
    %93 = vector.shape_cast %92 : vector<16x32x1xbf16> to vector<512x1xbf16>
    %94 = arith.extf %93 : vector<512x1xbf16> to vector<512x1xf32>
    %95 = vector.extract_strided_slice %3 {offsets = [2, 0, 0], sizes = [1, 1, 8], strides = [1, 1, 1]} : vector<3x3x8xf32> to vector<1x1x8xf32>
    %96 = vector.shape_cast %95 : vector<1x1x8xf32> to vector<8xf32>
    %97 = vector.shape_cast %96 : vector<8xf32> to vector<1x8xf32>
    %98 = vector.broadcast %94 : vector<512x1xf32> to vector<512x8xf32>
    %99 = vector.broadcast %97 : vector<1x8xf32> to vector<512x8xf32>
    %100 = arith.mulf %98, %99 : vector<512x8xf32>
    %101 = arith.addf %87, %100 : vector<512x8xf32>
    %c0_i32_32 = arith.constant 0 : i32
    %102 = arith.addi %c0_i32_32, %0 : i32
    %c2_i32_33 = arith.constant 2 : i32
    %103 = arith.addi %102, %c2_i32_33 : i32
    %c0_34 = arith.constant 0 : index
    %104 = arith.index_cast %103 : i32 to index
    %c1_35 = arith.constant 1 : index
    %c0_36 = arith.constant 0 : index
    %105 = vector.load %arg2[%c0_34, %104, %c1_35, %c0_36] : memref<1x18x34x1xbf16, #tpu.memory_space<vmem>>, vector<1x16x32x1xbf16>
    %106 = vector.shape_cast %105 : vector<1x16x32x1xbf16> to vector<16x32x1xbf16>
    %107 = vector.shape_cast %106 : vector<16x32x1xbf16> to vector<512x1xbf16>
    %108 = arith.extf %107 : vector<512x1xbf16> to vector<512x1xf32>
    %109 = vector.extract_strided_slice %3 {offsets = [2, 1, 0], sizes = [1, 1, 8], strides = [1, 1, 1]} : vector<3x3x8xf32> to vector<1x1x8xf32>
    %110 = vector.shape_cast %109 : vector<1x1x8xf32> to vector<8xf32>
    %111 = vector.shape_cast %110 : vector<8xf32> to vector<1x8xf32>
    %112 = vector.broadcast %108 : vector<512x1xf32> to vector<512x8xf32>
    %113 = vector.broadcast %111 : vector<1x8xf32> to vector<512x8xf32>
    %114 = arith.mulf %112, %113 : vector<512x8xf32>
    %115 = arith.addf %101, %114 : vector<512x8xf32>
    %c0_i32_37 = arith.constant 0 : i32
    %116 = arith.addi %c0_i32_37, %0 : i32
    %c2_i32_38 = arith.constant 2 : i32
    %117 = arith.addi %116, %c2_i32_38 : i32
    %c0_39 = arith.constant 0 : index
    %118 = arith.index_cast %117 : i32 to index
    %c2_40 = arith.constant 2 : index
    %c0_41 = arith.constant 0 : index
    %119 = vector.load %arg2[%c0_39, %118, %c2_40, %c0_41] : memref<1x18x34x1xbf16, #tpu.memory_space<vmem>>, vector<1x16x32x1xbf16>
    %120 = vector.shape_cast %119 : vector<1x16x32x1xbf16> to vector<16x32x1xbf16>
    %121 = vector.shape_cast %120 : vector<16x32x1xbf16> to vector<512x1xbf16>
    %122 = arith.extf %121 : vector<512x1xbf16> to vector<512x1xf32>
    %123 = vector.extract_strided_slice %3 {offsets = [2, 2, 0], sizes = [1, 1, 8], strides = [1, 1, 1]} : vector<3x3x8xf32> to vector<1x1x8xf32>
    %124 = vector.shape_cast %123 : vector<1x1x8xf32> to vector<8xf32>
    %125 = vector.shape_cast %124 : vector<8xf32> to vector<1x8xf32>
    %126 = vector.broadcast %122 : vector<512x1xf32> to vector<512x8xf32>
    %127 = vector.broadcast %125 : vector<1x8xf32> to vector<512x8xf32>
    %128 = arith.mulf %126, %127 : vector<512x8xf32>
    %129 = arith.addf %115, %128 : vector<512x8xf32>
    %c0_42 = arith.constant 0 : index
    %c0_43 = arith.constant 0 : index
    %130 = vector.load %arg4[%c0_42, %c0_43] : memref<1x8xf32, #tpu.memory_space<vmem>>, vector<1x8xf32>
    %131 = vector.broadcast %130 : vector<1x8xf32> to vector<512x8xf32>
    %132 = arith.addf %129, %131 : vector<512x8xf32>
    %cst_44 = arith.constant 0.000000e+00 : f32
    %133 = vector.broadcast %cst_44 : f32 to vector<512x8xf32>
    %134 = arith.maximumf %132, %133 : vector<512x8xf32>
    %135 = arith.truncf %134 : vector<512x8xf32> to vector<512x8xbf16>
    %c0_45 = arith.constant 0 : index
    %c0_46 = arith.constant 0 : index
    %c0_47 = arith.constant 0 : index
    %136 = vector.load %arg5[%c0_45, %c0_46, %c0_47] : memref<1x512x8xbf16, #tpu.memory_space<vmem>>, vector<1x512x8xbf16>
    %137 = vector.shape_cast %136 : vector<1x512x8xbf16> to vector<512x8xbf16>
    %138 = vector.shape_cast %135 : vector<512x8xbf16> to vector<1x512x8xbf16>
    tpu.vector_store %arg5[%c0_45, %c0_46, %c0_47], %138 {strides = array<i32>} : memref<1x512x8xbf16, #tpu.memory_space<vmem>>, vector<1x512x8xbf16>,
    return
  }
  func.func @transform_0(%arg0: i32, %arg1: i32) -> (i32, i32, i32, i32) {
    %c0_i32 = arith.constant 0 : i32
    %c0_i32_0 = arith.constant 0 : i32
    %c0_i32_1 = arith.constant 0 : i32
    %c0_i32_2 = arith.constant 0 : i32
    return %arg0, %c0_i32, %c0_i32_0, %c0_i32_1 : i32, i32, i32, i32
  }
  func.func @transform_1(%arg0: i32, %arg1: i32) -> (i32, i32, i32) {
    %c0_i32 = arith.constant 0 : i32
    %c0_i32_0 = arith.constant 0 : i32
    %c0_i32_1 = arith.constant 0 : i32
    %c0_i32_2 = arith.constant 0 : i32
    return %c0_i32, %c0_i32_0, %c0_i32_1 : i32, i32, i32
  }
  func.func @transform_2(%arg0: i32, %arg1: i32) -> (i32, i32) {
    %c0_i32 = arith.constant 0 : i32
    %c0_i32_0 = arith.constant 0 : i32
    %c0_i32_1 = arith.constant 0 : i32
    return %c0_i32, %c0_i32_0 : i32, i32
  }
  func.func @transform_3(%arg0: i32, %arg1: i32) -> (i32, i32, i32) {
    %c0_i32 = arith.constant 0 : i32
    %c0_i32_0 = arith.constant 0 : i32
    return %arg0, %arg1, %c0_i32 : i32, i32, i32
  }
}

</mosaic_0001>

<bundles_post_ra>
// kernel: tpu_custom_call.1
= control target key start
LH: loop header
LB: loop body
LE: loop exit
PB: predicated region body
PF: predicated region fallthrough
CT: control target
= control target key end

     0   :  { %8 = vsyncpa [#allocation3], 0  ;;  %s16990_s0 = inlined_call_operand.hbm [shape: bf16[2,18,34,1], index: 0, kind: input, shape index: {}]   ;;  %s16991_s1 = inlined_call_operand.hbm [shape: bf16[3,3,8], index: 1, kind: input, shape index: {}]   ;;  %s16992_s2 = inlined_call_operand.hbm [shape: f32[1,8], index: 2, kind: input, shape index: {}]   ;;  %s16993_s3 = inlined_call_operand.hbm [shape: bf16[2,512,8], index: 3, kind: output, shape index: {}]  }
   0x1   :  { %10 = vsyncpa [#allocation3 + $0x1], 0 }
   0x2   :  { %11 = vsyncpa [#allocation6], 0 }
   0x3   :  { %12 = vsyncpa [#allocation4], 0 }
   0x4   :  { %14 = vsyncpa [#allocation4 + $0x1], 0  ;;  %s12129_s12 = smov 0   ;;  %s12131_s13 = smov 0  }
   0x5   :  { %s12133_s14 = smov 0   ;;  %s12135_s15 = smov 0  }
   0x6   :  { %s12137_s16 = smov 0   ;;  %s12139_s17 = smov 0  }
   0x7 LB: > { %s9324_s18 = sadd.s32 4294967295, %s12096_s17   ;;  %s9325_s19 = sadd.s32 4294967294, %s12096_s17   ;;  %s12096_s17 = sphi %s12139_s17, %s20_s17   ;;  %s12092_s16 = sphi %s12137_s16, %s17557_s16   ;;  %s12088_s15 = sphi %s12135_s15, %s17556_s15   ;;  %s12084_s14 = sphi %s12133_s14, %s17555_s14   ;;  %s12080_s13 = sphi %s12131_s13, %s17554_s13   ;;  %s12076_s12 = sphi %s12129_s12, %s17553_s12  }
   0x8   : > { %p52_p0 = scmp.ne.s32.totalorder %s12080_s13, %s12076_s12  ;;  %p12163_p1 = scmp.eq.s32.totalorder %s9324_s18, 0 }
   0x9   : > { %p12167_p2 = scmp.eq.s32.totalorder %s9324_s18, 1  ;;  %p126_p3 = scmp.eq.s32.totalorder %s9325_s19, 1 }
   0xa   : > { %s17013_s20 = scalar_select %p12163_p1, 1, 0 }
   0xb   : > { %p12173_p4 = por %p12163_p1, %p52_p0  ;;  %p9326_p5 = scmp.ge.s32.totalorder %s12096_s17, 1 }
   0xc   : > { %p12178_p6 = por %p126_p3, %p52_p0  ;;  %p133_p7 = scmp.lt.s32.totalorder %s12096_s17, 3 }
   0xd   : > { %s17015_s22 = scalar_select %p12173_p4, 1, 0 }
   0xe   : > { %s17016_s23 = scalar_select %p12178_p6, 1, 0 }
   0xf   : > { %p12183_p8 = pnand %p9326_p5, %p133_p7  ;;  %s12098_s25 = smov [#allocation5]  }
  0x10   : > { %s145_s26 = sshll.u32 %s12098_s25, 4  ;;  %s12099_s28 = smov [#allocation7]   ;;  %s12187_s26 = int_to_ptr.vmem [resolvable:$true] %s145_s26 }
  0x11   : > { %p10212_p9 = pneg %p12183_p8  ;;  %s159_s29 = sshll.u32 %s12099_s28, 4  ;;  %s12198_s29 = int_to_ptr.vmem [resolvable:$true] %s159_s29 }
  0x12   : > { %s11924_s5 = scalar_lea.hbm %s16991_s1, 96 }
  0x13   : > { %p12194_p11 = pnand %p10212_p9, %p12163_p1  ;;  %p11925_p12 = scmp.ne.s32.totalorder %s16991_s1, %s11924_s5 }
  0x14   : > { %p11931_p5 = scmp.lt.u32.totalorder %s11924_s5, %s16991_s1 }
  0x15   : > { %p11926_p13 = pneg %p12194_p11 }
  0x17   : > { %p11927_p0 = pnand %p11926_p13, %p11925_p12 }
  0x19   : > { %p11928_p3 = pneg %p11927_p0 }
  0x1b   : > { %p11933_p7 = pnand %p11931_p5, %p11928_p3 }
  0x1d   : > { %11936 = shalt.err (!%p11933_p7)
}
  0x1e   : > { %s11937_s10 = scalar_lea.vmem %s12187_s26, 96  ;;  %p11945_p1 = scmp.lt.s32.totalorder %s12187_s26, %s12187_s26 }
  0x1f   : > { %p11938_p9 = scmp.ne.s32.totalorder %s12187_s26, %s11937_s10  ;;  %p11946_p12 = scmp.lt.s32.totalorder %s11937_s10, %s11937_s10 }
  0x21   : > { %p11940_p10 = pnand %p11938_p9, %p11926_p13  ;;  %p11947_p0 = por %p11946_p12, %p11945_p1 }
  0x23   : > { %p11941_p6 = pneg %p11940_p10 }
  0x25   : > { %p11948_p4 = pnand %p11947_p0, %p11941_p6 }
  0x27   : > { %11951 = shalt.err (!%p11948_p4)
}
  0x28   : > { %s12100_s11 = smov 32   ;;  %s12101_s18 = smov 2  }
  0x29   : > { %10215 = dma.hbm_to_vmem [thread:$0]  (!%p12194_p11), %s16991_s1, 96, %s12187_s26, [#allocation6], %s12100_s11, %s12100_s11, %s12101_s18  }
  0x2a   : > { %s11952_s4 = scalar_lea.hbm %s16992_s2, 16 }
  0x2b   : > { %p11953_p1 = scmp.ne.s32.totalorder %s16992_s2, %s11952_s4  ;;  %p11959_p10 = scmp.lt.u32.totalorder %s11952_s4, %s16992_s2 }
  0x2d   : > { %p11955_p4 = pnand %p11953_p1, %p11926_p13 }
  0x2f   : > { %p11956_p6 = pneg %p11955_p4 }
  0x31   : > { %p11961_p3 = pnand %p11959_p10, %p11956_p6 }
  0x33   : > { %11964 = shalt.err (!%p11961_p3)
}
  0x34   : > { %s11965_s26 = scalar_lea.vmem %s12198_s29, 16  ;;  %s11972_s9 = scalar_lea.vmem %s12198_s29, 32 }
  0x35   : > { %p11966_p5 = scmp.ne.s32.totalorder %s12198_s29, %s11965_s26  ;;  %p11973_p12 = scmp.lt.s32.totalorder %s12198_s29, %s12198_s29 }
  0x36   : > { %p11974_p0 = scmp.lt.s32.totalorder %s11972_s9, %s11965_s26 }
  0x37   : > { %p11968_p7 = pnand %p11966_p5, %p11926_p13 }
  0x38   : > { %p11975_p1 = por %p11974_p0, %p11973_p12 }
  0x39   : > { %p11969_p9 = pneg %p11968_p7 }
  0x3b   : > { %p11976_p4 = pnand %p11975_p1, %p11969_p9 }
  0x3d   : > { %11979 = shalt.err (!%p11976_p4)
}
  0x3e   : > { %10218 = dma.hbm_to_vmem [thread:$0]  (!%p12194_p11), %s16992_s2, 16, %s12198_s29, [#allocation6]  }
  0x3f   : > { %s32_s18 = sadd.s32 1, %s12092_s16  ;;  %s39_s19 = sadd.s32 1, %s12084_s14 }
  0x40   : > { %p34_p13 = scmp.ge.s32.totalorder %s32_s18, 2  ;;  %p46_p6 = scmp.ne.s32.totalorder %s12084_s14, %s12080_s13 }
  0x41   : > { %p47_p10 = scmp.eq.s32.totalorder %s12096_s17, 0  ;;  %p10229_p3 = scmp.lt.s32.totalorder %s12096_s17, 2 }
  0x42   : > { %s17559_s18 = smov (%p34_p13, %s32_s18), 0  ;;  %p12263_p7 = por %p12167_p2, %p46_p6 }
  0x43   : > { %p48_p5 = por %p47_p10, %p46_p6  ;;  %s36_s25 = ssub.s32 %s12092_s16, %s17559_s18 }
  0x44   : > { %s17019_s27 = scalar_select %p12263_p7, 1, 0 }
  0x45   : > { %s170_s28 = sand.u32 1, %s12084_s14   ;;  %p37_p9 = scmp.eq.s32.totalorder %s36_s25, 0 }
  0x46   : > { %s10197_s29 = smul.u32 360, %s170_s28  ;;  %p12270_p11 = pnand %p10229_p3, %p48_p5 }
  0x47   : > { %s12275_s4 = scalar_select %p37_p9, %s12084_s14, %s39_s19  }
  0x48   : > { %s10198_s5 = smul.u32 5760, %s12092_s16  ;;  %s174_s6 = scalar_lea.vmem [#allocation2], %s10197_s29 }
  0x49   : > { %s181_s7 = sshll.u32 %s174_s6, 4  ;;  %s12285_s9 = scalar_lea.sflag [#allocation3], %s170_s28  ;;  %s12283_s7 = int_to_ptr.vmem [resolvable:$true] %s181_s7 }
  0x4a   : > { %s12281_s26 = scalar_lea.hbm %s16990_s0, %s10198_s5  ;;  %p11982_p12 = pneg %p12270_p11 }
  0x4b   : > { %s11980_s10 = scalar_lea.hbm %s12281_s26, 5760  ;;  %s11985_s25 = scalar_lea.hbm %s16990_s0, 11520 }
  0x4c   : > { %p11981_p2 = scmp.ne.s32.totalorder %s12281_s26, %s11980_s10  ;;  %p11986_p4 = scmp.lt.u32.totalorder %s12281_s26, %s16990_s0 }
  0x4d   : > { %p11987_p13 = scmp.lt.u32.totalorder %s11985_s25, %s11980_s10  ;;  %p11989_p10 = scmp.lt.u32.totalorder %s11980_s10, %s12281_s26 }
  0x4e   : > { %p11983_p0 = pnand %p11982_p12, %p11981_p2 }
  0x4f   : > { %p11988_p6 = por %p11987_p13, %p11986_p4 }
  0x50   : > { %p11984_p1 = pneg %p11983_p0 }
  0x51   : > { %p11990_p3 = por %p11989_p10, %p11988_p6 }
  0x53   : > { %p11991_p5 = pnand %p11990_p3, %p11984_p1 }
  0x55   : > { %11994 = shalt.err (!%p11991_p5)
}
  0x56   : > { %s11995_s28 = scalar_lea.vmem %s12283_s7, 5760  ;;  %s12102_s6 = smov [#allocation2]  }
  0x57   : > { %p11996_p9 = scmp.ne.s32.totalorder %s12283_s7, %s11995_s28  ;;  %s12000_s21 = sshll.u32 %s12102_s6, 4  ;;  %s12001_s21 = int_to_ptr.vmem [resolvable:$false] %s12000_s21 }
  0x58   : > { %s12002_s8 = scalar_lea.vmem %s12001_s21, 11520  ;;  %p12003_p7 = scmp.lt.s32.totalorder %s12283_s7, %s12001_s21 }
  0x59   : > { %p11998_p2 = pnand %p11996_p9, %p11982_p12  ;;  %p12004_p4 = scmp.lt.s32.totalorder %s12002_s8, %s11995_s28 }
  0x5b   : > { %p11999_p0 = pneg %p11998_p2  ;;  %p12005_p13 = por %p12004_p4, %p12003_p7 }
  0x5d   : > { %p12006_p6 = pnand %p12005_p13, %p11999_p0 }
  0x5f   : > { %12009 = shalt.err (!%p12006_p6)
}
  0x60   : > { %s12103_s10 = smov 64   ;;  %s12104_s11 = smov 4  }
  0x61   : > { %10222 = dma.hbm_to_vmem [thread:$0]  (!%p12270_p11), %s12281_s26, 5760, %s12283_s7, %s12285_s9, %s12103_s10, %s12103_s10, %s12104_s11  }
  0x62   : > { %193 = sbr.rel (%p12183_p8) target bundleno = 1324 (0x52c), region = 32 }
  0x69   : > { %s12316_s19 = sand.u32 1, %s12080_s13   ;;  %p17021_p7 = scmp.ne.s32.totalorder %s17015_s22, 0 }
  0x6a   : > { %s10199_s25 = smul.u32 360, %s12316_s19  ;;  %s196_s29 = scalar_lea.sflag [#allocation3], %s12316_s19 }
  0x6c   : > { %s12320_s5 = scalar_lea.vmem [#allocation2], %s10199_s25 }
  0x6d   : > { %12063 = dma.done.wait (%p17021_p7), %s196_s29, 5760  }
  0x6e   : > { %12065 = vsyncadd (%p17021_p7), %s196_s29, 4294961536  ;;  %p17022_p11 = scmp.ne.s32.totalorder %s17013_s20, 0 }
  0x70   : > { %12067 = dma.done.wait (%p17022_p11), [#allocation6], 112  }
  0x71   : > { %12069 = vsyncadd (%p17022_p11), [#allocation6], 4294967184  ;;  %v12105_v0 = vmov 0   ;;  %v245_v1 = vld [vmem:[%s12320_s5 + $0x14] ss:$12 sps:$4 sm:$0xff]   ;;  %v10127_v2 = vld [vmem:[%s12320_s5 + $0x18] sm:$0xff]  }
  0x72   : > { %10301 = vset.pattern.permute.xlu1 %v12105_v0  ;;  %10290 = vset.pattern.permute.xlu0 %v12105_v0  ;;  %v9839_v3 = vld [vmem:[%s12320_s5] sm:$0xff]   ;;  %v9848_v4 = vunpack.c.l.bf16 %v10127_v2  ;;  %v9849_v5 = vunpack.c.h.bf16 %v10127_v2  ;;  %v309_v6 = vunpack.c.l.bf16 %v245_v1  ;;  %v10126_v8 = vld [vmem:[%s12320_s5 + $0x8] sm:$0xff]   ;;  %v10129_v9 = vld [vmem:[%s12320_s5 + $0x30] sm:$0xff]   ;;  %v312_v12 = vunpack.c.h.bf16 %v245_v1  ;;  %s9334_s20 = sshll.u32 %s12316_s19, 8  ;;  %s9837_s24 = sshll.u32 %s12088_s15, 12 }
  0x73   : > { %v9840_v7 = vunpack.c.l.bf16 %v9839_v3  ;;  %v10128_v10 = vld [vmem:[%s12320_s5 + $0x28] sm:$0xff]   ;;  %v9841_v11 = vunpack.c.h.bf16 %v9839_v3  ;;  %v9844_v13 = vunpack.c.l.bf16 %v10126_v8  ;;  %v9845_v14 = vunpack.c.h.bf16 %v10126_v8  ;;  %v10130_v15 = vld [vmem:[%s12320_s5 + $0x40] sm:$0xff]   ;;  %v10132_v21 = vld [vmem:[%s12320_s5 + $0x58] sm:$0xff]   ;;  %s16636_s22 = scalar_lea.vmem [#allocation8], %s9334_s20  ;;  %s16935_s26 = scalar_lea.hbm %s16993_s3, %s9837_s24 }
  0x74   : > { %v256_v16 = vld [vmem:[%s12320_s5 + $0x3c] ss:$12 sps:$4 sm:$0xff]   ;;  %v10302_v17 = vpack.i.bf16 %v9848_v4, %v309_v6  ;;  %v9856_v18 = vunpack.c.l.bf16 %v10129_v9  ;;  %v9857_v19 = vunpack.c.h.bf16 %v10129_v9  ;;  %v9852_v20 = vunpack.c.l.bf16 %v10128_v10  ;;  %v10131_v26 = vld [vmem:[%s12320_s5 + $0x50] sm:$0xff]   ;;  %v10135_v37 = vld [vmem:[%s12320_s5 + $0x80] sm:$0xff]   ;;  %s9211_s30 = sshll.u32 %s16636_s22, 4  ;;  %s9196_s9 = scalar_lea.sflag [#allocation4], %s12316_s19  ;;  %s16937_s30 = int_to_ptr.vmem [resolvable:$true] %s9211_s30 }
  0x75   : > { %v10291_v22 = vpack.i.bf16 %v9841_v11, %v9840_v7  ;;  %v10307_v23 = vpack.i.bf16 %v312_v12, %v9849_v5  ;;  %v10296_v24 = vpack.i.bf16 %v9845_v14, %v9844_v13  ;;  %v9853_v25 = vunpack.c.h.bf16 %v10128_v10  ;;  %v10133_v27 = vld [vmem:[%s12320_s5 + $0x68] sm:$0xff]   ;;  %v264_v32 = vld [vmem:[%s12320_s5 + $0x64] ss:$12 sps:$4 sm:$0xff]   ;;  %v10134_v42 = vld [vmem:[%s12320_s5 + $0x78] sm:$0xff]   ;;  %s12010_s28 = scalar_lea.vmem %s16937_s30, 4096  ;;  %p17550_p12 = scmp.ne.s32.totalorder %s17019_s27, 0 }
  0x76   : > { %10303 = vperm.xlu1 %10301, %v10302_v17   ;;  %v10317_v28 = vpack.i.bf16 %v9857_v19, %v9856_v18  ;;  %v9861_v29 = vunpack.c.h.bf16 %v10130_v15  ;;  %v320_v30 = vunpack.c.h.bf16 %v256_v16  ;;  %v9860_v31 = vunpack.c.l.bf16 %v10130_v15  ;;  %v10136_v43 = vld [vmem:[%s12320_s5 + $0x90] sm:$0xff]   ;;  %v272_v48 = vld [vmem:[%s12320_s5 + $0x8c] ss:$12 sps:$4 sm:$0xff]   ;;  %v10137_v58 = vld [vmem:[%s12320_s5 + $0xa0] sm:$0xff]   ;;  %p12011_p8 = scmp.ne.s32.totalorder %s16937_s30, %s12010_s28  ;;  %s12106_s6 = smov [#allocation8]  }
  0x77   : > { %10292 = vperm.xlu0 %10290, %v10291_v22   ;;  %v10312_v33 = vpack.i.bf16 %v9853_v25, %v9852_v20  ;;  %v317_v34 = vunpack.c.l.bf16 %v256_v16  ;;  %v9868_v35 = vunpack.c.l.bf16 %v10132_v21  ;;  %v9869_v36 = vunpack.c.h.bf16 %v10132_v21  ;;  %v10138_v53 = vld [vmem:[%s12320_s5 + $0xa8] sm:$0xff]   ;;  %v10139_v59 = vld [vmem:[%s12320_s5 + $0xb8] sm:$0xff]   ;;  %v280_v0 = vld [vmem:[%s12320_s5 + $0xb4] ss:$12 sps:$4 sm:$0xff]   ;;  %s12014_s21 = sshll.u32 %s12106_s6, 4  ;;  %s12015_s21 = int_to_ptr.vmem [resolvable:$false] %s12014_s21 }
  0x78   : > { %v10327_v38 = vpack.i.bf16 %v320_v30, %v9861_v29  ;;  %v9864_v39 = vunpack.c.l.bf16 %v10131_v26  ;;  %v9865_v40 = vunpack.c.h.bf16 %v10131_v26  ;;  %v9873_v41 = vunpack.c.h.bf16 %v10133_v27  ;;  %v10141_v5 = vld [vmem:[%s12320_s5 + $0xd0] sm:$0xff]   ;;  %v10140_v10 = vld [vmem:[%s12320_s5 + $0xc8] sm:$0xff]   ;;  %v10142_v11 = vld [vmem:[%s12320_s5 + $0xe0] sm:$0xff]   ;;  %p12012_p1 = pnand %p12011_p8, %p17550_p12  ;;  %s12016_s8 = scalar_lea.vmem %s12015_s21, 8192 }
  0x79   : > { %v10322_v44 = vpack.i.bf16 %v9860_v31, %v317_v34  ;;  %v12345_v45 = vpack.i.bf16 %v9869_v36, %v9868_v35  ;;  %v328_v46 = vunpack.c.h.bf16 %v264_v32  ;;  %v9872_v47 = vunpack.c.l.bf16 %v10133_v27  ;;  %v288_v16 = vld [vmem:[%s12320_s5 + $0xdc] ss:$12 sps:$4 sm:$0xff]   ;;  %v10143_v26 = vld [vmem:[%s12320_s5 + $0xf0] sm:$0xff]   ;;  %p12017_p3 = scmp.lt.s32.totalorder %s16937_s30, %s12015_s21  ;;  %p12018_p5 = scmp.lt.s32.totalorder %s12016_s8, %s12010_s28 }
  0x7a   : > { %10308 = vperm.xlu1 %10301, %v10307_v23   ;;  %v12348_v49 = vpack.i.bf16 %v9865_v40, %v9864_v39  ;;  %v325_v50 = vunpack.c.l.bf16 %v264_v32  ;;  %v9880_v51 = vunpack.c.l.bf16 %v10135_v37  ;;  %v9881_v52 = vunpack.c.h.bf16 %v10135_v37  ;;  %v10144_v21 = vld [vmem:[%s12320_s5 + $0xf8] sm:$0xff]   ;;  %v10145_v27 = vld [vmem:[%s12320_s5 + $0x108] sm:$0xff]   ;;  %v296_v32 = vld [vmem:[%s12320_s5 + $0x104] ss:$12 sps:$4 sm:$0xff]   ;;  %p12013_p10 = pneg %p12012_p1 }
  0x7b   : > { %10297 = vperm.xlu0 %10290, %v10296_v24   ;;  %v12351_v54 = vpack.i.bf16 %v328_v46, %v9873_v41  ;;  %v9876_v55 = vunpack.c.l.bf16 %v10134_v42  ;;  %v9877_v56 = vunpack.c.h.bf16 %v10134_v42  ;;  %v9885_v57 = vunpack.c.h.bf16 %v10136_v43  ;;  %v10147_v37 = vld [vmem:[%s12320_s5 + $0x120] sm:$0xff]   ;;  %v10146_v42 = vld [vmem:[%s12320_s5 + $0x118] sm:$0xff]   ;;  %p12019_p9 = por %p12018_p5, %p12017_p3 }
  0x7c   : > { %v12355_v60 = vpack.i.bf16 %v9872_v47, %v325_v50  ;;  %v12357_v61 = vpack.i.bf16 %v9881_v52, %v9880_v51  ;;  %v336_v62 = vunpack.c.h.bf16 %v272_v48  ;;  %v9884_v63 = vunpack.c.l.bf16 %v10136_v43  ;;  %v10148_v43 = vld [vmem:[%s12320_s5 + $0x130] sm:$0xff]   ;;  %v304_v50 = vld [vmem:[%s12320_s5 + $0x12c] ss:$12 sps:$4 sm:$0xff]  }
  0x7d   : > { %v12360_v1 = vpack.i.bf16 %v9877_v56, %v9876_v55  ;;  %v333_v2 = vunpack.c.l.bf16 %v272_v48  ;;  %v9892_v3 = vunpack.c.l.bf16 %v10138_v53  ;;  %v9893_v4 = vunpack.c.h.bf16 %v10138_v53  ;;  %v823_v56 = vld [vmem:[%s12320_s5 + $0x8] sm:$0xf]  ;;  %p12020_p2 = pnand %p12019_p9, %p12013_p10 }
  0x7e   : > { %10318 = vperm.xlu1 %10301, %v10317_v28   ;;  %v12363_v6 = vpack.i.bf16 %v336_v62, %v9885_v57  ;;  %v9888_v7 = vunpack.c.l.bf16 %v10137_v58  ;;  %v9889_v8 = vunpack.c.h.bf16 %v10137_v58  ;;  %v9897_v9 = vunpack.c.h.bf16 %v10139_v59 }
  0x7f   : > { %10313 = vperm.xlu0 %10290, %v10312_v33   ;;  %v12367_v12 = vpack.i.bf16 %v9884_v63, %v333_v2  ;;  %v12369_v13 = vpack.i.bf16 %v9893_v4, %v9892_v3  ;;  %v344_v14 = vunpack.c.h.bf16 %v280_v0  ;;  %v9896_v15 = vunpack.c.l.bf16 %v10139_v59  ;;  %v824_v63 = vld [vmem:[%s12320_s5 + $0xc] sm:$0xf] }
  0x80   : > { %v12372_v17 = vpack.i.bf16 %v9889_v8, %v9888_v7  ;;  %v341_v18 = vunpack.c.l.bf16 %v280_v0  ;;  %v9904_v19 = vunpack.c.l.bf16 %v10141_v5  ;;  %v9905_v20 = vunpack.c.h.bf16 %v10141_v5  ;;  %v825_v0 = vld [vmem:[%s12320_s5 + $0x10] sm:$0x1]  ;;  %v821_v5 = vld [vmem:[%s12320_s5] sm:$0xf] }
  0x81   : > { %v12375_v22 = vpack.i.bf16 %v344_v14, %v9897_v9  ;;  %v9900_v23 = vunpack.c.l.bf16 %v10140_v10  ;;  %v9901_v24 = vunpack.c.h.bf16 %v10140_v10  ;;  %v9909_v25 = vunpack.c.h.bf16 %v10142_v11 }
  0x82   : > { %10328 = vperm.xlu1 %10301, %v10327_v38   ;;  %v12379_v28 = vpack.i.bf16 %v9896_v15, %v341_v18  ;;  %v12381_v29 = vpack.i.bf16 %v9905_v20, %v9904_v19  ;;  %v352_v30 = vunpack.c.h.bf16 %v288_v16  ;;  %v9908_v31 = vunpack.c.l.bf16 %v10142_v11 }
  0x83   : > { %10323 = vperm.xlu0 %10290, %v10322_v44   ;;  %v12384_v33 = vpack.i.bf16 %v9901_v24, %v9900_v23  ;;  %v349_v34 = vunpack.c.l.bf16 %v288_v16  ;;  %v9916_v35 = vunpack.c.l.bf16 %v10144_v21  ;;  %v9917_v36 = vunpack.c.h.bf16 %v10144_v21  ;;  %v822_v16 = vld [vmem:[%s12320_s5 + $0x4] sm:$0xf]  ;;  %v828_v23 = vld [vmem:[%s12320_s5 + $0x1c] sm:$0xf] }
  0x84   : > { %vm901_vm0 = vsmask.f32 3328  ;;  %vm902_vm1 = vsmask.f32 7440  ;;  %v12387_v38 = vpack.i.bf16 %v352_v30, %v9909_v25  ;;  %v9912_v39 = vunpack.c.l.bf16 %v10143_v26 }
  0x85   : > { %v9913_v40 = vunpack.c.h.bf16 %v10143_v26  ;;  %v9921_v41 = vunpack.c.h.bf16 %v10145_v27  ;;  %v12391_v46 = vpack.i.bf16 %v9908_v31, %v349_v34  ;;  %v12393_v44 = vpack.i.bf16 %v9917_v36, %v9916_v35  ;;  %vm12424_vm2 = vmor %vm901_vm0, %vm902_vm1 }
  0x86   : > { %v360_v47 = vunpack.c.h.bf16 %v296_v32  ;;  %v9920_v48 = vunpack.c.l.bf16 %v10145_v27  ;;  %10338 = vperm.xlu1 %10301, %v12345_v45   ;;  %v357_v52 = vunpack.c.l.bf16 %v296_v32  ;;  %v9928_v53 = vunpack.c.l.bf16 %v10147_v37 }
  0x87   : > { %v12397_v51 = vpack.i.bf16 %v9913_v40, %v9912_v39  ;;  %v9929_v55 = vunpack.c.h.bf16 %v10147_v37  ;;  %10333 = vperm.xlu0 %10290, %v12348_v49   ;;  %v9924_v58 = vunpack.c.l.bf16 %v10146_v42  ;;  %v9925_v59 = vunpack.c.h.bf16 %v10146_v42 }
  0x88   : > { %v12401_v57 = vpack.i.bf16 %v360_v47, %v9921_v41  ;;  %v9933_v62 = vunpack.c.h.bf16 %v10148_v43  ;;  %v12405_v2 = vpack.i.bf16 %v9920_v48, %v357_v52  ;;  %v368_v3 = vunpack.c.h.bf16 %v304_v50 }
  0x89   : > { %v12407_v45 = vpack.i.bf16 %v9929_v55, %v9928_v53  ;;  %v9932_v4 = vunpack.c.l.bf16 %v10148_v43  ;;  %v12410_v7 = vpack.i.bf16 %v9925_v59, %v9924_v58  ;;  %v365_v8 = vunpack.c.l.bf16 %v304_v50  ;;  %v826_v59 = vld [vmem:[%s12320_s5 + $0x14] sm:$0xf] }
  0x8a   : > { %v924_v49 = vshll.u32 %v823_v56, 16  ;;  %v928_v9 = vshrl.u32 %v823_v56, 16  ;;  %10348 = vperm.xlu1 %10301, %v12351_v54   ;;  %v12413_v10 = vpack.i.bf16 %v368_v3, %v9933_v62  ;;  %v934_v11 = vshll.u32 %v824_v63, 16  ;;  %v829_v54 = vld [vmem:[%s12320_s5 + $0x20] sm:$0xf] }
  0x8b   : > { %v938_v14 = vshrl.u32 %v824_v63, 16  ;;  %v944_v15 = vshll.u32 %v825_v0, 16  ;;  %10343 = vperm.xlu0 %10290, %v12355_v60   ;;  %v12417_v18 = vpack.i.bf16 %v9932_v4, %v365_v8  ;;  %v905_v21 = vshrl.u32 %v821_v5, 16 }
  0x8c   : > { %v926_v19 = vrot.slane %v924_v49, 5  ;;  %v930_v20 = vrot.slane %v928_v9, 4  ;;  %v936_v24 = vrot.slane %v934_v11, 5  ;;  %v908_v27 = vshll.u32 %v821_v5, 16  ;;  %v827_v9 = vld [vmem:[%s12320_s5 + $0x18] sm:$0xf] }
  0x8d   : > { %v940_v25 = vrot.slane %v938_v14, 4  ;;  %v946_v26 = vrot.slane %v944_v15, 5  ;;  %v907_v31 = vrot.slane %v905_v21, 4  ;;  %v914_v32 = vshll.u32 %v822_v16, 16  ;;  %v833_v21 = vld [vmem:[%s12320_s5 + $0x30] sm:$0xf] }
  0x8e   : > { %v931_v30 = vor.u32 %v930_v20, %v926_v19  ;;  %v918_v34 = vshrl.u32 %v822_v16, 16  ;;  %10358 = vperm.xlu1 %10301, %v12357_v61   ;;  %v17023_v60 = vmov 0  ;;  %v910_v36 = vrot.slane %v908_v27, 5  ;;  %v830_v61 = vld [vmem:[%s12320_s5 + $0x24] sm:$0x1] }
  0x8f   : > { %v17024_v60 = vsel %vm12424_vm2, 4294967295, %v17023_v60  ;;  %v941_v35 = vor.u32 %v940_v25, %v936_v24  ;;  %v968_v37 = vshll.u32 %v828_v23, 16  ;;  %v972_v39 = vshrl.u32 %v828_v23, 16  ;;  %10353 = vperm.xlu0 %10290, %v12360_v1   ;;  %v834_v27 = vld [vmem:[%s12320_s5 + $0x34] sm:$0xf] }
  0x90   : > { %17025 = vst [vmem:[#allocation12_spill] sm:$0xff] %v17024_v60  ;;  %v932_v40 = vrot.slane %v931_v30, 4  ;;  %v916_v41 = vrot.slane %v914_v32, 5  ;;  %v920_v42 = vrot.slane %v918_v34, 4  ;;  %v978_v43 = vshll.u32 %v829_v54, 16 }
  0x91   : > { %v942_v47 = vrot.slane %v941_v35, 4  ;;  %v911_v48 = vor.u32 %v910_v36, %v907_v31  ;;  %v12430_v50 = vrot.slane %v968_v37, 5  ;;  %v974_v52 = vrot.slane %v972_v39, 4  ;;  %v835_v34 = vld [vmem:[%s12320_s5 + $0x38] sm:$0x1] }
  0x92   : > { %v937_v53 = vsel %vm12424_vm2, %v932_v40, %v936_v24  ;;  %v921_v55 = vor.u32 %v920_v42, %v916_v41  ;;  %v980_v56 = vrot.slane %v978_v43, 5  ;;  %v982_v58 = vshrl.u32 %v829_v54, 16  ;;  %10368 = vperm.xlu1 %10301, %v12363_v6   ;;  %v11766_v60 = vld [vmem:[%s12320_s5 + $0xb0] sm:$0x1] }
  0x93   : > { %v947_v1 = vsel %vm12424_vm2, %v942_v47, %v946_v26  ;;  %v12438_v62 = vunpack.c.l.bf16 %v937_v53  ;;  %v912_v63 = vrot.slane %v911_v48, 4  ;;  %v975_v0 = vor.u32 %v974_v52, %v12430_v50  ;;  %10363 = vperm.xlu0 %10290, %v12367_v12  }
  0x94   : > { %v12442_v3 = vunpack.c.l.bf16 %v947_v1  ;;  %v922_v4 = vrot.slane %v921_v55, 4  ;;  %v984_v5 = vrot.slane %v982_v58, 4  ;;  %v988_v8 = vshll.u32 %v830_v61, 16 }
  0x95   : > { %v917_v6 = vsel %vm12424_vm2, %v912_v63, %v916_v41  ;;  %v976_v49 = vrot.slane %v975_v0, 4  ;;  %v949_v11 = vshrl.u32 %v826_v59, 16  ;;  %v952_v14 = vshll.u32 %v826_v59, 16 }
  0x96   : > { %v10457_v15 = vpack.i.bf16 %v12442_v3, %v12438_v62  ;;  %v927_v16 = vsel %vm12424_vm2, %v922_v4, %v926_v19  ;;  %v12451_v12 = vunpack.c.l.bf16 %v917_v6  ;;  %v985_v20 = vor.u32 %v984_v5, %v980_v56  ;;  %10378 = vperm.xlu1 %10301, %v12369_v13  }
  0x97   : > { %v12455_v23 = vunpack.c.l.bf16 %v927_v16  ;;  %v981_v24 = vsel %vm12424_vm2, %v976_v49, %v980_v56  ;;  %v990_v25 = vrot.slane %v988_v8, 5  ;;  %v951_v26 = vrot.slane %v949_v11, 4  ;;  %10373 = vperm.xlu0 %10290, %v12372_v17   ;;  %v831_v17 = vld [vmem:[%s12320_s5 + $0x28] sm:$0xf] }
  0x98   : > { %v986_v54 = vrot.slane %v985_v20, 4  ;;  %v12461_v19 = vunpack.c.l.bf16 %v981_v24  ;;  %v954_v30 = vrot.slane %v952_v14, 5  ;;  %v958_v31 = vshll.u32 %v827_v9, 16  ;;  %v839_v24 = vld [vmem:[%s12320_s5 + $0x48] sm:$0xf] }
  0x99   : > { %v10452_v32 = vpack.i.bf16 %v12455_v23, %v12451_v12  ;;  %v962_v13 = vshrl.u32 %v827_v9, 16  ;;  %v1012_v35 = vshll.u32 %v833_v21, 16  ;;  %v1016_v36 = vshrl.u32 %v833_v21, 16 }
  0x9a   : > { %v991_v37 = vsel %vm12424_vm2, %v986_v54, %v990_v25  ;;  %v955_v39 = vor.u32 %v954_v30, %v951_v26  ;;  %v960_v40 = vrot.slane %v958_v31, 5  ;;  %v1022_v41 = vshll.u32 %v834_v27, 16  ;;  %10388 = vperm.xlu1 %10301, %v12375_v22   ;;  %v832_v22 = vld [vmem:[%s12320_s5 + $0x2c] sm:$0xf] }
  0x9b   : > { %v12470_v42 = vunpack.c.l.bf16 %v991_v37  ;;  %v964_v43 = vrot.slane %v962_v13, 4  ;;  %v12472_v47 = vrot.slane %v1012_v35, 5  ;;  %v1018_v48 = vrot.slane %v1016_v36, 4  ;;  %10383 = vperm.xlu0 %10290, %v12379_v28   ;;  %v838_v28 = vld [vmem:[%s12320_s5 + $0x44] sm:$0xf] }
  0x9c   : > { %v956_v61 = vrot.slane %v955_v39, 4  ;;  %v1024_v52 = vrot.slane %v1022_v41, 5  ;;  %v1026_v53 = vshrl.u32 %v834_v27, 16  ;;  %v1032_v55 = vshll.u32 %v835_v34, 16  ;;  %v840_v31 = vld [vmem:[%s12320_s5 + $0x4c] sm:$0x1] }
  0x9d   : > { %v10467_v56 = vpack.i.bf16 %v12470_v42, %v12461_v19  ;;  %v965_v58 = vor.u32 %v964_v43, %v960_v40  ;;  %v1019_v59 = vor.u32 %v1018_v48, %v12472_v47  ;;  %v993_v1 = vshrl.u32 %v831_v17, 16  ;;  %v836_v36 = vld [vmem:[%s12320_s5 + $0x3c] sm:$0xf] }
  0x9e   : > { %v961_v63 = vsel %vm12424_vm2, %v956_v61, %v960_v40  ;;  %v1028_v0 = vrot.slane %v1026_v53, 4  ;;  %v1034_v4 = vrot.slane %v1032_v55, 5  ;;  %v996_v5 = vshll.u32 %v831_v17, 16  ;;  %10398 = vperm.xlu1 %10301, %v12381_v29   ;;  %v837_v53 = vld [vmem:[%s12320_s5 + $0x40] sm:$0xf] }
  0x9f   : > { %v966_v8 = vrot.slane %v965_v58, 4  ;;  %v12483_v6 = vunpack.c.l.bf16 %v961_v63  ;;  %v1020_v49 = vrot.slane %v1019_v59, 4  ;;  %v995_v9 = vrot.slane %v993_v1, 4  ;;  %10393 = vperm.xlu0 %10290, %v12384_v33  }
  0xa0   : > { %v1029_v11 = vor.u32 %v1028_v0, %v1024_v52  ;;  %v998_v14 = vrot.slane %v996_v5, 5  ;;  %v1002_v16 = vshll.u32 %v832_v22, 16  ;;  %v1006_v20 = vshrl.u32 %v832_v22, 16 }
  0xa1   : > { %v971_v21 = vsel %vm12424_vm2, %v966_v8, %v12430_v50  ;;  %v1025_v29 = vsel %vm12424_vm2, %v1020_v49, %v1024_v52  ;;  %v1056_v25 = vshll.u32 %v838_v28, 16  ;;  %v1060_v26 = vshrl.u32 %v838_v28, 16  ;;  %v843_v28 = vld [vmem:[%s12320_s5 + $0x58] sm:$0xf] }
  0xa2   : > { %v12492_v27 = vunpack.c.l.bf16 %v971_v21  ;;  %v1030_v54 = vrot.slane %v1029_v11, 4  ;;  %v12494_v30 = vunpack.c.l.bf16 %v1025_v29  ;;  %v999_v33 = vor.u32 %v998_v14, %v995_v9  ;;  %10408 = vperm.xlu1 %10301, %v12387_v38   ;;  %v844_v11 = vld [vmem:[%s12320_s5 + $0x5c] sm:$0xf] }
  0xa3   : > { %v1004_v13 = vrot.slane %v1002_v16, 5  ;;  %v1008_v34 = vrot.slane %v1006_v20, 4  ;;  %v12498_v35 = vrot.slane %v1056_v25, 5  ;;  %v1062_v50 = vrot.slane %v1060_v26, 4  ;;  %10403 = vperm.xlu0 %10290, %v12391_v46  }
  0xa4   : > { %v10462_v37 = vpack.i.bf16 %v12492_v27, %v12483_v6  ;;  %v1035_v39 = vsel %vm12424_vm2, %v1030_v54, %v1034_v4  ;;  %v1000_v40 = vrot.slane %v999_v33, 4  ;;  %v1066_v41 = vshll.u32 %v839_v24, 16 }
  0xa5   : > { %v12506_v17 = vunpack.c.l.bf16 %v1035_v39  ;;  %v1009_v38 = vor.u32 %v1008_v34, %v1004_v13  ;;  %v1063_v43 = vor.u32 %v1062_v50, %v12498_v35  ;;  %v1070_v48 = vshrl.u32 %v839_v24, 16  ;;  %v845_v24 = vld [vmem:[%s12320_s5 + $0x60] sm:$0x1] }
  0xa6   : > { %v1005_v61 = vsel %vm12424_vm2, %v1000_v40, %v1004_v13  ;;  %v1068_v52 = vrot.slane %v1066_v41, 5  ;;  %v1076_v46 = vshll.u32 %v840_v31, 16  ;;  %v1037_v55 = vshrl.u32 %v836_v36, 16  ;;  %10418 = vperm.xlu1 %10301, %v12393_v44  }
  0xa7   : > { %v10477_v58 = vpack.i.bf16 %v12506_v17, %v12494_v30  ;;  %v1010_v59 = vrot.slane %v1009_v38, 4  ;;  %v12515_v22 = vunpack.c.l.bf16 %v1005_v61  ;;  %v1064_v1 = vrot.slane %v1063_v43, 4  ;;  %10413 = vperm.xlu0 %10290, %v12397_v51   ;;  %v852_v17 = vld [vmem:[%s12320_s5 + $0x7c] sm:$0xf] }
  0xa8   : > { %v1072_v63 = vrot.slane %v1070_v48, 4  ;;  %v1078_v0 = vrot.slane %v1076_v46, 5  ;;  %v1039_v4 = vrot.slane %v1037_v55, 4  ;;  %v1040_v5 = vshll.u32 %v836_v36, 16 }
  0xa9   : > { %v1015_v8 = vsel %vm12424_vm2, %v1010_v59, %v12472_v47  ;;  %v1069_v44 = vsel %vm12424_vm2, %v1064_v1, %v1068_v52  ;;  %v1046_v49 = vshll.u32 %v837_v53, 16  ;;  %v1050_v9 = vshrl.u32 %v837_v53, 16  ;;  %v848_v1 = vld [vmem:[%s12320_s5 + $0x6c] sm:$0xf] }
  0xaa   : > { %v12525_v14 = vunpack.c.l.bf16 %v1015_v8  ;;  %v1073_v16 = vor.u32 %v1072_v63, %v1068_v52  ;;  %v12527_v51 = vunpack.c.l.bf16 %v1069_v44  ;;  %v1042_v20 = vrot.slane %v1040_v5, 5  ;;  %10428 = vperm.xlu1 %10301, %v12401_v57   ;;  %v841_v57 = vld [vmem:[%s12320_s5 + $0x50] sm:$0xf]  ;;  %v842_v52 = vld [vmem:[%s12320_s5 + $0x54] sm:$0xf] }
  0xab   : > { %v1048_v21 = vrot.slane %v1046_v49, 5  ;;  %v1052_v29 = vrot.slane %v1050_v9, 4  ;;  %v1100_v25 = vshll.u32 %v843_v28, 16  ;;  %v1104_v47 = vshrl.u32 %v843_v28, 16  ;;  %10423 = vperm.xlu0 %10290, %v12405_v2  }
  0xac   : > { %v10472_v26 = vpack.i.bf16 %v12525_v14, %v12515_v22  ;;  %v1074_v54 = vrot.slane %v1073_v16, 4  ;;  %v1043_v33 = vor.u32 %v1042_v20, %v1039_v4  ;;  %v1110_v31 = vshll.u32 %v844_v11, 16  ;;  %v858_v22 = vld [vmem:[%s12320_s5 + $0x94] sm:$0xf] }
  0xad   : > { %v1053_v13 = vor.u32 %v1052_v29, %v1048_v21  ;;  %v12534_v34 = vrot.slane %v1100_v25, 5  ;;  %v1106_v50 = vrot.slane %v1104_v47, 4  ;;  %v1114_v36 = vshrl.u32 %v844_v11, 16  ;;  %v849_v11 = vld [vmem:[%s12320_s5 + $0x70] sm:$0xf] }
  0xae   : > { %v1079_v39 = vsel %vm12424_vm2, %v1074_v54, %v1078_v0  ;;  %v1044_v40 = vrot.slane %v1043_v33, 4  ;;  %v1112_v41 = vrot.slane %v1110_v31, 5  ;;  %v1120_v2 = vshll.u32 %v845_v24, 16  ;;  %10438 = vperm.xlu1 %10301, %v12407_v45   ;;  %v850_v24 = vld [vmem:[%s12320_s5 + $0x74] sm:$0x1] }
  0xaf   : > { %v12540_v38 = vunpack.c.l.bf16 %v1079_v39  ;;  %v1054_v43 = vrot.slane %v1053_v13, 4  ;;  %v1107_v48 = vor.u32 %v1106_v50, %v12534_v34  ;;  %v1116_v61 = vrot.slane %v1114_v36, 4  ;;  %10433 = vperm.xlu0 %10290, %v12410_v7   ;;  %v846_v33 = vld [vmem:[%s12320_s5 + $0x64] sm:$0xf] }
  0xb0   : > { %v1049_v46 = vsel %vm12424_vm2, %v1044_v40, %v1048_v21  ;;  %v1122_v53 = vrot.slane %v1120_v2, 5  ;;  %v1081_v55 = vshrl.u32 %v841_v57, 16  ;;  %v1084_v59 = vshll.u32 %v841_v57, 16 }
  0xb1   : > { %v10487_v45 = vpack.i.bf16 %v12540_v38, %v12527_v51  ;;  %v1059_v63 = vsel %vm12424_vm2, %v1054_v43, %v12498_v35  ;;  %v12553_v0 = vunpack.c.l.bf16 %v1049_v46  ;;  %v1108_v4 = vrot.slane %v1107_v48, 4  ;;  %v847_v48 = vld [vmem:[%s12320_s5 + $0x68] sm:$0xf]  ;;  %v853_v46 = vld [vmem:[%s12320_s5 + $0x80] sm:$0xf] }
  0xb2   : > { %v12555_v7 = vunpack.c.l.bf16 %v1059_v63  ;;  %v1117_v5 = vor.u32 %v1116_v61, %v1112_v41  ;;  %v1083_v28 = vrot.slane %v1081_v55, 4  ;;  %v1086_v8 = vrot.slane %v1084_v59, 5  ;;  %10448 = vperm.xlu1 %10301, %v12413_v10  }
  0xb3   : > { %v1113_v44 = vsel %vm12424_vm2, %v1108_v4, %v1112_v41  ;;  %v1090_v49 = vshll.u32 %v842_v52, 16  ;;  %v1094_v9 = vshrl.u32 %v842_v52, 16  ;;  %v1144_v16 = vshll.u32 %v848_v1, 16  ;;  %10443 = vperm.xlu0 %10290, %v12417_v18  }
  0xb4   : > { %v10482_v35 = vpack.i.bf16 %v12555_v7, %v12553_v0  ;;  %v1118_v20 = vrot.slane %v1117_v5, 4  ;;  %v12564_v21 = vunpack.c.l.bf16 %v1113_v44  ;;  %v1087_v29 = vor.u32 %v1086_v8, %v1083_v28  ;;  %v854_v8 = vld [vmem:[%s12320_s5 + $0x84] sm:$0xf] }
  0xb5   : > { %v1092_v25 = vrot.slane %v1090_v49, 5  ;;  %v1096_v10 = vrot.slane %v1094_v9, 4  ;;  %v12567_v47 = vrot.slane %v1144_v16, 5  ;;  %v1148_v54 = vshrl.u32 %v848_v1, 16  ;;  %v855_v49 = vld [vmem:[%s12320_s5 + $0x88] sm:$0x1] }
  0xb6   : > { %v1123_v31 = vsel %vm12424_vm2, %v1118_v20, %v1122_v53  ;;  %v1088_v13 = vrot.slane %v1087_v29, 4  ;;  %v1154_v18 = vshll.u32 %v849_v11, 16  ;;  %v1158_v50 = vshrl.u32 %v849_v11, 16  ;;  %10458 = vperm.xlu1 %10301, %v10457_v15  }
  0xb7   : > { %v12575_v36 = vunpack.c.l.bf16 %v1123_v31  ;;  %v1097_v57 = vor.u32 %v1096_v10, %v1092_v25  ;;  %v1150_v39 = vrot.slane %v1148_v54, 4  ;;  %v1164_v40 = vshll.u32 %v850_v24, 16  ;;  %10453 = vperm.xlu0 %10290, %v10452_v32  }
  0xb8   : > { %v1093_v41 = vsel %vm12424_vm2, %v1088_v13, %v1092_v25  ;;  %v1156_v2 = vrot.slane %v1154_v18, 5  ;;  %v1160_v43 = vrot.slane %v1158_v50, 4  ;;  %v1125_v61 = vshrl.u32 %v846_v33, 16 }
  0xb9   : > { %v10497_v62 = vpack.i.bf16 %v12575_v36, %v12564_v21  ;;  %v1098_v3 = vrot.slane %v1097_v57, 4  ;;  %v12585_v15 = vunpack.c.l.bf16 %v1093_v41  ;;  %v1151_v52 = vor.u32 %v1150_v39, %v12567_v47 }
  0xba   : > { %v1161_v53 = vor.u32 %v1160_v43, %v1156_v2  ;;  %v1166_v12 = vrot.slane %v1164_v40, 5  ;;  %v1127_v23 = vrot.slane %v1125_v61, 4  ;;  %v1128_v32 = vshll.u32 %v846_v33, 16  ;;  %10468 = vperm.xlu1 %10301, %v10467_v56  }
  0xbb   : > { %v1103_v55 = vsel %vm12424_vm2, %v1098_v3, %v12534_v34  ;;  %v1152_v59 = vrot.slane %v1151_v52, 4  ;;  %v1134_v1 = vshll.u32 %v847_v48, 16  ;;  %v1138_v63 = vshrl.u32 %v847_v48, 16  ;;  %10463 = vperm.xlu0 %10290, %v10462_v37   ;;  %v851_v37 = vld [vmem:[%s12320_s5 + $0x78] sm:$0xf] }
  0xbc   : > { %v1689_v4 = vunpack.c.l.bf16 %v1103_v55  ;;  %v1162_v5 = vrot.slane %v1161_v53, 4  ;;  %v1130_v28 = vrot.slane %v1128_v32, 5  ;;  %v1188_v44 = vshll.u32 %v853_v46, 16  ;;  %v856_v32 = vld [vmem:[%s12320_s5 + $0x8c] sm:$0xf] }
  0xbd   : > { %v1157_v19 = vsel %vm12424_vm2, %v1152_v59, %v1156_v2  ;;  %v1136_v42 = vrot.slane %v1134_v1, 5  ;;  %v1140_v56 = vrot.slane %v1138_v63, 4  ;;  %v1192_v34 = vshrl.u32 %v853_v46, 16 }
  0xbe   : > { %v10492_v9 = vpack.i.bf16 %v1689_v4, %v12585_v15  ;;  %v1167_v11 = vsel %vm12424_vm2, %v1162_v5, %v1166_v12  ;;  %v12605_v6 = vunpack.c.l.bf16 %v1157_v19  ;;  %v1131_v27 = vor.u32 %v1130_v28, %v1127_v23  ;;  %10478 = vperm.xlu1 %10301, %v10477_v58   ;;  %v860_v12 = vld [vmem:[%s12320_s5 + $0x9c] sm:$0x1] }
  0xbf   : > { %v1695_v16 = vunpack.c.l.bf16 %v1167_v11  ;;  %v1141_v20 = vor.u32 %v1140_v56, %v1136_v42  ;;  %v12611_v29 = vrot.slane %v1188_v44, 5  ;;  %v1194_v24 = vrot.slane %v1192_v34, 4  ;;  %10473 = vperm.xlu0 %10290, %v10472_v26   ;;  %v857_v44 = vld [vmem:[%s12320_s5 + $0x90] sm:$0xf] }
  0xc0   : > { %v1132_v25 = vrot.slane %v1131_v27, 4  ;;  %v1198_v10 = vshll.u32 %v854_v8, 16  ;;  %v1202_v54 = vshrl.u32 %v854_v8, 16  ;;  %v1208_v33 = vshll.u32 %v855_v49, 16 }
  0xc1   : > { %v10507_v31 = vpack.i.bf16 %v1695_v16, %v12605_v6  ;;  %v1142_v13 = vrot.slane %v1141_v20, 4  ;;  %v1195_v30 = vor.u32 %v1194_v24, %v12611_v29  ;;  %v1169_v58 = vshrl.u32 %v851_v37, 16 }
  0xc2   : > { %v1137_v18 = vsel %vm12424_vm2, %v1132_v25, %v1136_v42  ;;  %v1200_v50 = vrot.slane %v1198_v10, 5  ;;  %v1204_v57 = vrot.slane %v1202_v54, 4  ;;  %v1210_v39 = vrot.slane %v1208_v33, 5  ;;  %10488 = vperm.xlu1 %10301, %v10487_v45   ;;  %v859_v45 = vld [vmem:[%s12320_s5 + $0x98] sm:$0xf] }
  0xc3   : > { %v1147_v14 = vsel %vm12424_vm2, %v1142_v13, %v12567_v47  ;;  %v1692_v26 = vunpack.c.l.bf16 %v1137_v18  ;;  %v1196_v40 = vrot.slane %v1195_v30, 4  ;;  %v1171_v41 = vrot.slane %v1169_v58, 4  ;;  %10483 = vperm.xlu0 %10290, %v10482_v35   ;;  %v864_v10 = vld [vmem:[%s12320_s5 + $0xac] sm:$0xf]  ;;  %v865_v58 = vld [vmem:[%s12320_s5 + $0xb0] sm:$0x1] }
  0xc4   : > { %v1693_v2 = vunpack.c.l.bf16 %v1147_v14  ;;  %v1205_v43 = vor.u32 %v1204_v57, %v1200_v50  ;;  %v1172_v48 = vshll.u32 %v851_v37, 16  ;;  %v1178_v61 = vshll.u32 %v852_v17, 16  ;;  %v863_v37 = vld [vmem:[%s12320_s5 + $0xa8] sm:$0xf]  ;;  %v861_v14 = vld [vmem:[%s12320_s5 + $0xa0] sm:$0xf] }
  0xc5   : > { %v1201_v51 = vsel %vm12424_vm2, %v1196_v40, %v1200_v50  ;;  %v1182_v38 = vshrl.u32 %v852_v17, 16  ;;  %v1232_v3 = vshll.u32 %v858_v22, 16  ;;  %v1236_v47 = vshrl.u32 %v858_v22, 16 }
  0xc6   : > { %v10502_v15 = vpack.i.bf16 %v1693_v2, %v1692_v26  ;;  %v1206_v52 = vrot.slane %v1205_v43, 4  ;;  %v1698_v46 = vunpack.c.l.bf16 %v1201_v51  ;;  %v1174_v53 = vrot.slane %v1172_v48, 5  ;;  %10498 = vperm.xlu1 %10301, %v10497_v62  }
  0xc7   : > { %v1180_v0 = vrot.slane %v1178_v61, 5  ;;  %v1184_v7 = vrot.slane %v1182_v38, 4  ;;  %v12638_v35 = vrot.slane %v1232_v3, 5  ;;  %v1238_v23 = vrot.slane %v1236_v47, 4  ;;  %10493 = vperm.xlu0 %10290, %v10492_v9   ;;  %v862_v47 = vld [vmem:[%s12320_s5 + $0xa4] sm:$0xf] }
  0xc8   : > { %v1211_v55 = vsel %vm12424_vm2, %v1206_v52, %v1210_v39  ;;  %v1175_v59 = vor.u32 %v1174_v53, %v1171_v41  ;;  %v1242_v1 = vshll.u32 %v859_v45, 16  ;;  %v1246_v63 = vshrl.u32 %v859_v45, 16 }
  0xc9   : > { %v1699_v4 = vunpack.c.l.bf16 %v1211_v55  ;;  %v1185_v5 = vor.u32 %v1184_v7, %v1180_v0  ;;  %v1239_v28 = vor.u32 %v1238_v23, %v12638_v35  ;;  %v1252_v21 = vshll.u32 %v860_v12, 16 }
  0xca   : > { %v1176_v36 = vrot.slane %v1175_v59, 4  ;;  %v1244_v62 = vrot.slane %v1242_v1, 5  ;;  %v1248_v8 = vrot.slane %v1246_v63, 4  ;;  %v1213_v19 = vshrl.u32 %v856_v32, 16  ;;  %10508 = vperm.xlu1 %10301, %v10507_v31  }
  0xcb   : > { %v10517_v42 = vpack.i.bf16 %v1699_v4, %v1698_v46  ;;  %v1186_v56 = vrot.slane %v1185_v5, 4  ;;  %v1240_v49 = vrot.slane %v1239_v28, 4  ;;  %v1254_v34 = vrot.slane %v1252_v21, 5  ;;  %10503 = vperm.xlu0 %10290, %v10502_v15   ;;  %v869_v21 = vld [vmem:[%s12320_s5 + $0xc0] sm:$0xf] }
  0xcc   : > { %v1181_v9 = vsel %vm12424_vm2, %v1176_v36, %v1180_v0  ;;  %v1249_v11 = vor.u32 %v1248_v8, %v1244_v62  ;;  %v1215_v6 = vrot.slane %v1213_v19, 4  ;;  %v1216_v27 = vshll.u32 %v856_v32, 16  ;;  %v868_v0 = vld [vmem:[%s12320_s5 + $0xbc] sm:$0xf] }
  0xcd   : > { %v1191_v16 = vsel %vm12424_vm2, %v1186_v56, %v12611_v29  ;;  %v1696_v20 = vunpack.c.l.bf16 %v1181_v9  ;;  %v1245_v24 = vsel %vm12424_vm2, %v1240_v49, %v1244_v62  ;;  %v1222_v25 = vshll.u32 %v857_v44, 16  ;;  %v870_v56 = vld [vmem:[%s12320_s5 + $0xc4] sm:$0x1] }
  0xce   : > { %v1697_v54 = vunpack.c.l.bf16 %v1191_v16  ;;  %v1250_v33 = vrot.slane %v1249_v11, 4  ;;  %v1702_v31 = vunpack.c.l.bf16 %v1245_v24  ;;  %v1218_v13 = vrot.slane %v1216_v27, 5  ;;  %10518 = vperm.xlu1 %10301, %v10517_v42  }
  0xcf   : > { %v1224_v30 = vrot.slane %v1222_v25, 5  ;;  %v1226_v17 = vshrl.u32 %v857_v44, 16  ;;  %v1276_v18 = vshll.u32 %v863_v37, 16  ;;  %v1280_v50 = vshrl.u32 %v863_v37, 16 }
  0xd0   : > { %v10512_v57 = vpack.i.bf16 %v1697_v54, %v1696_v20  ;;  %v1255_v29 = vsel %vm12424_vm2, %v1250_v33, %v1254_v34  ;;  %v1219_v39 = vor.u32 %v1218_v13, %v1215_v6  ;;  %v1286_v22 = vshll.u32 %v864_v10, 16  ;;  %v866_v6 = vld [vmem:[%s12320_s5 + $0xb4] sm:$0xf]  ;;  %v867_v13 = vld [vmem:[%s12320_s5 + $0xb8] sm:$0xf] }
  0xd1   : > { %v1703_v26 = vunpack.c.l.bf16 %v1255_v29  ;;  %v1228_v40 = vrot.slane %v1226_v17, 4  ;;  %v12658_v41 = vrot.slane %v1276_v18, 5  ;;  %v1282_v2 = vrot.slane %v1280_v50, 4 }
  0xd2   : > { %10513 = vperm.xlu0 %10290, %v10512_v57   ;;  %v1220_v43 = vrot.slane %v1219_v39, 4  ;;  %v1288_v48 = vrot.slane %v1286_v22, 5  ;;  %v1290_v61 = vshrl.u32 %v864_v10, 16  ;;  %v1296_v51 = vshll.u32 %v865_v58, 16 }
  0xd3   : > { %v10527_v38 = vpack.i.bf16 %v1703_v26, %v1702_v31  ;;  %v1229_v45 = vor.u32 %v1228_v40, %v1224_v30  ;;  %v1283_v3 = vor.u32 %v1282_v2, %v12658_v41  ;;  %v1257_v15 = vshrl.u32 %v861_v14, 16 }
  0xd4   : > { %v1225_v52 = vsel %vm12424_vm2, %v1220_v43, %v1224_v30  ;;  %v1292_v46 = vrot.slane %v1290_v61, 4  ;;  %v1298_v53 = vrot.slane %v1296_v51, 5  ;;  %v1260_v12 = vshll.u32 %v861_v14, 16  ;;  %v873_v14 = vld [vmem:[%s12320_s5 + $0xd0] sm:$0xf] }
  0xd5   : > { %10528 = vperm.xlu1 %10301, %v10527_v38   ;;  %v1230_v7 = vrot.slane %v1229_v45, 4  ;;  %v1700_v23 = vunpack.c.l.bf16 %v1225_v52  ;;  %v1284_v32 = vrot.slane %v1283_v3, 4  ;;  %v1259_v55 = vrot.slane %v1257_v15, 4  ;;  %v875_v15 = vld [vmem:[%s12320_s5 + $0xd8] sm:$0x1] }
  0xd6   : > { %v1293_v59 = vor.u32 %v1292_v46, %v1288_v48  ;;  %v1262_v1 = vrot.slane %v1260_v12, 5  ;;  %v1266_v63 = vshll.u32 %v862_v47, 16  ;;  %v1270_v4 = vshrl.u32 %v862_v47, 16 }
  0xd7   : > { %v1235_v5 = vsel %vm12424_vm2, %v1230_v7, %v12638_v35  ;;  %v1289_v28 = vsel %vm12424_vm2, %v1284_v32, %v1288_v48  ;;  %v1320_v36 = vshll.u32 %v868_v0, 16  ;;  %v1324_v62 = vshrl.u32 %v868_v0, 16  ;;  %v874_v48 = vld [vmem:[%s12320_s5 + $0xd4] sm:$0xf] }
  0xd8   : > { %v1701_v8 = vunpack.c.l.bf16 %v1235_v5  ;;  %v1294_v44 = vrot.slane %v1293_v59, 4  ;;  %v1706_v19 = vunpack.c.l.bf16 %v1289_v28  ;;  %v1263_v42 = vor.u32 %v1262_v1, %v1259_v55  ;;  %v871_v59 = vld [vmem:[%s12320_s5 + $0xc8] sm:$0xf] }
  0xd9   : > { %v1268_v49 = vrot.slane %v1266_v63, 5  ;;  %v1272_v34 = vrot.slane %v1270_v4, 4  ;;  %v12672_v9 = vrot.slane %v1320_v36, 5  ;;  %v1326_v11 = vrot.slane %v1324_v62, 4 }
  0xda   : > { %v10522_v27 = vpack.i.bf16 %v1701_v8, %v1700_v23  ;;  %v1299_v35 = vsel %vm12424_vm2, %v1294_v44, %v1298_v53  ;;  %v1264_v37 = vrot.slane %v1263_v42, 4  ;;  %v1330_v16 = vshll.u32 %v869_v21, 16  ;;  %v872_v8 = vld [vmem:[%s12320_s5 + $0xcc] sm:$0xf] }
  0xdb   : > { %v1707_v20 = vunpack.c.l.bf16 %v1299_v35  ;;  %v1273_v24 = vor.u32 %v1272_v34, %v1268_v49  ;;  %v1327_v25 = vor.u32 %v1326_v11, %v12672_v9  ;;  %v1334_v10 = vshrl.u32 %v869_v21, 16 }
  0xdc   : > { %10523 = vperm.xlu0 %10290, %v10522_v27   ;;  %v1269_v54 = vsel %vm12424_vm2, %v1264_v37, %v1268_v49  ;;  %v1332_v33 = vrot.slane %v1330_v16, 5  ;;  %v1340_v31 = vshll.u32 %v870_v56, 16  ;;  %v1301_v30 = vshrl.u32 %v866_v6, 16  ;;  %v878_v49 = vld [vmem:[%s12320_s5 + $0xe4] sm:$0xf] }
  0xdd   : > { %v10537_v17 = vpack.i.bf16 %v1707_v20, %v1706_v19  ;;  %v1274_v58 = vrot.slane %v1273_v24, 4  ;;  %v1704_v18 = vunpack.c.l.bf16 %v1269_v54  ;;  %v1328_v50 = vrot.slane %v1327_v25, 4  ;;  %v879_v54 = vld [vmem:[%s12320_s5 + $0xe8] sm:$0xf] }
  0xde   : > { %v1336_v57 = vrot.slane %v1334_v10, 4  ;;  %v1342_v29 = vrot.slane %v1340_v31, 5  ;;  %v1303_v39 = vrot.slane %v1301_v30, 4  ;;  %v1304_v22 = vshll.u32 %v866_v6, 16 }
  0xdf   : > { %10538 = vperm.xlu1 %10301, %v10537_v17   ;;  %v1279_v26 = vsel %vm12424_vm2, %v1274_v58, %v12658_v41  ;;  %v1333_v40 = vsel %vm12424_vm2, %v1328_v50, %v1332_v33  ;;  %v1310_v2 = vshll.u32 %v867_v13, 16  ;;  %v1314_v43 = vshrl.u32 %v867_v13, 16  ;;  %v880_v17 = vld [vmem:[%s12320_s5 + $0xec] sm:$0x1] }
  0xe0   : > { %v1705_v61 = vunpack.c.l.bf16 %v1279_v26  ;;  %v1337_v51 = vor.u32 %v1336_v57, %v1332_v33  ;;  %v1710_v38 = vunpack.c.l.bf16 %v1333_v40  ;;  %v1306_v45 = vrot.slane %v1304_v22, 5 }
  0xe1   : > { %v1312_v3 = vrot.slane %v1310_v2, 5  ;;  %v1316_v47 = vrot.slane %v1314_v43, 4  ;;  %v1364_v52 = vshll.u32 %v873_v14, 16  ;;  %v1368_v46 = vshrl.u32 %v873_v14, 16 }
  0xe2   : > { %v10532_v53 = vpack.i.bf16 %v1705_v61, %v1704_v18  ;;  %v1338_v12 = vrot.slane %v1337_v51, 4  ;;  %v1307_v0 = vor.u32 %v1306_v45, %v1303_v39  ;;  %v1374_v41 = vshll.u32 %v874_v48, 16  ;;  %v877_v45 = vld [vmem:[%s12320_s5 + $0xe0] sm:$0xf] }
  0xe3   : > { %v1317_v7 = vor.u32 %v1316_v47, %v1312_v3  ;;  %v12689_v23 = vrot.slane %v1364_v52, 5  ;;  %v1370_v32 = vrot.slane %v1368_v46, 4  ;;  %v1378_v55 = vshrl.u32 %v874_v48, 16 }
  0xe4   : > { %10533 = vperm.xlu0 %10290, %v10532_v53   ;;  %v1343_v1 = vsel %vm12424_vm2, %v1338_v12, %v1342_v29  ;;  %v1308_v63 = vrot.slane %v1307_v0, 4  ;;  %v1376_v4 = vrot.slane %v1374_v41, 5  ;;  %v1384_v5 = vshll.u32 %v875_v15, 16  ;;  %v876_v29 = vld [vmem:[%s12320_s5 + $0xdc] sm:$0xf] }
  0xe5   : > { %v1711_v28 = vunpack.c.l.bf16 %v1343_v1  ;;  %v1318_v21 = vrot.slane %v1317_v7, 4  ;;  %v1371_v36 = vor.u32 %v1370_v32, %v12689_v23  ;;  %v1380_v62 = vrot.slane %v1378_v55, 4  ;;  %v883_v53 = vld [vmem:[%s12320_s5 + $0xf8] sm:$0xf] }
  0xe6   : > { %v1313_v44 = vsel %vm12424_vm2, %v1308_v63, %v1312_v3  ;;  %v1386_v19 = vrot.slane %v1384_v5, 5  ;;  %v1345_v42 = vshrl.u32 %v871_v59, 16  ;;  %v1348_v56 = vshll.u32 %v871_v59, 16 }
  0xe7   : > { %v10547_v34 = vpack.i.bf16 %v1711_v28, %v1710_v38  ;;  %v1323_v11 = vsel %vm12424_vm2, %v1318_v21, %v12672_v9  ;;  %v1708_v6 = vunpack.c.l.bf16 %v1313_v44  ;;  %v1372_v27 = vrot.slane %v1371_v36, 4  ;;  %v884_v28 = vld [vmem:[%s12320_s5 + $0xfc] sm:$0xf]  ;;  %v885_v44 = vld [vmem:[%s12320_s5 + $0x100] sm:$0x1] }
  0xe8   : > { %v1709_v35 = vunpack.c.l.bf16 %v1323_v11  ;;  %v1381_v37 = vor.u32 %v1380_v62, %v1376_v4  ;;  %v1347_v16 = vrot.slane %v1345_v42, 4  ;;  %v1350_v20 = vrot.slane %v1348_v56, 5 }
  0xe9   : > { %10548 = vperm.xlu1 %10301, %v10547_v34   ;;  %v1377_v24 = vsel %vm12424_vm2, %v1372_v27, %v1376_v4  ;;  %v1354_v25 = vshll.u32 %v872_v8, 16  ;;  %v1358_v10 = vshrl.u32 %v872_v8, 16  ;;  %v1408_v33 = vshll.u32 %v878_v49, 16  ;;  %v881_v34 = vld [vmem:[%s12320_s5 + $0xf0] sm:$0xf] }
  0xea   : > { %v10542_v31 = vpack.i.bf16 %v1709_v35, %v1708_v6  ;;  %v1382_v13 = vrot.slane %v1381_v37, 4  ;;  %v1714_v30 = vunpack.c.l.bf16 %v1377_v24  ;;  %v1351_v9 = vor.u32 %v1350_v20, %v1347_v16 }
  0xeb   : > { %v1356_v58 = vrot.slane %v1354_v25, 5  ;;  %v1360_v18 = vrot.slane %v1358_v10, 4  ;;  %v12706_v50 = vrot.slane %v1408_v33, 5  ;;  %v1412_v57 = vshrl.u32 %v878_v49, 16  ;;  %v882_v33 = vld [vmem:[%s12320_s5 + $0xf4] sm:$0xf] }
  0xec   : > { %10543 = vperm.xlu0 %10290, %v10542_v31   ;;  %v1387_v39 = vsel %vm12424_vm2, %v1382_v13, %v1386_v19  ;;  %v1352_v22 = vrot.slane %v1351_v9, 4  ;;  %v1418_v14 = vshll.u32 %v879_v54, 16  ;;  %v1422_v26 = vshrl.u32 %v879_v54, 16 }
  0xed   : > { %v1715_v40 = vunpack.c.l.bf16 %v1387_v39  ;;  %v1361_v2 = vor.u32 %v1360_v18, %v1356_v58  ;;  %v1414_v43 = vrot.slane %v1412_v57, 4  ;;  %v1428_v48 = vshll.u32 %v880_v17, 16 }
  0xee   : > { %v1357_v61 = vsel %vm12424_vm2, %v1352_v22, %v1356_v58  ;;  %v1420_v51 = vrot.slane %v1418_v14, 5  ;;  %v1424_v38 = vrot.slane %v1422_v26, 4  ;;  %v1389_v3 = vshrl.u32 %v876_v29, 16  ;;  %v888_v58 = vld [vmem:[%s12320_s5 + $0x10c] sm:$0xf] }
  0xef   : > { %v10557_v47 = vpack.i.bf16 %v1715_v40, %v1714_v30  ;;  %v1362_v15 = vrot.slane %v1361_v2, 4  ;;  %v1712_v52 = vunpack.c.l.bf16 %v1357_v61  ;;  %v1415_v46 = vor.u32 %v1414_v43, %v12706_v50 }
  0xf0   : > { %v1425_v12 = vor.u32 %v1424_v38, %v1420_v51  ;;  %v1430_v0 = vrot.slane %v1428_v48, 5  ;;  %v1391_v41 = vrot.slane %v1389_v3, 4  ;;  %v1392_v7 = vshll.u32 %v876_v29, 16  ;;  %v889_v48 = vld [vmem:[%s12320_s5 + $0x110] sm:$0xf] }
  0xf1   : > { %10558 = vperm.xlu1 %10301, %v10557_v47   ;;  %v1367_v32 = vsel %vm12424_vm2, %v1362_v15, %v12689_v23  ;;  %v1416_v55 = vrot.slane %v1415_v46, 4  ;;  %v1398_v59 = vshll.u32 %v877_v45, 16  ;;  %v1402_v1 = vshrl.u32 %v877_v45, 16  ;;  %v890_v47 = vld [vmem:[%s12320_s5 + $0x114] sm:$0x1] }
  0xf2   : > { %v1713_v63 = vunpack.c.l.bf16 %v1367_v32  ;;  %v1426_v4 = vrot.slane %v1425_v12, 4  ;;  %v1394_v5 = vrot.slane %v1392_v7, 5  ;;  %v1452_v21 = vshll.u32 %v883_v53, 16  ;;  %v886_v12 = vld [vmem:[%s12320_s5 + $0x104] sm:$0xf] }
  0xf3   : > { %v1421_v36 = vsel %vm12424_vm2, %v1416_v55, %v1420_v51  ;;  %v1400_v62 = vrot.slane %v1398_v59, 5  ;;  %v1404_v8 = vrot.slane %v1402_v1, 4  ;;  %v1456_v19 = vshrl.u32 %v883_v53, 16 }
  0xf4   : > { %v10552_v42 = vpack.i.bf16 %v1713_v63, %v1712_v52  ;;  %v1431_v23 = vsel %vm12424_vm2, %v1426_v4, %v1430_v0  ;;  %v1718_v56 = vunpack.c.l.bf16 %v1421_v36  ;;  %v1395_v49 = vor.u32 %v1394_v5, %v1391_v41 }
  0xf5   : > { %v1719_v11 = vunpack.c.l.bf16 %v1431_v23  ;;  %v1405_v6 = vor.u32 %v1404_v8, %v1400_v62  ;;  %v12726_v27 = vrot.slane %v1452_v21, 5  ;;  %v1458_v35 = vrot.slane %v1456_v19, 4  ;;  %v887_v21 = vld [vmem:[%s12320_s5 + $0x108] sm:$0xf] }
  0xf6   : > { %10553 = vperm.xlu0 %10290, %v10552_v42   ;;  %v1396_v37 = vrot.slane %v1395_v49, 4  ;;  %v1462_v16 = vshll.u32 %v884_v28, 16  ;;  %v1466_v20 = vshrl.u32 %v884_v28, 16  ;;  %v1472_v24 = vshll.u32 %v885_v44, 16 }
  0xf7   : > { %v10567_v25 = vpack.i.bf16 %v1719_v11, %v1718_v56  ;;  %v1406_v10 = vrot.slane %v1405_v6, 4  ;;  %v1459_v54 = vor.u32 %v1458_v35, %v12726_v27  ;;  %v1433_v31 = vshrl.u32 %v881_v34, 16 }
  0xf8   : > { %v1401_v13 = vsel %vm12424_vm2, %v1396_v37, %v1400_v62  ;;  %v1464_v30 = vrot.slane %v1462_v16, 5  ;;  %v1468_v9 = vrot.slane %v1466_v20, 4  ;;  %v1474_v17 = vrot.slane %v1472_v24, 5  ;;  %v894_v16 = vld [vmem:[%s12320_s5 + $0x124] sm:$0xf] }
  0xf9   : > { %10568 = vperm.xlu1 %10301, %v10567_v25   ;;  %v1411_v18 = vsel %vm12424_vm2, %v1406_v10, %v12706_v50  ;;  %v1716_v57 = vunpack.c.l.bf16 %v1401_v13  ;;  %v1460_v29 = vrot.slane %v1459_v54, 4  ;;  %v1435_v39 = vrot.slane %v1433_v31, 4  ;;  %v895_v31 = vld [vmem:[%s12320_s5 + $0x128] sm:$0x1] }
  0xfa   : > { %v1717_v22 = vunpack.c.l.bf16 %v1411_v18  ;;  %v1469_v14 = vor.u32 %v1468_v9, %v1464_v30  ;;  %v1436_v26 = vshll.u32 %v881_v34, 16  ;;  %v1442_v40 = vshll.u32 %v882_v33, 16  ;;  %v893_v34 = vld [vmem:[%s12320_s5 + $0x120] sm:$0xf]  ;;  %v891_v18 = vld [vmem:[%s12320_s5 + $0x118] sm:$0xf] }
  0xfb   : > { %v1465_v2 = vsel %vm12424_vm2, %v1460_v29, %v1464_v30  ;;  %v1446_v43 = vshrl.u32 %v882_v33, 16  ;;  %v1496_v61 = vshll.u32 %v888_v58, 16  ;;  %v1500_v51 = vshrl.u32 %v888_v58, 16 }
  0xfc   : > { %v10562_v38 = vpack.i.bf16 %v1717_v22, %v1716_v57  ;;  %v1470_v45 = vrot.slane %v1469_v14, 4  ;;  %v1722_v3 = vunpack.c.l.bf16 %v1465_v2  ;;  %v1438_v50 = vrot.slane %v1436_v26, 5 }
  0xfd   : > { %v1444_v15 = vrot.slane %v1442_v40, 5  ;;  %v1448_v52 = vrot.slane %v1446_v43, 4  ;;  %v12740_v46 = vrot.slane %v1496_v61, 5  ;;  %v1502_v53 = vrot.slane %v1500_v51, 4  ;;  %v892_v51 = vld [vmem:[%s12320_s5 + $0x11c] sm:$0xf] }
  0xfe   : > { %10563 = vperm.xlu0 %10290, %v10562_v38   ;;  %v1475_v0 = vsel %vm12424_vm2, %v1470_v45, %v1474_v17  ;;  %v1439_v41 = vor.u32 %v1438_v50, %v1435_v39  ;;  %v1506_v7 = vshll.u32 %v889_v48, 16  ;;  %v1510_v32 = vshrl.u32 %v889_v48, 16  ;;  %v12764_v45 = vpop.permute.xlu1 %10303 }
  0xff   : > { %v1723_v55 = vunpack.c.l.bf16 %v1475_v0  ;;  %v1449_v59 = vor.u32 %v1448_v52, %v1444_v15  ;;  %v1503_v1 = vor.u32 %v1502_v53, %v12740_v46  ;;  %v1516_v63 = vshll.u32 %v890_v47, 16  ;;  %v898_v52 = vld [vmem:[%s12320_s5 + $0x134] sm:$0xf] }
 0x100   : > { %v1440_v4 = vrot.slane %v1439_v41, 4  ;;  %v1508_v5 = vrot.slane %v1506_v7, 5  ;;  %v1512_v28 = vrot.slane %v1510_v32, 4  ;;  %v1477_v36 = vshrl.u32 %v886_v12, 16  ;;  %v12769_v7 = vpop.permute.xlu0 %10292 }
 0x101   : > { %v10577_v62 = vpack.i.bf16 %v1723_v55, %v1722_v3  ;;  %v1450_v8 = vrot.slane %v1449_v59, 4  ;;  %v1504_v44 = vrot.slane %v1503_v1, 4  ;;  %v1518_v19 = vrot.slane %v1516_v63, 5 }
 0x102   : > { %v1445_v42 = vsel %vm12424_vm2, %v1440_v4, %v1444_v15  ;;  %v1513_v23 = vor.u32 %v1512_v28, %v1508_v5  ;;  %v1479_v56 = vrot.slane %v1477_v36, 4  ;;  %v1480_v49 = vshll.u32 %v886_v12, 16 }
 0x103   : > { %10578 = vperm.xlu1 %10301, %v10577_v62   ;;  %v1455_v11 = vsel %vm12424_vm2, %v1450_v8, %v12726_v27  ;;  %v1720_v6 = vunpack.c.l.bf16 %v1445_v42  ;;  %v1509_v35 = vsel %vm12424_vm2, %v1504_v44, %v1508_v5  ;;  %v1486_v37 = vshll.u32 %v887_v21, 16  ;;  %v899_v5 = vld [vmem:[%s12320_s5 + $0x138] sm:$0xf] }
 0x104   : > { %v1721_v20 = vunpack.c.l.bf16 %v1455_v11  ;;  %v1514_v24 = vrot.slane %v1513_v23, 4  ;;  %v1726_v25 = vunpack.c.l.bf16 %v1509_v35  ;;  %v1482_v10 = vrot.slane %v1480_v49, 5  ;;  %v12781_v11 = vpop.permute.xlu1 %10308 }
 0x105   : > { %v1488_v54 = vrot.slane %v1486_v37, 5  ;;  %v1490_v33 = vshrl.u32 %v887_v21, 16  ;;  %v1540_v13 = vshll.u32 %v893_v34, 16  ;;  %v1544_v30 = vshrl.u32 %v893_v34, 16  ;;  %v896_v34 = vld [vmem:[%s12320_s5 + $0x12c] sm:$0xf] }
 0x106   : > { %v10572_v9 = vpack.i.bf16 %v1721_v20, %v1720_v6  ;;  %v1519_v27 = vsel %vm12424_vm2, %v1514_v24, %v1518_v19  ;;  %v1483_v17 = vor.u32 %v1482_v10, %v1479_v56  ;;  %v1550_v58 = vshll.u32 %v894_v16, 16  ;;  %v900_v19 = vld [vmem:[%s12320_s5 + $0x13c] sm:$0x1]  ;;  %v12786_v10 = vpop.permute.xlu0 %10297 }
 0x107   : > { %v1727_v57 = vunpack.c.l.bf16 %v1519_v27  ;;  %v1492_v29 = vrot.slane %v1490_v33, 4  ;;  %v12760_v39 = vrot.slane %v1540_v13, 5  ;;  %v1546_v22 = vrot.slane %v1544_v30, 4  ;;  %v897_v13 = vld [vmem:[%s12320_s5 + $0x130] sm:$0xf] }
 0x108   : > { %10573 = vperm.xlu0 %10290, %v10572_v9   ;;  %v1484_v14 = vrot.slane %v1483_v17, 4  ;;  %v1552_v26 = vrot.slane %v1550_v58, 5  ;;  %v1554_v40 = vshrl.u32 %v894_v16, 16  ;;  %v1560_v2 = vshll.u32 %v895_v31, 16 }
 0x109   : > { %v10587_v43 = vpack.i.bf16 %v1727_v57, %v1726_v25  ;;  %v1493_v48 = vor.u32 %v1492_v29, %v1488_v54  ;;  %v1547_v61 = vor.u32 %v1546_v22, %v12760_v39  ;;  %v1521_v38 = vshrl.u32 %v891_v18, 16 }
 0x10a   : > { %v1489_v3 = vsel %vm12424_vm2, %v1484_v14, %v1488_v54  ;;  %v1556_v50 = vrot.slane %v1554_v40, 4  ;;  %v1562_v47 = vrot.slane %v1560_v2, 5  ;;  %v1524_v15 = vshll.u32 %v891_v18, 16 }
 0x10b   : > { %10588 = vperm.xlu1 %10301, %v10587_v43   ;;  %v1494_v53 = vrot.slane %v1493_v48, 4  ;;  %v1724_v12 = vunpack.c.l.bf16 %v1489_v3  ;;  %v1548_v0 = vrot.slane %v1547_v61, 4  ;;  %v1523_v41 = vrot.slane %v1521_v38, 4  ;;  %v12796_v43 = vpop.permute.xlu1 %10318  ;;  %v232_v3 = vld [vmem:[#allocation5] sm:$0x3] }
 0x10c   : > { %v1557_v32 = vor.u32 %v1556_v50, %v1552_v26  ;;  %v1526_v55 = vrot.slane %v1524_v15, 5  ;;  %v1530_v59 = vshll.u32 %v892_v51, 16  ;;  %v1534_v1 = vshrl.u32 %v892_v51, 16 }
 0x10d   : > { %v1499_v63 = vsel %vm12424_vm2, %v1494_v53, %v12740_v46  ;;  %v1553_v4 = vsel %vm12424_vm2, %v1548_v0, %v1552_v26  ;;  %v1584_v28 = vshll.u32 %v898_v52, 16  ;;  %v1588_v21 = vshrl.u32 %v898_v52, 16  ;;  %v12799_v53 = vpop.permute.xlu0 %10313 }
 0x10e   : > { %v1725_v36 = vunpack.c.l.bf16 %v1499_v63  ;;  %v1558_v62 = vrot.slane %v1557_v32, 4  ;;  %v1730_v8 = vunpack.c.l.bf16 %v1553_v4  ;;  %v1527_v44 = vor.u32 %v1526_v55, %v1523_v41 }
 0x10f   : > { %v1532_v42 = vrot.slane %v1530_v59, 5  ;;  %v1536_v23 = vrot.slane %v1534_v1, 4  ;;  %v12778_v56 = vrot.slane %v1584_v28, 5  ;;  %v1590_v49 = vrot.slane %v1588_v21, 4 }
 0x110   : > { %v10582_v46 = vpack.i.bf16 %v1725_v36, %v1724_v12  ;;  %v1563_v6 = vsel %vm12424_vm2, %v1558_v62, %v1562_v47  ;;  %v1528_v35 = vrot.slane %v1527_v44, 4  ;;  %v1594_v37 = vshll.u32 %v899_v5, 16  ;;  %v2188_v36 = vld [vmem:[%s12320_s5] sm:$0xe]  ;;  %v12814_v62 = vpop.permute.xlu1 %10328  ;;  %v11732_v44 = vld [vmem:[%s12320_s5 + $0x8] sm:$0xf] }
 0x111   : > { %v1731_v16 = vunpack.c.l.bf16 %v1563_v6  ;;  %v1537_v20 = vor.u32 %v1536_v23, %v1532_v42  ;;  %v1591_v24 = vor.u32 %v1590_v49, %v12778_v56  ;;  %v1598_v25 = vshrl.u32 %v899_v5, 16  ;;  %v11734_v49 = vld [vmem:[%s12320_s5 + $0x10] sm:$0x1] }
 0x112   : > { %10583 = vperm.xlu0 %10290, %v10582_v46   ;;  %v1533_v54 = vsel %vm12424_vm2, %v1528_v35, %v1532_v42  ;;  %v1596_v33 = vrot.slane %v1594_v37, 5  ;;  %v1604_v31 = vshll.u32 %v900_v19, 16  ;;  %v1565_v30 = vshrl.u32 %v896_v34, 16  ;;  %v11733_v42 = vld [vmem:[%s12320_s5 + $0xc] sm:$0xf] }
 0x113   : > { %v10597_v9 = vpack.i.bf16 %v1731_v16, %v1730_v8  ;;  %v1538_v27 = vrot.slane %v1537_v20, 4  ;;  %v1728_v17 = vunpack.c.l.bf16 %v1533_v54  ;;  %v1592_v58 = vrot.slane %v1591_v24, 4  ;;  %v12833_v16 = vpop.permute.xlu0 %10323 }
 0x114   : > { %v1600_v18 = vrot.slane %v1598_v25, 4  ;;  %v1606_v57 = vrot.slane %v1604_v31, 5  ;;  %v1567_v29 = vrot.slane %v1565_v30, 4  ;;  %v1568_v22 = vshll.u32 %v896_v34, 16 }
 0x115   : > { %10598 = vperm.xlu1 %10301, %v10597_v9   ;;  %v1543_v14 = vsel %vm12424_vm2, %v1538_v27, %v12760_v39  ;;  %v1597_v26 = vsel %vm12424_vm2, %v1592_v58, %v1596_v33  ;;  %v1574_v40 = vshll.u32 %v897_v13, 16  ;;  %v1578_v2 = vshrl.u32 %v897_v13, 16  ;;  %v11735_v27 = vld [vmem:[%s12320_s5 + $0x4] sm:$0xf] }
 0x116   : > { %v1729_v48 = vunpack.c.l.bf16 %v1543_v14  ;;  %v1601_v61 = vor.u32 %v1600_v18, %v1596_v33  ;;  %v1734_v51 = vunpack.c.l.bf16 %v1597_v26  ;;  %v1570_v38 = vrot.slane %v1568_v22, 5  ;;  %v12851_v22 = vpop.permute.xlu1 %10338 }
 0x117   : > { %v1576_v50 = vrot.slane %v1574_v40, 5  ;;  %v1580_v47 = vrot.slane %v1578_v2, 4  ;;  %v689_v15 = vlaneseq  ;;  %v10306_v52 = vunpack.i.h.bf16 %v12764_v45 }
 0x118   : > { %v10592_v39 = vpack.i.bf16 %v1729_v48, %v1728_v17  ;;  %v1602_v12 = vrot.slane %v1601_v61, 4  ;;  %v1571_v0 = vor.u32 %v1570_v38, %v1567_v29  ;;  %v10305_v41 = vunpack.i.l.bf16 %v12764_v45  ;;  %v2189_v48 = vld [vmem:[%s12320_s5 + $0x14] sm:$0xe] }
 0x119   : > { %v1581_v32 = vor.u32 %v1580_v47, %v1576_v50  ;;  %v12802_v55 = vshrl.u32 %v689_v15, 7  ;;  %v12804_v59 = vunpack.c.l.bf16 %v232_v3  ;;  %v10295_v1 = vunpack.i.h.bf16 %v12769_v7  ;;  %v12864_v3 = vpop.permute.xlu0 %10333 }
 0x11a   : > { %10593 = vperm.xlu0 %10290, %v10592_v39   ;;  %v1607_v63 = vsel %vm12424_vm2, %v1602_v12, %v1606_v57  ;;  %v1572_v4 = vrot.slane %v1571_v0, 4  ;;  %v10294_v5 = vunpack.i.l.bf16 %v12769_v7  ;;  %vm2284_vm3 = vcmask 1042432   ;;  %v11737_v0 = vld [vmem:[%s12320_s5 + $0x20] sm:$0xf] }
 0x11b   : > { %17026 = vst [vmem:[#allocation13_spill] sm:$0xff] %v12802_v55  ;;  %v1735_v28 = vunpack.c.l.bf16 %v1607_v63  ;;  %v1582_v45 = vrot.slane %v1581_v32, 4  ;;  %v12811_v21 = vsub.s32 0, %v12802_v55  ;;  %vm2285_vm4 = vcmask 1046532   ;;  %v11738_v32 = vld [vmem:[%s12320_s5 + $0x24] sm:$0x1] }
 0x11c   : > { %v1577_v8 = vsel %vm12424_vm2, %v1572_v4, %v1576_v50  ;;  %v2292_v19 = vrot.slane %v11732_v44, 5  ;;  %v2295_v23 = vrot.slane %v11733_v42, 5  ;;  %v2298_v34 = vrot.slane %v11734_v49, 5  ;;  %vm12829_vm5 = vmor %vm2284_vm3, %vm2285_vm4  ;;  %v11739_v4 = vld [vmem:[%s12320_s5 + $0x18] sm:$0xf]  ;;  %v12884_v42 = vpop.permute.xlu1 %10348 }
 0x11d   : > { %17027 = vst [vmem:[#allocation14_spill] sm:$0xff] %v12811_v21  ;;  %v10607_v7 = vpack.i.bf16 %v1735_v28, %v1734_v51  ;;  %v1587_v46 = vsel %vm12424_vm2, %v1582_v45, %v12778_v56  ;;  %v1732_v6 = vunpack.c.l.bf16 %v1577_v8  ;;  %v12826_v35 = vrot.slane %v12804_v59, %v12811_v21 }
 0x11e   : > { %v17028_v37 = vmov 0  ;;  %v1733_v20 = vunpack.c.l.bf16 %v1587_v46  ;;  %v2294_v24 = vrot.slane %v2292_v19, 4  ;;  %v2297_v25 = vrot.slane %v2295_v23, 4 }
 0x11f   : > { %v17029_v37 = vsel %vm12829_vm5, 4294967295, %v17028_v37  ;;  %v9335_v54 = vrot.slane %v2188_v36, 9  ;;  %10608 = vperm.xlu1 %10301, %v10607_v7   ;;  %v12836_v56 = vmul.f32 %v10305_v41, %v12826_v35  ;;  %v12839_v33 = vmul.f32 %v10306_v52, %v12826_v35  ;;  %v11736_v52 = vld [vmem:[%s12320_s5 + $0x1c] sm:$0xf] }
 0x120   : > { %17030 = vst [vmem:[#allocation15_spill] sm:$0xff] %v17029_v37  ;;  %v12842_v31 = vmul.f32 %v10294_v5, %v12826_v35  ;;  %v10602_v13 = vpack.i.bf16 %v1733_v20, %v1732_v6  ;;  %v2296_v30 = vsel %vm12829_vm5, %v2294_v24, %v2295_v23  ;;  %v2299_v9 = vsel %vm12829_vm5, %v2297_v25, %v2298_v34  ;;  %v2190_v24 = vld [vmem:[%s12320_s5 + $0x28] sm:$0xe]  ;;  %v12897_v25 = vpop.permute.xlu0 %10343 }
 0x121   : > { %v2289_v17 = vrot.slane %v11735_v27, 5  ;;  %v2561_v58 = vunpack.c.l.bf16 %v2296_v30  ;;  %v2562_v18 = vunpack.c.l.bf16 %v2299_v9  ;;  %v10311_v57 = vunpack.i.h.bf16 %v12781_v11  ;;  %v11740_v27 = vld [vmem:[%s12320_s5 + $0x30] sm:$0xf] }
 0x122   : > { %v10310_v29 = vunpack.i.l.bf16 %v12781_v11  ;;  %10603 = vperm.xlu0 %10290, %v10602_v13   ;;  %v12854_v14 = vmul.f32 %v10295_v1, %v12826_v35  ;;  %v10299_v2 = vunpack.i.l.bf16 %v12786_v10  ;;  %v10300_v38 = vunpack.i.h.bf16 %v12786_v10 }
 0x123   : > { %v2290_v26 = vsel %vm12829_vm5, %v9335_v54, %v2289_v17  ;;  %v2291_v40 = vrot.slane %v2289_v17, 4  ;;  %v10617_v61 = vpack.i.bf16 %v2562_v18, %v2561_v58  ;;  %v12869_v47 = vmul.f32 %v10311_v57, %v12826_v35  ;;  %v11741_v58 = vld [vmem:[%s12320_s5 + $0x34] sm:$0xf]  ;;  %v11742_v57 = vld [vmem:[%s12320_s5 + $0x38] sm:$0x1] }
 0x124   : > { %v2559_v51 = vunpack.c.l.bf16 %v2290_v26  ;;  %v12861_v11 = vmul.f32 %v10310_v29, %v12826_v35  ;;  %v12872_v15 = vmul.f32 %v10299_v2, %v12826_v35  ;;  %v2305_v39 = vrot.slane %v11736_v52, 5  ;;  %v11743_v2 = vld [vmem:[%s12320_s5 + $0x2c] sm:$0xf] }
 0x125   : > { %v2293_v50 = vsel %vm12829_vm5, %v2291_v40, %v2292_v19  ;;  %10618 = vperm.xlu1 %10301, %v10617_v61   ;;  %v2308_v41 = vrot.slane %v11737_v0, 5  ;;  %v2311_v1 = vrot.slane %v11738_v32, 5  ;;  %v9336_v10 = vrot.slane %v2189_v48, 9 }
 0x126   : > { %v2560_v12 = vunpack.c.l.bf16 %v2293_v50  ;;  %v2307_v63 = vrot.slane %v2305_v39, 4  ;;  %v2302_v5 = vrot.slane %v11739_v4, 5  ;;  %v10321_v28 = vunpack.i.h.bf16 %v12796_v43  ;;  %v2191_v4 = vld [vmem:[%s12320_s5 + $0x3c] sm:$0xe] }
 0x127   : > { %v10320_v45 = vunpack.i.l.bf16 %v12796_v43  ;;  %v12881_v8 = vmul.f32 %v10300_v38, %v12826_v35  ;;  %v2310_v44 = vrot.slane %v2308_v41, 4  ;;  %v10315_v19 = vunpack.i.l.bf16 %v12799_v53 }
 0x128   : > { %v10612_v36 = vpack.i.bf16 %v2560_v12, %v2559_v51  ;;  %v2309_v23 = vsel %vm12829_vm5, %v2307_v63, %v2308_v41  ;;  %v2303_v49 = vsel %vm12829_vm5, %v9336_v10, %v2302_v5  ;;  %v2304_v34 = vrot.slane %v2302_v5, 4  ;;  %v12929_v5 = vpop.permute.xlu0 %10353 }
 0x129   : > { %v10316_v43 = vunpack.i.h.bf16 %v12799_v53  ;;  %v2312_v7 = vsel %vm12829_vm5, %v2310_v44, %v2311_v1  ;;  %v2565_v46 = vunpack.c.l.bf16 %v2309_v23  ;;  %v2563_v6 = vunpack.c.l.bf16 %v2303_v49  ;;  %v11744_v49 = vld [vmem:[%s12320_s5 + $0x44] sm:$0xf] }
 0x12a   : > { %10613 = vperm.xlu0 %10290, %v10612_v36   ;;  %v12894_v20 = vmul.f32 %v10320_v45, %v12826_v35  ;;  %v2566_v54 = vunpack.c.l.bf16 %v2312_v7  ;;  %v2306_v13 = vsel %vm12829_vm5, %v2304_v34, %v2305_v39  ;;  %v12902_v53 = vmul.f32 %v10321_v28, %v12826_v35  ;;  %v12913_v39 = vpop.permute.xlu1 %10358 }
 0x12b   : > { %v12905_v30 = vmul.f32 %v10315_v19, %v12826_v35  ;;  %v2564_v9 = vunpack.c.l.bf16 %v2306_v13  ;;  %v2318_v17 = vrot.slane %v11740_v27, 5  ;;  %v2321_v18 = vrot.slane %v11741_v58, 5  ;;  %v11747_v58 = vld [vmem:[%s12320_s5 + $0x40] sm:$0xf] }
 0x12c   : > { %v2324_v29 = vrot.slane %v11742_v57, 5  ;;  %v10627_v26 = vpack.i.bf16 %v2566_v54, %v2565_v46  ;;  %v9337_v40 = vrot.slane %v2190_v24, 9  ;;  %v2315_v48 = vrot.slane %v11743_v2, 5  ;;  %v11746_v24 = vld [vmem:[%s12320_s5 + $0x4c] sm:$0x1] }
 0x12d   : > { %v10331_v61 = vunpack.i.h.bf16 %v12814_v62  ;;  %v10622_v51 = vpack.i.bf16 %v2564_v9, %v2563_v6  ;;  %v2320_v38 = vrot.slane %v2318_v17, 4  ;;  %v2323_v50 = vrot.slane %v2321_v18, 4 }
 0x12e   : > { %v10330_v52 = vunpack.i.l.bf16 %v12814_v62  ;;  %10628 = vperm.xlu1 %10301, %v10627_v26   ;;  %v12916_v12 = vmul.f32 %v10316_v43, %v12826_v35  ;;  %v2316_v0 = vsel %vm12829_vm5, %v9337_v40, %v2315_v48  ;;  %v2317_v41 = vrot.slane %v2315_v48, 4  ;;  %v11745_v43 = vld [vmem:[%s12320_s5 + $0x48] sm:$0xf] }
 0x12f   : > { %v10326_v32 = vunpack.i.h.bf16 %v12833_v16  ;;  %10623 = vperm.xlu0 %10290, %v10622_v51   ;;  %v2322_v1 = vsel %vm12829_vm5, %v2320_v38, %v2321_v18  ;;  %v2325_v62 = vsel %vm12829_vm5, %v2323_v50, %v2324_v29  ;;  %v2567_v10 = vunpack.c.l.bf16 %v2316_v0  ;;  %v12944_v18 = vpop.permute.xlu1 %10368  ;;  %v12958_v38 = vpop.permute.xlu0 %10363 }
 0x130   : > { %v12926_v63 = vmul.f32 %v10331_v61, %v12826_v35  ;;  %v2569_v28 = vunpack.c.l.bf16 %v2322_v1  ;;  %v2570_v45 = vunpack.c.l.bf16 %v2325_v62  ;;  %v2319_v36 = vsel %vm12829_vm5, %v2317_v41, %v2318_v17  ;;  %v2192_v41 = vld [vmem:[%s12320_s5 + $0x50] sm:$0xe] }
 0x131   : > { %v10325_v44 = vunpack.i.l.bf16 %v12833_v16  ;;  %v2568_v19 = vunpack.c.l.bf16 %v2319_v36  ;;  %v12935_v23 = vmul.f32 %v10330_v52, %v12826_v35  ;;  %v2331_v34 = vrot.slane %v11744_v49, 5 }
 0x132   : > { %v2334_v7 = vrot.slane %v11745_v43, 5  ;;  %v10637_v46 = vpack.i.bf16 %v2570_v45, %v2569_v28  ;;  %v12940_v6 = vmul.f32 %v10326_v32, %v12826_v35  ;;  %v2337_v54 = vrot.slane %v11746_v24, 5  ;;  %v11748_v45 = vld [vmem:[%s12320_s5 + $0x58] sm:$0xf] }
 0x133   : > { %v9338_v13 = vrot.slane %v2191_v4, 9  ;;  %v10632_v9 = vpack.i.bf16 %v2568_v19, %v2567_v10  ;;  %v2333_v27 = vrot.slane %v2331_v34, 4  ;;  %v2328_v16 = vrot.slane %v11747_v58, 5  ;;  %v12978_v24 = vpop.permute.xlu1 %10378 }
 0x134   : > { %v2336_v17 = vrot.slane %v2334_v7, 4  ;;  %10638 = vperm.xlu1 %10301, %v10637_v46   ;;  %v12947_v57 = vmul.f32 %v10325_v44, %v12826_v35  ;;  %v10341_v29 = vunpack.i.h.bf16 %v12851_v22  ;;  %v10340_v26 = vunpack.i.l.bf16 %v12851_v22  ;;  %v11749_v44 = vld [vmem:[%s12320_s5 + $0x5c] sm:$0xf] }
 0x135   : > { %v10335_v40 = vunpack.i.l.bf16 %v12864_v3  ;;  %10633 = vperm.xlu0 %10290, %v10632_v9   ;;  %v2335_v2 = vsel %vm12829_vm5, %v2333_v27, %v2334_v7  ;;  %v2329_v61 = vsel %vm12829_vm5, %v9338_v13, %v2328_v16  ;;  %v2330_v51 = vrot.slane %v2328_v16, 4  ;;  %v11751_v7 = vld [vmem:[%s12320_s5 + $0x54] sm:$0xf] }
 0x136   : > { %v2338_v48 = vsel %vm12829_vm5, %v2336_v17, %v2337_v54  ;;  %v2573_v50 = vunpack.c.l.bf16 %v2335_v2  ;;  %v2571_v52 = vunpack.c.l.bf16 %v2329_v61  ;;  %v10336_v0 = vunpack.i.h.bf16 %v12864_v3  ;;  %v11750_v3 = vld [vmem:[%s12320_s5 + $0x60] sm:$0x1]  ;;  %v2193_v61 = vld [vmem:[%s12320_s5 + $0x64] sm:$0xe] }
 0x137   : > { %v2574_v22 = vunpack.c.l.bf16 %v2338_v48  ;;  %v2332_v32 = vsel %vm12829_vm5, %v2330_v51, %v2331_v34  ;;  %v12965_v1 = vmul.f32 %v10340_v26, %v12826_v35  ;;  %v12968_v62 = vmul.f32 %v10341_v29, %v12826_v35  ;;  %v12987_v26 = vpop.permute.xlu0 %10373 }
 0x138   : > { %v12971_v10 = vmul.f32 %v10335_v40, %v12826_v35  ;;  %v2572_v28 = vunpack.c.l.bf16 %v2332_v32  ;;  %v2344_v36 = vrot.slane %v11748_v45, 5  ;;  %v2347_v19 = vrot.slane %v11749_v44, 5  ;;  %v11752_v32 = vld [vmem:[%s12320_s5 + $0x6c] sm:$0xf] }
 0x139   : > { %v10647_v4 = vpack.i.bf16 %v2574_v22, %v2573_v50  ;;  %v2350_v49 = vrot.slane %v11750_v3, 5  ;;  %v9339_v43 = vrot.slane %v2192_v41, 9  ;;  %v2341_v34 = vrot.slane %v11751_v7, 5  ;;  %v11754_v3 = vld [vmem:[%s12320_s5 + $0x74] sm:$0x1]  ;;  %v13009_v7 = vpop.permute.xlu1 %10388 }
 0x13a   : > { %v10351_v46 = vunpack.i.h.bf16 %v12884_v42  ;;  %v10642_v54 = vpack.i.bf16 %v2572_v28, %v2571_v52  ;;  %v2346_v13 = vrot.slane %v2344_v36, 4  ;;  %v2349_v9 = vrot.slane %v2347_v19, 4  ;;  %v11753_v28 = vld [vmem:[%s12320_s5 + $0x70] sm:$0xf] }
 0x13b   : > { %10648 = vperm.xlu1 %10301, %v10647_v4   ;;  %v10350_v27 = vunpack.i.l.bf16 %v12884_v42  ;;  %v12982_v17 = vmul.f32 %v10336_v0, %v12826_v35  ;;  %v2342_v58 = vsel %vm12829_vm5, %v9339_v43, %v2341_v34  ;;  %v2343_v16 = vrot.slane %v2341_v34, 4 }
 0x13c   : > { %v10346_v29 = vunpack.i.h.bf16 %v12897_v25  ;;  %10643 = vperm.xlu0 %10290, %v10642_v54   ;;  %v2348_v40 = vsel %vm12829_vm5, %v2346_v13, %v2347_v19  ;;  %v2351_v42 = vsel %vm12829_vm5, %v2349_v9, %v2350_v49  ;;  %v2575_v2 = vunpack.c.l.bf16 %v2342_v58 }
 0x13d   : > { %v12994_v48 = vmul.f32 %v10351_v46, %v12826_v35  ;;  %v2577_v51 = vunpack.c.l.bf16 %v2348_v40  ;;  %v2578_v50 = vunpack.c.l.bf16 %v2351_v42  ;;  %v2345_v22 = vsel %vm12829_vm5, %v2343_v16, %v2344_v36  ;;  %v11755_v46 = vld [vmem:[%s12320_s5 + $0x68] sm:$0xf]  ;;  %v13018_v16 = vpop.permute.xlu0 %10383 }
 0x13e   : > { %v10345_v52 = vunpack.i.l.bf16 %v12897_v25  ;;  %v2576_v0 = vunpack.c.l.bf16 %v2345_v22  ;;  %v13001_v41 = vmul.f32 %v10350_v27, %v12826_v35  ;;  %v2357_v4 = vrot.slane %v11752_v32, 5  ;;  %v2194_v22 = vld [vmem:[%s12320_s5 + $0x78] sm:$0xe] }
 0x13f   : > { %v2360_v45 = vrot.slane %v11753_v28, 5  ;;  %v10657_v44 = vpack.i.bf16 %v2578_v50, %v2577_v51  ;;  %v13006_v19 = vmul.f32 %v10346_v29, %v12826_v35  ;;  %v2363_v49 = vrot.slane %v11754_v3, 5  ;;  %v11756_v3 = vld [vmem:[%s12320_s5 + $0x80] sm:$0xf] }
 0x140   : > { %v9340_v43 = vrot.slane %v2193_v61, 9  ;;  %v10652_v36 = vpack.i.bf16 %v2576_v0, %v2575_v2  ;;  %v2359_v25 = vrot.slane %v2357_v4, 4  ;;  %v2354_v54 = vrot.slane %v11755_v46, 5  ;;  %v11759_v46 = vld [vmem:[%s12320_s5 + $0x7c] sm:$0xf] }
 0x141   : > { %v2362_v34 = vrot.slane %v2360_v45, 4  ;;  %10658 = vperm.xlu1 %10301, %v10657_v44   ;;  %v13013_v13 = vmul.f32 %v10345_v52, %v12826_v35  ;;  %v10361_v9 = vunpack.i.h.bf16 %v12913_v39  ;;  %v10360_v27 = vunpack.i.l.bf16 %v12913_v39 }
 0x142   : > { %v10355_v58 = vunpack.i.l.bf16 %v12929_v5  ;;  %10653 = vperm.xlu0 %10290, %v10652_v36   ;;  %v2361_v29 = vsel %vm12829_vm5, %v2359_v25, %v2360_v45  ;;  %v2355_v42 = vsel %vm12829_vm5, %v9340_v43, %v2354_v54  ;;  %v2356_v2 = vrot.slane %v2354_v54, 4  ;;  %v11757_v43 = vld [vmem:[%s12320_s5 + $0x84] sm:$0xf]  ;;  %v13041_v36 = vpop.permute.xlu1 %10398  ;;  %v11758_v25 = vld [vmem:[%s12320_s5 + $0x88] sm:$0x1] }
 0x143   : > { %v2364_v40 = vsel %vm12829_vm5, %v2362_v34, %v2363_v49  ;;  %v2581_v61 = vunpack.c.l.bf16 %v2361_v29  ;;  %v2579_v51 = vunpack.c.l.bf16 %v2355_v42  ;;  %v10356_v50 = vunpack.i.h.bf16 %v12929_v5  ;;  %v13047_v42 = vpop.permute.xlu0 %10393 }
 0x144   : > { %v2582_v39 = vunpack.c.l.bf16 %v2364_v40  ;;  %v2358_v52 = vsel %vm12829_vm5, %v2356_v2, %v2357_v4  ;;  %v13031_v0 = vmul.f32 %v10360_v27, %v12826_v35  ;;  %v13034_v32 = vmul.f32 %v10361_v9, %v12826_v35 }
 0x145   : > { %v13037_v28 = vmul.f32 %v10355_v58, %v12826_v35  ;;  %v2580_v44 = vunpack.c.l.bf16 %v2358_v52  ;;  %v2370_v49 = vrot.slane %v11756_v3, 5  ;;  %v2373_v5 = vrot.slane %v11757_v43, 5 }
 0x146   : > { %v10667_v45 = vpack.i.bf16 %v2582_v39, %v2581_v61  ;;  %v2376_v34 = vrot.slane %v11758_v25, 5  ;;  %v9341_v4 = vrot.slane %v2194_v22, 9  ;;  %v2367_v54 = vrot.slane %v11759_v46, 5  ;;  %v11760_v46 = vld [vmem:[%s12320_s5 + $0x94] sm:$0xf] }
 0x147   : > { %v10371_v27 = vunpack.i.h.bf16 %v12944_v18  ;;  %v10662_v9 = vpack.i.bf16 %v2580_v44, %v2579_v51  ;;  %v2372_v58 = vrot.slane %v2370_v49, 4  ;;  %v2375_v29 = vrot.slane %v2373_v5, 4 }
 0x148   : > { %10668 = vperm.xlu1 %10301, %v10667_v45   ;;  %v10370_v40 = vunpack.i.l.bf16 %v12944_v18  ;;  %v13050_v2 = vmul.f32 %v10356_v50, %v12826_v35  ;;  %v2368_v61 = vsel %vm12829_vm5, %v9341_v4, %v2367_v54  ;;  %v2369_v39 = vrot.slane %v2367_v54, 4  ;;  %v2195_v45 = vld [vmem:[%s12320_s5 + $0x8c] sm:$0xe]  ;;  %v11761_v54 = vld [vmem:[%s12320_s5 + $0x98] sm:$0xf] }
 0x149   : > { %v10366_v22 = vunpack.i.h.bf16 %v12958_v38  ;;  %10663 = vperm.xlu0 %10290, %v10662_v9   ;;  %v2374_v51 = vsel %vm12829_vm5, %v2372_v58, %v2373_v5  ;;  %v2377_v18 = vsel %vm12829_vm5, %v2375_v29, %v2376_v34  ;;  %v2583_v52 = vunpack.c.l.bf16 %v2368_v61  ;;  %v13071_v58 = vpop.permute.xlu1 %10408  ;;  %v11762_v61 = vld [vmem:[%s12320_s5 + $0x9c] sm:$0x1] }
 0x14a   : > { %v13060_v50 = vmul.f32 %v10371_v27, %v12826_v35  ;;  %v2585_v44 = vunpack.c.l.bf16 %v2374_v51  ;;  %v2586_v3 = vunpack.c.l.bf16 %v2377_v18  ;;  %v2371_v43 = vsel %vm12829_vm5, %v2369_v39, %v2370_v49 }
 0x14b   : > { %v10365_v25 = vunpack.i.l.bf16 %v12958_v38  ;;  %v2584_v4 = vunpack.c.l.bf16 %v2371_v43  ;;  %v13067_v5 = vmul.f32 %v10370_v40, %v12826_v35  ;;  %v2383_v34 = vrot.slane %v11760_v46, 5  ;;  %v11763_v43 = vld [vmem:[%s12320_s5 + $0x90] sm:$0xf]  ;;  %v13078_v40 = vpop.permute.xlu0 %10403 }
 0x14c   : > { %17031 = vst [vmem:[#allocation16_spill] sm:$0xff] %v13060_v50  ;;  %v2386_v9 = vrot.slane %v11761_v54, 5  ;;  %v10677_v27 = vpack.i.bf16 %v2586_v3, %v2585_v44  ;;  %v13074_v29 = vmul.f32 %v10366_v22, %v12826_v35  ;;  %v2389_v51 = vrot.slane %v11762_v61, 5 }
 0x14d   : > { %17032 = vst [vmem:[#allocation17_spill] sm:$0xff] %v13067_v5  ;;  %v9342_v49 = vrot.slane %v2195_v45, 9  ;;  %v10672_v39 = vpack.i.bf16 %v2584_v4, %v2583_v52  ;;  %v2385_v38 = vrot.slane %v2383_v34, 4  ;;  %v2380_v21 = vrot.slane %v11763_v43, 5 }
 0x14e   : > { %17033 = vst [vmem:[#allocation18_spill] sm:$0xff] %v13074_v29  ;;  %v2388_v18 = vrot.slane %v2386_v9, 4  ;;  %10678 = vperm.xlu1 %10301, %v10677_v27   ;;  %v13081_v46 = vmul.f32 %v10365_v25, %v12826_v35  ;;  %v10381_v44 = vunpack.i.h.bf16 %v12978_v24  ;;  %v10380_v22 = vunpack.i.l.bf16 %v12978_v24 }
 0x14f   : > { %v10375_v3 = vunpack.i.l.bf16 %v12987_v26  ;;  %10673 = vperm.xlu0 %10290, %v10672_v39   ;;  %v2387_v52 = vsel %vm12829_vm5, %v2385_v38, %v2386_v9  ;;  %v2381_v4 = vsel %vm12829_vm5, %v9342_v49, %v2380_v21  ;;  %v2382_v25 = vrot.slane %v2380_v21, 4  ;;  %v2196_v39 = vld [vmem:[%s12320_s5 + $0xa0] sm:$0xe]  ;;  %v13105_v21 = vpop.permute.xlu1 %10418 }
 0x150   : > { %17034 = vst [vmem:[#allocation19_spill] sm:$0xff] %v13081_v46  ;;  %v2390_v45 = vsel %vm12829_vm5, %v2388_v18, %v2389_v51  ;;  %v2589_v54 = vunpack.c.l.bf16 %v2387_v52  ;;  %v2587_v61 = vunpack.c.l.bf16 %v2381_v4  ;;  %v10376_v24 = vunpack.i.h.bf16 %v12987_v26  ;;  %v11764_v52 = vld [vmem:[%s12320_s5 + $0xa8] sm:$0xf] }
 0x151   : > { %v2590_v27 = vunpack.c.l.bf16 %v2390_v45  ;;  %v2384_v9 = vsel %vm12829_vm5, %v2382_v25, %v2383_v34  ;;  %v13097_v38 = vmul.f32 %v10380_v22, %v12826_v35  ;;  %v13100_v51 = vmul.f32 %v10381_v44, %v12826_v35  ;;  %v11765_v45 = vld [vmem:[%s12320_s5 + $0xac] sm:$0xf]  ;;  %v11767_v25 = vld [vmem:[%s12320_s5 + $0xa4] sm:$0xf]  ;;  %v13112_v44 = vpop.permute.xlu0 %10413 }
 0x152   : > { %v13103_v49 = vmul.f32 %v10375_v3, %v12826_v35  ;;  %v2588_v43 = vunpack.c.l.bf16 %v2384_v9  ;;  %v2396_v26 = vrot.slane %v11764_v52, 5  ;;  %v2399_v4 = vrot.slane %v11765_v45, 5 }
 0x153   : > { %17035 = vst [vmem:[#allocation20_spill] sm:$0xff] %v13097_v38  ;;  %17036 = vst [vmem:[#allocation21_spill] sm:$0xff] %v13100_v51  ;;  %v10687_v18 = vpack.i.bf16 %v2590_v27, %v2589_v54  ;;  %v2402_v29 = vrot.slane %v11766_v60, 5  ;;  %v9343_v34 = vrot.slane %v2196_v39, 9  ;;  %v2393_v22 = vrot.slane %v11767_v25, 5 }
 0x154   : > { %17037 = vst [vmem:[#allocation22_spill] sm:$0xff] %v13103_v49  ;;  %v10391_v38 = vunpack.i.h.bf16 %v13009_v7  ;;  %v10682_v3 = vpack.i.bf16 %v2588_v43, %v2587_v61  ;;  %v2398_v49 = vrot.slane %v2396_v26, 4  ;;  %v2401_v51 = vrot.slane %v2399_v4, 4 }
 0x155   : > { %10688 = vperm.xlu1 %10301, %v10687_v18   ;;  %v10390_v54 = vunpack.i.l.bf16 %v13009_v7  ;;  %v13116_v27 = vmul.f32 %v10376_v24, %v12826_v35  ;;  %v2394_v60 = vsel %vm12829_vm5, %v9343_v34, %v2393_v22  ;;  %v2395_v39 = vrot.slane %v2393_v22, 4  ;;  %v2197_v24 = vld [vmem:[%s12320_s5 + $0xb4] sm:$0xe]  ;;  %v13132_v22 = vpop.permute.xlu1 %10428 }
 0x156   : > { %v10386_v9 = vunpack.i.h.bf16 %v13018_v16  ;;  %10683 = vperm.xlu0 %10290, %v10682_v3   ;;  %v2400_v18 = vsel %vm12829_vm5, %v2398_v49, %v2399_v4  ;;  %v2403_v61 = vsel %vm12829_vm5, %v2401_v51, %v2402_v29  ;;  %v2591_v43 = vunpack.c.l.bf16 %v2394_v60  ;;  %v11768_v29 = vld [vmem:[%s12320_s5 + $0xbc] sm:$0xf]  ;;  %v11769_v3 = vld [vmem:[%s12320_s5 + $0xc0] sm:$0xf] }
 0x157   : > { %17038 = vst [vmem:[#allocation23_spill] sm:$0xff] %v13116_v27  ;;  %v13126_v7 = vmul.f32 %v10391_v38, %v12826_v35  ;;  %v2593_v52 = vunpack.c.l.bf16 %v2400_v18  ;;  %v2594_v45 = vunpack.c.l.bf16 %v2403_v61  ;;  %v2397_v34 = vsel %vm12829_vm5, %v2395_v39, %v2396_v26  ;;  %v11770_v61 = vld [vmem:[%s12320_s5 + $0xc4] sm:$0x1]  ;;  %v13143_v39 = vpop.permute.xlu0 %10423 }
 0x158   : > { %v10385_v25 = vunpack.i.l.bf16 %v13018_v16  ;;  %v2592_v49 = vunpack.c.l.bf16 %v2397_v34  ;;  %v13135_v4 = vmul.f32 %v10390_v54, %v12826_v35  ;;  %v2409_v51 = vrot.slane %v11768_v29, 5  ;;  %v11771_v34 = vld [vmem:[%s12320_s5 + $0xb8] sm:$0xf] }
 0x159   : > { %17039 = vst [vmem:[#allocation24_spill] sm:$0xff] %v13126_v7  ;;  %v2412_v38 = vrot.slane %v11769_v3, 5  ;;  %v10697_v60 = vpack.i.bf16 %v2594_v45, %v2593_v52  ;;  %v13140_v18 = vmul.f32 %v10386_v9, %v12826_v35  ;;  %v2415_v7 = vrot.slane %v11770_v61, 5 }
 0x15a   : > { %17040 = vst [vmem:[#allocation25_spill] sm:$0xff] %v13135_v4  ;;  %v9344_v26 = vrot.slane %v2197_v24, 9  ;;  %v10692_v16 = vpack.i.bf16 %v2592_v49, %v2591_v43  ;;  %v2411_v27 = vrot.slane %v2409_v51, 4  ;;  %v2406_v54 = vrot.slane %v11771_v34, 5  ;;  %v2198_v34 = vld [vmem:[%s12320_s5 + $0xc8] sm:$0xe] }
 0x15b   : > { %17041 = vst [vmem:[#allocation26_spill] sm:$0xff] %v13140_v18  ;;  %v2414_v46 = vrot.slane %v2412_v38, 4  ;;  %10698 = vperm.xlu1 %10301, %v10697_v60   ;;  %v13147_v29 = vmul.f32 %v10385_v25, %v12826_v35  ;;  %v10401_v52 = vunpack.i.h.bf16 %v13041_v36  ;;  %v10400_v9 = vunpack.i.l.bf16 %v13041_v36  ;;  %v13175_v18 = vpop.permute.xlu0 %10433 }
 0x15c   : > { %v10395_v45 = vunpack.i.l.bf16 %v13047_v42  ;;  %10693 = vperm.xlu0 %10290, %v10692_v16   ;;  %v2413_v24 = vsel %vm12829_vm5, %v2411_v27, %v2412_v38  ;;  %v2407_v49 = vsel %vm12829_vm5, %v9344_v26, %v2406_v54  ;;  %v2408_v25 = vrot.slane %v2406_v54, 4  ;;  %v13160_v16 = vpop.permute.xlu1 %10438 }
 0x15d   : > { %17042 = vst [vmem:[#allocation27_spill] sm:$0xff] %v13147_v29  ;;  %v2416_v43 = vsel %vm12829_vm5, %v2414_v46, %v2415_v7  ;;  %v2597_v3 = vunpack.c.l.bf16 %v2413_v24  ;;  %v2595_v61 = vunpack.c.l.bf16 %v2407_v49  ;;  %v10396_v36 = vunpack.i.h.bf16 %v13047_v42  ;;  %v11772_v24 = vld [vmem:[%s12320_s5 + $0xd0] sm:$0xf]  ;;  %v11774_v29 = vld [vmem:[%s12320_s5 + $0xd8] sm:$0x1] }
 0x15e   : > { %v2598_v60 = vunpack.c.l.bf16 %v2416_v43  ;;  %v2410_v27 = vsel %vm12829_vm5, %v2408_v25, %v2409_v51  ;;  %v13165_v46 = vmul.f32 %v10400_v9, %v12826_v35  ;;  %v13168_v7 = vmul.f32 %v10401_v52, %v12826_v35  ;;  %v11773_v43 = vld [vmem:[%s12320_s5 + $0xd4] sm:$0xf]  ;;  %v11775_v25 = vld [vmem:[%s12320_s5 + $0xcc] sm:$0xf] }
 0x15f   : > { %v13171_v38 = vmul.f32 %v10395_v45, %v12826_v35  ;;  %v2596_v54 = vunpack.c.l.bf16 %v2410_v27  ;;  %v2422_v42 = vrot.slane %v11772_v24, 5  ;;  %v2425_v49 = vrot.slane %v11773_v43, 5 }
 0x160   : > { %17043 = vst [vmem:[#allocation28_spill] sm:$0xff] %v13165_v46  ;;  %17044 = vst [vmem:[#allocation29_spill] sm:$0xff] %v13168_v7  ;;  %v10707_v26 = vpack.i.bf16 %v2598_v60, %v2597_v3  ;;  %v2428_v4 = vrot.slane %v11774_v29, 5  ;;  %v9345_v51 = vrot.slane %v2198_v34, 9  ;;  %v2419_v9 = vrot.slane %v11775_v25, 5  ;;  %v13195_v24 = vpop.permute.xlu1 %10448 }
 0x161   : > { %17045 = vst [vmem:[#allocation30_spill] sm:$0xff] %v13171_v38  ;;  %v10411_v52 = vunpack.i.h.bf16 %v13071_v58  ;;  %v10702_v7 = vpack.i.bf16 %v2596_v54, %v2595_v61  ;;  %v2424_v45 = vrot.slane %v2422_v42, 4  ;;  %v2427_v38 = vrot.slane %v2425_v49, 4 }
 0x162   : > { %10708 = vperm.xlu1 %10301, %v10707_v26   ;;  %v10410_v3 = vunpack.i.l.bf16 %v13071_v58  ;;  %v13182_v60 = vmul.f32 %v10396_v36, %v12826_v35  ;;  %v2420_v27 = vsel %vm12829_vm5, %v9345_v51, %v2419_v9  ;;  %v2421_v29 = vrot.slane %v2419_v9, 4  ;;  %v2199_v36 = vld [vmem:[%s12320_s5 + $0xdc] sm:$0xe] }
 0x163   : > { %v10406_v34 = vunpack.i.h.bf16 %v13078_v40  ;;  %10703 = vperm.xlu0 %10290, %v10702_v7   ;;  %v2426_v26 = vsel %vm12829_vm5, %v2424_v45, %v2425_v49  ;;  %v2429_v61 = vsel %vm12829_vm5, %v2427_v38, %v2428_v4  ;;  %v2599_v54 = vunpack.c.l.bf16 %v2420_v27  ;;  %v11776_v4 = vld [vmem:[%s12320_s5 + $0xe4] sm:$0xf]  ;;  %v13205_v27 = vpop.permute.xlu0 %10443 }
 0x164   : > { %17046 = vst [vmem:[#allocation31_spill] sm:$0xff] %v13182_v60  ;;  %v13192_v58 = vmul.f32 %v10411_v52, %v12826_v35  ;;  %v2601_v43 = vunpack.c.l.bf16 %v2426_v26  ;;  %v2602_v51 = vunpack.c.l.bf16 %v2429_v61  ;;  %v2423_v25 = vsel %vm12829_vm5, %v2421_v29, %v2422_v42  ;;  %v11777_v52 = vld [vmem:[%s12320_s5 + $0xe8] sm:$0xf]  ;;  %v11778_v61 = vld [vmem:[%s12320_s5 + $0xec] sm:$0x1] }
 0x165   : > { %v10405_v7 = vunpack.i.l.bf16 %v13078_v40  ;;  %v2600_v49 = vunpack.c.l.bf16 %v2423_v25  ;;  %v13201_v9 = vmul.f32 %v10410_v3, %v12826_v35  ;;  %v2435_v38 = vrot.slane %v11776_v4, 5  ;;  %v11779_v25 = vld [vmem:[%s12320_s5 + $0xe0] sm:$0xf] }
 0x166   : > { %17047 = vst [vmem:[#allocation32_spill] sm:$0xff] %v13192_v58  ;;  %v2438_v45 = vrot.slane %v11777_v52, 5  ;;  %v10717_v58 = vpack.i.bf16 %v2602_v51, %v2601_v43  ;;  %v13208_v26 = vmul.f32 %v10406_v34, %v12826_v35  ;;  %v2441_v60 = vrot.slane %v11778_v61, 5 }
 0x167   : > { %17048 = vst [vmem:[#allocation33_spill] sm:$0xff] %v13201_v9  ;;  %v9346_v42 = vrot.slane %v2199_v36, 9  ;;  %v10712_v29 = vpack.i.bf16 %v2600_v49, %v2599_v54  ;;  %v2437_v40 = vrot.slane %v2435_v38, 4  ;;  %v2432_v5 = vrot.slane %v11779_v25, 5  ;;  %v11787_v9 = vld [vmem:[%s12320_s5 + $0x108] sm:$0xf] }
 0x168   : > { %17049 = vst [vmem:[#allocation34_spill] sm:$0xff] %v13208_v26  ;;  %v2440_v46 = vrot.slane %v2438_v45, 4  ;;  %10718 = vperm.xlu1 %10301, %v10717_v58   ;;  %v13213_v3 = vmul.f32 %v10405_v7, %v12826_v35  ;;  %v10421_v4 = vunpack.i.h.bf16 %v13105_v21  ;;  %v10420_v43 = vunpack.i.l.bf16 %v13105_v21  ;;  %v13224_v7 = vpop.permute.xlu1 %10458  ;;  %v11782_v26 = vld [vmem:[%s12320_s5 + $0x100] sm:$0x1] }
 0x169   : > { %v10415_v34 = vunpack.i.l.bf16 %v13112_v44  ;;  %10713 = vperm.xlu0 %10290, %v10712_v29   ;;  %v2439_v36 = vsel %vm12829_vm5, %v2437_v40, %v2438_v45  ;;  %v2433_v58 = vsel %vm12829_vm5, %v9346_v42, %v2432_v5  ;;  %v2434_v51 = vrot.slane %v2432_v5, 4  ;;  %v2200_v29 = vld [vmem:[%s12320_s5 + $0xf0] sm:$0xe]  ;;  %v13239_v42 = vpop.permute.xlu0 %10453 }
 0x16a   : > { %17050 = vst [vmem:[#allocation35_spill] sm:$0xff] %v13213_v3  ;;  %v2442_v54 = vsel %vm12829_vm5, %v2440_v46, %v2441_v60  ;;  %v2605_v49 = vunpack.c.l.bf16 %v2439_v36  ;;  %v2603_v52 = vunpack.c.l.bf16 %v2433_v58  ;;  %v10416_v61 = vunpack.i.h.bf16 %v13112_v44  ;;  %v11780_v36 = vld [vmem:[%s12320_s5 + $0xf8] sm:$0xf] }
 0x16b   : > { %v2606_v21 = vunpack.c.l.bf16 %v2442_v54  ;;  %v2436_v45 = vsel %vm12829_vm5, %v2434_v51, %v2435_v38  ;;  %v13231_v46 = vmul.f32 %v10420_v43, %v12826_v35  ;;  %v13234_v60 = vmul.f32 %v10421_v4, %v12826_v35  ;;  %v11781_v54 = vld [vmem:[%s12320_s5 + $0xfc] sm:$0xf]  ;;  %v11783_v51 = vld [vmem:[%s12320_s5 + $0xf4] sm:$0xf] }
 0x16c   : > { %v13237_v5 = vmul.f32 %v10415_v34, %v12826_v35  ;;  %v2604_v25 = vunpack.c.l.bf16 %v2436_v45  ;;  %v2448_v44 = vrot.slane %v11780_v36, 5  ;;  %v2451_v58 = vrot.slane %v11781_v54, 5 }
 0x16d   : > { %17051 = vst [vmem:[#allocation36_spill] sm:$0xff] %v13231_v46  ;;  %17052 = vst [vmem:[#allocation37_spill] sm:$0xff] %v13234_v60  ;;  %v10727_v40 = vpack.i.bf16 %v2606_v21, %v2605_v49  ;;  %v2454_v3 = vrot.slane %v11782_v26, 5  ;;  %v9347_v38 = vrot.slane %v2200_v29, 9  ;;  %v2445_v43 = vrot.slane %v11783_v51, 5  ;;  %v13253_v29 = vpop.permute.xlu1 %10468 }
 0x16e   : > { %17053 = vst [vmem:[#allocation38_spill] sm:$0xff] %v13237_v5  ;;  %v10431_v46 = vunpack.i.h.bf16 %v13132_v22  ;;  %v10722_v4 = vpack.i.bf16 %v2604_v25, %v2603_v52  ;;  %v2450_v34 = vrot.slane %v2448_v44, 4  ;;  %v2453_v5 = vrot.slane %v2451_v58, 4  ;;  %v2201_v25 = vld [vmem:[%s12320_s5 + $0x104] sm:$0xe] }
 0x16f   : > { %10728 = vperm.xlu1 %10301, %v10727_v40   ;;  %v10430_v60 = vunpack.i.l.bf16 %v13132_v22  ;;  %v13248_v49 = vmul.f32 %v10416_v61, %v12826_v35  ;;  %v2446_v21 = vsel %vm12829_vm5, %v9347_v38, %v2445_v43  ;;  %v2447_v45 = vrot.slane %v2445_v43, 4  ;;  %v13266_v43 = vpop.permute.xlu0 %10463 }
 0x170   : > { %v10426_v26 = vunpack.i.h.bf16 %v13143_v39  ;;  %10723 = vperm.xlu0 %10290, %v10722_v4   ;;  %v2452_v52 = vsel %vm12829_vm5, %v2450_v34, %v2451_v58  ;;  %v2455_v22 = vsel %vm12829_vm5, %v2453_v5, %v2454_v3  ;;  %v2607_v40 = vunpack.c.l.bf16 %v2446_v21  ;;  %v11784_v3 = vld [vmem:[%s12320_s5 + $0x10c] sm:$0xf]  ;;  %v11785_v34 = vld [vmem:[%s12320_s5 + $0x110] sm:$0xf] }
 0x171   : > { %17054 = vst [vmem:[#allocation39_spill] sm:$0xff] %v13248_v49  ;;  %v13260_v61 = vmul.f32 %v10431_v46, %v12826_v35  ;;  %v2609_v36 = vunpack.c.l.bf16 %v2452_v52  ;;  %v2610_v54 = vunpack.c.l.bf16 %v2455_v22  ;;  %v2449_v38 = vsel %vm12829_vm5, %v2447_v45, %v2448_v44  ;;  %v11786_v22 = vld [vmem:[%s12320_s5 + $0x114] sm:$0x1] }
 0x172   : > { %v10425_v51 = vunpack.i.l.bf16 %v13143_v39  ;;  %v2608_v58 = vunpack.c.l.bf16 %v2449_v38  ;;  %v13269_v4 = vmul.f32 %v10430_v60, %v12826_v35  ;;  %v2461_v5 = vrot.slane %v11784_v3, 5 }
 0x173   : > { %17055 = vst [vmem:[#allocation40_spill] sm:$0xff] %v13260_v61  ;;  %v2464_v46 = vrot.slane %v11785_v34, 5  ;;  %v10737_v21 = vpack.i.bf16 %v2610_v54, %v2609_v36  ;;  %v13274_v52 = vmul.f32 %v10426_v26, %v12826_v35  ;;  %v2467_v61 = vrot.slane %v11786_v22, 5  ;;  %v13284_v54 = vpop.permute.xlu1 %10478  ;;  %v13294_v22 = vpop.permute.xlu0 %10473 }
 0x174   : > { %17056 = vst [vmem:[#allocation41_spill] sm:$0xff] %v13269_v4  ;;  %v9348_v44 = vrot.slane %v2201_v25, 9  ;;  %v10732_v45 = vpack.i.bf16 %v2608_v58, %v2607_v40  ;;  %v2463_v39 = vrot.slane %v2461_v5, 4  ;;  %v2458_v50 = vrot.slane %v11787_v9, 5  ;;  %v11791_v4 = vld [vmem:[%s12320_s5 + $0x11c] sm:$0xf] }
 0x175   : > { %17057 = vst [vmem:[#allocation42_spill] sm:$0xff] %v13274_v52  ;;  %v2466_v49 = vrot.slane %v2464_v46, 4  ;;  %10738 = vperm.xlu1 %10301, %v10737_v21   ;;  %v13279_v60 = vmul.f32 %v10425_v51, %v12826_v35  ;;  %v10441_v38 = vunpack.i.h.bf16 %v13160_v16  ;;  %v10440_v36 = vunpack.i.l.bf16 %v13160_v16  ;;  %v2202_v21 = vld [vmem:[%s12320_s5 + $0x118] sm:$0xe] }
 0x176   : > { %v10435_v26 = vunpack.i.l.bf16 %v13175_v18  ;;  %10733 = vperm.xlu0 %10290, %v10732_v45   ;;  %v2465_v40 = vsel %vm12829_vm5, %v2463_v39, %v2464_v46  ;;  %v2459_v25 = vsel %vm12829_vm5, %v9348_v44, %v2458_v50  ;;  %v2460_v51 = vrot.slane %v2458_v50, 4  ;;  %v11788_v39 = vld [vmem:[%s12320_s5 + $0x120] sm:$0xf] }
 0x177   : > { %17058 = vst [vmem:[#allocation43_spill] sm:$0xff] %v13279_v60  ;;  %v2468_v9 = vsel %vm12829_vm5, %v2466_v49, %v2467_v61  ;;  %v2613_v58 = vunpack.c.l.bf16 %v2465_v40  ;;  %v2611_v3 = vunpack.c.l.bf16 %v2459_v25  ;;  %v10436_v34 = vunpack.i.h.bf16 %v13175_v18  ;;  %v11789_v40 = vld [vmem:[%s12320_s5 + $0x124] sm:$0xf]  ;;  %v11790_v25 = vld [vmem:[%s12320_s5 + $0x128] sm:$0x1] }
 0x178   : > { %v2614_v16 = vunpack.c.l.bf16 %v2468_v9  ;;  %v2462_v46 = vsel %vm12829_vm5, %v2460_v51, %v2461_v5  ;;  %v13299_v49 = vmul.f32 %v10440_v36, %v12826_v35  ;;  %v13302_v61 = vmul.f32 %v10441_v38, %v12826_v35 }
 0x179   : > { %v13305_v50 = vmul.f32 %v10435_v26, %v12826_v35  ;;  %v2612_v45 = vunpack.c.l.bf16 %v2462_v46  ;;  %v2474_v18 = vrot.slane %v11788_v39, 5  ;;  %v2477_v9 = vrot.slane %v11789_v40, 5  ;;  %v13329_v39 = vpop.permute.xlu0 %10483 }
 0x17a   : > { %17059 = vst [vmem:[#allocation44_spill] sm:$0xff] %v13302_v61  ;;  %v10747_v44 = vpack.i.bf16 %v2614_v16, %v2613_v58  ;;  %v2480_v52 = vrot.slane %v11790_v25, 5  ;;  %v9349_v60 = vrot.slane %v2202_v21, 9  ;;  %v2471_v5 = vrot.slane %v11791_v4, 5  ;;  %v13313_v58 = vpop.permute.xlu1 %10488 }
 0x17b   : > { %17060 = vst [vmem:[#allocation45_spill] sm:$0xff] %v13305_v50  ;;  %v10451_v36 = vunpack.i.h.bf16 %v13195_v24  ;;  %v10742_v38 = vpack.i.bf16 %v2612_v45, %v2611_v3  ;;  %v2476_v51 = vrot.slane %v2474_v18, 4  ;;  %v2479_v61 = vrot.slane %v2477_v9, 4  ;;  %v2203_v45 = vld [vmem:[%s12320_s5 + $0x12c] sm:$0xe] }
 0x17c   : > { %10748 = vperm.xlu1 %10301, %v10747_v44   ;;  %v10450_v26 = vunpack.i.l.bf16 %v13195_v24  ;;  %v13316_v16 = vmul.f32 %v10436_v34, %v12826_v35  ;;  %v2472_v46 = vsel %vm12829_vm5, %v9349_v60, %v2471_v5  ;;  %v2473_v21 = vrot.slane %v2471_v5, 4 }
 0x17d   : > { %v10446_v4 = vunpack.i.h.bf16 %v13205_v27  ;;  %10743 = vperm.xlu0 %10290, %v10742_v38   ;;  %v2478_v3 = vsel %vm12829_vm5, %v2476_v51, %v2477_v9  ;;  %v2481_v24 = vsel %vm12829_vm5, %v2479_v61, %v2480_v52  ;;  %v2615_v44 = vunpack.c.l.bf16 %v2472_v46  ;;  %v11792_v61 = vld [vmem:[%s12320_s5 + $0x134] sm:$0xf]  ;;  %v11793_v51 = vld [vmem:[%s12320_s5 + $0x138] sm:$0xf] }
 0x17e   : > { %17061 = vst [vmem:[#allocation46_spill] sm:$0xff] %v13316_v16  ;;  %v13326_v34 = vmul.f32 %v10451_v36, %v12826_v35  ;;  %v2617_v60 = vunpack.c.l.bf16 %v2478_v3  ;;  %v2618_v40 = vunpack.c.l.bf16 %v2481_v24  ;;  %v2475_v25 = vsel %vm12829_vm5, %v2473_v21, %v2474_v18  ;;  %v11794_v3 = vld [vmem:[%s12320_s5 + $0x13c] sm:$0x1]  ;;  %v13344_v16 = vpop.permute.xlu1 %10498 }
 0x17f   : > { %v13334_v5 = vmul.f32 %v10450_v26, %v12826_v35  ;;  %v2616_v9 = vunpack.c.l.bf16 %v2475_v25  ;;  %v10445_v52 = vunpack.i.l.bf16 %v13205_v27  ;;  %v2487_v38 = vrot.slane %v11792_v61, 5  ;;  %v10149_v61 = vld [vmem:[%s12320_s5 + $0x18] sm:$0xff]  }
 0x180   : > { %17062 = vst [vmem:[#allocation47_spill] sm:$0xff] %v13326_v34  ;;  %v2490_v36 = vrot.slane %v11793_v51, 5  ;;  %v10757_v46 = vpack.i.bf16 %v2618_v40, %v2617_v60  ;;  %v13340_v34 = vmul.f32 %v10446_v4, %v12826_v35  ;;  %v2493_v24 = vrot.slane %v11794_v3, 5  ;;  %v9354_v51 = vld [vmem:[%s12320_s5 + $0x14] ss:$12 sps:$4 sm:$0xff]  }
 0x181   : > { %17063 = vst [vmem:[#allocation48_spill] sm:$0xff] %v13334_v5  ;;  %v9350_v18 = vrot.slane %v2203_v45, 9  ;;  %v10752_v21 = vpack.i.bf16 %v2616_v9, %v2615_v44  ;;  %v2489_v50 = vrot.slane %v2487_v38, 4  ;;  %v11795_v5 = vld [vmem:[%s12320_s5 + $0x130] sm:$0xf]  ;;  %v13347_v27 = vsub.s32 1, %v12802_v55 }
 0x182   : > { %17064 = vst [vmem:[#allocation49_spill] sm:$0xff] %v13340_v34  ;;  %v2492_v26 = vrot.slane %v2490_v36, 4  ;;  %v2484_v25 = vrot.slane %v11795_v5, 5  ;;  %10758 = vperm.xlu1 %10301, %v10757_v46   ;;  %v10461_v60 = vunpack.i.h.bf16 %v13224_v7  ;;  %v10460_v4 = vunpack.i.l.bf16 %v13224_v7  ;;  %v13360_v46 = vpop.permute.xlu0 %10493 }
 0x183   : > { %17065 = vst [vmem:[#allocation50_spill] sm:$0xff] %v13347_v27  ;;  %v10456_v40 = vunpack.i.h.bf16 %v13239_v42  ;;  %10753 = vperm.xlu0 %10290, %v10752_v21   ;;  %v2491_v44 = vsel %vm12829_vm5, %v2489_v50, %v2490_v36  ;;  %v13364_v55 = vrot.slane %v12804_v59, %v13347_v27  ;;  %v10455_v36 = vunpack.i.l.bf16 %v13239_v42 }
 0x184   : > { %v2494_v45 = vsel %vm12829_vm5, %v2492_v26, %v2493_v24  ;;  %v2485_v5 = vsel %vm12829_vm5, %v9350_v18, %v2484_v25  ;;  %v2486_v9 = vrot.slane %v2484_v25, 4  ;;  %v2621_v3 = vunpack.c.l.bf16 %v2491_v44 }
 0x185   : > { %v2622_v7 = vunpack.c.l.bf16 %v2494_v45  ;;  %v2619_v34 = vunpack.c.l.bf16 %v2485_v5  ;;  %v9937_v24 = vunpack.c.h.bf16 %v10149_v61  ;;  %v3146_v21 = vunpack.c.h.bf16 %v9354_v51 }
 0x186   : > { %v2488_v50 = vsel %vm12829_vm5, %v2486_v9, %v2487_v38  ;;  %v2062_v25 = vmul.f32 %v10460_v4, %v13364_v55  ;;  %v2063_v44 = vmul.f32 %v10461_v60, %v13364_v55  ;;  %v13372_v45 = vmul.f32 %v10445_v52, %v12826_v35  ;;  %v10151_v38 = vld [vmem:[%s12320_s5 + $0x30] sm:$0xff]   ;;  %v13377_v9 = vpop.permute.xlu1 %10508 }
 0x187   : > { %v10767_v18 = vpack.i.bf16 %v2622_v7, %v2621_v3  ;;  %v2620_v26 = vunpack.c.l.bf16 %v2488_v50  ;;  %v2060_v5 = vmul.f32 %v10455_v36, %v13364_v55  ;;  %v2061_v27 = vmul.f32 %v10456_v40, %v13364_v55  ;;  %v10150_v50 = vld [vmem:[%s12320_s5 + $0x28] sm:$0xff]  }
 0x188   : > { %v9936_v37 = vunpack.c.l.bf16 %v10149_v61  ;;  %v13380_v3 = vadd.f32 %v2062_v25, %v12872_v15  ;;  %v10777_v7 = vpack.i.bf16 %v3146_v21, %v9937_v24  ;;  %v3143_v4 = vunpack.c.l.bf16 %v9354_v51  ;;  %v13391_v61 = vpop.permute.xlu0 %10503  ;;  %v10152_v25 = vld [vmem:[%s12320_s5 + $0x40] sm:$0xff]  }
 0x189   : > { %10768 = vperm.xlu1 %10301, %v10767_v18   ;;  %v10762_v42 = vpack.i.bf16 %v2620_v26, %v2619_v34  ;;  %v13384_v60 = vadd.f32 %v2063_v44, %v12881_v8  ;;  %v13387_v35 = vadd.f32 %v2060_v5, %v12842_v31  ;;  %v10471_v52 = vunpack.i.h.bf16 %v13253_v29 }
 0x18a   : > { %v10470_v40 = vunpack.i.l.bf16 %v13253_v29  ;;  %v10772_v34 = vpack.i.bf16 %v9936_v37, %v3143_v4  ;;  %v10466_v15 = vunpack.i.h.bf16 %v13266_v43  ;;  %v10465_v51 = vunpack.i.l.bf16 %v13266_v43  ;;  %v13409_v4 = vpop.permute.xlu1 %10518 }
 0x18b   : > { %10763 = vperm.xlu0 %10290, %v10762_v42   ;;  %v9944_v36 = vunpack.c.l.bf16 %v10151_v38  ;;  %v2067_v31 = vmul.f32 %v10471_v52, %v13364_v55  ;;  %v9945_v24 = vunpack.c.h.bf16 %v10151_v38  ;;  %v9940_v21 = vunpack.c.l.bf16 %v10150_v50  ;;  %v9362_v38 = vld [vmem:[%s12320_s5 + $0x3c] ss:$12 sps:$4 sm:$0xff]  }
 0x18c   : > { %v2066_v8 = vmul.f32 %v10470_v40, %v13364_v55  ;;  %v2064_v29 = vmul.f32 %v10465_v51, %v13364_v55  ;;  %v2065_v18 = vmul.f32 %v10466_v15, %v13364_v55  ;;  %v9941_v26 = vunpack.c.h.bf16 %v10150_v50  ;;  %v13421_v15 = vpop.permute.xlu0 %10513 }
 0x18d   : > { %10778 = vperm.xlu1 %10301, %v10777_v7   ;;  %v10481_v37 = vunpack.i.h.bf16 %v13284_v54  ;;  %v13402_v44 = vadd.f32 %v2061_v27, %v12854_v14  ;;  %v10787_v5 = vpack.i.bf16 %v9945_v24, %v9944_v36  ;;  %v10480_v42 = vunpack.i.l.bf16 %v13284_v54  ;;  %v10154_v24 = vld [vmem:[%s12320_s5 + $0x58] sm:$0xff]  }
 0x18e   : > { %v13405_v43 = vadd.f32 %v2066_v8, %v12861_v11  ;;  %v13412_v7 = vadd.f32 %v2067_v31, %v12869_v47  ;;  %v13415_v50 = vadd.f32 %v2064_v29, %v12836_v56  ;;  %v10782_v52 = vpack.i.bf16 %v9941_v26, %v9940_v21  ;;  %v10153_v26 = vld [vmem:[%s12320_s5 + $0x50] sm:$0xff]  }
 0x18f   : > { %10773 = vperm.xlu0 %10290, %v10772_v34   ;;  %v2071_v14 = vmul.f32 %v10481_v37, %v13364_v55  ;;  %v2070_v11 = vmul.f32 %v10480_v42, %v13364_v55  ;;  %v10476_v27 = vunpack.i.h.bf16 %v13294_v22  ;;  %v10475_v54 = vunpack.i.l.bf16 %v13294_v22  ;;  %v13444_v42 = vpop.permute.xlu1 %10528 }
 0x190   : > { %v9949_v40 = vunpack.c.h.bf16 %v10152_v25  ;;  %v13424_v47 = vadd.f32 %v2065_v18, %v12839_v33  ;;  %v3154_v56 = vunpack.c.h.bf16 %v9362_v38  ;;  %v9948_v34 = vunpack.c.l.bf16 %v10152_v25 }
 0x191   : > { %10788 = vperm.xlu1 %10301, %v10787_v5   ;;  %v3151_v51 = vunpack.c.l.bf16 %v9362_v38  ;;  %v13427_v36 = vadd.f32 %v2071_v14, %v12902_v53  ;;  %v2068_v8 = vmul.f32 %v10475_v54, %v13364_v55  ;;  %v2069_v31 = vmul.f32 %v10476_v27, %v13364_v55  ;;  %v10155_v54 = vld [vmem:[%s12320_s5 + $0x68] sm:$0xff]  }
 0x192   : > { %v10491_v22 = vunpack.i.h.bf16 %v13313_v58  ;;  %v10797_v21 = vpack.i.bf16 %v3154_v56, %v9949_v40  ;;  %v10490_v33 = vunpack.i.l.bf16 %v13313_v58  ;;  %v10486_v18 = vunpack.i.h.bf16 %v13329_v39  ;;  %v9370_v40 = vld [vmem:[%s12320_s5 + $0x64] ss:$12 sps:$4 sm:$0xff]  }
 0x193   : > { %10783 = vperm.xlu0 %10290, %v10782_v52   ;;  %v10792_v29 = vpack.i.bf16 %v9948_v34, %v3151_v51  ;;  %v13437_v53 = vadd.f32 %v2070_v11, %v12894_v20  ;;  %v13440_v37 = vadd.f32 %v2068_v8, %v12905_v30  ;;  %v10485_v5 = vunpack.i.l.bf16 %v13329_v39  ;;  %v13456_v39 = vpop.permute.xlu0 %10523 }
 0x194   : > { %v2075_v25 = vmul.f32 %v10491_v22, %v13364_v55  ;;  %v2074_v58 = vmul.f32 %v10490_v33, %v13364_v55  ;;  %v2073_v38 = vmul.f32 %v10486_v18, %v13364_v55  ;;  %v9956_v52 = vunpack.c.l.bf16 %v10154_v24 }
 0x195   : > { %10798 = vperm.xlu1 %10301, %v10797_v21   ;;  %v9957_v14 = vunpack.c.h.bf16 %v10154_v24  ;;  %v13449_v27 = vadd.f32 %v2069_v31, %v12916_v12  ;;  %v9952_v30 = vunpack.c.l.bf16 %v10153_v26  ;;  %v9953_v11 = vunpack.c.h.bf16 %v10153_v26 }
 0x196   : > { %v13452_v20 = vadd.f32 %v2075_v25, %v12926_v63  ;;  %v13459_v56 = vadd.f32 %v2074_v58, %v12935_v23  ;;  %v2072_v34 = vmul.f32 %v10485_v5, %v13364_v55  ;;  %v10501_v8 = vunpack.i.h.bf16 %v13344_v16  ;;  %v13472_v25 = vpop.permute.xlu1 %10538 }
 0x197   : > { %10793 = vperm.xlu0 %10290, %v10792_v29   ;;  %v10807_v51 = vpack.i.bf16 %v9957_v14, %v9956_v52  ;;  %v13464_v12 = vadd.f32 %v2073_v38, %v12940_v6  ;;  %v10802_v63 = vpack.i.bf16 %v9953_v11, %v9952_v30  ;;  %v10500_v31 = vunpack.i.l.bf16 %v13344_v16  ;;  %v10156_v52 = vld [vmem:[%s12320_s5 + $0x78] sm:$0xff]  }
 0x198   : > { %v10496_v22 = vunpack.i.h.bf16 %v13360_v46  ;;  %v2079_v24 = vmul.f32 %v10501_v8, %v13364_v55  ;;  %v10495_v23 = vunpack.i.l.bf16 %v13360_v46  ;;  %v9961_v21 = vunpack.c.h.bf16 %v10155_v54  ;;  %v10157_v46 = vld [vmem:[%s12320_s5 + $0x80] sm:$0xff]  }
 0x199   : > { %10808 = vperm.xlu1 %10301, %v10807_v51   ;;  %v3162_v29 = vunpack.c.h.bf16 %v9370_v40  ;;  %v2078_v33 = vmul.f32 %v10500_v31, %v13364_v55  ;;  %v9960_v6 = vunpack.c.l.bf16 %v10155_v54  ;;  %v3159_v26 = vunpack.c.l.bf16 %v9370_v40 }
 0x19a   : > { %v2077_v18 = vmul.f32 %v10496_v22, %v13364_v55  ;;  %v13475_v16 = vadd.f32 %v2072_v34, %v12947_v57  ;;  %v2076_v5 = vmul.f32 %v10495_v23, %v13364_v55  ;;  %v10511_v38 = vunpack.i.h.bf16 %v13377_v9  ;;  %v13488_v57 = vpop.permute.xlu0 %10533  ;;  %v10158_v23 = vld [vmem:[%s12320_s5 + $0x90] sm:$0xff]  }
 0x19b   : > { %10803 = vperm.xlu0 %10290, %v10802_v63   ;;  %v10817_v58 = vpack.i.bf16 %v3162_v29, %v9961_v21  ;;  %v13482_v14 = vadd.f32 %v2078_v33, %v12965_v1  ;;  %v13485_v30 = vadd.f32 %v2079_v24, %v12968_v62  ;;  %v10812_v11 = vpack.i.bf16 %v9960_v6, %v3159_v26  ;;  %v13509_v6 = vpop.permute.xlu1 %10548 }
 0x19c   : > { %v10510_v54 = vunpack.i.l.bf16 %v13377_v9  ;;  %v13491_v40 = vadd.f32 %v2077_v18, %v12982_v17  ;;  %v2083_v34 = vmul.f32 %v10511_v38, %v13364_v55  ;;  %v10506_v51 = vunpack.i.h.bf16 %v13391_v61  ;;  %v9378_v18 = vld [vmem:[%s12320_s5 + $0x8c] ss:$12 sps:$4 sm:$0xff]  }
 0x19d   : > { %10818 = vperm.xlu1 %10301, %v10817_v58   ;;  %v10505_v1 = vunpack.i.l.bf16 %v13391_v61  ;;  %v9968_v8 = vunpack.c.l.bf16 %v10157_v46  ;;  %v9969_v63 = vunpack.c.h.bf16 %v10157_v46  ;;  %v9964_v31 = vunpack.c.l.bf16 %v10156_v52 }
 0x19e   : > { %v2082_v62 = vmul.f32 %v10510_v54, %v13364_v55  ;;  %v13498_v9 = vadd.f32 %v2076_v5, %v12971_v10  ;;  %v13501_v17 = vadd.f32 %v2083_v34, %v12994_v48  ;;  %v9965_v24 = vunpack.c.h.bf16 %v10156_v52  ;;  %v13521_v52 = vpop.permute.xlu0 %10543 }
 0x19f   : > { %10813 = vperm.xlu0 %10290, %v10812_v11   ;;  %v2080_v22 = vmul.f32 %v10505_v1, %v13364_v55  ;;  %v2081_v21 = vmul.f32 %v10506_v51, %v13364_v55  ;;  %v10827_v29 = vpack.i.bf16 %v9969_v63, %v9968_v8  ;;  %v10521_v61 = vunpack.i.h.bf16 %v13409_v4  ;;  %v10159_v8 = vld [vmem:[%s12320_s5 + $0xa0] sm:$0xff]  }
 0x1a0   : > { %v10520_v33 = vunpack.i.l.bf16 %v13409_v4  ;;  %v13512_v10 = vadd.f32 %v2082_v62, %v13001_v41  ;;  %v10822_v26 = vpack.i.bf16 %v9965_v24, %v9964_v31  ;;  %v10516_v5 = vunpack.i.h.bf16 %v13421_v15 }
 0x1a1   : > { %v13515_v48 = vadd.f32 %v2080_v22, %v13013_v13  ;;  %10828 = vperm.xlu1 %10301, %v10827_v29   ;;  %v2087_v38 = vmul.f32 %v10521_v61, %v13364_v55  ;;  %v10515_v4 = vunpack.i.l.bf16 %v13421_v15  ;;  %v9973_v46 = vunpack.c.h.bf16 %v10158_v23  ;;  %v10160_v15 = vld [vmem:[%s12320_s5 + $0xa8] sm:$0xff]   ;;  %v13544_v29 = vpop.permute.xlu1 %10558 }
 0x1a2   : > { %v2086_v58 = vmul.f32 %v10520_v33, %v13364_v55  ;;  %v2085_v41 = vmul.f32 %v10516_v5, %v13364_v55  ;;  %v3170_v13 = vunpack.c.h.bf16 %v9378_v18  ;;  %v9972_v11 = vunpack.c.l.bf16 %v10158_v23 }
 0x1a3   : > { %10823 = vperm.xlu0 %10290, %v10822_v26   ;;  %v3167_v54 = vunpack.c.l.bf16 %v9378_v18  ;;  %v13525_v34 = vadd.f32 %v2081_v21, %v13006_v19  ;;  %v2084_v1 = vmul.f32 %v10515_v4, %v13364_v55  ;;  %v10531_v62 = vunpack.i.h.bf16 %v13444_v42 }
 0x1a4   : > { %v13528_v51 = vadd.f32 %v2086_v58, %v13031_v0  ;;  %v13535_v63 = vadd.f32 %v2087_v38, %v13034_v32  ;;  %v10837_v31 = vpack.i.bf16 %v3170_v13, %v9973_v46  ;;  %v10530_v24 = vunpack.i.l.bf16 %v13444_v42  ;;  %v13555_v38 = vpop.permute.xlu0 %10553 }
 0x1a5   : > { %v10832_v22 = vpack.i.bf16 %v9972_v11, %v3167_v54  ;;  %v13539_v19 = vadd.f32 %v2085_v41, %v13050_v2  ;;  %v2091_v0 = vmul.f32 %v10531_v62, %v13364_v55  ;;  %v10526_v23 = vunpack.i.h.bf16 %v13456_v39  ;;  %v17066_v2 = vld [vmem:[#allocation16_spill] sm:$0xff]  ;;  %v17067_v54 = vld [vmem:[#allocation17_spill] sm:$0xff] }
 0x1a6   : > { %v10525_v21 = vunpack.i.l.bf16 %v13456_v39  ;;  %10838 = vperm.xlu1 %10301, %v10837_v31   ;;  %v2090_v32 = vmul.f32 %v10530_v24, %v13364_v55  ;;  %v9980_v61 = vunpack.c.l.bf16 %v10160_v15  ;;  %v9981_v33 = vunpack.c.h.bf16 %v10160_v15  ;;  %v10161_v39 = vld [vmem:[%s12320_s5 + $0xb8] sm:$0xff]   ;;  %v9386_v11 = vld [vmem:[%s12320_s5 + $0xb4] ss:$12 sps:$4 sm:$0xff]  }
 0x1a7   : > { %10833 = vperm.xlu0 %10290, %v10832_v22   ;;  %v9976_v42 = vunpack.c.l.bf16 %v10159_v8  ;;  %v13548_v18 = vadd.f32 %v2084_v1, %v13037_v28  ;;  %v13551_v26 = vadd.f32 %v2091_v0, %v17066_v2  ;;  %v9977_v58 = vunpack.c.h.bf16 %v10159_v8  ;;  %v17068_v1 = vld [vmem:[#allocation19_spill] sm:$0xff]  ;;  %v17070_v2 = vld [vmem:[#allocation20_spill] sm:$0xff] }
 0x1a8   : > { %v2088_v5 = vmul.f32 %v10525_v21, %v13364_v55  ;;  %v2089_v4 = vmul.f32 %v10526_v23, %v13364_v55  ;;  %v10847_v46 = vpack.i.bf16 %v9981_v33, %v9980_v61  ;;  %v10541_v41 = vunpack.i.h.bf16 %v13472_v25  ;;  %v13572_v61 = vpop.permute.xlu1 %10568  ;;  %v17069_v33 = vld [vmem:[#allocation18_spill] sm:$0xff] }
 0x1a9   : > { %v10540_v13 = vunpack.i.l.bf16 %v13472_v25  ;;  %v13562_v28 = vadd.f32 %v2090_v32, %v17067_v54  ;;  %v10842_v15 = vpack.i.bf16 %v9977_v58, %v9976_v42  ;;  %v10536_v8 = vunpack.i.h.bf16 %v13488_v57 }
 0x1aa   : > { %v13565_v62 = vadd.f32 %v2088_v5, %v17068_v1  ;;  %10848 = vperm.xlu1 %10301, %v10847_v46   ;;  %v2095_v22 = vmul.f32 %v10541_v41, %v13364_v55  ;;  %v10535_v24 = vunpack.i.l.bf16 %v13488_v57  ;;  %v9985_v25 = vunpack.c.h.bf16 %v10161_v39  ;;  %v10163_v57 = vld [vmem:[%s12320_s5 + $0xd0] sm:$0xff]   ;;  %v10162_v41 = vld [vmem:[%s12320_s5 + $0xc8] sm:$0xff]  }
 0x1ab   : > { %v2094_v31 = vmul.f32 %v10540_v13, %v13364_v55  ;;  %10843 = vperm.xlu0 %10290, %v10842_v15   ;;  %v2093_v0 = vmul.f32 %v10536_v8, %v13364_v55  ;;  %v3178_v23 = vunpack.c.h.bf16 %v9386_v11  ;;  %v9984_v21 = vunpack.c.l.bf16 %v10161_v39  ;;  %v17072_v13 = vld [vmem:[#allocation21_spill] sm:$0xff]  ;;  %v13588_v15 = vpop.permute.xlu0 %10563 }
 0x1ac   : > { %v3175_v32 = vunpack.c.l.bf16 %v9386_v11  ;;  %v13575_v42 = vadd.f32 %v2089_v4, %v17069_v33  ;;  %v2092_v58 = vmul.f32 %v10535_v24, %v13364_v55  ;;  %v10551_v46 = vunpack.i.h.bf16 %v13509_v6  ;;  %v17074_v4 = vld [vmem:[#allocation23_spill] sm:$0xff] }
 0x1ad   : > { %v13578_v5 = vadd.f32 %v2094_v31, %v17070_v2  ;;  %v13585_v54 = vadd.f32 %v2095_v22, %v17072_v13  ;;  %v10857_v1 = vpack.i.bf16 %v3178_v23, %v9985_v25  ;;  %v10550_v11 = vunpack.i.l.bf16 %v13509_v6  ;;  %v17078_v2 = vld [vmem:[#allocation24_spill] sm:$0xff] }
 0x1ae   : > { %v10852_v39 = vpack.i.bf16 %v9984_v21, %v3175_v32  ;;  %v13591_v8 = vadd.f32 %v2093_v0, %v17074_v4  ;;  %v2099_v31 = vmul.f32 %v10551_v46, %v13364_v55  ;;  %v10546_v24 = vunpack.i.h.bf16 %v13521_v52  ;;  %v17076_v21 = vld [vmem:[#allocation22_spill] sm:$0xff] }
 0x1af   : > { %17071 = vst [vmem:[#allocation16_spill] sm:$0xff] %v13578_v5  ;;  %17073 = vst [vmem:[#allocation17_spill] sm:$0xff] %v13585_v54  ;;  %v10545_v33 = vunpack.i.l.bf16 %v13521_v52  ;;  %10858 = vperm.xlu1 %10301, %v10857_v1   ;;  %v2098_v22 = vmul.f32 %v10550_v11, %v13364_v55  ;;  %v9992_v25 = vunpack.c.l.bf16 %v10163_v57  ;;  %v9993_v23 = vunpack.c.h.bf16 %v10163_v57  ;;  %v10164_v4 = vld [vmem:[%s12320_s5 + $0xe0] sm:$0xff]   ;;  %v9394_v11 = vld [vmem:[%s12320_s5 + $0xdc] ss:$12 sps:$4 sm:$0xff]   ;;  %v10579_v57 = vpop.permute.xlu1 %10578 }
 0x1b0   : > { %17075 = vst [vmem:[#allocation19_spill] sm:$0xff] %v13591_v8  ;;  %10853 = vperm.xlu0 %10290, %v10852_v39   ;;  %v9988_v6 = vunpack.c.l.bf16 %v10162_v41  ;;  %v13598_v32 = vadd.f32 %v2092_v58, %v17076_v21  ;;  %v13601_v0 = vadd.f32 %v2099_v31, %v17078_v2  ;;  %v9989_v13 = vunpack.c.h.bf16 %v10162_v41  ;;  %v17080_v54 = vld [vmem:[#allocation25_spill] sm:$0xff]  ;;  %v17082_v58 = vld [vmem:[#allocation27_spill] sm:$0xff] }
 0x1b1   : > { %v2096_v46 = vmul.f32 %v10545_v33, %v13364_v55  ;;  %v2097_v52 = vmul.f32 %v10546_v24, %v13364_v55  ;;  %v10867_v8 = vpack.i.bf16 %v9993_v23, %v9992_v25  ;;  %v10561_v1 = vunpack.i.h.bf16 %v13544_v29  ;;  %v10574_v23 = vpop.permute.xlu0 %10573 }
 0x1b2   : > { %17077 = vst [vmem:[#allocation18_spill] sm:$0xff] %v13598_v32  ;;  %17079 = vst [vmem:[#allocation20_spill] sm:$0xff] %v13601_v0  ;;  %v10560_v39 = vunpack.i.l.bf16 %v13544_v29  ;;  %v13610_v5 = vadd.f32 %v2098_v22, %v17080_v54  ;;  %v10862_v31 = vpack.i.bf16 %v9989_v13, %v9988_v6  ;;  %v10556_v33 = vunpack.i.h.bf16 %v13555_v38  ;;  %v17084_v6 = vld [vmem:[#allocation26_spill] sm:$0xff]  ;;  %v17098_v32 = vld [vmem:[#allocation35_spill] sm:$0xff] }
 0x1b3   : > { %v13613_v21 = vadd.f32 %v2096_v46, %v17082_v58  ;;  %10868 = vperm.xlu1 %10301, %v10867_v8   ;;  %v2103_v24 = vmul.f32 %v10561_v1, %v13364_v55  ;;  %v10555_v29 = vunpack.i.l.bf16 %v13555_v38  ;;  %v9997_v25 = vunpack.c.h.bf16 %v10164_v4  ;;  %v17086_v58 = vld [vmem:[#allocation28_spill] sm:$0xff] }
 0x1b4   : > { %17081 = vst [vmem:[#allocation21_spill] sm:$0xff] %v13610_v5  ;;  %v2102_v41 = vmul.f32 %v10560_v39, %v13364_v55  ;;  %10863 = vperm.xlu0 %10290, %v10862_v31   ;;  %v2101_v54 = vmul.f32 %v10556_v33, %v13364_v55  ;;  %v3186_v22 = vunpack.c.h.bf16 %v9394_v11  ;;  %v9996_v2 = vunpack.c.l.bf16 %v10164_v4  ;;  %v10165_v38 = vld [vmem:[%s12320_s5 + $0xf0] sm:$0xff]   ;;  %v17088_v5 = vld [vmem:[#allocation29_spill] sm:$0xff] }
 0x1b5   : > { %17083 = vst [vmem:[#allocation23_spill] sm:$0xff] %v13613_v21  ;;  %v3183_v46 = vunpack.c.l.bf16 %v9394_v11  ;;  %v13621_v13 = vadd.f32 %v2097_v52, %v17084_v6  ;;  %v2100_v39 = vmul.f32 %v10555_v29, %v13364_v55  ;;  %v10571_v1 = vunpack.i.h.bf16 %v13572_v61  ;;  %v10166_v21 = vld [vmem:[%s12320_s5 + $0xf8] sm:$0xff]   ;;  %v17090_v11 = vld [vmem:[#allocation31_spill] sm:$0xff] }
 0x1b6   : > { %v13624_v8 = vadd.f32 %v2102_v41, %v17086_v58  ;;  %v13631_v0 = vadd.f32 %v2103_v24, %v17088_v5  ;;  %v10877_v31 = vpack.i.bf16 %v3186_v22, %v9997_v25  ;;  %v10570_v4 = vunpack.i.l.bf16 %v13572_v61  ;;  %v10589_v58 = vpop.permute.xlu1 %10588  ;;  %v17092_v61 = vld [vmem:[#allocation30_spill] sm:$0xff] }
 0x1b7   : > { %17085 = vst [vmem:[#allocation22_spill] sm:$0xff] %v13621_v13  ;;  %v10872_v33 = vpack.i.bf16 %v9996_v2, %v3183_v46  ;;  %v13635_v52 = vadd.f32 %v2101_v54, %v17090_v11  ;;  %v2107_v41 = vmul.f32 %v10571_v1, %v13364_v55  ;;  %v10566_v6 = vunpack.i.h.bf16 %v13588_v15  ;;  %v17094_v54 = vld [vmem:[#allocation32_spill] sm:$0xff]  ;;  %v17096_v13 = vld [vmem:[#allocation33_spill] sm:$0xff] }
 0x1b8   : > { %17087 = vst [vmem:[#allocation24_spill] sm:$0xff] %v13624_v8  ;;  %17089 = vst [vmem:[#allocation25_spill] sm:$0xff] %v13631_v0  ;;  %v10565_v29 = vunpack.i.l.bf16 %v13588_v15  ;;  %10878 = vperm.xlu1 %10301, %v10877_v31   ;;  %v2106_v5 = vmul.f32 %v10570_v4, %v13364_v55  ;;  %v10004_v24 = vunpack.c.l.bf16 %v10166_v21  ;;  %v10005_v25 = vunpack.c.h.bf16 %v10166_v21  ;;  %v10584_v15 = vpop.permute.xlu0 %10583  ;;  %v9402_v4 = vld [vmem:[%s12320_s5 + $0x104] ss:$12 sps:$4 sm:$0xff]  }
 0x1b9   : > { %17091 = vst [vmem:[#allocation27_spill] sm:$0xff] %v13635_v52  ;;  %10873 = vperm.xlu0 %10290, %v10872_v33   ;;  %v10000_v22 = vunpack.c.l.bf16 %v10165_v38  ;;  %v13642_v2 = vadd.f32 %v2100_v39, %v17092_v61  ;;  %v13645_v46 = vadd.f32 %v2107_v41, %v17094_v54  ;;  %v10001_v11 = vunpack.c.h.bf16 %v10165_v38  ;;  %v10167_v52 = vld [vmem:[%s12320_s5 + $0x108] sm:$0xff]  }
 0x1ba   : > { %v2104_v1 = vmul.f32 %v10565_v29, %v13364_v55  ;;  %v2105_v31 = vmul.f32 %v10566_v6, %v13364_v55  ;;  %v10887_v0 = vpack.i.bf16 %v10005_v25, %v10004_v24  ;;  %v10581_v33 = vunpack.i.h.bf16 %v10579_v57  ;;  %v10599_v54 = vpop.permute.xlu1 %10598 }
 0x1bb   : > { %17093 = vst [vmem:[#allocation26_spill] sm:$0xff] %v13642_v2  ;;  %17095 = vst [vmem:[#allocation28_spill] sm:$0xff] %v13645_v46  ;;  %v10580_v8 = vunpack.i.l.bf16 %v10579_v57  ;;  %v13652_v21 = vadd.f32 %v2106_v5, %v17096_v13  ;;  %v10882_v61 = vpack.i.bf16 %v10001_v11, %v10000_v22  ;;  %v10576_v41 = vunpack.i.h.bf16 %v10574_v23  ;;  %v17101_v22 = vld [vmem:[#allocation36_spill] sm:$0xff] }
 0x1bc   : > { %v13655_v39 = vadd.f32 %v2104_v1, %v17098_v32  ;;  %10888 = vperm.xlu1 %10301, %v10887_v0   ;;  %v2111_v29 = vmul.f32 %v10581_v33, %v13364_v55  ;;  %v10575_v6 = vunpack.i.l.bf16 %v10574_v23  ;;  %v10009_v24 = vunpack.c.h.bf16 %v10167_v52  ;;  %v17100_v32 = vld [vmem:[#allocation34_spill] sm:$0xff]  ;;  %v10168_v33 = vld [vmem:[%s12320_s5 + $0x118] sm:$0xff]  }
 0x1bd   : > { %17097 = vst [vmem:[#allocation29_spill] sm:$0xff] %v13652_v21  ;;  %v2110_v38 = vmul.f32 %v10580_v8, %v13364_v55  ;;  %10883 = vperm.xlu0 %10290, %v10882_v61   ;;  %v2109_v57 = vmul.f32 %v10576_v41, %v13364_v55  ;;  %v3194_v25 = vunpack.c.h.bf16 %v9402_v4  ;;  %v10008_v13 = vunpack.c.l.bf16 %v10167_v52  ;;  %v17103_v23 = vld [vmem:[#allocation37_spill] sm:$0xff]  ;;  %v10594_v52 = vpop.permute.xlu0 %10593 }
 0x1be   : > { %17099 = vst [vmem:[#allocation31_spill] sm:$0xff] %v13655_v39  ;;  %v3191_v5 = vunpack.c.l.bf16 %v9402_v4  ;;  %v13661_v1 = vadd.f32 %v2105_v31, %v17100_v32  ;;  %v2108_v0 = vmul.f32 %v10575_v6, %v13364_v55  ;;  %v10591_v8 = vunpack.i.h.bf16 %v10589_v58  ;;  %v10169_v39 = vld [vmem:[%s12320_s5 + $0x120] sm:$0xff]   ;;  %v17105_v4 = vld [vmem:[#allocation39_spill] sm:$0xff] }
 0x1bf   : > { %v13664_v11 = vadd.f32 %v2110_v38, %v17101_v22  ;;  %v13670_v21 = vadd.f32 %v2111_v29, %v17103_v23  ;;  %v10897_v61 = vpack.i.bf16 %v3194_v25, %v10009_v24  ;;  %v10590_v46 = vunpack.i.l.bf16 %v10589_v58  ;;  %v17107_v24 = vld [vmem:[#allocation38_spill] sm:$0xff]  ;;  %v17108_v58 = vld [vmem:[#allocation40_spill] sm:$0xff] }
 0x1c0   : > { %v10892_v41 = vpack.i.bf16 %v10008_v13, %v3191_v5  ;;  %v13673_v2 = vadd.f32 %v2109_v57, %v17105_v4  ;;  %v2115_v31 = vmul.f32 %v10591_v8, %v13364_v55  ;;  %v10586_v38 = vunpack.i.h.bf16 %v10584_v15  ;;  %v10170_v8 = vld [vmem:[%s12320_s5 + $0x130] sm:$0xff]  }
 0x1c1   : > { %17102 = vst [vmem:[#allocation30_spill] sm:$0xff] %v13664_v11  ;;  %17104 = vst [vmem:[#allocation32_spill] sm:$0xff] %v13670_v21  ;;  %v10585_v32 = vunpack.i.l.bf16 %v10584_v15  ;;  %10898 = vperm.xlu1 %10301, %v10897_v61   ;;  %v2114_v6 = vmul.f32 %v10590_v46, %v13364_v55  ;;  %v10016_v22 = vunpack.c.l.bf16 %v10169_v39  ;;  %v10017_v29 = vunpack.c.h.bf16 %v10169_v39  ;;  %v10609_v46 = vpop.permute.xlu1 %10608  ;;  %v17110_v21 = vld [vmem:[#allocation41_spill] sm:$0xff]  ;;  %v17112_v11 = vld [vmem:[#allocation43_spill] sm:$0xff] }
 0x1c2   : > { %17106 = vst [vmem:[#allocation33_spill] sm:$0xff] %v13673_v2  ;;  %10893 = vperm.xlu0 %10290, %v10892_v41   ;;  %v10012_v23 = vunpack.c.l.bf16 %v10168_v33  ;;  %v13678_v25 = vadd.f32 %v2108_v0, %v17107_v24  ;;  %v13681_v13 = vadd.f32 %v2115_v31, %v17108_v58  ;;  %v10013_v5 = vunpack.c.h.bf16 %v10168_v33  ;;  %v9410_v2 = vld [vmem:[%s12320_s5 + $0x12c] ss:$12 sps:$4 sm:$0xff]  }
 0x1c3   : > { %v2112_v57 = vmul.f32 %v10585_v32, %v13364_v55  ;;  %v2113_v15 = vmul.f32 %v10586_v38, %v13364_v55  ;;  %v10907_v4 = vpack.i.bf16 %v10017_v29, %v10016_v22  ;;  %v10601_v61 = vunpack.i.h.bf16 %v10599_v54 }
 0x1c4   : > { %17109 = vst [vmem:[#allocation35_spill] sm:$0xff] %v13681_v13  ;;  %v10600_v41 = vunpack.i.l.bf16 %v10599_v54  ;;  %v13688_v39 = vadd.f32 %v2114_v6, %v17110_v21  ;;  %v10902_v24 = vpack.i.bf16 %v10013_v5, %v10012_v23  ;;  %v10596_v31 = vunpack.i.h.bf16 %v10594_v52  ;;  %v10604_v54 = vpop.permute.xlu0 %10603  ;;  %v17118_v13 = vld [vmem:[#allocation46_spill] sm:$0xff] }
 0x1c5   : > { %v13691_v0 = vadd.f32 %v2112_v57, %v17112_v11  ;;  %10908 = vperm.xlu1 %10301, %v10907_v4   ;;  %v2119_v38 = vmul.f32 %v10601_v61, %v13364_v55  ;;  %v10595_v32 = vunpack.i.l.bf16 %v10594_v52  ;;  %v10021_v22 = vunpack.c.h.bf16 %v10170_v8  ;;  %v17114_v11 = vld [vmem:[#allocation42_spill] sm:$0xff]  ;;  %v17116_v52 = vld [vmem:[#allocation44_spill] sm:$0xff] }
 0x1c6   : > { %17111 = vst [vmem:[#allocation34_spill] sm:$0xff] %v13688_v39  ;;  %v2118_v33 = vmul.f32 %v10600_v41, %v13364_v55  ;;  %10903 = vperm.xlu0 %10290, %v10902_v24   ;;  %v2117_v29 = vmul.f32 %v10596_v31, %v13364_v55  ;;  %v3202_v21 = vunpack.c.h.bf16 %v9410_v2  ;;  %v10020_v6 = vunpack.c.l.bf16 %v10170_v8  ;;  %v10172_v41 = vld [vmem:[%s12320_s5 + $0x148] sm:$0xff]   ;;  %v10171_v61 = vld [vmem:[%s12320_s5 + $0x140] sm:$0xff]  }
 0x1c7   : > { %17113 = vst [vmem:[#allocation36_spill] sm:$0xff] %v13691_v0  ;;  %v3199_v58 = vunpack.c.l.bf16 %v9410_v2  ;;  %v13697_v57 = vadd.f32 %v2113_v15, %v17114_v11  ;;  %v2116_v5 = vmul.f32 %v10595_v32, %v13364_v55  ;;  %v10611_v4 = vunpack.i.h.bf16 %v10609_v46 }
 0x1c8   : > { %v13700_v23 = vadd.f32 %v2118_v33, %v13299_v49  ;;  %v13706_v0 = vadd.f32 %v2119_v38, %v17116_v52  ;;  %v10917_v24 = vpack.i.bf16 %v3202_v21, %v10021_v22  ;;  %v10610_v31 = vunpack.i.l.bf16 %v10609_v46  ;;  %v10619_v33 = vpop.permute.xlu1 %10618  ;;  %v17120_v21 = vld [vmem:[#allocation45_spill] sm:$0xff] }
 0x1c9   : > { %v10912_v39 = vpack.i.bf16 %v10020_v6, %v3199_v58  ;;  %v13709_v8 = vadd.f32 %v2117_v29, %v17118_v13  ;;  %v2123_v2 = vmul.f32 %v10611_v4, %v13364_v55  ;;  %v10606_v15 = vunpack.i.h.bf16 %v10604_v54  ;;  %v17121_v13 = vld [vmem:[#allocation47_spill] sm:$0xff]  ;;  %v9417_v4 = vld [vmem:[%s12320_s5 + $0x1c] sm:$0xf] }
 0x1ca   : > { %17115 = vst [vmem:[#allocation37_spill] sm:$0xff] %v13700_v23  ;;  %17117 = vst [vmem:[#allocation39_spill] sm:$0xff] %v13706_v0  ;;  %v10605_v49 = vunpack.i.l.bf16 %v10604_v54  ;;  %10918 = vperm.xlu1 %10301, %v10917_v24   ;;  %v2122_v32 = vmul.f32 %v10610_v31, %v13364_v55  ;;  %v10028_v38 = vunpack.c.l.bf16 %v10172_v41  ;;  %v10029_v11 = vunpack.c.h.bf16 %v10172_v41  ;;  %v10614_v54 = vpop.permute.xlu0 %10613  ;;  %v17122_v24 = vld [vmem:[#allocation13_spill] sm:$0xff]  ;;  %v17124_v23 = vld [vmem:[#allocation48_spill] sm:$0xff] }
 0x1cb   : > { %17119 = vst [vmem:[#allocation38_spill] sm:$0xff] %v13709_v8  ;;  %10913 = vperm.xlu0 %10290, %v10912_v39   ;;  %v10024_v22 = vunpack.c.l.bf16 %v10171_v61  ;;  %v13714_v46 = vadd.f32 %v2116_v5, %v17120_v21  ;;  %v13717_v29 = vadd.f32 %v2123_v2, %v17121_v13  ;;  %v10025_v58 = vunpack.c.h.bf16 %v10171_v61  ;;  %v9418_v41 = vld [vmem:[%s12320_s5 + $0x20] sm:$0xf]  ;;  %v9419_v0 = vld [vmem:[%s12320_s5 + $0x24] sm:$0x1] }
 0x1cc   : > { %v2120_v6 = vmul.f32 %v10605_v49, %v13364_v55  ;;  %v2121_v52 = vmul.f32 %v10606_v15, %v13364_v55  ;;  %v10927_v39 = vpack.i.bf16 %v10029_v11, %v10028_v38  ;;  %v13723_v8 = vsub.s32 2, %v17122_v24  ;;  %v17126_v24 = vld [vmem:[#allocation49_spill] sm:$0xff] }
 0x1cd   : > { %v10621_v31 = vunpack.i.h.bf16 %v10619_v33  ;;  %v13728_v5 = vadd.f32 %v2122_v32, %v17124_v23  ;;  %v10922_v21 = vpack.i.bf16 %v10025_v58, %v10024_v22  ;;  %v10620_v61 = vunpack.i.l.bf16 %v10619_v33 }
 0x1ce   : > { %17123 = vst [vmem:[#allocation40_spill] sm:$0xff] %v13723_v8  ;;  %v13731_v2 = vadd.f32 %v2120_v6, %v13372_v45  ;;  %10928 = vperm.xlu1 %10301, %v10927_v39   ;;  %v13735_v55 = vrot.slane %v12804_v59, %v13723_v8  ;;  %v10616_v15 = vunpack.i.h.bf16 %v10614_v54  ;;  %v10615_v49 = vunpack.i.l.bf16 %v10614_v54  ;;  %v9415_v59 = vld [vmem:[%s12320_s5 + $0x14] sm:$0xf] }
 0x1cf   : > { %v3759_v38 = vshll.u32 %v9417_v4, 16  ;;  %10923 = vperm.xlu0 %10290, %v10922_v21   ;;  %v3763_v11 = vshrl.u32 %v9417_v4, 16  ;;  %v3769_v13 = vshll.u32 %v9418_v41, 16  ;;  %v3773_v23 = vshrl.u32 %v9418_v41, 16  ;;  %v10629_v21 = vpop.permute.xlu1 %10628 }
 0x1d0   : > { %17125 = vst [vmem:[#allocation41_spill] sm:$0xff] %v13731_v2  ;;  %v3779_v32 = vshll.u32 %v9419_v0, 16  ;;  %v13738_v45 = vadd.f32 %v2121_v52, %v17126_v24  ;;  %v2949_v22 = vmul.f32 %v10620_v61, %v13735_v55  ;;  %v2950_v33 = vmul.f32 %v10621_v31, %v13735_v55  ;;  %v9416_v2 = vld [vmem:[%s12320_s5 + $0x18] sm:$0xf] }
 0x1d1   : > { %v2947_v6 = vmul.f32 %v10615_v49, %v13735_v55  ;;  %v3761_v58 = vrot.slane %v3759_v38, 5  ;;  %v3765_v39 = vrot.slane %v3763_v11, 4  ;;  %v3771_v54 = vrot.slane %v3769_v13, 5 }
 0x1d2   : > { %17127 = vst [vmem:[#allocation43_spill] sm:$0xff] %v13738_v45  ;;  %v3775_v8 = vrot.slane %v3773_v23, 4  ;;  %v13746_v4 = vadd.f32 %v2949_v22, %v13380_v3  ;;  %v13749_v0 = vadd.f32 %v2950_v33, %v13384_v60  ;;  %v2948_v52 = vmul.f32 %v10616_v15, %v13735_v55  ;;  %v10624_v45 = vpop.permute.xlu0 %10623 }
 0x1d3   : > { %v13753_v41 = vadd.f32 %v2947_v6, %v13387_v35  ;;  %v3766_v31 = vor.u32 %v3765_v39, %v3761_v58  ;;  %v3781_v49 = vrot.slane %v3779_v32, 5  ;;  %v3740_v38 = vshrl.u32 %v9415_v59, 16  ;;  %v9422_v39 = vld [vmem:[%s12320_s5 + $0x30] sm:$0xf]  ;;  %v11799_v6 = vld [vmem:[%s12320_s5 + $0x18] sm:$0xf] }
 0x1d4   : > { %17128 = vst [vmem:[#allocation42_spill] sm:$0xff] %v13746_v4  ;;  %17129 = vst [vmem:[#allocation44_spill] sm:$0xff] %v13749_v0  ;;  %v3776_v61 = vor.u32 %v3775_v8, %v3771_v54  ;;  %v3743_v11 = vshll.u32 %v9415_v59, 16  ;;  %v3749_v13 = vshll.u32 %v9416_v2, 16  ;;  %v3753_v23 = vshrl.u32 %v9416_v2, 16 }
 0x1d5   : > { %v10631_v24 = vunpack.i.h.bf16 %v10629_v21  ;;  %v3767_v3 = vrot.slane %v3766_v31, 4  ;;  %v3742_v60 = vrot.slane %v3740_v38, 4  ;;  %v10630_v33 = vunpack.i.l.bf16 %v10629_v21 }
 0x1d6   : > { %v3777_v22 = vrot.slane %v3776_v61, 4  ;;  %v3745_v0 = vrot.slane %v3743_v11, 5  ;;  %v3751_v15 = vrot.slane %v3749_v13, 5  ;;  %v3755_v4 = vrot.slane %v3753_v23, 4  ;;  %v9423_v11 = vld [vmem:[%s12320_s5 + $0x34] sm:$0xf] }
 0x1d7   : > { %v2954_v35 = vmul.f32 %v10631_v24, %v13735_v55  ;;  %v3772_v8 = vsel %vm12424_vm2, %v3767_v3, %v3771_v54  ;;  %v2953_v2 = vmul.f32 %v10630_v33, %v13735_v55  ;;  %v10626_v59 = vunpack.i.h.bf16 %v10624_v45 }
 0x1d8   : > { %v3782_v32 = vsel %vm12424_vm2, %v3777_v22, %v3781_v49  ;;  %v4509_v31 = vunpack.c.l.bf16 %v3772_v8  ;;  %v3746_v38 = vor.u32 %v3745_v0, %v3742_v60  ;;  %v3756_v21 = vor.u32 %v3755_v4, %v3751_v15  ;;  %v9424_v0 = vld [vmem:[%s12320_s5 + $0x38] sm:$0x1] }
 0x1d9   : > { %v4510_v61 = vunpack.c.l.bf16 %v3782_v32  ;;  %v13764_v13 = vadd.f32 %v2948_v52, %v13402_v44  ;;  %v13767_v23 = vadd.f32 %v2953_v2, %v13405_v43  ;;  %v10625_v54 = vunpack.i.l.bf16 %v10624_v45  ;;  %v9420_v52 = vld [vmem:[%s12320_s5 + $0x28] sm:$0xf] }
 0x1da   : > { %v2952_v49 = vmul.f32 %v10626_v59, %v13735_v55  ;;  %v3747_v3 = vrot.slane %v3746_v38, 4  ;;  %v3757_v22 = vrot.slane %v3756_v21, 4  ;;  %v3803_v33 = vshll.u32 %v9422_v39, 16  ;;  %v9421_v59 = vld [vmem:[%s12320_s5 + $0x2c] sm:$0xf] }
 0x1db   : > { %17131 = vst [vmem:[#allocation46_spill] sm:$0xff] %v13764_v13  ;;  %17132 = vst [vmem:[#allocation45_spill] sm:$0xff] %v13767_v23  ;;  %v10937_v24 = vpack.i.bf16 %v4510_v61, %v4509_v31  ;;  %v13771_v8 = vadd.f32 %v2954_v35, %v13412_v7  ;;  %v2951_v4 = vmul.f32 %v10625_v54, %v13735_v55  ;;  %v3807_v60 = vshrl.u32 %v9422_v39, 16  ;;  %v10634_v13 = vpop.permute.xlu0 %10633 }
 0x1dc   : > { %v3813_v44 = vshll.u32 %v9423_v11, 16  ;;  %v3752_v43 = vsel %vm12424_vm2, %v3747_v3, %v3751_v15  ;;  %v3762_v45 = vsel %vm12424_vm2, %v3757_v22, %v3761_v58  ;;  %v3805_v32 = vrot.slane %v3803_v33, 5 }
 0x1dd   : > { %17133 = vst [vmem:[#allocation47_spill] sm:$0xff] %v13771_v8  ;;  %10938 = vperm.xlu1 %10301, %v10937_v24   ;;  %v3817_v2 = vshrl.u32 %v9423_v11, 16  ;;  %v4507_v31 = vunpack.c.l.bf16 %v3752_v43  ;;  %v4508_v61 = vunpack.c.l.bf16 %v3762_v45  ;;  %v13782_v7 = vadd.f32 %v2952_v49, %v13424_v47  ;;  %v10639_v24 = vpop.permute.xlu1 %10638 }
 0x1de   : > { %v3809_v35 = vrot.slane %v3807_v60, 4  ;;  %v3815_v38 = vrot.slane %v3813_v44, 5  ;;  %v3823_v21 = vshll.u32 %v9424_v0, 16  ;;  %v3784_v54 = vshrl.u32 %v9420_v52, 16 }
 0x1df   : > { %v3819_v39 = vrot.slane %v3817_v2, 4  ;;  %v10932_v8 = vpack.i.bf16 %v4508_v61, %v4507_v31  ;;  %v3787_v15 = vshll.u32 %v9420_v52, 16  ;;  %v3793_v3 = vshll.u32 %v9421_v59, 16 }
 0x1e0   : > { %v3810_v23 = vor.u32 %v3809_v35, %v3805_v32  ;;  %v3825_v22 = vrot.slane %v3823_v21, 5  ;;  %v3786_v11 = vrot.slane %v3784_v54, 4  ;;  %v3797_v33 = vshrl.u32 %v9421_v59, 16 }
 0x1e1   : > { %v3820_v58 = vor.u32 %v3819_v39, %v3815_v38  ;;  %10933 = vperm.xlu0 %10290, %v10932_v8   ;;  %v3789_v47 = vrot.slane %v3787_v15, 5  ;;  %v3795_v49 = vrot.slane %v3793_v3, 5  ;;  %v10641_v60 = vunpack.i.h.bf16 %v10639_v24  ;;  %v9427_v39 = vld [vmem:[%s12320_s5 + $0x44] sm:$0xf] }
 0x1e2   : > { %v3811_v43 = vrot.slane %v3810_v23, 4  ;;  %v3799_v45 = vrot.slane %v3797_v33, 4  ;;  %v10640_v0 = vunpack.i.l.bf16 %v10639_v24  ;;  %v10636_v2 = vunpack.i.h.bf16 %v10634_v13 }
 0x1e3   : > { %v3821_v44 = vrot.slane %v3820_v58, 4  ;;  %v3790_v52 = vor.u32 %v3789_v47, %v3786_v11  ;;  %v2958_v61 = vmul.f32 %v10641_v60, %v13735_v55  ;;  %v10635_v35 = vunpack.i.l.bf16 %v10634_v13  ;;  %v9429_v11 = vld [vmem:[%s12320_s5 + $0x4c] sm:$0x1]  ;;  %v9425_v60 = vld [vmem:[%s12320_s5 + $0x3c] sm:$0xf] }
 0x1e4   : > { %v3816_v31 = vsel %vm12424_vm2, %v3811_v43, %v3815_v38  ;;  %v3800_v59 = vor.u32 %v3799_v45, %v3795_v49  ;;  %v2957_v21 = vmul.f32 %v10640_v0, %v13735_v55  ;;  %v13792_v54 = vadd.f32 %v2951_v4, %v13415_v50 }
 0x1e5   : > { %v3826_v23 = vsel %vm12424_vm2, %v3821_v44, %v3825_v22  ;;  %v4513_v8 = vunpack.c.l.bf16 %v3816_v31  ;;  %v3791_v24 = vrot.slane %v3790_v52, 4  ;;  %v2955_v15 = vmul.f32 %v10635_v35, %v13735_v55  ;;  %v9428_v22 = vld [vmem:[%s12320_s5 + $0x48] sm:$0xf]  ;;  %v9426_v44 = vld [vmem:[%s12320_s5 + $0x40] sm:$0xf] }
 0x1e6   : > { %v4514_v38 = vunpack.c.l.bf16 %v3826_v23  ;;  %v3801_v3 = vrot.slane %v3800_v59, 4  ;;  %v13796_v13 = vadd.f32 %v2957_v21, %v13437_v53  ;;  %v13799_v58 = vadd.f32 %v2958_v61, %v13427_v36 }
 0x1e7   : > { %v3847_v33 = vshll.u32 %v9427_v39, 16  ;;  %v3796_v47 = vsel %vm12424_vm2, %v3791_v24, %v3795_v49  ;;  %v2956_v50 = vmul.f32 %v10636_v2, %v13735_v55  ;;  %v3851_v4 = vshrl.u32 %v9427_v39, 16  ;;  %v10644_v24 = vpop.permute.xlu0 %10643 }
 0x1e8   : > { %v10947_v43 = vpack.i.bf16 %v4514_v38, %v4513_v8  ;;  %v3806_v45 = vsel %vm12424_vm2, %v3801_v3, %v3805_v32  ;;  %v4511_v53 = vunpack.c.l.bf16 %v3796_v47  ;;  %v13811_v0 = vadd.f32 %v2955_v15, %v13440_v37  ;;  %v10649_v8 = vpop.permute.xlu1 %10648 }
 0x1e9   : > { %v13813_v36 = vrot.slane %v3847_v33, 5  ;;  %v4512_v31 = vunpack.c.l.bf16 %v3806_v45  ;;  %v3853_v52 = vrot.slane %v3851_v4, 4  ;;  %v3857_v61 = vshll.u32 %v9428_v22, 16 }
 0x1ea   : > { %10948 = vperm.xlu1 %10301, %v10947_v43   ;;  %v3861_v35 = vshrl.u32 %v9428_v22, 16  ;;  %v3867_v49 = vshll.u32 %v9429_v11, 16  ;;  %v3828_v23 = vshrl.u32 %v9425_v60, 16  ;;  %v3831_v2 = vshll.u32 %v9425_v60, 16 }
 0x1eb   : > { %v3837_v39 = vshll.u32 %v9426_v44, 16  ;;  %v10942_v59 = vpack.i.bf16 %v4512_v31, %v4511_v53  ;;  %v3854_v21 = vor.u32 %v3853_v52, %v13813_v36  ;;  %v3859_v32 = vrot.slane %v3857_v61, 5 }
 0x1ec   : > { %v3863_v38 = vrot.slane %v3861_v35, 4  ;;  %v3869_v37 = vrot.slane %v3867_v49, 5  ;;  %v3830_v15 = vrot.slane %v3828_v23, 4  ;;  %v3833_v3 = vrot.slane %v3831_v2, 5 }
 0x1ed   : > { %v3839_v33 = vrot.slane %v3837_v39, 5  ;;  %10943 = vperm.xlu0 %10290, %v10942_v59   ;;  %v3855_v43 = vrot.slane %v3854_v21, 4  ;;  %v3841_v22 = vshrl.u32 %v9426_v44, 16  ;;  %v10651_v11 = vunpack.i.h.bf16 %v10649_v8  ;;  %v9432_v39 = vld [vmem:[%s12320_s5 + $0x58] sm:$0xf] }
 0x1ee   : > { %v3864_v47 = vor.u32 %v3863_v38, %v3859_v32  ;;  %v3834_v4 = vor.u32 %v3833_v3, %v3830_v15  ;;  %v10650_v60 = vunpack.i.l.bf16 %v10649_v8  ;;  %v10646_v45 = vunpack.i.h.bf16 %v10644_v24  ;;  %v9433_v38 = vld [vmem:[%s12320_s5 + $0x5c] sm:$0xf] }
 0x1ef   : > { %v10645_v53 = vunpack.i.l.bf16 %v10644_v24  ;;  %v3860_v31 = vsel %vm12424_vm2, %v3855_v43, %v3859_v32  ;;  %v3843_v61 = vrot.slane %v3841_v22, 4  ;;  %v2962_v35 = vmul.f32 %v10651_v11, %v13735_v55 }
 0x1f0   : > { %v3865_v52 = vrot.slane %v3864_v47, 4  ;;  %v4517_v49 = vunpack.c.l.bf16 %v3860_v31  ;;  %v3835_v23 = vrot.slane %v3834_v4, 4  ;;  %v2961_v2 = vmul.f32 %v10650_v60, %v13735_v55  ;;  %v9431_v31 = vld [vmem:[%s12320_s5 + $0x54] sm:$0xf] }
 0x1f1   : > { %v2959_v44 = vmul.f32 %v10645_v53, %v13735_v55  ;;  %v13823_v8 = vadd.f32 %v2956_v50, %v13449_v27  ;;  %v3844_v21 = vor.u32 %v3843_v61, %v3839_v33  ;;  %v13828_v32 = vadd.f32 %v2962_v35, %v13452_v20  ;;  %v9434_v27 = vld [vmem:[%s12320_s5 + $0x60] sm:$0x1]  ;;  %v9430_v50 = vld [vmem:[%s12320_s5 + $0x50] sm:$0xf] }
 0x1f2   : > { %v3870_v59 = vsel %vm12424_vm2, %v3865_v52, %v3869_v37  ;;  %v3840_v15 = vsel %vm12424_vm2, %v3835_v23, %v3839_v33  ;;  %v13834_v3 = vadd.f32 %v2961_v2, %v13459_v56  ;;  %v2960_v43 = vmul.f32 %v10646_v45, %v13735_v55 }
 0x1f3   : > { %17134 = vst [vmem:[#allocation13_spill] sm:$0xff] %v13828_v32  ;;  %v4518_v24 = vunpack.c.l.bf16 %v3870_v59  ;;  %v3845_v47 = vrot.slane %v3844_v21, 4  ;;  %v4515_v22 = vunpack.c.l.bf16 %v3840_v15  ;;  %v13840_v37 = vadd.f32 %v2959_v44, %v13475_v16  ;;  %v10659_v16 = vpop.permute.xlu1 %10658  ;;  %v10654_v21 = vpop.permute.xlu0 %10653 }
 0x1f4   : > { %v3891_v20 = vshll.u32 %v9432_v39, 16  ;;  %v3895_v4 = vshrl.u32 %v9432_v39, 16  ;;  %v3901_v60 = vshll.u32 %v9433_v38, 16  ;;  %v3905_v53 = vshrl.u32 %v9433_v38, 16 }
 0x1f5   : > { %17135 = vst [vmem:[#allocation48_spill] sm:$0xff] %v13840_v37  ;;  %v10957_v11 = vpack.i.bf16 %v4518_v24, %v4517_v49  ;;  %v3850_v56 = vsel %vm12424_vm2, %v3845_v47, %v13813_v36  ;;  %v3911_v52 = vshll.u32 %v9434_v27, 16  ;;  %v3872_v45 = vshrl.u32 %v9430_v50, 16 }
 0x1f6   : > { %v3893_v33 = vrot.slane %v3891_v20, 5  ;;  %v4516_v61 = vunpack.c.l.bf16 %v3850_v56  ;;  %v3897_v35 = vrot.slane %v3895_v4, 4  ;;  %v3903_v23 = vrot.slane %v3901_v60, 5 }
 0x1f7   : > { %10958 = vperm.xlu1 %10301, %v10957_v11   ;;  %v3907_v2 = vrot.slane %v3905_v53, 4  ;;  %v3913_v44 = vrot.slane %v3911_v52, 5  ;;  %v3874_v59 = vrot.slane %v3872_v45, 4  ;;  %v3875_v49 = vshll.u32 %v9430_v50, 16 }
 0x1f8   : > { %v3881_v39 = vshll.u32 %v9431_v31, 16  ;;  %v10952_v38 = vpack.i.bf16 %v4516_v61, %v4515_v22  ;;  %v3898_v24 = vor.u32 %v3897_v35, %v3893_v33  ;;  %v3885_v37 = vshrl.u32 %v9431_v31, 16  ;;  %v9437_v35 = vld [vmem:[%s12320_s5 + $0x6c] sm:$0xf] }
 0x1f9   : > { %v3908_v15 = vor.u32 %v3907_v2, %v3903_v23  ;;  %v3877_v32 = vrot.slane %v3875_v49, 5  ;;  %v10661_v27 = vunpack.i.h.bf16 %v10659_v16  ;;  %v10660_v47 = vunpack.i.l.bf16 %v10659_v16 }
 0x1fa   : > { %v3883_v36 = vrot.slane %v3881_v39, 5  ;;  %10953 = vperm.xlu0 %10290, %v10952_v38   ;;  %v3899_v20 = vrot.slane %v3898_v24, 4  ;;  %v3887_v4 = vrot.slane %v3885_v37, 4  ;;  %v10656_v60 = vunpack.i.h.bf16 %v10654_v21 }
 0x1fb   : > { %v3909_v11 = vrot.slane %v3908_v15, 4  ;;  %v3878_v53 = vor.u32 %v3877_v32, %v3874_v59  ;;  %v2965_v50 = vmul.f32 %v10660_v47, %v13735_v55  ;;  %v2966_v56 = vmul.f32 %v10661_v27, %v13735_v55  ;;  %v9438_v59 = vld [vmem:[%s12320_s5 + $0x70] sm:$0xf]  ;;  %v9435_v15 = vld [vmem:[%s12320_s5 + $0x64] sm:$0xf] }
 0x1fc   : > { %v10655_v22 = vunpack.i.l.bf16 %v10654_v21  ;;  %v3904_v31 = vsel %vm12424_vm2, %v3899_v20, %v3903_v23  ;;  %v3888_v45 = vor.u32 %v3887_v4, %v3883_v36  ;;  %v2964_v61 = vmul.f32 %v10656_v60, %v13735_v55 }
 0x1fd   : > { %v3914_v52 = vsel %vm12424_vm2, %v3909_v11, %v3913_v44  ;;  %v13855_v37 = vadd.f32 %v2960_v43, %v13464_v12  ;;  %v4521_v32 = vunpack.c.l.bf16 %v3904_v31  ;;  %v3879_v16 = vrot.slane %v3878_v53, 4  ;;  %v9439_v12 = vld [vmem:[%s12320_s5 + $0x74] sm:$0x1]  ;;  %v10669_v31 = vpop.permute.xlu1 %10668 }
 0x1fe   : > { %v4522_v2 = vunpack.c.l.bf16 %v3914_v52  ;;  %v3889_v49 = vrot.slane %v3888_v45, 4  ;;  %v13859_v23 = vadd.f32 %v2965_v50, %v13482_v14  ;;  %v13862_v39 = vadd.f32 %v2966_v56, %v13485_v30  ;;  %v9436_v30 = vld [vmem:[%s12320_s5 + $0x68] sm:$0xf] }
 0x1ff   : > { %v2963_v44 = vmul.f32 %v10655_v22, %v13735_v55  ;;  %v3884_v38 = vsel %vm12424_vm2, %v3879_v16, %v3883_v36  ;;  %v3935_v43 = vshll.u32 %v9437_v35, 16  ;;  %v3939_v24 = vshrl.u32 %v9437_v35, 16 }
 0x200   : > { %v10967_v21 = vpack.i.bf16 %v4522_v2, %v4521_v32  ;;  %v3894_v27 = vsel %vm12424_vm2, %v3889_v49, %v3893_v33  ;;  %v4519_v47 = vunpack.c.l.bf16 %v3884_v38  ;;  %v13872_v14 = vadd.f32 %v2964_v61, %v13491_v40  ;;  %v10664_v32 = vpop.permute.xlu0 %10663 }
 0x201   : > { %v3945_v20 = vshll.u32 %v9438_v59, 16  ;;  %v4520_v11 = vunpack.c.l.bf16 %v3894_v27  ;;  %v3937_v4 = vrot.slane %v3935_v43, 5  ;;  %v3941_v60 = vrot.slane %v3939_v24, 4 }
 0x202   : > { %10968 = vperm.xlu1 %10301, %v10967_v21   ;;  %v3949_v53 = vshrl.u32 %v9438_v59, 16  ;;  %v3955_v36 = vshll.u32 %v9439_v12, 16  ;;  %v3916_v56 = vshrl.u32 %v9435_v15, 16  ;;  %v3919_v22 = vshll.u32 %v9435_v15, 16 }
 0x203   : > { %v3947_v50 = vrot.slane %v3945_v20, 5  ;;  %v10962_v52 = vpack.i.bf16 %v4520_v11, %v4519_v47  ;;  %v3942_v45 = vor.u32 %v3941_v60, %v3937_v4  ;;  %v3925_v33 = vshll.u32 %v9436_v30, 16 }
 0x204   : > { %v3951_v35 = vrot.slane %v3949_v53, 4  ;;  %v3957_v2 = vrot.slane %v3955_v36, 5  ;;  %v3918_v40 = vrot.slane %v3916_v56, 4  ;;  %v3921_v61 = vrot.slane %v3919_v22, 5  ;;  %v9442_v56 = vld [vmem:[%s12320_s5 + $0x80] sm:$0xf] }
 0x205   : > { %v3929_v16 = vshrl.u32 %v9436_v30, 16  ;;  %10963 = vperm.xlu0 %10290, %v10962_v52   ;;  %v3943_v49 = vrot.slane %v3942_v45, 4  ;;  %v3927_v38 = vrot.slane %v3925_v33, 5  ;;  %v10671_v59 = vunpack.i.h.bf16 %v10669_v31  ;;  %v9443_v45 = vld [vmem:[%s12320_s5 + $0x84] sm:$0xf] }
 0x206   : > { %v3952_v21 = vor.u32 %v3951_v35, %v3947_v50  ;;  %v3922_v43 = vor.u32 %v3921_v61, %v3918_v40  ;;  %v10670_v24 = vunpack.i.l.bf16 %v10669_v31  ;;  %v10666_v15 = vunpack.i.h.bf16 %v10664_v32  ;;  %v9444_v61 = vld [vmem:[%s12320_s5 + $0x88] sm:$0x1] }
 0x207   : > { %v3931_v12 = vrot.slane %v3929_v16, 4  ;;  %v3948_v27 = vsel %vm12424_vm2, %v3943_v49, %v3947_v50  ;;  %v2970_v20 = vmul.f32 %v10671_v59, %v13735_v55  ;;  %v10665_v11 = vunpack.i.l.bf16 %v10664_v32  ;;  %v9440_v16 = vld [vmem:[%s12320_s5 + $0x78] sm:$0xf] }
 0x208   : > { %v3953_v47 = vrot.slane %v3952_v21, 4  ;;  %v4525_v30 = vunpack.c.l.bf16 %v3948_v27  ;;  %v3923_v60 = vrot.slane %v3922_v43, 4  ;;  %v2969_v36 = vmul.f32 %v10670_v24, %v13735_v55 }
 0x209   : > { %v3932_v53 = vor.u32 %v3931_v12, %v3927_v38  ;;  %v13881_v22 = vadd.f32 %v2963_v44, %v13498_v9  ;;  %v13886_v50 = vadd.f32 %v2970_v20, %v13501_v17  ;;  %v2967_v52 = vmul.f32 %v10665_v11, %v13735_v55 }
 0x20a   : > { %v3958_v31 = vsel %vm12424_vm2, %v3953_v47, %v3957_v2  ;;  %v3928_v33 = vsel %vm12424_vm2, %v3923_v60, %v3927_v38  ;;  %v2968_v40 = vmul.f32 %v10666_v15, %v13735_v55  ;;  %v13895_v44 = vadd.f32 %v2969_v36, %v13512_v10  ;;  %v9441_v38 = vld [vmem:[%s12320_s5 + $0x7c] sm:$0xf] }
 0x20b   : > { %v4526_v35 = vunpack.c.l.bf16 %v3958_v31  ;;  %v3933_v32 = vrot.slane %v3932_v53, 4  ;;  %v4523_v9 = vunpack.c.l.bf16 %v3928_v33  ;;  %v13898_v2 = vadd.f32 %v2967_v52, %v13515_v48  ;;  %v10679_v48 = vpop.permute.xlu1 %10678  ;;  %v10674_v31 = vpop.permute.xlu0 %10673 }
 0x20c   : > { %v3979_v17 = vshll.u32 %v9442_v56, 16  ;;  %v3983_v59 = vshrl.u32 %v9442_v56, 16  ;;  %v3989_v43 = vshll.u32 %v9443_v45, 16  ;;  %v3993_v15 = vshrl.u32 %v9443_v45, 16 }
 0x20d   : > { %v10977_v49 = vpack.i.bf16 %v4526_v35, %v4525_v30  ;;  %v3938_v21 = vsel %vm12424_vm2, %v3933_v32, %v3937_v4  ;;  %v3999_v27 = vshll.u32 %v9444_v61, 16  ;;  %v3960_v20 = vshrl.u32 %v9440_v16, 16 }
 0x20e   : > { %v4524_v12 = vunpack.c.l.bf16 %v3938_v21  ;;  %v3981_v24 = vrot.slane %v3979_v17, 5  ;;  %v3985_v47 = vrot.slane %v3983_v59, 4  ;;  %v3991_v10 = vrot.slane %v3989_v43, 5 }
 0x20f   : > { %10978 = vperm.xlu1 %10301, %v10977_v49   ;;  %v3963_v11 = vshll.u32 %v9440_v16, 16  ;;  %v3995_v53 = vrot.slane %v3993_v15, 4  ;;  %v4001_v36 = vrot.slane %v3999_v27, 5  ;;  %v3969_v30 = vshll.u32 %v9441_v38, 16 }
 0x210   : > { %v10972_v60 = vpack.i.bf16 %v4524_v12, %v4523_v9  ;;  %v3986_v52 = vor.u32 %v3985_v47, %v3981_v24  ;;  %v3962_v4 = vrot.slane %v3960_v20, 4  ;;  %v3973_v35 = vshrl.u32 %v9441_v38, 16  ;;  %v9447_v20 = vld [vmem:[%s12320_s5 + $0x94] sm:$0xf] }
 0x211   : > { %v3965_v56 = vrot.slane %v3963_v11, 5  ;;  %v3996_v33 = vor.u32 %v3995_v53, %v3991_v10  ;;  %v3971_v45 = vrot.slane %v3969_v30, 5  ;;  %v10681_v32 = vunpack.i.h.bf16 %v10679_v48  ;;  %v9448_v30 = vld [vmem:[%s12320_s5 + $0x98] sm:$0xf] }
 0x212   : > { %10973 = vperm.xlu0 %10290, %v10972_v60   ;;  %v10680_v61 = vunpack.i.l.bf16 %v10679_v48  ;;  %v3987_v17 = vrot.slane %v3986_v52, 4  ;;  %v3975_v16 = vrot.slane %v3973_v35, 4  ;;  %v10676_v21 = vunpack.i.h.bf16 %v10674_v31 }
 0x213   : > { %v3966_v49 = vor.u32 %v3965_v56, %v3962_v4  ;;  %v3997_v9 = vrot.slane %v3996_v33, 4  ;;  %v2974_v43 = vmul.f32 %v10681_v32, %v13735_v55  ;;  %v10675_v12 = vunpack.i.l.bf16 %v10674_v31  ;;  %v9445_v33 = vld [vmem:[%s12320_s5 + $0x8c] sm:$0xf] }
 0x214   : > { %v2973_v59 = vmul.f32 %v10680_v61, %v13735_v55  ;;  %v3992_v38 = vsel %vm12424_vm2, %v3987_v17, %v3991_v10  ;;  %v3976_v27 = vor.u32 %v3975_v16, %v3971_v45  ;;  %v2972_v47 = vmul.f32 %v10676_v21, %v13735_v55 }
 0x215   : > { %v3967_v15 = vrot.slane %v3966_v49, 4  ;;  %v13911_v11 = vadd.f32 %v2968_v40, %v13525_v34  ;;  %v4002_v48 = vsel %vm12424_vm2, %v3997_v9, %v4001_v36  ;;  %v4529_v60 = vunpack.c.l.bf16 %v3992_v38  ;;  %v9449_v40 = vld [vmem:[%s12320_s5 + $0x9c] sm:$0x1]  ;;  %v10689_v38 = vpop.permute.xlu1 %10688 }
 0x216   : > { %v13916_v53 = vadd.f32 %v2973_v59, %v13528_v51  ;;  %v4530_v10 = vunpack.c.l.bf16 %v4002_v48  ;;  %v3977_v52 = vrot.slane %v3976_v27, 4  ;;  %v13922_v4 = vadd.f32 %v2974_v43, %v13535_v63 }
 0x217   : > { %v3972_v31 = vsel %vm12424_vm2, %v3967_v15, %v3971_v45  ;;  %v2971_v34 = vmul.f32 %v10675_v12, %v13735_v55  ;;  %v4023_v35 = vshll.u32 %v9447_v20, 16  ;;  %v4027_v36 = vshrl.u32 %v9447_v20, 16  ;;  %v9446_v45 = vld [vmem:[%s12320_s5 + $0x90] sm:$0xf] }
 0x218   : > { %v4527_v56 = vunpack.c.l.bf16 %v3972_v31  ;;  %v10987_v32 = vpack.i.bf16 %v4530_v10, %v4529_v60  ;;  %v3982_v51 = vsel %vm12424_vm2, %v3977_v52, %v3981_v24  ;;  %v13930_v61 = vadd.f32 %v2972_v47, %v13539_v19  ;;  %v10684_v24 = vpop.permute.xlu0 %10683 }
 0x219   : > { %v4033_v17 = vshll.u32 %v9448_v30, 16  ;;  %v4528_v49 = vunpack.c.l.bf16 %v3982_v51  ;;  %v4025_v16 = vrot.slane %v4023_v35, 5  ;;  %v4029_v63 = vrot.slane %v4027_v36, 4 }
 0x21a   : > { %v4037_v21 = vshrl.u32 %v9448_v30, 16  ;;  %10988 = vperm.xlu1 %10301, %v10987_v32   ;;  %v4043_v59 = vshll.u32 %v9449_v40, 16  ;;  %v4004_v43 = vshrl.u32 %v9445_v33, 16  ;;  %v4007_v12 = vshll.u32 %v9445_v33, 16 }
 0x21b   : > { %v4035_v9 = vrot.slane %v4033_v17, 5  ;;  %v10982_v15 = vpack.i.bf16 %v4528_v49, %v4527_v56  ;;  %v4030_v27 = vor.u32 %v4029_v63, %v4025_v16  ;;  %v4013_v48 = vshll.u32 %v9446_v45, 16 }
 0x21c   : > { %v4039_v20 = vrot.slane %v4037_v21, 4  ;;  %v4045_v60 = vrot.slane %v4043_v59, 5  ;;  %v4006_v19 = vrot.slane %v4004_v43, 4  ;;  %v4009_v47 = vrot.slane %v4007_v12, 5  ;;  %v9452_v43 = vld [vmem:[%s12320_s5 + $0xa8] sm:$0xf] }
 0x21d   : > { %v4017_v10 = vshrl.u32 %v9446_v45, 16  ;;  %10983 = vperm.xlu0 %10290, %v10982_v15   ;;  %v4031_v31 = vrot.slane %v4030_v27, 4  ;;  %v4015_v30 = vrot.slane %v4013_v48, 5  ;;  %v10691_v35 = vunpack.i.h.bf16 %v10689_v38  ;;  %v9453_v27 = vld [vmem:[%s12320_s5 + $0xac] sm:$0xf] }
 0x21e   : > { %v4040_v52 = vor.u32 %v4039_v20, %v4035_v9  ;;  %v4010_v36 = vor.u32 %v4009_v47, %v4006_v19  ;;  %v10690_v33 = vunpack.i.l.bf16 %v10689_v38  ;;  %v10686_v32 = vunpack.i.h.bf16 %v10684_v24  ;;  %v9454_v47 = vld [vmem:[%s12320_s5 + $0xb0] sm:$0x1] }
 0x21f   : > { %v4019_v40 = vrot.slane %v4017_v10, 4  ;;  %v4036_v56 = vsel %vm12424_vm2, %v4031_v31, %v4035_v9  ;;  %v2978_v17 = vmul.f32 %v10691_v35, %v13735_v55  ;;  %v10685_v49 = vunpack.i.l.bf16 %v10684_v24  ;;  %v9450_v10 = vld [vmem:[%s12320_s5 + $0xa0] sm:$0xf] }
 0x220   : > { %v4041_v51 = vrot.slane %v4040_v52, 4  ;;  %v4533_v45 = vunpack.c.l.bf16 %v4036_v56  ;;  %v4011_v63 = vrot.slane %v4010_v36, 4  ;;  %v2977_v59 = vmul.f32 %v10690_v33, %v13735_v55 }
 0x221   : > { %v4020_v21 = vor.u32 %v4019_v40, %v4015_v30  ;;  %v13939_v12 = vadd.f32 %v2971_v34, %v13548_v18  ;;  %v13944_v9 = vadd.f32 %v2978_v17, %v13551_v26  ;;  %v2975_v15 = vmul.f32 %v10685_v49, %v13735_v55 }
 0x222   : > { %v4046_v38 = vsel %vm12424_vm2, %v4041_v51, %v4045_v60  ;;  %v4016_v48 = vsel %vm12424_vm2, %v4011_v63, %v4015_v30  ;;  %v2976_v19 = vmul.f32 %v10686_v32, %v13735_v55  ;;  %v13953_v34 = vadd.f32 %v2977_v59, %v13562_v28  ;;  %v9451_v30 = vld [vmem:[%s12320_s5 + $0xa4] sm:$0xf] }
 0x223   : > { %v4534_v20 = vunpack.c.l.bf16 %v4046_v38  ;;  %v4021_v24 = vrot.slane %v4020_v21, 4  ;;  %v4531_v18 = vunpack.c.l.bf16 %v4016_v48  ;;  %v13956_v60 = vadd.f32 %v2975_v15, %v13565_v62  ;;  %v10699_v62 = vpop.permute.xlu1 %10698  ;;  %v10694_v38 = vpop.permute.xlu0 %10693 }
 0x224   : > { %v4067_v26 = vshll.u32 %v9452_v43, 16  ;;  %v4071_v35 = vshrl.u32 %v9452_v43, 16  ;;  %v4077_v36 = vshll.u32 %v9453_v27, 16  ;;  %v4081_v32 = vshrl.u32 %v9453_v27, 16 }
 0x225   : > { %v10997_v31 = vpack.i.bf16 %v4534_v20, %v4533_v45  ;;  %v4026_v52 = vsel %vm12424_vm2, %v4021_v24, %v4025_v16  ;;  %v4087_v56 = vshll.u32 %v9454_v47, 16  ;;  %v4048_v17 = vshrl.u32 %v9450_v10, 16 }
 0x226   : > { %v4532_v40 = vunpack.c.l.bf16 %v4026_v52  ;;  %v4069_v33 = vrot.slane %v4067_v26, 5  ;;  %v4073_v51 = vrot.slane %v4071_v35, 4  ;;  %v4079_v28 = vrot.slane %v4077_v36, 5 }
 0x227   : > { %10998 = vperm.xlu1 %10301, %v10997_v31   ;;  %v4051_v49 = vshll.u32 %v9450_v10, 16  ;;  %v4083_v21 = vrot.slane %v4081_v32, 4  ;;  %v4089_v59 = vrot.slane %v4087_v56, 5  ;;  %v4057_v45 = vshll.u32 %v9451_v30, 16 }
 0x228   : > { %v10992_v63 = vpack.i.bf16 %v4532_v40, %v4531_v18  ;;  %v4074_v15 = vor.u32 %v4073_v51, %v4069_v33  ;;  %v4050_v16 = vrot.slane %v4048_v17, 4  ;;  %v4061_v20 = vshrl.u32 %v9451_v30, 16  ;;  %v9457_v17 = vld [vmem:[%s12320_s5 + $0xbc] sm:$0xf] }
 0x229   : > { %v4053_v43 = vrot.slane %v4051_v49, 5  ;;  %v4084_v48 = vor.u32 %v4083_v21, %v4079_v28  ;;  %v4059_v27 = vrot.slane %v4057_v45, 5  ;;  %v10701_v24 = vunpack.i.h.bf16 %v10699_v62  ;;  %v17136_v21 = vld [vmem:[#allocation16_spill] sm:$0xff] }
 0x22a   : > { %10993 = vperm.xlu0 %10290, %v10992_v63   ;;  %v10700_v47 = vunpack.i.l.bf16 %v10699_v62  ;;  %v4075_v26 = vrot.slane %v4074_v15, 4  ;;  %v4063_v10 = vrot.slane %v4061_v20, 4  ;;  %v10696_v52 = vunpack.i.h.bf16 %v10694_v38 }
 0x22b   : > { %v4054_v31 = vor.u32 %v4053_v43, %v4050_v16  ;;  %v4085_v18 = vrot.slane %v4084_v48, 4  ;;  %v2982_v36 = vmul.f32 %v10701_v24, %v13735_v55  ;;  %v10695_v40 = vunpack.i.l.bf16 %v10694_v38  ;;  %v9458_v38 = vld [vmem:[%s12320_s5 + $0xc0] sm:$0xf] }
 0x22c   : > { %v2981_v35 = vmul.f32 %v10700_v47, %v13735_v55  ;;  %v4080_v30 = vsel %vm12424_vm2, %v4075_v26, %v4079_v28  ;;  %v4064_v56 = vor.u32 %v4063_v10, %v4059_v27  ;;  %v2980_v51 = vmul.f32 %v10696_v52, %v13735_v55  ;;  %v17137_v43 = vld [vmem:[#allocation17_spill] sm:$0xff]  ;;  %v9455_v47 = vld [vmem:[%s12320_s5 + $0xb4] sm:$0xf] }
 0x22d   : > { %v4055_v32 = vrot.slane %v4054_v31, 4  ;;  %v13969_v49 = vadd.f32 %v2976_v19, %v13575_v42  ;;  %v4090_v62 = vsel %vm12424_vm2, %v4085_v18, %v4089_v59  ;;  %v4537_v63 = vunpack.c.l.bf16 %v4080_v30  ;;  %v9459_v19 = vld [vmem:[%s12320_s5 + $0xc4] sm:$0x1]  ;;  %v17138_v10 = vld [vmem:[#allocation19_spill] sm:$0xff] }
 0x22e   : > { %v13974_v45 = vadd.f32 %v2981_v35, %v17136_v21  ;;  %v4538_v28 = vunpack.c.l.bf16 %v4090_v62  ;;  %v4065_v16 = vrot.slane %v4064_v56, 4  ;;  %v13980_v20 = vadd.f32 %v2982_v36, %v17137_v43 }
 0x22f   : > { %v4060_v15 = vsel %vm12424_vm2, %v4055_v32, %v4059_v27  ;;  %v2979_v42 = vmul.f32 %v10695_v40, %v13735_v55  ;;  %v4111_v24 = vshll.u32 %v9457_v17, 16  ;;  %v4115_v59 = vshrl.u32 %v9457_v17, 16  ;;  %v9456_v27 = vld [vmem:[%s12320_s5 + $0xb8] sm:$0xf]  ;;  %v10709_v17 = vpop.permute.xlu1 %10708 }
 0x230   : > { %v4535_v48 = vunpack.c.l.bf16 %v4060_v15  ;;  %v11007_v26 = vpack.i.bf16 %v4538_v28, %v4537_v63  ;;  %v4070_v31 = vsel %vm12424_vm2, %v4065_v16, %v4069_v33  ;;  %v13988_v52 = vadd.f32 %v2980_v51, %v17138_v10  ;;  %v10704_v33 = vpop.permute.xlu0 %10703 }
 0x231   : > { %v4121_v18 = vshll.u32 %v9458_v38, 16  ;;  %v4536_v35 = vunpack.c.l.bf16 %v4070_v31  ;;  %v4113_v30 = vrot.slane %v4111_v24, 5  ;;  %v4117_v36 = vrot.slane %v4115_v59, 4 }
 0x232   : > { %17139 = vst [vmem:[#allocation49_spill] sm:$0xff] %v13988_v52  ;;  %v4125_v32 = vshrl.u32 %v9458_v38, 16  ;;  %11008 = vperm.xlu1 %10301, %v11007_v26   ;;  %v4131_v40 = vshll.u32 %v9459_v19, 16  ;;  %v4092_v62 = vshrl.u32 %v9455_v47, 16  ;;  %v4095_v21 = vshll.u32 %v9455_v47, 16 }
 0x233   : > { %v4123_v56 = vrot.slane %v4121_v18, 5  ;;  %v11002_v15 = vpack.i.bf16 %v4536_v35, %v4535_v48  ;;  %v4118_v63 = vor.u32 %v4117_v36, %v4113_v30  ;;  %v4101_v43 = vshll.u32 %v9456_v27, 16 }
 0x234   : > { %v4127_v28 = vrot.slane %v4125_v32, 4  ;;  %v4133_v16 = vrot.slane %v4131_v40, 5  ;;  %v4094_v51 = vrot.slane %v4092_v62, 4  ;;  %v4097_v10 = vrot.slane %v4095_v21, 5 }
 0x235   : > { %v4105_v52 = vshrl.u32 %v9456_v27, 16  ;;  %11003 = vperm.xlu0 %10290, %v11002_v15   ;;  %v4119_v31 = vrot.slane %v4118_v63, 4  ;;  %v4103_v38 = vrot.slane %v4101_v43, 5  ;;  %v10711_v59 = vunpack.i.h.bf16 %v10709_v17  ;;  %v9462_v15 = vld [vmem:[%s12320_s5 + $0xd0] sm:$0xf]  ;;  %v17140_v63 = vld [vmem:[#allocation18_spill] sm:$0xff] }
 0x236   : > { %v4128_v24 = vor.u32 %v4127_v28, %v4123_v56  ;;  %v4098_v26 = vor.u32 %v4097_v10, %v4094_v51  ;;  %v10710_v47 = vunpack.i.l.bf16 %v10709_v17  ;;  %v10706_v18 = vunpack.i.h.bf16 %v10704_v33  ;;  %v17142_v28 = vld [vmem:[#allocation20_spill] sm:$0xff] }
 0x237   : > { %v4107_v19 = vrot.slane %v4105_v52, 4  ;;  %v4124_v48 = vsel %vm12424_vm2, %v4119_v31, %v4123_v56  ;;  %v2986_v36 = vmul.f32 %v10711_v59, %v13735_v55  ;;  %v10705_v32 = vunpack.i.l.bf16 %v10704_v33  ;;  %v9463_v33 = vld [vmem:[%s12320_s5 + $0xd4] sm:$0xf]  ;;  %v9464_v59 = vld [vmem:[%s12320_s5 + $0xd8] sm:$0x1] }
 0x238   : > { %v4129_v35 = vrot.slane %v4128_v24, 4  ;;  %v4541_v27 = vunpack.c.l.bf16 %v4124_v48  ;;  %v4099_v40 = vrot.slane %v4098_v26, 4  ;;  %v2985_v21 = vmul.f32 %v10710_v47, %v13735_v55  ;;  %v17144_v26 = vld [vmem:[#allocation21_spill] sm:$0xff] }
 0x239   : > { %v4108_v62 = vor.u32 %v4107_v19, %v4103_v38  ;;  %v13997_v52 = vadd.f32 %v2979_v42, %v17140_v63  ;;  %v14002_v56 = vadd.f32 %v2986_v36, %v17142_v28  ;;  %v2983_v43 = vmul.f32 %v10705_v32, %v13735_v55 }
 0x23a   : > { %v4134_v17 = vsel %vm12424_vm2, %v4129_v35, %v4133_v16  ;;  %v4104_v10 = vsel %vm12424_vm2, %v4099_v40, %v4103_v38  ;;  %v2984_v24 = vmul.f32 %v10706_v18, %v13735_v55  ;;  %v14011_v19 = vadd.f32 %v2985_v21, %v17144_v26  ;;  %v17146_v16 = vld [vmem:[#allocation23_spill] sm:$0xff] }
 0x23b   : > { %17141 = vst [vmem:[#allocation16_spill] sm:$0xff] %v13997_v52  ;;  %17143 = vst [vmem:[#allocation17_spill] sm:$0xff] %v14002_v56  ;;  %v4542_v51 = vunpack.c.l.bf16 %v4134_v17  ;;  %v4109_v31 = vrot.slane %v4108_v62, 4  ;;  %v4539_v42 = vunpack.c.l.bf16 %v4104_v10  ;;  %v14014_v47 = vadd.f32 %v2983_v43, %v17146_v16  ;;  %v9460_v35 = vld [vmem:[%s12320_s5 + $0xc8] sm:$0xf]  ;;  %v10719_v43 = vpop.permute.xlu1 %10718 }
 0x23c   : > { %17145 = vst [vmem:[#allocation19_spill] sm:$0xff] %v14011_v19  ;;  %v4155_v48 = vshll.u32 %v9462_v15, 16  ;;  %v4159_v63 = vshrl.u32 %v9462_v15, 16  ;;  %v4165_v17 = vshll.u32 %v9463_v33, 16  ;;  %v9461_v38 = vld [vmem:[%s12320_s5 + $0xcc] sm:$0xf] }
 0x23d   : > { %17147 = vst [vmem:[#allocation18_spill] sm:$0xff] %v14014_v47  ;;  %v11017_v36 = vpack.i.bf16 %v4542_v51, %v4541_v27  ;;  %v4114_v32 = vsel %vm12424_vm2, %v4109_v31, %v4113_v30  ;;  %v4169_v18 = vshrl.u32 %v9463_v33, 16  ;;  %v4175_v28 = vshll.u32 %v9464_v59, 16  ;;  %v10714_v51 = vpop.permute.xlu0 %10713 }
 0x23e   : > { %v4540_v40 = vunpack.c.l.bf16 %v4114_v32  ;;  %v4157_v62 = vrot.slane %v4155_v48, 5  ;;  %v4161_v10 = vrot.slane %v4159_v63, 4  ;;  %v4167_v21 = vrot.slane %v4165_v17, 5 }
 0x23f   : > { %11018 = vperm.xlu1 %10301, %v11017_v36   ;;  %v4136_v26 = vshrl.u32 %v9460_v35, 16  ;;  %v4139_v56 = vshll.u32 %v9460_v35, 16  ;;  %v4171_v47 = vrot.slane %v4169_v18, 4  ;;  %v4177_v19 = vrot.slane %v4175_v28, 5 }
 0x240   : > { %v11012_v16 = vpack.i.bf16 %v4540_v40, %v4539_v42  ;;  %v4145_v27 = vshll.u32 %v9461_v38, 16  ;;  %v4162_v52 = vor.u32 %v4161_v10, %v4157_v62  ;;  %v4149_v31 = vshrl.u32 %v9461_v38, 16 }
 0x241   : > { %v4138_v30 = vrot.slane %v4136_v26, 4  ;;  %v4141_v15 = vrot.slane %v4139_v56, 5  ;;  %v4172_v32 = vor.u32 %v4171_v47, %v4167_v21  ;;  %v10721_v59 = vunpack.i.h.bf16 %v10719_v43  ;;  %v17148_v26 = vld [vmem:[#allocation22_spill] sm:$0xff] }
 0x242   : > { %11013 = vperm.xlu0 %10290, %v11012_v16   ;;  %v4147_v33 = vrot.slane %v4145_v27, 5  ;;  %v10720_v48 = vunpack.i.l.bf16 %v10719_v43  ;;  %v4163_v36 = vrot.slane %v4162_v52, 4  ;;  %v4151_v35 = vrot.slane %v4149_v31, 4  ;;  %v9467_v52 = vld [vmem:[%s12320_s5 + $0xe4] sm:$0xf] }
 0x243   : > { %v4142_v63 = vor.u32 %v4141_v15, %v4138_v30  ;;  %v10716_v17 = vunpack.i.h.bf16 %v10714_v51  ;;  %v4173_v42 = vrot.slane %v4172_v32, 4  ;;  %v2990_v18 = vmul.f32 %v10721_v59, %v13735_v55  ;;  %v17150_v30 = vld [vmem:[#allocation24_spill] sm:$0xff]  ;;  %v17152_v59 = vld [vmem:[#allocation25_spill] sm:$0xff] }
 0x244   : > { %v2989_v40 = vmul.f32 %v10720_v48, %v13735_v55  ;;  %v10715_v28 = vunpack.i.l.bf16 %v10714_v51  ;;  %v4168_v56 = vsel %vm12424_vm2, %v4163_v36, %v4167_v21  ;;  %v4152_v38 = vor.u32 %v4151_v35, %v4147_v33  ;;  %v9468_v51 = vld [vmem:[%s12320_s5 + $0xe8] sm:$0xf] }
 0x245   : > { %v4143_v47 = vrot.slane %v4142_v63, 4  ;;  %v2988_v10 = vmul.f32 %v10716_v17, %v13735_v55  ;;  %v14027_v43 = vadd.f32 %v2984_v24, %v17148_v26  ;;  %v4178_v16 = vsel %vm12424_vm2, %v4173_v42, %v4177_v19  ;;  %v9469_v63 = vld [vmem:[%s12320_s5 + $0xec] sm:$0x1]  ;;  %v9465_v17 = vld [vmem:[%s12320_s5 + $0xdc] sm:$0xf] }
 0x246   : > { %v4545_v27 = vunpack.c.l.bf16 %v4168_v56  ;;  %v14032_v15 = vadd.f32 %v2989_v40, %v17150_v30  ;;  %v4546_v21 = vunpack.c.l.bf16 %v4178_v16  ;;  %v4153_v32 = vrot.slane %v4152_v38, 4  ;;  %v17154_v56 = vld [vmem:[#allocation27_spill] sm:$0xff] }
 0x247   : > { %17149 = vst [vmem:[#allocation20_spill] sm:$0xff] %v14027_v43  ;;  %v4148_v31 = vsel %vm12424_vm2, %v4143_v47, %v4147_v33  ;;  %v14038_v48 = vadd.f32 %v2990_v18, %v17152_v59  ;;  %v2987_v24 = vmul.f32 %v10715_v28, %v13735_v55  ;;  %v4199_v35 = vshll.u32 %v9467_v52, 16  ;;  %v9466_v33 = vld [vmem:[%s12320_s5 + $0xe0] sm:$0xf] }
 0x248   : > { %17151 = vst [vmem:[#allocation21_spill] sm:$0xff] %v14032_v15  ;;  %v4543_v36 = vunpack.c.l.bf16 %v4148_v31  ;;  %v4203_v19 = vshrl.u32 %v9467_v52, 16  ;;  %v11027_v42 = vpack.i.bf16 %v4546_v21, %v4545_v27  ;;  %v4158_v40 = vsel %vm12424_vm2, %v4153_v32, %v4157_v62  ;;  %v10729_v52 = vpop.permute.xlu1 %10728  ;;  %v10724_v62 = vpop.permute.xlu0 %10723 }
 0x249   : > { %17153 = vst [vmem:[#allocation23_spill] sm:$0xff] %v14038_v48  ;;  %v14046_v26 = vadd.f32 %v2988_v10, %v17154_v56  ;;  %v4209_v16 = vshll.u32 %v9468_v51, 16  ;;  %v4544_v47 = vunpack.c.l.bf16 %v4158_v40  ;;  %v4201_v38 = vrot.slane %v4199_v35, 5 }
 0x24a   : > { %v4205_v18 = vrot.slane %v4203_v19, 4  ;;  %v4213_v30 = vshrl.u32 %v9468_v51, 16  ;;  %11028 = vperm.xlu1 %10301, %v11027_v42   ;;  %v4219_v28 = vshll.u32 %v9469_v63, 16  ;;  %v4180_v59 = vshrl.u32 %v9465_v17, 16 }
 0x24b   : > { %17155 = vst [vmem:[#allocation22_spill] sm:$0xff] %v14046_v26  ;;  %v4211_v31 = vrot.slane %v4209_v16, 5  ;;  %v4183_v48 = vshll.u32 %v9465_v17, 16  ;;  %v11022_v15 = vpack.i.bf16 %v4544_v47, %v4543_v36  ;;  %v4189_v43 = vshll.u32 %v9466_v33, 16 }
 0x24c   : > { %v4206_v27 = vor.u32 %v4205_v18, %v4201_v38  ;;  %v4215_v21 = vrot.slane %v4213_v30, 4  ;;  %v4221_v32 = vrot.slane %v4219_v28, 5  ;;  %v4182_v10 = vrot.slane %v4180_v59, 4  ;;  %v17156_v59 = vld [vmem:[#allocation26_spill] sm:$0xff] }
 0x24d   : > { %v4185_v56 = vrot.slane %v4183_v48, 5  ;;  %v4193_v26 = vshrl.u32 %v9466_v33, 16  ;;  %11023 = vperm.xlu0 %10290, %v11022_v15   ;;  %v4191_v51 = vrot.slane %v4189_v43, 5  ;;  %v10731_v19 = vunpack.i.h.bf16 %v10729_v52  ;;  %v9472_v43 = vld [vmem:[%s12320_s5 + $0xf8] sm:$0xf] }
 0x24e   : > { %v4207_v40 = vrot.slane %v4206_v27, 4  ;;  %v4216_v35 = vor.u32 %v4215_v21, %v4211_v31  ;;  %v10730_v17 = vunpack.i.l.bf16 %v10729_v52  ;;  %v10726_v16 = vunpack.i.h.bf16 %v10724_v62  ;;  %v17158_v27 = vld [vmem:[#allocation28_spill] sm:$0xff] }
 0x24f   : > { %v4186_v42 = vor.u32 %v4185_v56, %v4182_v10  ;;  %v4195_v63 = vrot.slane %v4193_v26, 4  ;;  %v2994_v18 = vmul.f32 %v10731_v19, %v13735_v55  ;;  %v10725_v48 = vunpack.i.l.bf16 %v10724_v62  ;;  %v9473_v62 = vld [vmem:[%s12320_s5 + $0xfc] sm:$0xf]  ;;  %v9474_v19 = vld [vmem:[%s12320_s5 + $0x100] sm:$0x1] }
 0x250   : > { %v4212_v36 = vsel %vm12424_vm2, %v4207_v40, %v4211_v31  ;;  %v4217_v47 = vrot.slane %v4216_v35, 4  ;;  %v2993_v28 = vmul.f32 %v10730_v17, %v13735_v55  ;;  %v14055_v26 = vadd.f32 %v2987_v24, %v17156_v59 }
 0x251   : > { %v4549_v33 = vunpack.c.l.bf16 %v4212_v36  ;;  %v4187_v15 = vrot.slane %v4186_v42, 4  ;;  %v4196_v30 = vor.u32 %v4195_v63, %v4191_v51  ;;  %v14060_v31 = vadd.f32 %v2994_v18, %v17158_v27  ;;  %v17160_v42 = vld [vmem:[#allocation29_spill] sm:$0xff] }
 0x252   : > { %17157 = vst [vmem:[#allocation24_spill] sm:$0xff] %v14055_v26  ;;  %v4222_v52 = vsel %vm12424_vm2, %v4217_v47, %v4221_v32  ;;  %v2991_v21 = vmul.f32 %v10725_v48, %v13735_v55  ;;  %v2992_v35 = vmul.f32 %v10726_v16, %v13735_v55  ;;  %v14069_v63 = vadd.f32 %v2993_v28, %v17160_v42  ;;  %v17162_v32 = vld [vmem:[#allocation31_spill] sm:$0xff] }
 0x253   : > { %17159 = vst [vmem:[#allocation25_spill] sm:$0xff] %v14060_v31  ;;  %v4550_v10 = vunpack.c.l.bf16 %v4222_v52  ;;  %v4192_v56 = vsel %vm12424_vm2, %v4187_v15, %v4191_v51  ;;  %v4197_v40 = vrot.slane %v4196_v30, 4  ;;  %v4243_v36 = vshll.u32 %v9472_v43, 16  ;;  %v9470_v47 = vld [vmem:[%s12320_s5 + $0xf0] sm:$0xf] }
 0x254   : > { %v4547_v24 = vunpack.c.l.bf16 %v4192_v56  ;;  %17161 = vst [vmem:[#allocation27_spill] sm:$0xff] %v14069_v63  ;;  %v14072_v17 = vadd.f32 %v2991_v21, %v17162_v32  ;;  %v4247_v59 = vshrl.u32 %v9472_v43, 16  ;;  %v4253_v52 = vshll.u32 %v9473_v62, 16  ;;  %v9471_v51 = vld [vmem:[%s12320_s5 + $0xf4] sm:$0xf]  ;;  %v10739_v21 = vpop.permute.xlu1 %10738 }
 0x255   : > { %v11037_v18 = vpack.i.bf16 %v4550_v10, %v4549_v33  ;;  %v4202_v48 = vsel %vm12424_vm2, %v4197_v40, %v4201_v38  ;;  %v4245_v30 = vrot.slane %v4243_v36, 5  ;;  %v4257_v16 = vshrl.u32 %v9473_v62, 16  ;;  %v10734_v10 = vpop.permute.xlu0 %10733 }
 0x256   : > { %17163 = vst [vmem:[#allocation26_spill] sm:$0xff] %v14072_v17  ;;  %v4548_v15 = vunpack.c.l.bf16 %v4202_v48  ;;  %v4263_v27 = vshll.u32 %v9474_v19, 16  ;;  %v4249_v56 = vrot.slane %v4247_v59, 4  ;;  %v4255_v28 = vrot.slane %v4253_v52, 5 }
 0x257   : > { %11038 = vperm.xlu1 %10301, %v11037_v18   ;;  %v4224_v42 = vshrl.u32 %v9470_v47, 16  ;;  %v4227_v31 = vshll.u32 %v9470_v47, 16  ;;  %v4259_v17 = vrot.slane %v4257_v16, 4  ;;  %v4233_v33 = vshll.u32 %v9471_v51, 16 }
 0x258   : > { %v11032_v32 = vpack.i.bf16 %v4548_v15, %v4547_v24  ;;  %v4265_v63 = vrot.slane %v4263_v27, 5  ;;  %v4250_v26 = vor.u32 %v4249_v56, %v4245_v30  ;;  %v4237_v40 = vshrl.u32 %v9471_v51, 16 }
 0x259   : > { %v4226_v38 = vrot.slane %v4224_v42, 4  ;;  %v4229_v43 = vrot.slane %v4227_v31, 5  ;;  %v4260_v48 = vor.u32 %v4259_v17, %v4255_v28  ;;  %v4235_v62 = vrot.slane %v4233_v33, 5  ;;  %v17164_v33 = vld [vmem:[#allocation30_spill] sm:$0xff] }
 0x25a   : > { %11033 = vperm.xlu0 %10290, %v11032_v32   ;;  %v10741_v19 = vunpack.i.h.bf16 %v10739_v21  ;;  %v10740_v36 = vunpack.i.l.bf16 %v10739_v21  ;;  %v4251_v18 = vrot.slane %v4250_v26, 4  ;;  %v4239_v47 = vrot.slane %v4237_v40, 4  ;;  %v9477_v26 = vld [vmem:[%s12320_s5 + $0x10c] sm:$0xf] }
 0x25b   : > { %v4230_v59 = vor.u32 %v4229_v43, %v4226_v38  ;;  %v10736_v52 = vunpack.i.h.bf16 %v10734_v10  ;;  %v4261_v24 = vrot.slane %v4260_v48, 4  ;;  %v10735_v27 = vunpack.i.l.bf16 %v10734_v10  ;;  %v9478_v10 = vld [vmem:[%s12320_s5 + $0x110] sm:$0xf] }
 0x25c   : > { %v2997_v15 = vmul.f32 %v10740_v36, %v13735_v55  ;;  %v2998_v16 = vmul.f32 %v10741_v19, %v13735_v55  ;;  %v4256_v31 = vsel %vm12424_vm2, %v4251_v18, %v4255_v28  ;;  %v4240_v51 = vor.u32 %v4239_v47, %v4235_v62  ;;  %v17166_v48 = vld [vmem:[#allocation32_spill] sm:$0xff] }
 0x25d   : > { %v4231_v17 = vrot.slane %v4230_v59, 4  ;;  %v2996_v56 = vmul.f32 %v10736_v52, %v13735_v55  ;;  %v14085_v42 = vadd.f32 %v2992_v35, %v13661_v1  ;;  %v4266_v21 = vsel %vm12424_vm2, %v4261_v24, %v4265_v63  ;;  %v9479_v35 = vld [vmem:[%s12320_s5 + $0x114] sm:$0x1]  ;;  %v9475_v59 = vld [vmem:[%s12320_s5 + $0x104] sm:$0xf] }
 0x25e   : > { %v4553_v32 = vunpack.c.l.bf16 %v4256_v31  ;;  %v14090_v38 = vadd.f32 %v2997_v15, %v17164_v33  ;;  %v4554_v28 = vunpack.c.l.bf16 %v4266_v21  ;;  %v4241_v40 = vrot.slane %v4240_v51, 4  ;;  %v17168_v24 = vld [vmem:[#allocation33_spill] sm:$0xff] }
 0x25f   : > { %v4236_v43 = vsel %vm12424_vm2, %v4231_v17, %v4235_v62  ;;  %v14096_v19 = vadd.f32 %v2998_v16, %v17166_v48  ;;  %v2995_v1 = vmul.f32 %v10735_v27, %v13735_v55  ;;  %v4287_v18 = vshll.u32 %v9477_v26, 16  ;;  %v9476_v62 = vld [vmem:[%s12320_s5 + $0x108] sm:$0xf] }
 0x260   : > { %17165 = vst [vmem:[#allocation28_spill] sm:$0xff] %v14090_v38  ;;  %v4551_v36 = vunpack.c.l.bf16 %v4236_v43  ;;  %v4291_v63 = vshrl.u32 %v9477_v26, 16  ;;  %v11047_v47 = vpack.i.bf16 %v4554_v28, %v4553_v32  ;;  %v4246_v52 = vsel %vm12424_vm2, %v4241_v40, %v4245_v30  ;;  %v10749_v26 = vpop.permute.xlu1 %10748  ;;  %v10744_v30 = vpop.permute.xlu0 %10743 }
 0x261   : > { %17167 = vst [vmem:[#allocation29_spill] sm:$0xff] %v14096_v19  ;;  %v14104_v15 = vadd.f32 %v2996_v56, %v17168_v24  ;;  %v4297_v31 = vshll.u32 %v9478_v10, 16  ;;  %v4552_v17 = vunpack.c.l.bf16 %v4246_v52  ;;  %v4289_v51 = vrot.slane %v4287_v18, 5 }
 0x262   : > { %v4293_v16 = vrot.slane %v4291_v63, 4  ;;  %v4301_v21 = vshrl.u32 %v9478_v10, 16  ;;  %11048 = vperm.xlu1 %10301, %v11047_v47   ;;  %v4307_v27 = vshll.u32 %v9479_v35, 16  ;;  %v4268_v43 = vshrl.u32 %v9475_v59, 16 }
 0x263   : > { %17169 = vst [vmem:[#allocation31_spill] sm:$0xff] %v14104_v15  ;;  %v4299_v33 = vrot.slane %v4297_v31, 5  ;;  %v4271_v48 = vshll.u32 %v9475_v59, 16  ;;  %v11042_v19 = vpack.i.bf16 %v4552_v17, %v4551_v36  ;;  %v4277_v38 = vshll.u32 %v9476_v62, 16 }
 0x264   : > { %v4294_v32 = vor.u32 %v4293_v16, %v4289_v51  ;;  %v4303_v28 = vrot.slane %v4301_v21, 4  ;;  %v4309_v40 = vrot.slane %v4307_v27, 5  ;;  %v4270_v56 = vrot.slane %v4268_v43, 4 }
 0x265   : > { %v4273_v24 = vrot.slane %v4271_v48, 5  ;;  %v4281_v15 = vshrl.u32 %v9476_v62, 16  ;;  %11043 = vperm.xlu0 %10290, %v11042_v19   ;;  %v4279_v10 = vrot.slane %v4277_v38, 5  ;;  %v10751_v63 = vunpack.i.h.bf16 %v10749_v26  ;;  %v9482_v38 = vld [vmem:[%s12320_s5 + $0x120] sm:$0xf] }
 0x266   : > { %v4295_v52 = vrot.slane %v4294_v32, 4  ;;  %v4304_v18 = vor.u32 %v4303_v28, %v4299_v33  ;;  %v10750_v59 = vunpack.i.l.bf16 %v10749_v26  ;;  %v10746_v31 = vunpack.i.h.bf16 %v10744_v30  ;;  %v17170_v26 = vld [vmem:[#allocation35_spill] sm:$0xff]  ;;  %v9483_v28 = vld [vmem:[%s12320_s5 + $0x124] sm:$0xf] }
 0x267   : > { %v4274_v47 = vor.u32 %v4273_v24, %v4270_v56  ;;  %v4283_v35 = vrot.slane %v4281_v15, 4  ;;  %v3002_v16 = vmul.f32 %v10751_v63, %v13735_v55  ;;  %v10745_v21 = vunpack.i.l.bf16 %v10744_v30 }
 0x268   : > { %v4300_v36 = vsel %vm12424_vm2, %v4295_v52, %v4299_v33  ;;  %v4305_v17 = vrot.slane %v4304_v18, 4  ;;  %v3001_v43 = vmul.f32 %v10750_v59, %v13735_v55  ;;  %v14113_v15 = vadd.f32 %v2995_v1, %v13678_v25  ;;  %v9484_v18 = vld [vmem:[%s12320_s5 + $0x128] sm:$0x1]  ;;  %v9480_v59 = vld [vmem:[%s12320_s5 + $0x118] sm:$0xf] }
 0x269   : > { %v4557_v62 = vunpack.c.l.bf16 %v4300_v36  ;;  %v4275_v19 = vrot.slane %v4274_v47, 4  ;;  %v4284_v27 = vor.u32 %v4283_v35, %v4279_v10  ;;  %v14118_v33 = vadd.f32 %v3002_v16, %v17170_v26  ;;  %v17172_v1 = vld [vmem:[#allocation34_spill] sm:$0xff] }
 0x26a   : > { %v4310_v48 = vsel %vm12424_vm2, %v4305_v17, %v4309_v40  ;;  %v2999_v32 = vmul.f32 %v10745_v21, %v13735_v55  ;;  %v3000_v52 = vmul.f32 %v10746_v31, %v13735_v55  ;;  %v14127_v63 = vadd.f32 %v3001_v43, %v17172_v1  ;;  %v17174_v40 = vld [vmem:[#allocation36_spill] sm:$0xff] }
 0x26b   : > { %17171 = vst [vmem:[#allocation30_spill] sm:$0xff] %v14118_v33  ;;  %v4558_v30 = vunpack.c.l.bf16 %v4310_v48  ;;  %v4280_v56 = vsel %vm12424_vm2, %v4275_v19, %v4279_v10  ;;  %v4285_v24 = vrot.slane %v4284_v27, 4  ;;  %v4331_v35 = vshll.u32 %v9482_v38, 16  ;;  %v9481_v10 = vld [vmem:[%s12320_s5 + $0x11c] sm:$0xf] }
 0x26c   : > { %v4555_v25 = vunpack.c.l.bf16 %v4280_v56  ;;  %17173 = vst [vmem:[#allocation32_spill] sm:$0xff] %v14127_v63  ;;  %v14130_v47 = vadd.f32 %v2999_v32, %v17174_v40  ;;  %v4335_v16 = vshrl.u32 %v9482_v38, 16  ;;  %v4341_v21 = vshll.u32 %v9483_v28, 16  ;;  %v10759_v32 = vpop.permute.xlu1 %10758 }
 0x26d   : > { %v11057_v36 = vpack.i.bf16 %v4558_v30, %v4557_v62  ;;  %v4290_v17 = vsel %vm12424_vm2, %v4285_v24, %v4289_v51  ;;  %v4333_v27 = vrot.slane %v4331_v35, 5  ;;  %v4345_v31 = vshrl.u32 %v9483_v28, 16  ;;  %v10754_v30 = vpop.permute.xlu0 %10753 }
 0x26e   : > { %17175 = vst [vmem:[#allocation33_spill] sm:$0xff] %v14130_v47  ;;  %v4556_v19 = vunpack.c.l.bf16 %v4290_v17  ;;  %v4351_v48 = vshll.u32 %v9484_v18, 16  ;;  %v4337_v26 = vrot.slane %v4335_v16, 4  ;;  %v4343_v43 = vrot.slane %v4341_v21, 5 }
 0x26f   : > { %11058 = vperm.xlu1 %10301, %v11057_v36   ;;  %v4312_v56 = vshrl.u32 %v9480_v59, 16  ;;  %v4315_v1 = vshll.u32 %v9480_v59, 16  ;;  %v4347_v47 = vrot.slane %v4345_v31, 4  ;;  %v4321_v62 = vshll.u32 %v9481_v10, 16 }
 0x270   : > { %v11052_v40 = vpack.i.bf16 %v4556_v19, %v4555_v25  ;;  %v4353_v33 = vrot.slane %v4351_v48, 5  ;;  %v4338_v63 = vor.u32 %v4337_v26, %v4333_v27  ;;  %v4325_v24 = vshrl.u32 %v9481_v10, 16 }
 0x271   : > { %v4314_v51 = vrot.slane %v4312_v56, 4  ;;  %v4317_v38 = vrot.slane %v4315_v1, 5  ;;  %v4348_v17 = vor.u32 %v4347_v47, %v4343_v43  ;;  %v4323_v28 = vrot.slane %v4321_v62, 5  ;;  %v17176_v62 = vld [vmem:[#allocation37_spill] sm:$0xff] }
 0x272   : > { %11053 = vperm.xlu0 %10290, %v11052_v40   ;;  %v10761_v18 = vunpack.i.h.bf16 %v10759_v32  ;;  %v10760_v35 = vunpack.i.l.bf16 %v10759_v32  ;;  %v4339_v36 = vrot.slane %v4338_v63, 4  ;;  %v4327_v59 = vrot.slane %v4325_v24, 4  ;;  %v9487_v63 = vld [vmem:[%s12320_s5 + $0x134] sm:$0xf] }
 0x273   : > { %v4318_v16 = vor.u32 %v4317_v38, %v4314_v51  ;;  %v10756_v21 = vunpack.i.h.bf16 %v10754_v30  ;;  %v4349_v25 = vrot.slane %v4348_v17, 4  ;;  %v10755_v48 = vunpack.i.l.bf16 %v10754_v30  ;;  %v9488_v30 = vld [vmem:[%s12320_s5 + $0x138] sm:$0xf]  ;;  %v17178_v17 = vld [vmem:[#allocation39_spill] sm:$0xff] }
 0x274   : > { %v3005_v19 = vmul.f32 %v10760_v35, %v13735_v55  ;;  %v3006_v31 = vmul.f32 %v10761_v18, %v13735_v55  ;;  %v4344_v10 = vsel %vm12424_vm2, %v4339_v36, %v4343_v43  ;;  %v4328_v26 = vor.u32 %v4327_v59, %v4323_v28 }
 0x275   : > { %v4319_v47 = vrot.slane %v4318_v16, 4  ;;  %v3004_v56 = vmul.f32 %v10756_v21, %v13735_v55  ;;  %v14143_v1 = vadd.f32 %v3000_v52, %v13697_v57  ;;  %v4354_v32 = vsel %vm12424_vm2, %v4349_v25, %v4353_v33  ;;  %v9489_v52 = vld [vmem:[%s12320_s5 + $0x13c] sm:$0x1]  ;;  %v9485_v16 = vld [vmem:[%s12320_s5 + $0x12c] sm:$0xf] }
 0x276   : > { %v4561_v40 = vunpack.c.l.bf16 %v4344_v10  ;;  %v14148_v51 = vadd.f32 %v3005_v19, %v17176_v62  ;;  %v4562_v43 = vunpack.c.l.bf16 %v4354_v32  ;;  %v4329_v24 = vrot.slane %v4328_v26, 4  ;;  %v17180_v25 = vld [vmem:[#allocation38_spill] sm:$0xff] }
 0x277   : > { %v4324_v38 = vsel %vm12424_vm2, %v4319_v47, %v4323_v28  ;;  %v14154_v18 = vadd.f32 %v3006_v31, %v17178_v17  ;;  %v3003_v57 = vmul.f32 %v10755_v48, %v13735_v55  ;;  %v4375_v36 = vshll.u32 %v9487_v63, 16  ;;  %v9486_v28 = vld [vmem:[%s12320_s5 + $0x130] sm:$0xf] }
 0x278   : > { %17177 = vst [vmem:[#allocation35_spill] sm:$0xff] %v14148_v51  ;;  %v4559_v35 = vunpack.c.l.bf16 %v4324_v38  ;;  %v4379_v33 = vshrl.u32 %v9487_v63, 16  ;;  %v11067_v59 = vpack.i.bf16 %v4562_v43, %v4561_v40  ;;  %v4334_v21 = vsel %vm12424_vm2, %v4329_v24, %v4333_v27  ;;  %v10769_v63 = vpop.permute.xlu1 %10768  ;;  %v10764_v27 = vpop.permute.xlu0 %10763 }
 0x279   : > { %17179 = vst [vmem:[#allocation34_spill] sm:$0xff] %v14154_v18  ;;  %v14162_v19 = vadd.f32 %v3004_v56, %v17180_v25  ;;  %v4385_v10 = vshll.u32 %v9488_v30, 16  ;;  %v4560_v47 = vunpack.c.l.bf16 %v4334_v21  ;;  %v4377_v26 = vrot.slane %v4375_v36, 5 }
 0x27a   : > { %v4381_v31 = vrot.slane %v4379_v33, 4  ;;  %v4389_v32 = vshrl.u32 %v9488_v30, 16  ;;  %11068 = vperm.xlu1 %10301, %v11067_v59   ;;  %v4395_v48 = vshll.u32 %v9489_v52, 16  ;;  %v4356_v38 = vshrl.u32 %v9485_v16, 16 }
 0x27b   : > { %17181 = vst [vmem:[#allocation36_spill] sm:$0xff] %v14162_v19  ;;  %v4387_v62 = vrot.slane %v4385_v10, 5  ;;  %v4359_v17 = vshll.u32 %v9485_v16, 16  ;;  %v11062_v18 = vpack.i.bf16 %v4560_v47, %v4559_v35  ;;  %v4365_v51 = vshll.u32 %v9486_v28, 16 }
 0x27c   : > { %v4382_v40 = vor.u32 %v4381_v31, %v4377_v26  ;;  %v4391_v43 = vrot.slane %v4389_v32, 4  ;;  %v4397_v24 = vrot.slane %v4395_v48, 5  ;;  %v4358_v56 = vrot.slane %v4356_v38, 4 }
 0x27d   : > { %v4361_v25 = vrot.slane %v4359_v17, 5  ;;  %v4369_v19 = vshrl.u32 %v9486_v28, 16  ;;  %11063 = vperm.xlu0 %10290, %v11062_v18   ;;  %v4367_v30 = vrot.slane %v4365_v51, 5  ;;  %v10771_v33 = vunpack.i.h.bf16 %v10769_v63  ;;  %v9492_v51 = vld [vmem:[%s12320_s5 + $0x148] sm:$0xf] }
 0x27e   : > { %v4383_v21 = vrot.slane %v4382_v40, 4  ;;  %v4392_v36 = vor.u32 %v4391_v43, %v4387_v62  ;;  %v10770_v16 = vunpack.i.l.bf16 %v10769_v63  ;;  %v10766_v10 = vunpack.i.h.bf16 %v10764_v27  ;;  %v9493_v40 = vld [vmem:[%s12320_s5 + $0x14c] sm:$0xf] }
 0x27f   : > { %v4362_v59 = vor.u32 %v4361_v25, %v4358_v56  ;;  %v4371_v52 = vrot.slane %v4369_v19, 4  ;;  %v3010_v31 = vmul.f32 %v10771_v33, %v13735_v55  ;;  %v10765_v32 = vunpack.i.l.bf16 %v10764_v27  ;;  %v9490_v33 = vld [vmem:[%s12320_s5 + $0x140] sm:$0xf] }
 0x280   : > { %v4388_v35 = vsel %vm12424_vm2, %v4383_v21, %v4387_v62  ;;  %v4393_v47 = vrot.slane %v4392_v36, 4  ;;  %v3009_v38 = vmul.f32 %v10770_v16, %v13735_v55  ;;  %v14171_v19 = vadd.f32 %v3003_v57, %v13714_v46  ;;  %v9494_v21 = vld [vmem:[%s12320_s5 + $0x150] sm:$0x1] }
 0x281   : > { %v4565_v28 = vunpack.c.l.bf16 %v4388_v35  ;;  %v4363_v18 = vrot.slane %v4362_v59, 4  ;;  %v4372_v48 = vor.u32 %v4371_v52, %v4367_v30  ;;  %v14176_v62 = vadd.f32 %v3010_v31, %v13717_v29 }
 0x282   : > { %v4398_v17 = vsel %vm12424_vm2, %v4393_v47, %v4397_v24  ;;  %v3007_v63 = vmul.f32 %v10765_v32, %v13735_v55  ;;  %v3008_v25 = vmul.f32 %v10766_v10, %v13735_v55  ;;  %v14185_v57 = vadd.f32 %v3009_v38, %v13728_v5  ;;  %v17182_v24 = vld [vmem:[#allocation41_spill] sm:$0xff]  ;;  %v10779_v38 = vpop.permute.xlu1 %10778 }
 0x283   : > { %v4566_v43 = vunpack.c.l.bf16 %v4398_v17  ;;  %v4368_v27 = vsel %vm12424_vm2, %v4363_v18, %v4367_v30  ;;  %v4373_v56 = vrot.slane %v4372_v48, 4  ;;  %v4419_v29 = vshll.u32 %v9492_v51, 16  ;;  %v9491_v30 = vld [vmem:[%s12320_s5 + $0x144] sm:$0xf] }
 0x284   : > { %v4563_v46 = vunpack.c.l.bf16 %v4368_v27  ;;  %v14188_v36 = vadd.f32 %v3007_v63, %v17182_v24  ;;  %v4423_v16 = vshrl.u32 %v9492_v51, 16  ;;  %v4429_v35 = vshll.u32 %v9493_v40, 16 }
 0x285   : > { %v11077_v59 = vpack.i.bf16 %v4566_v43, %v4565_v28  ;;  %v4378_v52 = vsel %vm12424_vm2, %v4373_v56, %v4377_v26  ;;  %v4421_v31 = vrot.slane %v4419_v29, 5  ;;  %v4433_v55 = vshrl.u32 %v9493_v40, 16  ;;  %v233_v43 = vld [vmem:[#allocation5 + $0x2] sm:$0x3] }
 0x286   : > { %17183 = vst [vmem:[#allocation37_spill] sm:$0xff] %v14188_v36  ;;  %v4564_v47 = vunpack.c.l.bf16 %v4378_v52  ;;  %v4439_v10 = vshll.u32 %v9494_v21, 16  ;;  %v4425_v32 = vrot.slane %v4423_v16, 4  ;;  %v4431_v5 = vrot.slane %v4429_v35, 5  ;;  %v10774_v52 = vpop.permute.xlu0 %10773 }
 0x287   : > { %11078 = vperm.xlu1 %10301, %v11077_v59   ;;  %v4400_v18 = vshrl.u32 %v9490_v33, 16  ;;  %v4403_v48 = vshll.u32 %v9490_v33, 16  ;;  %v4435_v63 = vrot.slane %v4433_v55, 4  ;;  %v4409_v28 = vshll.u32 %v9491_v30, 16 }
 0x288   : > { %v11072_v17 = vpack.i.bf16 %v4564_v47, %v4563_v46  ;;  %v4441_v27 = vrot.slane %v4439_v10, 5  ;;  %v4426_v24 = vor.u32 %v4425_v32, %v4421_v31  ;;  %v4413_v56 = vshrl.u32 %v9491_v30, 16  ;;  %v11796_v32 = vld [vmem:[%s12320_s5 + $0x1c] sm:$0xf] }
 0x289   : > { %v4402_v26 = vrot.slane %v4400_v18, 4  ;;  %v4405_v51 = vrot.slane %v4403_v48, 5  ;;  %v4436_v40 = vor.u32 %v4435_v63, %v4431_v5  ;;  %v4411_v21 = vrot.slane %v4409_v28, 5  ;;  %v17185_v63 = vld [vmem:[#allocation14_spill] sm:$0xff] }
 0x28a   : > { %11073 = vperm.xlu0 %10290, %v11072_v17   ;;  %v10781_v29 = vunpack.i.h.bf16 %v10779_v38  ;;  %v10780_v59 = vunpack.i.l.bf16 %v10779_v38  ;;  %v4427_v16 = vrot.slane %v4426_v24, 4  ;;  %v4415_v35 = vrot.slane %v4413_v56, 4 }
 0x28b   : > { %v4406_v33 = vor.u32 %v4405_v51, %v4402_v26  ;;  %v14194_v46 = vunpack.c.l.bf16 %v233_v43  ;;  %v4437_v47 = vrot.slane %v4436_v40, 4  ;;  %v10776_v55 = vunpack.i.h.bf16 %v10774_v52  ;;  %v11797_v26 = vld [vmem:[%s12320_s5 + $0x20] sm:$0xf] }
 0x28c   : > { %v10775_v10 = vunpack.i.l.bf16 %v10774_v52  ;;  %v5124_v18 = vrot.slane %v11796_v32, 5  ;;  %v4432_v30 = vsel %vm12424_vm2, %v4427_v16, %v4431_v5  ;;  %v4416_v17 = vor.u32 %v4415_v35, %v4411_v21  ;;  %v17186_v16 = vld [vmem:[#allocation43_spill] sm:$0xff] }
 0x28d   : > { %17184 = vst [vmem:[#allocation39_spill] sm:$0xff] %v14194_v46  ;;  %v4407_v48 = vrot.slane %v4406_v33, 4  ;;  %v14201_v38 = vrot.slane %v14194_v46, %v17185_v63  ;;  %v4442_v28 = vsel %vm12424_vm2, %v4437_v47, %v4441_v27  ;;  %v4569_v43 = vunpack.c.l.bf16 %v4432_v30  ;;  %v9495_v47 = vld [vmem:[%s12320_s5 + $0x14] sm:$0xe] }
 0x28e   : > { %v5126_v24 = vrot.slane %v5124_v18, 4  ;;  %v5127_v51 = vrot.slane %v11797_v26, 5  ;;  %v4570_v56 = vunpack.c.l.bf16 %v4442_v28  ;;  %v4417_v40 = vrot.slane %v4416_v17, 4  ;;  %v10789_v17 = vpop.permute.xlu1 %10788  ;;  %v17188_v26 = vld [vmem:[#allocation42_spill] sm:$0xff] }
 0x28f   : > { %v4412_v52 = vsel %vm12424_vm2, %v4407_v48, %v4411_v21  ;;  %v3533_v5 = vmul.f32 %v10780_v59, %v14201_v38  ;;  %v14210_v33 = vadd.f32 %v3008_v25, %v17186_v16  ;;  %v3534_v32 = vmul.f32 %v10781_v29, %v14201_v38  ;;  %v17189_v16 = vld [vmem:[#allocation44_spill] sm:$0xff] }
 0x290   : > { %v4567_v35 = vunpack.c.l.bf16 %v4412_v52  ;;  %v3531_v27 = vmul.f32 %v10775_v10, %v14201_v38  ;;  %v11087_v30 = vpack.i.bf16 %v4570_v56, %v4569_v43  ;;  %v4422_v28 = vsel %vm12424_vm2, %v4417_v40, %v4421_v31  ;;  %v10784_v43 = vpop.permute.xlu0 %10783  ;;  %v11798_v56 = vld [vmem:[%s12320_s5 + $0x24] sm:$0x1] }
 0x291   : > { %v3532_v21 = vmul.f32 %v10776_v55, %v14201_v38  ;;  %v5128_v59 = vsel %vm12829_vm5, %v5126_v24, %v5127_v51  ;;  %v4568_v25 = vunpack.c.l.bf16 %v4422_v28  ;;  %v14221_v52 = vadd.f32 %v3533_v5, %v17188_v26 }
 0x292   : > { %v14224_v29 = vadd.f32 %v3534_v32, %v17189_v16  ;;  %v14227_v10 = vadd.f32 %v3531_v27, %v13753_v41  ;;  %11088 = vperm.xlu1 %10301, %v11087_v30   ;;  %v5129_v31 = vrot.slane %v5127_v51, 4  ;;  %v5130_v55 = vrot.slane %v11798_v56, 5  ;;  %v11800_v27 = vld [vmem:[%s12320_s5 + $0x30] sm:$0xf]  ;;  %v10799_v56 = vpop.permute.xlu1 %10798 }
 0x293   : > { %v5393_v40 = vunpack.c.l.bf16 %v5128_v59  ;;  %v9511_v63 = vrot.slane %v9495_v47, 9  ;;  %v11082_v24 = vpack.i.bf16 %v4568_v25, %v4567_v35  ;;  %v5121_v28 = vrot.slane %v11799_v6, 5  ;;  %v17192_v47 = vld [vmem:[#allocation46_spill] sm:$0xff] }
 0x294   : > { %17190 = vst [vmem:[#allocation38_spill] sm:$0xff] %v14224_v29  ;;  %17191 = vst [vmem:[#allocation41_spill] sm:$0xff] %v14227_v10  ;;  %v10791_v36 = vunpack.i.h.bf16 %v10789_v17  ;;  %v10790_v5 = vunpack.i.l.bf16 %v10789_v17  ;;  %v5131_v32 = vsel %vm12829_vm5, %v5129_v31, %v5130_v55  ;;  %v10786_v26 = vunpack.i.h.bf16 %v10784_v43  ;;  %v9496_v31 = vld [vmem:[%s12320_s5 + $0x28] sm:$0xe] }
 0x295   : > { %v10785_v41 = vunpack.i.l.bf16 %v10784_v43  ;;  %v5137_v16 = vrot.slane %v11800_v27, 5  ;;  %11083 = vperm.xlu0 %10290, %v11082_v24   ;;  %v5394_v30 = vunpack.c.l.bf16 %v5131_v32  ;;  %v5122_v51 = vsel %vm12829_vm5, %v9511_v63, %v5121_v28  ;;  %v17194_v32 = vld [vmem:[#allocation45_spill] sm:$0xff] }
 0x296   : > { %v5123_v59 = vrot.slane %v5121_v28, 4  ;;  %v3537_v35 = vmul.f32 %v10790_v5, %v14201_v38  ;;  %v14238_v6 = vadd.f32 %v3532_v21, %v17192_v47  ;;  %v5391_v17 = vunpack.c.l.bf16 %v5122_v51  ;;  %v10794_v5 = vpop.permute.xlu0 %10793  ;;  %v17195_v51 = vld [vmem:[#allocation47_spill] sm:$0xff] }
 0x297   : > { %v3538_v25 = vmul.f32 %v10791_v36, %v14201_v38  ;;  %v3535_v43 = vmul.f32 %v10785_v41, %v14201_v38  ;;  %v11097_v55 = vpack.i.bf16 %v5394_v30, %v5393_v40  ;;  %v3536_v24 = vmul.f32 %v10786_v26, %v14201_v38  ;;  %v11801_v47 = vld [vmem:[%s12320_s5 + $0x34] sm:$0xf]  ;;  %v11802_v30 = vld [vmem:[%s12320_s5 + $0x38] sm:$0x1] }
 0x298   : > { %17193 = vst [vmem:[#allocation43_spill] sm:$0xff] %v14238_v6  ;;  %v5125_v63 = vsel %vm12829_vm5, %v5123_v59, %v5124_v18  ;;  %v5139_v28 = vrot.slane %v5137_v16, 4  ;;  %v14247_v27 = vadd.f32 %v3537_v35, %v17194_v32  ;;  %v5140_v40 = vrot.slane %v11801_v47, 5  ;;  %v11803_v59 = vld [vmem:[%s12320_s5 + $0x2c] sm:$0xf] }
 0x299   : > { %v5392_v21 = vunpack.c.l.bf16 %v5125_v63  ;;  %v14250_v36 = vadd.f32 %v3538_v25, %v17195_v51  ;;  %v14253_v41 = vadd.f32 %v3535_v43, %v13792_v54  ;;  %11098 = vperm.xlu1 %10301, %v11097_v55   ;;  %v5143_v6 = vrot.slane %v11802_v30, 5 }
 0x29a   : > { %v9512_v18 = vrot.slane %v9496_v31, 9  ;;  %v5134_v26 = vrot.slane %v11803_v59, 5  ;;  %v10801_v29 = vunpack.i.h.bf16 %v10799_v56  ;;  %v10800_v63 = vunpack.i.l.bf16 %v10799_v56  ;;  %v10809_v56 = vpop.permute.xlu1 %10808 }
 0x29b   : > { %v11092_v10 = vpack.i.bf16 %v5392_v21, %v5391_v17  ;;  %v10796_v35 = vunpack.i.h.bf16 %v10794_v5  ;;  %v5141_v25 = vsel %vm12829_vm5, %v5139_v28, %v5140_v40  ;;  %v5142_v32 = vrot.slane %v5140_v40, 4 }
 0x29c   : > { %v5135_v54 = vsel %vm12829_vm5, %v9512_v18, %v5134_v26  ;;  %v5136_v43 = vrot.slane %v5134_v26, 4  ;;  %v5397_v55 = vunpack.c.l.bf16 %v5141_v25  ;;  %v3541_v31 = vmul.f32 %v10800_v63, %v14201_v38  ;;  %v10804_v26 = vpop.permute.xlu0 %10803  ;;  %v11805_v25 = vld [vmem:[%s12320_s5 + $0x48] sm:$0xf] }
 0x29d   : > { %11093 = vperm.xlu0 %10290, %v11092_v10   ;;  %v5395_v51 = vunpack.c.l.bf16 %v5135_v54  ;;  %v3542_v17 = vmul.f32 %v10801_v29, %v14201_v38  ;;  %v5144_v21 = vsel %vm12829_vm5, %v5142_v32, %v5143_v6  ;;  %v10795_v47 = vunpack.i.l.bf16 %v10794_v5  ;;  %v9497_v10 = vld [vmem:[%s12320_s5 + $0x3c] sm:$0xe]  ;;  %v11804_v5 = vld [vmem:[%s12320_s5 + $0x44] sm:$0xf] }
 0x29e   : > { %v5138_v28 = vsel %vm12829_vm5, %v5136_v43, %v5137_v16  ;;  %v3540_v40 = vmul.f32 %v10796_v35, %v14201_v38  ;;  %v14271_v30 = vadd.f32 %v3536_v24, %v13782_v7  ;;  %v5398_v18 = vunpack.c.l.bf16 %v5144_v21  ;;  %v11806_v7 = vld [vmem:[%s12320_s5 + $0x4c] sm:$0x1] }
 0x29f   : > { %v5396_v59 = vunpack.c.l.bf16 %v5138_v28  ;;  %v14274_v29 = vadd.f32 %v3541_v31, %v13796_v13  ;;  %v14277_v6 = vadd.f32 %v3542_v17, %v13799_v58  ;;  %v3539_v16 = vmul.f32 %v10795_v47, %v14201_v38  ;;  %v11807_v28 = vld [vmem:[%s12320_s5 + $0x40] sm:$0xf] }
 0x2a0   : > { %v5150_v63 = vrot.slane %v11804_v5, 5  ;;  %v5153_v35 = vrot.slane %v11805_v25, 5  ;;  %v11107_v32 = vpack.i.bf16 %v5398_v18, %v5397_v55  ;;  %v5156_v24 = vrot.slane %v11806_v7, 5  ;;  %v10819_v25 = vpop.permute.xlu1 %10818 }
 0x2a1   : > { %17196 = vst [vmem:[#allocation42_spill] sm:$0xff] %v14274_v29  ;;  %v11102_v54 = vpack.i.bf16 %v5396_v59, %v5395_v51  ;;  %v9513_v43 = vrot.slane %v9497_v10, 9  ;;  %v14284_v21 = vadd.f32 %v3540_v40, %v13823_v8  ;;  %v5147_v29 = vrot.slane %v11807_v28, 5 }
 0x2a2   : > { %v5152_v13 = vrot.slane %v5150_v63, 4  ;;  %v5155_v31 = vrot.slane %v5153_v35, 4  ;;  %11108 = vperm.xlu1 %10301, %v11107_v32   ;;  %v10811_v58 = vunpack.i.h.bf16 %v10809_v56  ;;  %v10810_v17 = vunpack.i.l.bf16 %v10809_v56  ;;  %v10814_v32 = vpop.permute.xlu0 %10813 }
 0x2a3   : > { %11103 = vperm.xlu0 %10290, %v11102_v54   ;;  %v10806_v47 = vunpack.i.h.bf16 %v10804_v26  ;;  %v10805_v5 = vunpack.i.l.bf16 %v10804_v26  ;;  %v5148_v8 = vsel %vm12829_vm5, %v9513_v43, %v5147_v29  ;;  %v5149_v40 = vrot.slane %v5147_v29, 4 }
 0x2a4   : > { %v5154_v55 = vsel %vm12829_vm5, %v5152_v13, %v5153_v35  ;;  %v5157_v51 = vsel %vm12829_vm5, %v5155_v31, %v5156_v24  ;;  %v5399_v59 = vunpack.c.l.bf16 %v5148_v8  ;;  %v3545_v56 = vmul.f32 %v10810_v17, %v14201_v38  ;;  %v9498_v24 = vld [vmem:[%s12320_s5 + $0x50] sm:$0xe]  ;;  %v11808_v31 = vld [vmem:[%s12320_s5 + $0x58] sm:$0xf] }
 0x2a5   : > { %v5401_v10 = vunpack.c.l.bf16 %v5154_v55  ;;  %v5402_v18 = vunpack.c.l.bf16 %v5157_v51  ;;  %v14295_v26 = vadd.f32 %v3539_v16, %v13811_v0  ;;  %v5151_v35 = vsel %vm12829_vm5, %v5149_v40, %v5150_v63  ;;  %v17198_v0 = vld [vmem:[#allocation13_spill] sm:$0xff]  ;;  %v17199_v63 = vld [vmem:[#allocation48_spill] sm:$0xff] }
 0x2a6   : > { %v3546_v54 = vmul.f32 %v10811_v58, %v14201_v38  ;;  %v3543_v7 = vmul.f32 %v10805_v5, %v14201_v38  ;;  %v5400_v43 = vunpack.c.l.bf16 %v5151_v35  ;;  %v3544_v13 = vmul.f32 %v10806_v47, %v14201_v38  ;;  %v11809_v58 = vld [vmem:[%s12320_s5 + $0x5c] sm:$0xf]  ;;  %v11810_v40 = vld [vmem:[%s12320_s5 + $0x60] sm:$0x1] }
 0x2a7   : > { %v11117_v29 = vpack.i.bf16 %v5402_v18, %v5401_v10  ;;  %v5163_v28 = vrot.slane %v11808_v31, 5  ;;  %v14305_v17 = vadd.f32 %v3545_v56, %v13834_v3  ;;  %v5166_v51 = vrot.slane %v11809_v58, 5  ;;  %v10829_v18 = vpop.permute.xlu1 %10828  ;;  %v11811_v31 = vld [vmem:[%s12320_s5 + $0x54] sm:$0xf] }
 0x2a8   : > { %v14308_v16 = vadd.f32 %v3546_v54, %v17198_v0  ;;  %v14311_v55 = vadd.f32 %v3543_v7, %v17199_v63  ;;  %v11112_v5 = vpack.i.bf16 %v5400_v43, %v5399_v59  ;;  %v5169_v47 = vrot.slane %v11810_v40, 5  ;;  %v10824_v59 = vpop.permute.xlu0 %10823 }
 0x2a9   : > { %17197 = vst [vmem:[#allocation44_spill] sm:$0xff] %v14305_v17  ;;  %11118 = vperm.xlu1 %10301, %v11117_v29   ;;  %v5165_v8 = vrot.slane %v5163_v28, 4  ;;  %v9514_v10 = vrot.slane %v9498_v24, 9  ;;  %v5168_v35 = vrot.slane %v5166_v51, 4  ;;  %v5160_v3 = vrot.slane %v11811_v31, 5 }
 0x2aa   : > { %v10821_v56 = vunpack.i.h.bf16 %v10819_v25  ;;  %v10820_v17 = vunpack.i.l.bf16 %v10819_v25  ;;  %11113 = vperm.xlu0 %10290, %v11112_v5   ;;  %v10816_v7 = vunpack.i.h.bf16 %v10814_v32  ;;  %v10815_v0 = vunpack.i.l.bf16 %v10814_v32  ;;  %v11812_v29 = vld [vmem:[%s12320_s5 + $0x6c] sm:$0xf] }
 0x2ab   : > { %v5167_v54 = vsel %vm12829_vm5, %v5165_v8, %v5166_v51  ;;  %v5176_v63 = vrot.slane %v11812_v29, 5  ;;  %v5170_v43 = vsel %vm12829_vm5, %v5168_v35, %v5169_v47  ;;  %v5161_v58 = vsel %vm12829_vm5, %v9514_v10, %v5160_v3  ;;  %v9499_v10 = vld [vmem:[%s12320_s5 + $0x64] sm:$0xe] }
 0x2ac   : > { %v5405_v24 = vunpack.c.l.bf16 %v5167_v54  ;;  %v5162_v40 = vrot.slane %v5160_v3, 4  ;;  %v5406_v31 = vunpack.c.l.bf16 %v5170_v43  ;;  %v5403_v25 = vunpack.c.l.bf16 %v5161_v58  ;;  %v14336_v43 = vpop.permute.xlu1 %10838 }
 0x2ad   : > { %v3549_v5 = vmul.f32 %v10820_v17, %v14201_v38  ;;  %v3550_v32 = vmul.f32 %v10821_v56, %v14201_v38  ;;  %v14326_v51 = vadd.f32 %v3544_v13, %v13855_v37  ;;  %v3547_v47 = vmul.f32 %v10815_v0, %v14201_v38  ;;  %v11814_v0 = vld [vmem:[%s12320_s5 + $0x74] sm:$0x1] }
 0x2ae   : > { %v5164_v8 = vsel %vm12829_vm5, %v5162_v40, %v5163_v28  ;;  %v5178_v35 = vrot.slane %v5176_v63, 4  ;;  %v11127_v3 = vpack.i.bf16 %v5406_v31, %v5405_v24  ;;  %v3548_v17 = vmul.f32 %v10816_v7, %v14201_v38  ;;  %v11813_v28 = vld [vmem:[%s12320_s5 + $0x70] sm:$0xf]  ;;  %v11815_v31 = vld [vmem:[%s12320_s5 + $0x68] sm:$0xf] }
 0x2af   : > { %v5404_v54 = vunpack.c.l.bf16 %v5164_v8  ;;  %v14333_v29 = vadd.f32 %v3549_v5, %v13859_v23  ;;  %v14339_v37 = vadd.f32 %v3550_v32, %v13862_v39  ;;  %v14342_v13 = vadd.f32 %v3547_v47, %v13881_v22  ;;  %v14347_v8 = vpop.permute.xlu0 %10833 }
 0x2b0   : > { %v5179_v56 = vrot.slane %v11813_v28, 5  ;;  %v5182_v58 = vrot.slane %v11814_v0, 5  ;;  %11128 = vperm.xlu1 %10301, %v11127_v3   ;;  %v9515_v40 = vrot.slane %v9499_v10, 9  ;;  %v5173_v23 = vrot.slane %v11815_v31, 5  ;;  %v9500_v31 = vld [vmem:[%s12320_s5 + $0x78] sm:$0xe] }
 0x2b1   : > { %v11122_v24 = vpack.i.bf16 %v5404_v54, %v5403_v25  ;;  %v10831_v5 = vunpack.i.h.bf16 %v10829_v18  ;;  %v10830_v32 = vunpack.i.l.bf16 %v10829_v18  ;;  %v10826_v22 = vunpack.i.h.bf16 %v10824_v59 }
 0x2b2   : > { %v5180_v7 = vsel %vm12829_vm5, %v5178_v35, %v5179_v56  ;;  %v5181_v39 = vrot.slane %v5179_v56, 4  ;;  %v5174_v28 = vsel %vm12829_vm5, %v9515_v40, %v5173_v23  ;;  %v5175_v25 = vrot.slane %v5173_v23, 4  ;;  %v14364_v23 = vpop.permute.xlu1 %10848 }
 0x2b3   : > { %11123 = vperm.xlu0 %10290, %v11122_v24   ;;  %v5409_v47 = vunpack.c.l.bf16 %v5180_v7  ;;  %v3554_v10 = vmul.f32 %v10831_v5, %v14201_v38  ;;  %v5407_v54 = vunpack.c.l.bf16 %v5174_v28  ;;  %v3553_v35 = vmul.f32 %v10830_v32, %v14201_v38  ;;  %v11817_v32 = vld [vmem:[%s12320_s5 + $0x84] sm:$0xf]  ;;  %v11818_v28 = vld [vmem:[%s12320_s5 + $0x88] sm:$0x1] }
 0x2b4   : > { %v5183_v3 = vsel %vm12829_vm5, %v5181_v39, %v5182_v58  ;;  %v10825_v56 = vunpack.i.l.bf16 %v10824_v59  ;;  %v14358_v18 = vadd.f32 %v3548_v17, %v13872_v14  ;;  %v5177_v24 = vsel %vm12829_vm5, %v5175_v25, %v5176_v63  ;;  %v11816_v59 = vld [vmem:[%s12320_s5 + $0x80] sm:$0xf]  ;;  %v14376_v25 = vpop.permute.xlu0 %10843 }
 0x2b5   : > { %v5410_v0 = vunpack.c.l.bf16 %v5183_v3  ;;  %v3552_v40 = vmul.f32 %v10826_v22, %v14201_v38  ;;  %v5408_v5 = vunpack.c.l.bf16 %v5177_v24  ;;  %v14367_v58 = vadd.f32 %v3553_v35, %v13895_v44  ;;  %v11819_v24 = vld [vmem:[%s12320_s5 + $0x7c] sm:$0xf] }
 0x2b6   : > { %v14370_v7 = vadd.f32 %v3554_v10, %v13886_v50  ;;  %v5189_v14 = vrot.slane %v11816_v59, 5  ;;  %v3551_v39 = vmul.f32 %v10825_v56, %v14201_v38  ;;  %v5192_v63 = vrot.slane %v11817_v32, 5 }
 0x2b7   : > { %v11137_v17 = vpack.i.bf16 %v5410_v0, %v5409_v47  ;;  %v5195_v22 = vrot.slane %v11818_v28, 5  ;;  %v11132_v3 = vpack.i.bf16 %v5408_v5, %v5407_v54  ;;  %v14379_v44 = vadd.f32 %v3552_v40, %v13911_v11  ;;  %v11820_v11 = vld [vmem:[%s12320_s5 + $0x94] sm:$0xf] }
 0x2b8   : > { %v5191_v35 = vrot.slane %v5189_v14, 4  ;;  %v9516_v50 = vrot.slane %v9500_v31, 9  ;;  %v5194_v10 = vrot.slane %v5192_v63, 4  ;;  %v5186_v59 = vrot.slane %v11819_v24, 5 }
 0x2b9   : > { %17200 = vst [vmem:[#allocation46_spill] sm:$0xff] %v14379_v44  ;;  %11138 = vperm.xlu1 %10301, %v11137_v17   ;;  %v10841_v47 = vunpack.i.h.bf16 %v14336_v43  ;;  %v10840_v56 = vunpack.i.l.bf16 %v14336_v43  ;;  %11133 = vperm.xlu0 %10290, %v11132_v3   ;;  %v10836_v32 = vunpack.i.h.bf16 %v14347_v8  ;;  %v10835_v54 = vunpack.i.l.bf16 %v14347_v8  ;;  %v14393_v43 = vpop.permute.xlu1 %10858 }
 0x2ba   : > { %v5193_v0 = vsel %vm12829_vm5, %v5191_v35, %v5192_v63  ;;  %v5202_v40 = vrot.slane %v11820_v11, 5  ;;  %v5196_v31 = vsel %vm12829_vm5, %v5194_v10, %v5195_v22  ;;  %v5187_v17 = vsel %vm12829_vm5, %v9516_v50, %v5186_v59 }
 0x2bb   : > { %v5413_v5 = vunpack.c.l.bf16 %v5193_v0  ;;  %v5188_v28 = vrot.slane %v5186_v59, 4  ;;  %v5414_v3 = vunpack.c.l.bf16 %v5196_v31  ;;  %v5411_v63 = vunpack.c.l.bf16 %v5187_v17  ;;  %v9501_v59 = vld [vmem:[%s12320_s5 + $0x8c] sm:$0xe]  ;;  %v14404_v0 = vpop.permute.xlu0 %10853  ;;  %v11822_v17 = vld [vmem:[%s12320_s5 + $0x9c] sm:$0x1] }
 0x2bc   : > { %v3557_v35 = vmul.f32 %v10840_v56, %v14201_v38  ;;  %v3558_v8 = vmul.f32 %v10841_v47, %v14201_v38  ;;  %v14398_v24 = vadd.f32 %v3551_v39, %v13898_v2  ;;  %v3555_v10 = vmul.f32 %v10835_v54, %v14201_v38 }
 0x2bd   : > { %v5190_v22 = vsel %vm12829_vm5, %v5188_v28, %v5189_v14  ;;  %v5204_v50 = vrot.slane %v5202_v40, 4  ;;  %v11147_v11 = vpack.i.bf16 %v5414_v3, %v5413_v5  ;;  %v3556_v47 = vmul.f32 %v10836_v32, %v14201_v38  ;;  %v11821_v14 = vld [vmem:[%s12320_s5 + $0x98] sm:$0xf]  ;;  %v11823_v5 = vld [vmem:[%s12320_s5 + $0x90] sm:$0xf] }
 0x2be   : > { %17201 = vst [vmem:[#allocation45_spill] sm:$0xff] %v14398_v24  ;;  %v5412_v31 = vunpack.c.l.bf16 %v5190_v22  ;;  %v14407_v56 = vadd.f32 %v3557_v35, %v13916_v53  ;;  %v14411_v2 = vadd.f32 %v3558_v8, %v13922_v4  ;;  %v14414_v39 = vadd.f32 %v3555_v10, %v13939_v12  ;;  %v14424_v8 = vpop.permute.xlu1 %10868 }
 0x2bf   : > { %v5205_v54 = vrot.slane %v11821_v14, 5  ;;  %v5208_v28 = vrot.slane %v11822_v17, 5  ;;  %11148 = vperm.xlu1 %10301, %v11147_v11   ;;  %v9517_v44 = vrot.slane %v9501_v59, 9  ;;  %v5199_v3 = vrot.slane %v11823_v5, 5  ;;  %v14433_v14 = vpop.permute.xlu0 %10863  ;;  %v9502_v5 = vld [vmem:[%s12320_s5 + $0xa0] sm:$0xe] }
 0x2c0   : > { %v11142_v24 = vpack.i.bf16 %v5412_v31, %v5411_v63  ;;  %v10851_v53 = vunpack.i.h.bf16 %v14364_v23  ;;  %v10850_v4 = vunpack.i.l.bf16 %v14364_v23  ;;  %v10846_v12 = vunpack.i.h.bf16 %v14376_v25 }
 0x2c1   : > { %v5206_v32 = vsel %vm12829_vm5, %v5204_v50, %v5205_v54  ;;  %v5207_v35 = vrot.slane %v5205_v54, 4  ;;  %v5200_v63 = vsel %vm12829_vm5, %v9517_v44, %v5199_v3  ;;  %v5201_v10 = vrot.slane %v5199_v3, 4 }
 0x2c2   : > { %11143 = vperm.xlu0 %10290, %v11142_v24   ;;  %v5417_v22 = vunpack.c.l.bf16 %v5206_v32  ;;  %v3562_v59 = vmul.f32 %v10851_v53, %v14201_v38  ;;  %v5415_v11 = vunpack.c.l.bf16 %v5200_v63  ;;  %v3561_v23 = vmul.f32 %v10850_v4, %v14201_v38  ;;  %v11826_v63 = vld [vmem:[%s12320_s5 + $0xb0] sm:$0x1] }
 0x2c3   : > { %v5209_v50 = vsel %vm12829_vm5, %v5207_v35, %v5208_v28  ;;  %v10845_v31 = vunpack.i.l.bf16 %v14376_v25  ;;  %v14436_v24 = vadd.f32 %v3556_v47, %v13930_v61  ;;  %v5203_v54 = vsel %vm12829_vm5, %v5201_v10, %v5202_v40  ;;  %v11824_v25 = vld [vmem:[%s12320_s5 + $0xa8] sm:$0xf]  ;;  %v11825_v47 = vld [vmem:[%s12320_s5 + $0xac] sm:$0xf] }
 0x2c4   : > { %v5418_v44 = vunpack.c.l.bf16 %v5209_v50  ;;  %v3560_v17 = vmul.f32 %v10846_v12, %v14201_v38  ;;  %v5416_v28 = vunpack.c.l.bf16 %v5203_v54  ;;  %v14443_v3 = vadd.f32 %v3561_v23, %v13953_v34  ;;  %v14455_v23 = vpop.permute.xlu1 %10878 }
 0x2c5   : > { %v14446_v53 = vadd.f32 %v3562_v59, %v13944_v9  ;;  %v5215_v32 = vrot.slane %v11824_v25, 5  ;;  %v3559_v61 = vmul.f32 %v10845_v31, %v14201_v38  ;;  %v5218_v4 = vrot.slane %v11825_v47, 5  ;;  %v11827_v59 = vld [vmem:[%s12320_s5 + $0xa4] sm:$0xf] }
 0x2c6   : > { %17202 = vst [vmem:[#allocation47_spill] sm:$0xff] %v14443_v3  ;;  %v11157_v35 = vpack.i.bf16 %v5418_v44, %v5417_v22  ;;  %v5221_v40 = vrot.slane %v11826_v63, 5  ;;  %v11152_v12 = vpack.i.bf16 %v5416_v28, %v5415_v11  ;;  %v14453_v10 = vadd.f32 %v3560_v17, %v13969_v49  ;;  %v11828_v17 = vld [vmem:[%s12320_s5 + $0xbc] sm:$0xf]  ;;  %v14465_v28 = vpop.permute.xlu0 %10873 }
 0x2c7   : > { %v5217_v34 = vrot.slane %v5215_v32, 4  ;;  %v9518_v50 = vrot.slane %v9502_v5, 9  ;;  %v5220_v9 = vrot.slane %v5218_v4, 4  ;;  %v5212_v54 = vrot.slane %v11827_v59, 5 }
 0x2c8   : > { %17203 = vst [vmem:[#allocation13_spill] sm:$0xff] %v14453_v10  ;;  %11158 = vperm.xlu1 %10301, %v11157_v35   ;;  %v10861_v22 = vunpack.i.h.bf16 %v14393_v43  ;;  %v10860_v31 = vunpack.i.l.bf16 %v14393_v43  ;;  %11153 = vperm.xlu0 %10290, %v11152_v12   ;;  %v10856_v11 = vunpack.i.h.bf16 %v14404_v0  ;;  %v10855_v49 = vunpack.i.l.bf16 %v14404_v0 }
 0x2c9   : > { %v5219_v44 = vsel %vm12829_vm5, %v5217_v34, %v5218_v4  ;;  %v5228_v5 = vrot.slane %v11828_v17, 5  ;;  %v5222_v25 = vsel %vm12829_vm5, %v5220_v9, %v5221_v40  ;;  %v5213_v43 = vsel %vm12829_vm5, %v9518_v50, %v5212_v54  ;;  %v9503_v50 = vld [vmem:[%s12320_s5 + $0xb4] sm:$0xe] }
 0x2ca   : > { %v5421_v35 = vunpack.c.l.bf16 %v5219_v44  ;;  %v5214_v47 = vrot.slane %v5212_v54, 4  ;;  %v5422_v63 = vunpack.c.l.bf16 %v5222_v25  ;;  %v5419_v4 = vunpack.c.l.bf16 %v5213_v43  ;;  %v14484_v25 = vpop.permute.xlu1 %10888  ;;  %v11830_v43 = vld [vmem:[%s12320_s5 + $0xc4] sm:$0x1] }
 0x2cb   : > { %v3565_v12 = vmul.f32 %v10860_v31, %v14201_v38  ;;  %v3566_v0 = vmul.f32 %v10861_v22, %v14201_v38  ;;  %v14474_v34 = vadd.f32 %v3559_v61, %v13956_v60  ;;  %v3563_v40 = vmul.f32 %v10855_v49, %v14201_v38  ;;  %v17207_v61 = vld [vmem:[#allocation16_spill] sm:$0xff] }
 0x2cc   : > { %v5216_v59 = vsel %vm12829_vm5, %v5214_v47, %v5215_v32  ;;  %v5230_v9 = vrot.slane %v5228_v5, 4  ;;  %v11167_v54 = vpack.i.bf16 %v5422_v63, %v5421_v35  ;;  %v3564_v31 = vmul.f32 %v10856_v11, %v14201_v38  ;;  %v11829_v32 = vld [vmem:[%s12320_s5 + $0xc0] sm:$0xf]  ;;  %v14496_v11 = vpop.permute.xlu0 %10883 }
 0x2cd   : > { %17204 = vst [vmem:[#allocation48_spill] sm:$0xff] %v14474_v34  ;;  %v5420_v44 = vunpack.c.l.bf16 %v5216_v59  ;;  %v14481_v17 = vadd.f32 %v3565_v12, %v13974_v45  ;;  %v14487_v60 = vadd.f32 %v3566_v0, %v13980_v20  ;;  %v14490_v22 = vadd.f32 %v3563_v40, %v17207_v61  ;;  %v11831_v59 = vld [vmem:[%s12320_s5 + $0xb8] sm:$0xf] }
 0x2ce   : > { %v5231_v49 = vrot.slane %v11829_v32, 5  ;;  %v5234_v47 = vrot.slane %v11830_v43, 5  ;;  %11168 = vperm.xlu1 %10301, %v11167_v54   ;;  %v9519_v63 = vrot.slane %v9503_v50, 9  ;;  %v5225_v45 = vrot.slane %v11831_v59, 5 }
 0x2cf   : > { %17205 = vst [vmem:[#allocation51_spill] sm:$0xff] %v14481_v17  ;;  %17206 = vst [vmem:[#allocation52_spill] sm:$0xff] %v14487_v60  ;;  %v11162_v35 = vpack.i.bf16 %v5420_v44, %v5419_v4  ;;  %v10871_v12 = vunpack.i.h.bf16 %v14424_v8  ;;  %v10870_v40 = vunpack.i.l.bf16 %v14424_v8  ;;  %v10866_v61 = vunpack.i.h.bf16 %v14433_v14  ;;  %v17215_v17 = vld [vmem:[#allocation20_spill] sm:$0xff] }
 0x2d0   : > { %17208 = vst [vmem:[#allocation16_spill] sm:$0xff] %v14490_v22  ;;  %v5232_v20 = vsel %vm12829_vm5, %v5230_v9, %v5231_v49  ;;  %v5233_v0 = vrot.slane %v5231_v49, 4  ;;  %v5226_v4 = vsel %vm12829_vm5, %v9519_v63, %v5225_v45  ;;  %v5227_v50 = vrot.slane %v5225_v45, 4  ;;  %v17209_v49 = vld [vmem:[#allocation49_spill] sm:$0xff]  ;;  %v14528_v60 = vpop.permute.xlu0 %10893 }
 0x2d1   : > { %11163 = vperm.xlu0 %10290, %v11162_v35   ;;  %v5425_v32 = vunpack.c.l.bf16 %v5232_v20  ;;  %v3570_v54 = vmul.f32 %v10871_v12, %v14201_v38  ;;  %v5423_v43 = vunpack.c.l.bf16 %v5226_v4  ;;  %v3569_v9 = vmul.f32 %v10870_v40, %v14201_v38  ;;  %v9504_v12 = vld [vmem:[%s12320_s5 + $0xc8] sm:$0xe]  ;;  %v14516_v20 = vpop.permute.xlu1 %10898  ;;  %v17213_v40 = vld [vmem:[#allocation17_spill] sm:$0xff] }
 0x2d2   : > { %v5235_v44 = vsel %vm12829_vm5, %v5233_v0, %v5234_v47  ;;  %v10865_v8 = vunpack.i.l.bf16 %v14433_v14  ;;  %v14510_v35 = vadd.f32 %v3564_v31, %v17209_v49  ;;  %v5229_v63 = vsel %vm12829_vm5, %v5227_v50, %v5228_v5  ;;  %v17211_v0 = vld [vmem:[#allocation19_spill] sm:$0xff]  ;;  %v11834_v50 = vld [vmem:[%s12320_s5 + $0xd8] sm:$0x1] }
 0x2d3   : > { %v5426_v59 = vunpack.c.l.bf16 %v5235_v44  ;;  %v3568_v45 = vmul.f32 %v10866_v61, %v14201_v38  ;;  %v5424_v47 = vunpack.c.l.bf16 %v5229_v63  ;;  %v14519_v4 = vadd.f32 %v3569_v9, %v17211_v0  ;;  %v11832_v14 = vld [vmem:[%s12320_s5 + $0xd0] sm:$0xf] }
 0x2d4   : > { %17210 = vst [vmem:[#allocation49_spill] sm:$0xff] %v14510_v35  ;;  %v14522_v22 = vadd.f32 %v3570_v54, %v17213_v40  ;;  %v5241_v31 = vrot.slane %v11832_v14, 5  ;;  %v3567_v44 = vmul.f32 %v10865_v8, %v14201_v38  ;;  %v11833_v35 = vld [vmem:[%s12320_s5 + $0xd4] sm:$0xf]  ;;  %v5247_v61 = vrot.slane %v11834_v50, 5 }
 0x2d5   : > { %17212 = vst [vmem:[#allocation19_spill] sm:$0xff] %v14519_v4  ;;  %v11177_v49 = vpack.i.bf16 %v5426_v59, %v5425_v32  ;;  %v5244_v5 = vrot.slane %v11833_v35, 5  ;;  %v11172_v63 = vpack.i.bf16 %v5424_v47, %v5423_v43  ;;  %v14531_v9 = vadd.f32 %v3568_v45, %v17215_v17  ;;  %v11835_v4 = vld [vmem:[%s12320_s5 + $0xcc] sm:$0xf]  ;;  %v11836_v17 = vld [vmem:[%s12320_s5 + $0xe4] sm:$0xf] }
 0x2d6   : > { %17214 = vst [vmem:[#allocation17_spill] sm:$0xff] %v14522_v22  ;;  %v5243_v0 = vrot.slane %v5241_v31, 4  ;;  %v9520_v54 = vrot.slane %v9504_v12, 9  ;;  %v5238_v14 = vrot.slane %v11835_v4, 5  ;;  %v10881_v32 = vunpack.i.h.bf16 %v14455_v23  ;;  %v17220_v22 = vld [vmem:[#allocation23_spill] sm:$0xff] }
 0x2d7   : > { %17216 = vst [vmem:[#allocation20_spill] sm:$0xff] %v14531_v9  ;;  %11178 = vperm.xlu1 %10301, %v11177_v49   ;;  %v5246_v40 = vrot.slane %v5244_v5, 4  ;;  %v10880_v8 = vunpack.i.l.bf16 %v14455_v23  ;;  %11173 = vperm.xlu0 %10290, %v11172_v63   ;;  %v10876_v59 = vunpack.i.h.bf16 %v14465_v28  ;;  %v10875_v43 = vunpack.i.l.bf16 %v14465_v28  ;;  %v14545_v23 = vpop.permute.xlu1 %10908  ;;  %v17219_v9 = vld [vmem:[#allocation21_spill] sm:$0xff] }
 0x2d8   : > { %v5245_v35 = vsel %vm12829_vm5, %v5243_v0, %v5244_v5  ;;  %v5254_v45 = vrot.slane %v11836_v17, 5  ;;  %v5239_v4 = vsel %vm12829_vm5, %v9520_v54, %v5238_v14  ;;  %v5240_v49 = vrot.slane %v5238_v14, 4  ;;  %v17217_v0 = vld [vmem:[#allocation18_spill] sm:$0xff]  ;;  %v9505_v14 = vld [vmem:[%s12320_s5 + $0xdc] sm:$0xe] }
 0x2d9   : > { %v5248_v12 = vsel %vm12829_vm5, %v5246_v40, %v5247_v61  ;;  %v5429_v47 = vunpack.c.l.bf16 %v5245_v35  ;;  %v5427_v5 = vunpack.c.l.bf16 %v5239_v4  ;;  %v3573_v63 = vmul.f32 %v10880_v8, %v14201_v38  ;;  %v14556_v35 = vpop.permute.xlu0 %10903 }
 0x2da   : > { %v5430_v50 = vunpack.c.l.bf16 %v5248_v12  ;;  %v3574_v28 = vmul.f32 %v10881_v32, %v14201_v38  ;;  %v14550_v17 = vadd.f32 %v3567_v44, %v17217_v0  ;;  %v5242_v61 = vsel %vm12829_vm5, %v5240_v49, %v5241_v31  ;;  %v17221_v0 = vld [vmem:[#allocation24_spill] sm:$0xff]  ;;  %v11837_v31 = vld [vmem:[%s12320_s5 + $0xe8] sm:$0xf]  ;;  %v11838_v49 = vld [vmem:[%s12320_s5 + $0xec] sm:$0x1] }
 0x2db   : > { %v3571_v40 = vmul.f32 %v10875_v43, %v14201_v38  ;;  %v5256_v54 = vrot.slane %v5254_v45, 4  ;;  %v5428_v4 = vunpack.c.l.bf16 %v5242_v61  ;;  %v14559_v8 = vadd.f32 %v3573_v63, %v17219_v9  ;;  %v14576_v61 = vpop.permute.xlu1 %10918 }
 0x2dc   : > { %17218 = vst [vmem:[#allocation18_spill] sm:$0xff] %v14550_v17  ;;  %v11187_v12 = vpack.i.bf16 %v5430_v50, %v5429_v47  ;;  %v3572_v32 = vmul.f32 %v10876_v59, %v14201_v38  ;;  %v14563_v44 = vadd.f32 %v3574_v28, %v17220_v22  ;;  %v5257_v43 = vrot.slane %v11837_v31, 5  ;;  %v11839_v47 = vld [vmem:[%s12320_s5 + $0xe0] sm:$0xf] }
 0x2dd   : > { %v14566_v17 = vadd.f32 %v3571_v40, %v17221_v0  ;;  %v5260_v34 = vrot.slane %v11838_v49, 5  ;;  %v11182_v10 = vpack.i.bf16 %v5428_v4, %v5427_v5  ;;  %v9521_v3 = vrot.slane %v9505_v14, 9  ;;  %v14585_v31 = vpop.permute.xlu0 %10913 }
 0x2de   : > { %11188 = vperm.xlu1 %10301, %v11187_v12   ;;  %v5251_v50 = vrot.slane %v11839_v47, 5  ;;  %v10891_v9 = vunpack.i.h.bf16 %v14484_v25  ;;  %v5258_v59 = vsel %vm12829_vm5, %v5256_v54, %v5257_v43  ;;  %v5259_v63 = vrot.slane %v5257_v43, 4 }
 0x2df   : > { %17222 = vst [vmem:[#allocation21_spill] sm:$0xff] %v14566_v17  ;;  %v10890_v22 = vunpack.i.l.bf16 %v14484_v25  ;;  %v10886_v28 = vunpack.i.h.bf16 %v14496_v11  ;;  %11183 = vperm.xlu0 %10290, %v11182_v10   ;;  %v5433_v40 = vunpack.c.l.bf16 %v5258_v59  ;;  %v10885_v0 = vunpack.i.l.bf16 %v14496_v11  ;;  %v17223_v10 = vld [vmem:[#allocation22_spill] sm:$0xff]  ;;  %v11840_v11 = vld [vmem:[%s12320_s5 + $0xf8] sm:$0xf] }
 0x2e0   : > { %v5252_v5 = vsel %vm12829_vm5, %v9521_v3, %v5251_v50  ;;  %v5253_v14 = vrot.slane %v5251_v50, 4  ;;  %v3578_v12 = vmul.f32 %v10891_v9, %v14201_v38  ;;  %v5261_v54 = vsel %vm12829_vm5, %v5259_v63, %v5260_v34  ;;  %v9506_v50 = vld [vmem:[%s12320_s5 + $0xf0] sm:$0xe]  ;;  %v17227_v63 = vld [vmem:[#allocation25_spill] sm:$0xff] }
 0x2e1   : > { %v5431_v4 = vunpack.c.l.bf16 %v5252_v5  ;;  %v3577_v25 = vmul.f32 %v10890_v22, %v14201_v38  ;;  %v14588_v43 = vadd.f32 %v3572_v32, %v17223_v10  ;;  %v5434_v3 = vunpack.c.l.bf16 %v5261_v54  ;;  %v17225_v9 = vld [vmem:[#allocation27_spill] sm:$0xff]  ;;  %v11841_v54 = vld [vmem:[%s12320_s5 + $0xfc] sm:$0xf] }
 0x2e2   : > { %v5255_v49 = vsel %vm12829_vm5, %v5253_v14, %v5254_v45  ;;  %v3576_v47 = vmul.f32 %v10886_v28, %v14201_v38  ;;  %v14598_v22 = vadd.f32 %v3578_v12, %v17227_v63  ;;  %v5267_v5 = vrot.slane %v11840_v11, 5  ;;  %v11843_v63 = vld [vmem:[%s12320_s5 + $0xf4] sm:$0xf] }
 0x2e3   : > { %17224 = vst [vmem:[#allocation23_spill] sm:$0xff] %v14588_v43  ;;  %v5432_v34 = vunpack.c.l.bf16 %v5255_v49  ;;  %v14595_v59 = vadd.f32 %v3577_v25, %v17225_v9  ;;  %v11197_v17 = vpack.i.bf16 %v5434_v3, %v5433_v40  ;;  %v3575_v32 = vmul.f32 %v10885_v0, %v14201_v38  ;;  %v11842_v43 = vld [vmem:[%s12320_s5 + $0x100] sm:$0x1]  ;;  %v14607_v9 = vpop.permute.xlu1 %10928  ;;  %v11844_v3 = vld [vmem:[%s12320_s5 + $0x10c] sm:$0xf] }
 0x2e4   : > { %17228 = vst [vmem:[#allocation22_spill] sm:$0xff] %v14598_v22  ;;  %v5270_v10 = vrot.slane %v11841_v54, 5  ;;  %v5273_v45 = vrot.slane %v11842_v43, 5  ;;  %v14605_v14 = vadd.f32 %v3576_v47, %v14085_v42  ;;  %v5269_v25 = vrot.slane %v5267_v5, 4 }
 0x2e5   : > { %17226 = vst [vmem:[#allocation24_spill] sm:$0xff] %v14595_v59  ;;  %v11192_v28 = vpack.i.bf16 %v5432_v34, %v5431_v4  ;;  %v9522_v49 = vrot.slane %v9506_v50, 9  ;;  %11198 = vperm.xlu1 %10301, %v11197_v17   ;;  %v5264_v11 = vrot.slane %v11843_v63, 5  ;;  %v10901_v40 = vunpack.i.h.bf16 %v14516_v20  ;;  %v14617_v50 = vpop.permute.xlu0 %10923  ;;  %v17230_v63 = vld [vmem:[#allocation26_spill] sm:$0xff] }
 0x2e6   : > { %17229 = vst [vmem:[#allocation27_spill] sm:$0xff] %v14605_v14  ;;  %v5272_v12 = vrot.slane %v5270_v10, 4  ;;  %v10900_v0 = vunpack.i.l.bf16 %v14516_v20  ;;  %v5271_v43 = vsel %vm12829_vm5, %v5269_v25, %v5270_v10  ;;  %v10896_v4 = vunpack.i.h.bf16 %v14528_v60 }
 0x2e7   : > { %11193 = vperm.xlu0 %10290, %v11192_v28   ;;  %v10895_v42 = vunpack.i.l.bf16 %v14528_v60  ;;  %v5280_v47 = vrot.slane %v11844_v3, 5  ;;  %v5437_v34 = vunpack.c.l.bf16 %v5271_v43  ;;  %v5265_v20 = vsel %vm12829_vm5, %v9522_v49, %v5264_v11  ;;  %v9507_v49 = vld [vmem:[%s12320_s5 + $0x104] sm:$0xe]  ;;  %v14636_v59 = vpop.permute.xlu1 %10938 }
 0x2e8   : > { %v5274_v17 = vsel %vm12829_vm5, %v5272_v12, %v5273_v45  ;;  %v5266_v54 = vrot.slane %v5264_v11, 4  ;;  %v5435_v10 = vunpack.c.l.bf16 %v5265_v20  ;;  %v3581_v25 = vmul.f32 %v10900_v0, %v14201_v38 }
 0x2e9   : > { %v5438_v28 = vunpack.c.l.bf16 %v5274_v17  ;;  %v3582_v60 = vmul.f32 %v10901_v40, %v14201_v38  ;;  %v14626_v3 = vadd.f32 %v3575_v32, %v17230_v63  ;;  %v3579_v45 = vmul.f32 %v10895_v42, %v14201_v38  ;;  %v17232_v17 = vld [vmem:[#allocation28_spill] sm:$0xff]  ;;  %v17234_v40 = vld [vmem:[#allocation29_spill] sm:$0xff] }
 0x2ea   : > { %v5268_v14 = vsel %vm12829_vm5, %v5266_v54, %v5267_v5  ;;  %v5282_v12 = vrot.slane %v5280_v47, 4  ;;  %v14633_v20 = vadd.f32 %v3581_v25, %v17232_v17  ;;  %v3580_v0 = vmul.f32 %v10896_v4, %v14201_v38  ;;  %v11845_v5 = vld [vmem:[%s12320_s5 + $0x110] sm:$0xf]  ;;  %v11846_v54 = vld [vmem:[%s12320_s5 + $0x114] sm:$0x1]  ;;  %v14648_v4 = vpop.permute.xlu0 %10933 }
 0x2eb   : > { %17231 = vst [vmem:[#allocation25_spill] sm:$0xff] %v14626_v3  ;;  %v11207_v11 = vpack.i.bf16 %v5438_v28, %v5437_v34  ;;  %v5436_v43 = vunpack.c.l.bf16 %v5268_v14  ;;  %v14639_v32 = vadd.f32 %v3582_v60, %v17234_v40  ;;  %v14642_v63 = vadd.f32 %v3579_v45, %v14113_v15  ;;  %v11847_v28 = vld [vmem:[%s12320_s5 + $0x108] sm:$0xf] }
 0x2ec   : > { %17233 = vst [vmem:[#allocation26_spill] sm:$0xff] %v14633_v20  ;;  %v5283_v42 = vrot.slane %v11845_v5, 5  ;;  %v5286_v3 = vrot.slane %v11846_v54, 5  ;;  %v9523_v14 = vrot.slane %v9507_v49, 9  ;;  %v5277_v25 = vrot.slane %v11847_v28, 5 }
 0x2ed   : > { %17235 = vst [vmem:[#allocation28_spill] sm:$0xff] %v14639_v32  ;;  %17236 = vst [vmem:[#allocation29_spill] sm:$0xff] %v14642_v63  ;;  %11208 = vperm.xlu1 %10301, %v11207_v11   ;;  %v11202_v34 = vpack.i.bf16 %v5436_v43, %v5435_v10  ;;  %v10911_v17 = vunpack.i.h.bf16 %v14545_v23  ;;  %v10910_v15 = vunpack.i.l.bf16 %v14545_v23  ;;  %v10906_v45 = vunpack.i.h.bf16 %v14556_v35 }
 0x2ee   : > { %v5284_v60 = vsel %vm12829_vm5, %v5282_v12, %v5283_v42  ;;  %v5285_v40 = vrot.slane %v5283_v42, 4  ;;  %v5278_v10 = vsel %vm12829_vm5, %v9523_v14, %v5277_v25  ;;  %v5279_v49 = vrot.slane %v5277_v25, 4  ;;  %v17237_v42 = vld [vmem:[#allocation31_spill] sm:$0xff]  ;;  %v14680_v32 = vpop.permute.xlu0 %10943 }
 0x2ef   : > { %11203 = vperm.xlu0 %10290, %v11202_v34   ;;  %v5441_v5 = vunpack.c.l.bf16 %v5284_v60  ;;  %v3586_v11 = vmul.f32 %v10911_v17, %v14201_v38  ;;  %v5439_v54 = vunpack.c.l.bf16 %v5278_v10  ;;  %v3585_v12 = vmul.f32 %v10910_v15, %v14201_v38  ;;  %v9508_v17 = vld [vmem:[%s12320_s5 + $0x118] sm:$0xe]  ;;  %v14668_v60 = vpop.permute.xlu1 %10948  ;;  %v17241_v15 = vld [vmem:[#allocation30_spill] sm:$0xff] }
 0x2f0   : > { %v5287_v43 = vsel %vm12829_vm5, %v5285_v40, %v5286_v3  ;;  %v10905_v23 = vunpack.i.l.bf16 %v14556_v35  ;;  %v14662_v34 = vadd.f32 %v3580_v0, %v17237_v42  ;;  %v5281_v14 = vsel %vm12829_vm5, %v5279_v49, %v5280_v47  ;;  %v17239_v40 = vld [vmem:[#allocation32_spill] sm:$0xff]  ;;  %v11848_v35 = vld [vmem:[%s12320_s5 + $0x120] sm:$0xf]  ;;  %v11850_v49 = vld [vmem:[%s12320_s5 + $0x128] sm:$0x1] }
 0x2f1   : > { %v5442_v28 = vunpack.c.l.bf16 %v5287_v43  ;;  %v3584_v25 = vmul.f32 %v10906_v45, %v14201_v38  ;;  %v5440_v3 = vunpack.c.l.bf16 %v5281_v14  ;;  %v14671_v10 = vadd.f32 %v3585_v12, %v17239_v40 }
 0x2f2   : > { %17238 = vst [vmem:[#allocation31_spill] sm:$0xff] %v14662_v34  ;;  %v14674_v63 = vadd.f32 %v3586_v11, %v17241_v15  ;;  %v5293_v0 = vrot.slane %v11848_v35, 5  ;;  %v3583_v43 = vmul.f32 %v10905_v23, %v14201_v38  ;;  %v11849_v34 = vld [vmem:[%s12320_s5 + $0x124] sm:$0xf]  ;;  %v5299_v45 = vrot.slane %v11850_v49, 5 }
 0x2f3   : > { %17240 = vst [vmem:[#allocation32_spill] sm:$0xff] %v14671_v10  ;;  %v11217_v42 = vpack.i.bf16 %v5442_v28, %v5441_v5  ;;  %v5296_v47 = vrot.slane %v11849_v34, 5  ;;  %v11212_v14 = vpack.i.bf16 %v5440_v3, %v5439_v54  ;;  %v14683_v12 = vadd.f32 %v3584_v25, %v14143_v1  ;;  %v11851_v10 = vld [vmem:[%s12320_s5 + $0x11c] sm:$0xf]  ;;  %v11852_v1 = vld [vmem:[%s12320_s5 + $0x134] sm:$0xf] }
 0x2f4   : > { %17242 = vst [vmem:[#allocation30_spill] sm:$0xff] %v14674_v63  ;;  %v5295_v40 = vrot.slane %v5293_v0, 4  ;;  %v9524_v11 = vrot.slane %v9508_v17, 9  ;;  %v5290_v35 = vrot.slane %v11851_v10, 5  ;;  %v10921_v5 = vunpack.i.h.bf16 %v14576_v61  ;;  %v17247_v63 = vld [vmem:[#allocation34_spill] sm:$0xff] }
 0x2f5   : > { %17243 = vst [vmem:[#allocation53_spill] sm:$0xff] %v14683_v12  ;;  %11218 = vperm.xlu1 %10301, %v11217_v42   ;;  %v5298_v15 = vrot.slane %v5296_v47, 4  ;;  %v10920_v23 = vunpack.i.l.bf16 %v14576_v61  ;;  %11213 = vperm.xlu0 %10290, %v11212_v14   ;;  %v10916_v28 = vunpack.i.h.bf16 %v14585_v31  ;;  %v10915_v54 = vunpack.i.l.bf16 %v14585_v31  ;;  %v14697_v61 = vpop.permute.xlu1 %10958  ;;  %v17246_v12 = vld [vmem:[#allocation35_spill] sm:$0xff] }
 0x2f6   : > { %v5297_v34 = vsel %vm12829_vm5, %v5295_v40, %v5296_v47  ;;  %v5306_v25 = vrot.slane %v11852_v1, 5  ;;  %v5291_v10 = vsel %vm12829_vm5, %v9524_v11, %v5290_v35  ;;  %v5292_v42 = vrot.slane %v5290_v35, 4  ;;  %v17244_v40 = vld [vmem:[#allocation33_spill] sm:$0xff]  ;;  %v9509_v35 = vld [vmem:[%s12320_s5 + $0x12c] sm:$0xe] }
 0x2f7   : > { %v5300_v17 = vsel %vm12829_vm5, %v5298_v15, %v5299_v45  ;;  %v5445_v3 = vunpack.c.l.bf16 %v5297_v34  ;;  %v5443_v47 = vunpack.c.l.bf16 %v5291_v10  ;;  %v3589_v14 = vmul.f32 %v10920_v23, %v14201_v38  ;;  %v14708_v34 = vpop.permute.xlu0 %10953 }
 0x2f8   : > { %v5446_v49 = vunpack.c.l.bf16 %v5300_v17  ;;  %v3590_v31 = vmul.f32 %v10921_v5, %v14201_v38  ;;  %v14702_v1 = vadd.f32 %v3583_v43, %v17244_v40  ;;  %v5294_v45 = vsel %vm12829_vm5, %v5292_v42, %v5293_v0  ;;  %v11853_v0 = vld [vmem:[%s12320_s5 + $0x138] sm:$0xf]  ;;  %v11854_v42 = vld [vmem:[%s12320_s5 + $0x13c] sm:$0x1] }
 0x2f9   : > { %v3587_v15 = vmul.f32 %v10915_v54, %v14201_v38  ;;  %v5308_v11 = vrot.slane %v5306_v25, 4  ;;  %v5444_v10 = vunpack.c.l.bf16 %v5294_v45  ;;  %v14711_v23 = vadd.f32 %v3589_v14, %v17246_v12 }
 0x2fa   : > { %17245 = vst [vmem:[#allocation33_spill] sm:$0xff] %v14702_v1  ;;  %v11227_v17 = vpack.i.bf16 %v5446_v49, %v5445_v3  ;;  %v3588_v5 = vmul.f32 %v10916_v28, %v14201_v38  ;;  %v14715_v43 = vadd.f32 %v3590_v31, %v17247_v63  ;;  %v5309_v54 = vrot.slane %v11853_v0, 5  ;;  %v11855_v3 = vld [vmem:[%s12320_s5 + $0x130] sm:$0xf]  ;;  %v14728_v31 = vpop.permute.xlu1 %10968 }
 0x2fb   : > { %v14718_v40 = vadd.f32 %v3587_v15, %v14171_v19  ;;  %v5312_v1 = vrot.slane %v11854_v42, 5  ;;  %v11222_v20 = vpack.i.bf16 %v5444_v10, %v5443_v47  ;;  %v9525_v22 = vrot.slane %v9509_v35, 9  ;;  %v14737_v0 = vpop.permute.xlu0 %10963 }
 0x2fc   : > { %11228 = vperm.xlu1 %10301, %v11227_v17   ;;  %v5303_v49 = vrot.slane %v11855_v3, 5  ;;  %v10931_v12 = vunpack.i.h.bf16 %v14607_v9  ;;  %v5310_v28 = vsel %vm12829_vm5, %v5308_v11, %v5309_v54  ;;  %v5311_v14 = vrot.slane %v5309_v54, 4 }
 0x2fd   : > { %v10930_v63 = vunpack.i.l.bf16 %v14607_v9  ;;  %v10926_v19 = vunpack.i.h.bf16 %v14617_v50  ;;  %11223 = vperm.xlu0 %10290, %v11222_v20   ;;  %v5449_v45 = vunpack.c.l.bf16 %v5310_v28  ;;  %v10925_v10 = vunpack.i.l.bf16 %v14617_v50  ;;  %v17248_v20 = vld [vmem:[#allocation36_spill] sm:$0xff]  ;;  %v11856_v50 = vld [vmem:[%s12320_s5 + $0x148] sm:$0xf] }
 0x2fe   : > { %v5304_v47 = vsel %vm12829_vm5, %v9525_v22, %v5303_v49  ;;  %v5305_v15 = vrot.slane %v5303_v49, 4  ;;  %v3594_v35 = vmul.f32 %v10931_v12, %v14201_v38  ;;  %v5313_v11 = vsel %vm12829_vm5, %v5311_v14, %v5312_v1  ;;  %v9510_v49 = vld [vmem:[%s12320_s5 + $0x140] sm:$0xe] }
 0x2ff   : > { %v5447_v17 = vunpack.c.l.bf16 %v5304_v47  ;;  %v3593_v9 = vmul.f32 %v10930_v63, %v14201_v38  ;;  %v14740_v54 = vadd.f32 %v3588_v5, %v17248_v20  ;;  %v5450_v22 = vunpack.c.l.bf16 %v5313_v11  ;;  %v11857_v47 = vld [vmem:[%s12320_s5 + $0x14c] sm:$0xf]  ;;  %v11858_v20 = vld [vmem:[%s12320_s5 + $0x150] sm:$0x1] }
 0x300   : > { %v5307_v42 = vsel %vm12829_vm5, %v5305_v15, %v5306_v25  ;;  %v3592_v3 = vmul.f32 %v10926_v19, %v14201_v38  ;;  %v14750_v28 = vadd.f32 %v3594_v35, %v14176_v62  ;;  %v5319_v14 = vrot.slane %v11856_v50, 5  ;;  %v11859_v35 = vld [vmem:[%s12320_s5 + $0x144] sm:$0xf] }
 0x301   : > { %v5448_v1 = vunpack.c.l.bf16 %v5307_v42  ;;  %v14747_v12 = vadd.f32 %v3593_v9, %v14185_v57  ;;  %v11237_v63 = vpack.i.bf16 %v5450_v22, %v5449_v45  ;;  %v3591_v5 = vmul.f32 %v10925_v10, %v14201_v38  ;;  %v14759_v42 = vpop.permute.xlu1 %10978  ;;  %v17251_v10 = vld [vmem:[#allocation50_spill] sm:$0xff] }
 0x302   : > { %v5322_v11 = vrot.slane %v11857_v47, 5  ;;  %v5325_v25 = vrot.slane %v11858_v20, 5  ;;  %v14757_v19 = vadd.f32 %v3592_v3, %v14210_v33  ;;  %v5321_v57 = vrot.slane %v5319_v14, 4 }
 0x303   : > { %17249 = vst [vmem:[#allocation35_spill] sm:$0xff] %v14747_v12  ;;  %v11232_v15 = vpack.i.bf16 %v5448_v1, %v5447_v17  ;;  %v9526_v9 = vrot.slane %v9510_v49, 9  ;;  %11238 = vperm.xlu1 %10301, %v11237_v63   ;;  %v5316_v50 = vrot.slane %v11859_v35, 5  ;;  %v10941_v45 = vunpack.i.h.bf16 %v14636_v59  ;;  %v10174_v49 = vld [vmem:[%s12320_s5 + $0x30] sm:$0xff]   ;;  %v14773_v1 = vpop.permute.xlu0 %10973 }
 0x304   : > { %17250 = vst [vmem:[#allocation34_spill] sm:$0xff] %v14757_v19  ;;  %v5324_v62 = vrot.slane %v5322_v11, 4  ;;  %v10940_v38 = vunpack.i.l.bf16 %v14636_v59  ;;  %v5323_v17 = vsel %vm12829_vm5, %v5321_v57, %v5322_v11  ;;  %v14768_v33 = vrot.slane %v14194_v46, %v17251_v10  ;;  %v17252_v10 = vld [vmem:[#allocation37_spill] sm:$0xff] }
 0x305   : > { %11233 = vperm.xlu0 %10290, %v11232_v15   ;;  %v10936_v22 = vunpack.i.h.bf16 %v14648_v4  ;;  %v10935_v3 = vunpack.i.l.bf16 %v14648_v4  ;;  %v5453_v59 = vunpack.c.l.bf16 %v5323_v17  ;;  %v5317_v47 = vsel %vm12829_vm5, %v9526_v9, %v5316_v50  ;;  %v10173_v4 = vld [vmem:[%s12320_s5 + $0x28] sm:$0xff]  }
 0x306   : > { %v5326_v63 = vsel %vm12829_vm5, %v5324_v62, %v5325_v25  ;;  %v5318_v11 = vrot.slane %v5316_v50, 4  ;;  %v5451_v15 = vunpack.c.l.bf16 %v5317_v47  ;;  %v4897_v57 = vmul.f32 %v10940_v38, %v14768_v33  ;;  %v17253_v47 = vld [vmem:[#allocation38_spill] sm:$0xff] }
 0x307   : > { %v5454_v20 = vunpack.c.l.bf16 %v5326_v63  ;;  %v4898_v35 = vmul.f32 %v10941_v45, %v14768_v33  ;;  %v14783_v19 = vadd.f32 %v3591_v5, %v17252_v10  ;;  %v4895_v62 = vmul.f32 %v10935_v3, %v14768_v33  ;;  %v10175_v63 = vld [vmem:[%s12320_s5 + $0x40] sm:$0xff]   ;;  %v14793_v45 = vpop.permute.xlu1 %10988  ;;  %v9534_v3 = vld [vmem:[%s12320_s5 + $0x3c] ss:$12 sps:$4 sm:$0xff]  }
 0x308   : > { %v5320_v25 = vsel %vm12829_vm5, %v5318_v11, %v5319_v14  ;;  %v10036_v17 = vunpack.c.l.bf16 %v10174_v49  ;;  %v14789_v50 = vadd.f32 %v4897_v57, %v14221_v52  ;;  %v4896_v38 = vmul.f32 %v10936_v22, %v14768_v33  ;;  %v17254_v5 = vld [vmem:[#allocation41_spill] sm:$0xff]  ;;  %v14804_v57 = vpop.permute.xlu0 %10983 }
 0x309   : > { %v11247_v46 = vpack.i.bf16 %v5454_v20, %v5453_v59  ;;  %v5452_v9 = vunpack.c.l.bf16 %v5320_v25  ;;  %v14796_v12 = vadd.f32 %v4898_v35, %v17253_v47  ;;  %v14799_v10 = vadd.f32 %v4895_v62, %v17254_v5 }
 0x30a   : > { %v10037_v14 = vunpack.c.h.bf16 %v10174_v49  ;;  %v10032_v11 = vunpack.c.l.bf16 %v10173_v4  ;;  %v10033_v20 = vunpack.c.h.bf16 %v10173_v4  ;;  %v10951_v52 = vunpack.i.h.bf16 %v14668_v60 }
 0x30b   : > { %11248 = vperm.xlu1 %10301, %v11247_v46   ;;  %v11242_v59 = vpack.i.bf16 %v5452_v9, %v5451_v15  ;;  %v10950_v22 = vunpack.i.l.bf16 %v14668_v60  ;;  %v10946_v35 = vunpack.i.h.bf16 %v14680_v32  ;;  %v10945_v47 = vunpack.i.l.bf16 %v14680_v32  ;;  %v17255_v9 = vld [vmem:[#allocation43_spill] sm:$0xff] }
 0x30c   : > { %v11257_v25 = vpack.i.bf16 %v10037_v14, %v10036_v17  ;;  %v10041_v62 = vunpack.c.h.bf16 %v10175_v63  ;;  %v11252_v49 = vpack.i.bf16 %v10033_v20, %v10032_v11  ;;  %v4902_v15 = vmul.f32 %v10951_v52, %v14768_v33  ;;  %v10177_v14 = vld [vmem:[%s12320_s5 + $0x58] sm:$0xff]   ;;  %v14821_v52 = vpop.permute.xlu1 %10998 }
 0x30d   : > { %11243 = vperm.xlu0 %10290, %v11242_v59   ;;  %v4901_v46 = vmul.f32 %v10950_v22, %v14768_v33  ;;  %v5982_v4 = vunpack.c.h.bf16 %v9534_v3  ;;  %v14811_v5 = vadd.f32 %v4896_v38, %v17255_v9  ;;  %v4899_v60 = vmul.f32 %v10945_v47, %v14768_v33  ;;  %v10176_v22 = vld [vmem:[%s12320_s5 + $0x50] sm:$0xff]  }
 0x30e   : > { %v10040_v48 = vunpack.c.l.bf16 %v10175_v63  ;;  %v5979_v17 = vunpack.c.l.bf16 %v9534_v3  ;;  %v4900_v59 = vmul.f32 %v10946_v35, %v14768_v33  ;;  %v10961_v20 = vunpack.i.h.bf16 %v14697_v61 }
 0x30f   : > { %11258 = vperm.xlu1 %10301, %v11257_v25   ;;  %v14816_v32 = vadd.f32 %v4901_v46, %v14247_v27  ;;  %v11267_v11 = vpack.i.bf16 %v5982_v4, %v10041_v62  ;;  %v14824_v38 = vadd.f32 %v4902_v15, %v14250_v36  ;;  %v14827_v47 = vadd.f32 %v4899_v60, %v14253_v41  ;;  %v14833_v46 = vpop.permute.xlu0 %10993  ;;  %v10178_v60 = vld [vmem:[%s12320_s5 + $0x68] sm:$0xff]  }
 0x310   : > { %v11262_v63 = vpack.i.bf16 %v10040_v48, %v5979_v17  ;;  %v10960_v3 = vunpack.i.l.bf16 %v14697_v61  ;;  %v4906_v27 = vmul.f32 %v10961_v20, %v14768_v33  ;;  %v10956_v25 = vunpack.i.h.bf16 %v14708_v34  ;;  %v17256_v17 = vld [vmem:[#allocation42_spill] sm:$0xff] }
 0x311   : > { %11253 = vperm.xlu0 %10290, %v11252_v49   ;;  %v10955_v35 = vunpack.i.l.bf16 %v14708_v34  ;;  %v10048_v62 = vunpack.c.l.bf16 %v10177_v14  ;;  %v10049_v15 = vunpack.c.h.bf16 %v10177_v14  ;;  %v10044_v41 = vunpack.c.l.bf16 %v10176_v22  ;;  %v9542_v34 = vld [vmem:[%s12320_s5 + $0x64] ss:$12 sps:$4 sm:$0xff]  }
 0x312   : > { %v4905_v36 = vmul.f32 %v10960_v3, %v14768_v33  ;;  %v10045_v4 = vunpack.c.h.bf16 %v10176_v22  ;;  %v14837_v48 = vadd.f32 %v4900_v59, %v14271_v30  ;;  %v4904_v49 = vmul.f32 %v10956_v25, %v14768_v33 }
 0x313   : > { %11268 = vperm.xlu1 %10301, %v11267_v11   ;;  %v4903_v61 = vmul.f32 %v10955_v35, %v14768_v33  ;;  %v10971_v9 = vunpack.i.h.bf16 %v14728_v31  ;;  %v14848_v3 = vadd.f32 %v4906_v27, %v14277_v6  ;;  %v11277_v14 = vpack.i.bf16 %v10049_v15, %v10048_v62  ;;  %v14856_v35 = vpop.permute.xlu1 %11008 }
 0x314   : > { %v14845_v20 = vadd.f32 %v4905_v36, %v17256_v17  ;;  %v10970_v22 = vunpack.i.l.bf16 %v14728_v31  ;;  %v11272_v59 = vpack.i.bf16 %v10045_v4, %v10044_v41  ;;  %v10966_v25 = vunpack.i.h.bf16 %v14737_v0  ;;  %v10180_v41 = vld [vmem:[%s12320_s5 + $0x80] sm:$0xff]   ;;  %v14865_v4 = vpop.permute.xlu0 %11003 }
 0x315   : > { %11263 = vperm.xlu0 %10290, %v11262_v63   ;;  %v14852_v30 = vadd.f32 %v4903_v61, %v14295_v26  ;;  %v4910_v11 = vmul.f32 %v10971_v9, %v14768_v33  ;;  %v10965_v6 = vunpack.i.l.bf16 %v14737_v0  ;;  %v10053_v27 = vunpack.c.h.bf16 %v10178_v60 }
 0x316   : > { %v4909_v36 = vmul.f32 %v10970_v22, %v14768_v33  ;;  %v5990_v62 = vunpack.c.h.bf16 %v9542_v34  ;;  %v14861_v31 = vadd.f32 %v4904_v49, %v14284_v21  ;;  %v4908_v26 = vmul.f32 %v10966_v25, %v14768_v33  ;;  %v10179_v22 = vld [vmem:[%s12320_s5 + $0x78] sm:$0xff]  }
 0x317   : > { %11278 = vperm.xlu1 %10301, %v11277_v14   ;;  %v10052_v63 = vunpack.c.l.bf16 %v10178_v60  ;;  %v5987_v15 = vunpack.c.l.bf16 %v9542_v34  ;;  %v14868_v61 = vadd.f32 %v4910_v11, %v14308_v16  ;;  %v4907_v9 = vmul.f32 %v10965_v6, %v14768_v33  ;;  %v17257_v21 = vld [vmem:[#allocation44_spill] sm:$0xff] }
 0x318   : > { %v11287_v17 = vpack.i.bf16 %v5990_v62, %v10053_v27  ;;  %v10981_v0 = vunpack.i.h.bf16 %v14759_v42  ;;  %v14874_v49 = vadd.f32 %v4909_v36, %v17257_v21  ;;  %v10980_v60 = vunpack.i.l.bf16 %v14759_v42  ;;  %v14885_v42 = vpop.permute.xlu1 %11018 }
 0x319   : > { %11273 = vperm.xlu0 %10290, %v11272_v59   ;;  %v11282_v14 = vpack.i.bf16 %v10052_v63, %v5987_v15  ;;  %v10976_v34 = vunpack.i.h.bf16 %v14773_v1  ;;  %v14879_v16 = vadd.f32 %v4908_v26, %v14326_v51  ;;  %v10975_v25 = vunpack.i.l.bf16 %v14773_v1  ;;  %v9550_v1 = vld [vmem:[%s12320_s5 + $0x8c] ss:$12 sps:$4 sm:$0xff]  }
 0x31a   : > { %v4914_v11 = vmul.f32 %v10981_v0, %v14768_v33  ;;  %v10060_v6 = vunpack.c.l.bf16 %v10180_v41  ;;  %v4913_v59 = vmul.f32 %v10980_v60, %v14768_v33  ;;  %v10061_v27 = vunpack.c.h.bf16 %v10180_v41  ;;  %v10181_v0 = vld [vmem:[%s12320_s5 + $0x90] sm:$0xff]  }
 0x31b   : > { %11288 = vperm.xlu1 %10301, %v11287_v17   ;;  %v4912_v36 = vmul.f32 %v10976_v34, %v14768_v33  ;;  %v10056_v62 = vunpack.c.l.bf16 %v10179_v22  ;;  %v14888_v63 = vadd.f32 %v4907_v9, %v14311_v55  ;;  %v4911_v51 = vmul.f32 %v10975_v25, %v14768_v33  ;;  %v14901_v55 = vpop.permute.xlu0 %11013 }
 0x31c   : > { %v10057_v26 = vunpack.c.h.bf16 %v10179_v22  ;;  %v10991_v15 = vunpack.i.h.bf16 %v14793_v45  ;;  %v14895_v17 = vadd.f32 %v4913_v59, %v14333_v29  ;;  %v14898_v21 = vadd.f32 %v4914_v11, %v14339_v37 }
 0x31d   : > { %11283 = vperm.xlu0 %10290, %v11282_v14   ;;  %v11297_v41 = vpack.i.bf16 %v10061_v27, %v10060_v6  ;;  %v10990_v60 = vunpack.i.l.bf16 %v14793_v45  ;;  %v14904_v9 = vadd.f32 %v4912_v36, %v14358_v18  ;;  %v10986_v14 = vunpack.i.h.bf16 %v14804_v57  ;;  %v10183_v36 = vld [vmem:[%s12320_s5 + $0xa8] sm:$0xff]  }
 0x31e   : > { %v11292_v22 = vpack.i.bf16 %v10057_v26, %v10056_v62  ;;  %v4918_v34 = vmul.f32 %v10991_v15, %v14768_v33  ;;  %v10985_v37 = vunpack.i.l.bf16 %v14804_v57  ;;  %v10065_v11 = vunpack.c.h.bf16 %v10181_v0  ;;  %v10182_v57 = vld [vmem:[%s12320_s5 + $0xa0] sm:$0xff]  }
 0x31f   : > { %11298 = vperm.xlu1 %10301, %v11297_v41   ;;  %v4917_v29 = vmul.f32 %v10990_v60, %v14768_v33  ;;  %v5998_v25 = vunpack.c.h.bf16 %v9550_v1  ;;  %v14911_v45 = vadd.f32 %v4911_v51, %v14342_v13  ;;  %v4916_v6 = vmul.f32 %v10986_v14, %v14768_v33  ;;  %v14921_v41 = vpop.permute.xlu1 %11028  ;;  %v17258_v60 = vld [vmem:[#allocation46_spill] sm:$0xff] }
 0x320   : > { %v10064_v18 = vunpack.c.l.bf16 %v10181_v0  ;;  %v5995_v59 = vunpack.c.l.bf16 %v9550_v1  ;;  %v14916_v27 = vadd.f32 %v4918_v34, %v14370_v7  ;;  %v4915_v62 = vmul.f32 %v10985_v37, %v14768_v33  ;;  %v14933_v37 = vpop.permute.xlu0 %11023 }
 0x321   : > { %11293 = vperm.xlu0 %10290, %v11292_v22   ;;  %v11307_v26 = vpack.i.bf16 %v5998_v25, %v10065_v11  ;;  %v11001_v15 = vunpack.i.h.bf16 %v14821_v52  ;;  %v14924_v13 = vadd.f32 %v4917_v29, %v14367_v58  ;;  %v11000_v0 = vunpack.i.l.bf16 %v14821_v52  ;;  %v17259_v25 = vld [vmem:[#allocation45_spill] sm:$0xff] }
 0x322   : > { %v11302_v51 = vpack.i.bf16 %v10064_v18, %v5995_v59  ;;  %v10996_v1 = vunpack.i.h.bf16 %v14833_v46  ;;  %v14929_v7 = vadd.f32 %v4916_v6, %v17258_v60  ;;  %v10995_v34 = vunpack.i.l.bf16 %v14833_v46  ;;  %v9558_v46 = vld [vmem:[%s12320_s5 + $0xb4] ss:$12 sps:$4 sm:$0xff]  }
 0x323   : > { %11308 = vperm.xlu1 %10301, %v11307_v26   ;;  %v4922_v22 = vmul.f32 %v11001_v15, %v14768_v33  ;;  %v10072_v14 = vunpack.c.l.bf16 %v10183_v36  ;;  %v4921_v58 = vmul.f32 %v11000_v0, %v14768_v33  ;;  %v10073_v52 = vunpack.c.h.bf16 %v10183_v36  ;;  %v10184_v15 = vld [vmem:[%s12320_s5 + $0xb8] sm:$0xff]  }
 0x324   : > { %v4920_v29 = vmul.f32 %v10996_v1, %v14768_v33  ;;  %v10068_v11 = vunpack.c.l.bf16 %v10182_v57  ;;  %v14938_v18 = vadd.f32 %v4915_v62, %v17259_v25  ;;  %v4919_v6 = vmul.f32 %v10995_v34, %v14768_v33  ;;  %v14956_v25 = vpop.permute.xlu1 %11038 }
 0x325   : > { %11303 = vperm.xlu0 %10290, %v11302_v51   ;;  %v10069_v59 = vunpack.c.h.bf16 %v10182_v57  ;;  %v11011_v26 = vunpack.i.h.bf16 %v14856_v35  ;;  %v14945_v60 = vadd.f32 %v4921_v58, %v14407_v56  ;;  %v14948_v0 = vadd.f32 %v4922_v22, %v14411_v2 }
 0x326   : > { %v11317_v1 = vpack.i.bf16 %v10073_v52, %v10072_v14  ;;  %v11010_v36 = vunpack.i.l.bf16 %v14856_v35  ;;  %v14952_v62 = vadd.f32 %v4920_v29, %v14436_v24  ;;  %v11006_v34 = vunpack.i.h.bf16 %v14865_v4  ;;  %v10186_v52 = vld [vmem:[%s12320_s5 + $0xd0] sm:$0xff]  }
 0x327   : > { %v11312_v51 = vpack.i.bf16 %v10069_v59, %v10068_v11  ;;  %v4926_v57 = vmul.f32 %v11011_v26, %v14768_v33  ;;  %v11005_v2 = vunpack.i.l.bf16 %v14865_v4  ;;  %v10077_v22 = vunpack.c.h.bf16 %v10184_v15  ;;  %v14965_v11 = vpop.permute.xlu0 %11033 }
 0x328   : > { %17260 = vst [vmem:[#allocation36_spill] sm:$0xff] %v14952_v62  ;;  %11318 = vperm.xlu1 %10301, %v11317_v1   ;;  %v4925_v56 = vmul.f32 %v11010_v36, %v14768_v33  ;;  %v6006_v14 = vunpack.c.h.bf16 %v9558_v46  ;;  %v14961_v35 = vadd.f32 %v4919_v6, %v14414_v39  ;;  %v4924_v24 = vmul.f32 %v11006_v34, %v14768_v33  ;;  %v10185_v36 = vld [vmem:[%s12320_s5 + $0xc8] sm:$0xff]  }
 0x329   : > { %11313 = vperm.xlu0 %10290, %v11312_v51   ;;  %v10076_v58 = vunpack.c.l.bf16 %v10184_v15  ;;  %v6003_v29 = vunpack.c.l.bf16 %v9558_v46  ;;  %v14968_v59 = vadd.f32 %v4926_v57, %v14446_v53  ;;  %v4923_v26 = vmul.f32 %v11005_v2, %v14768_v33  ;;  %v17263_v62 = vld [vmem:[#allocation47_spill] sm:$0xff]  ;;  %v17265_v46 = vld [vmem:[#allocation13_spill] sm:$0xff] }
 0x32a   : > { %17261 = vst [vmem:[#allocation37_spill] sm:$0xff] %v14961_v35  ;;  %v11327_v1 = vpack.i.bf16 %v6006_v14, %v10077_v22  ;;  %v11021_v4 = vunpack.i.h.bf16 %v14885_v42  ;;  %v14974_v39 = vadd.f32 %v4925_v56, %v17263_v62  ;;  %v11020_v51 = vunpack.i.l.bf16 %v14885_v42  ;;  %v14985_v14 = vpop.permute.xlu1 %11048 }
 0x32b   : > { %17262 = vst [vmem:[#allocation38_spill] sm:$0xff] %v14968_v59  ;;  %v11322_v6 = vpack.i.bf16 %v10076_v58, %v6003_v29  ;;  %v11016_v15 = vunpack.i.h.bf16 %v14901_v55  ;;  %v14979_v34 = vadd.f32 %v4924_v24, %v17265_v46  ;;  %v11015_v57 = vunpack.i.l.bf16 %v14901_v55  ;;  %v17267_v58 = vld [vmem:[#allocation48_spill] sm:$0xff]  ;;  %v10187_v46 = vld [vmem:[%s12320_s5 + $0xe0] sm:$0xff]  }
 0x32c   : > { %17264 = vst [vmem:[#allocation41_spill] sm:$0xff] %v14974_v39  ;;  %11328 = vperm.xlu1 %10301, %v11327_v1   ;;  %v4930_v53 = vmul.f32 %v11021_v4, %v14768_v33  ;;  %v10084_v2 = vunpack.c.l.bf16 %v10186_v52  ;;  %v4929_v62 = vmul.f32 %v11020_v51, %v14768_v33  ;;  %v10085_v22 = vunpack.c.h.bf16 %v10186_v52  ;;  %v9566_v55 = vld [vmem:[%s12320_s5 + $0xdc] ss:$12 sps:$4 sm:$0xff]   ;;  %v15001_v39 = vpop.permute.xlu0 %11043 }
 0x32d   : > { %17266 = vst [vmem:[#allocation43_spill] sm:$0xff] %v14979_v34  ;;  %11323 = vperm.xlu0 %10290, %v11322_v6   ;;  %v4928_v56 = vmul.f32 %v11016_v15, %v14768_v33  ;;  %v10080_v42 = vunpack.c.l.bf16 %v10185_v36  ;;  %v14988_v29 = vadd.f32 %v4923_v26, %v17267_v58  ;;  %v4927_v24 = vmul.f32 %v11015_v57, %v14768_v33  ;;  %v17269_v34 = vld [vmem:[#allocation51_spill] sm:$0xff]  ;;  %v17271_v51 = vld [vmem:[#allocation52_spill] sm:$0xff]  ;;  %v17273_v26 = vld [vmem:[#allocation49_spill] sm:$0xff] }
 0x32e   : > { %v10081_v1 = vunpack.c.h.bf16 %v10185_v36  ;;  %v11031_v4 = vunpack.i.h.bf16 %v14921_v41  ;;  %v14995_v6 = vadd.f32 %v4929_v62, %v17269_v34  ;;  %v14998_v59 = vadd.f32 %v4930_v53, %v17271_v51 }
 0x32f   : > { %17268 = vst [vmem:[#allocation42_spill] sm:$0xff] %v14988_v29  ;;  %v11337_v52 = vpack.i.bf16 %v10085_v22, %v10084_v2  ;;  %v11030_v15 = vunpack.i.l.bf16 %v14921_v41  ;;  %v15004_v58 = vadd.f32 %v4928_v56, %v17273_v26  ;;  %v11026_v29 = vunpack.i.h.bf16 %v14933_v37  ;;  %v17275_v41 = vld [vmem:[#allocation16_spill] sm:$0xff] }
 0x330   : > { %17270 = vst [vmem:[#allocation44_spill] sm:$0xff] %v14995_v6  ;;  %17272 = vst [vmem:[#allocation46_spill] sm:$0xff] %v14998_v59  ;;  %v11332_v36 = vpack.i.bf16 %v10081_v1, %v10080_v42  ;;  %v4934_v57 = vmul.f32 %v11031_v4, %v14768_v33  ;;  %v11025_v53 = vunpack.i.l.bf16 %v14933_v37  ;;  %v10089_v2 = vunpack.c.h.bf16 %v10187_v46  ;;  %v10189_v1 = vld [vmem:[%s12320_s5 + $0xf8] sm:$0xff]   ;;  %v10188_v37 = vld [vmem:[%s12320_s5 + $0xf0] sm:$0xff]   ;;  %v11059_v6 = vpop.permute.xlu1 %11058 }
 0x331   : > { %17274 = vst [vmem:[#allocation45_spill] sm:$0xff] %v15004_v58  ;;  %11338 = vperm.xlu1 %10301, %v11337_v52   ;;  %v4933_v34 = vmul.f32 %v11030_v15, %v14768_v33  ;;  %v6014_v62 = vunpack.c.h.bf16 %v9566_v55  ;;  %v15011_v22 = vadd.f32 %v4927_v24, %v17275_v41  ;;  %v4932_v56 = vmul.f32 %v11026_v29, %v14768_v33  ;;  %v17276_v4 = vld [vmem:[#allocation17_spill] sm:$0xff]  ;;  %v17277_v59 = vld [vmem:[#allocation19_spill] sm:$0xff] }
 0x332   : > { %11333 = vperm.xlu0 %10290, %v11332_v36   ;;  %v10088_v51 = vunpack.c.l.bf16 %v10187_v46  ;;  %v6011_v42 = vunpack.c.l.bf16 %v9566_v55  ;;  %v15016_v26 = vadd.f32 %v4934_v57, %v17276_v4  ;;  %v4931_v52 = vmul.f32 %v11025_v53, %v14768_v33  ;;  %v17278_v46 = vld [vmem:[#allocation20_spill] sm:$0xff] }
 0x333   : > { %v11347_v58 = vpack.i.bf16 %v6014_v62, %v10089_v2  ;;  %v11041_v15 = vunpack.i.h.bf16 %v14956_v25  ;;  %v15022_v35 = vadd.f32 %v4933_v34, %v17277_v59  ;;  %v11040_v36 = vunpack.i.l.bf16 %v14956_v25  ;;  %v11054_v62 = vpop.permute.xlu0 %11053 }
 0x334   : > { %v11342_v24 = vpack.i.bf16 %v10088_v51, %v6011_v42  ;;  %v11036_v29 = vunpack.i.h.bf16 %v14965_v11  ;;  %v15027_v55 = vadd.f32 %v4932_v56, %v17278_v46  ;;  %v11035_v53 = vunpack.i.l.bf16 %v14965_v11  ;;  %v17280_v51 = vld [vmem:[#allocation18_spill] sm:$0xff] }
 0x335   : > { %11348 = vperm.xlu1 %10301, %v11347_v58   ;;  %v4938_v57 = vmul.f32 %v11041_v15, %v14768_v33  ;;  %v10096_v2 = vunpack.c.l.bf16 %v10189_v1  ;;  %v4937_v59 = vmul.f32 %v11040_v36, %v14768_v33  ;;  %v10097_v25 = vunpack.c.h.bf16 %v10189_v1  ;;  %v10190_v15 = vld [vmem:[%s12320_s5 + $0x108] sm:$0xff]   ;;  %v9574_v46 = vld [vmem:[%s12320_s5 + $0x104] ss:$12 sps:$4 sm:$0xff]  }
 0x336   : > { %17279 = vst [vmem:[#allocation47_spill] sm:$0xff] %v15027_v55  ;;  %11343 = vperm.xlu0 %10290, %v11342_v24   ;;  %v4936_v34 = vmul.f32 %v11036_v29, %v14768_v33  ;;  %v10092_v41 = vunpack.c.l.bf16 %v10188_v37  ;;  %v15034_v42 = vadd.f32 %v4931_v52, %v17280_v51  ;;  %v4935_v56 = vmul.f32 %v11035_v53, %v14768_v33  ;;  %v17284_v29 = vld [vmem:[#allocation23_spill] sm:$0xff] }
 0x337   : > { %v10093_v4 = vunpack.c.h.bf16 %v10188_v37  ;;  %v11051_v58 = vunpack.i.h.bf16 %v14985_v14  ;;  %v15041_v11 = vadd.f32 %v4937_v59, %v14559_v8  ;;  %v15044_v24 = vadd.f32 %v4938_v57, %v14563_v44  ;;  %v17286_v59 = vld [vmem:[#allocation21_spill] sm:$0xff] }
 0x338   : > { %17281 = vst [vmem:[#allocation13_spill] sm:$0xff] %v15034_v42  ;;  %v11357_v36 = vpack.i.bf16 %v10097_v25, %v10096_v2  ;;  %v11050_v1 = vunpack.i.l.bf16 %v14985_v14  ;;  %v15048_v52 = vadd.f32 %v4936_v34, %v17284_v29  ;;  %v11046_v53 = vunpack.i.h.bf16 %v15001_v39  ;;  %v11069_v42 = vpop.permute.xlu1 %11068  ;;  %v17288_v29 = vld [vmem:[#allocation22_spill] sm:$0xff] }
 0x339   : > { %17282 = vst [vmem:[#allocation48_spill] sm:$0xff] %v15041_v11  ;;  %17283 = vst [vmem:[#allocation51_spill] sm:$0xff] %v15044_v24  ;;  %v11352_v51 = vpack.i.bf16 %v10093_v4, %v10092_v41  ;;  %v4942_v37 = vmul.f32 %v11051_v58, %v14768_v33  ;;  %v11045_v44 = vunpack.i.l.bf16 %v15001_v39  ;;  %v10101_v57 = vunpack.c.h.bf16 %v10190_v15  ;;  %v10192_v4 = vld [vmem:[%s12320_s5 + $0x120] sm:$0xff]   ;;  %v11064_v58 = vpop.permute.xlu0 %11063  ;;  %v10191_v39 = vld [vmem:[%s12320_s5 + $0x118] sm:$0xff]  }
 0x33a   : > { %17285 = vst [vmem:[#allocation52_spill] sm:$0xff] %v15048_v52  ;;  %11358 = vperm.xlu1 %10301, %v11357_v36   ;;  %v4941_v8 = vmul.f32 %v11050_v1, %v14768_v33  ;;  %v6022_v2 = vunpack.c.h.bf16 %v9574_v46  ;;  %v15055_v14 = vadd.f32 %v4935_v56, %v17286_v59  ;;  %v4940_v34 = vmul.f32 %v11046_v53, %v14768_v33  ;;  %v17290_v24 = vld [vmem:[#allocation24_spill] sm:$0xff] }
 0x33b   : > { %11353 = vperm.xlu0 %10290, %v11352_v51   ;;  %v10100_v25 = vunpack.c.l.bf16 %v10190_v15  ;;  %v6019_v41 = vunpack.c.l.bf16 %v9574_v46  ;;  %v15060_v52 = vadd.f32 %v4942_v37, %v17288_v29  ;;  %v4939_v36 = vmul.f32 %v11045_v44, %v14768_v33  ;;  %v10193_v29 = vld [vmem:[%s12320_s5 + $0x130] sm:$0xff]  }
 0x33c   : > { %17287 = vst [vmem:[#allocation49_spill] sm:$0xff] %v15055_v14  ;;  %v11367_v1 = vpack.i.bf16 %v6022_v2, %v10101_v57  ;;  %v11061_v11 = vunpack.i.h.bf16 %v11059_v6  ;;  %v15065_v55 = vadd.f32 %v4941_v8, %v17290_v24  ;;  %v11060_v59 = vunpack.i.l.bf16 %v11059_v6  ;;  %v17292_v14 = vld [vmem:[#allocation27_spill] sm:$0xff]  ;;  %v11079_v2 = vpop.permute.xlu1 %11078  ;;  %v17294_v6 = vld [vmem:[#allocation25_spill] sm:$0xff] }
 0x33d   : > { %17289 = vst [vmem:[#allocation16_spill] sm:$0xff] %v15060_v52  ;;  %v11362_v56 = vpack.i.bf16 %v10100_v25, %v6019_v41  ;;  %v11056_v51 = vunpack.i.h.bf16 %v11054_v62  ;;  %v15068_v15 = vadd.f32 %v4940_v34, %v17292_v14  ;;  %v11055_v37 = vunpack.i.l.bf16 %v11054_v62  ;;  %v17299_v52 = vld [vmem:[#allocation31_spill] sm:$0xff] }
 0x33e   : > { %17291 = vst [vmem:[#allocation17_spill] sm:$0xff] %v15065_v55  ;;  %11368 = vperm.xlu1 %10301, %v11367_v1   ;;  %v4946_v46 = vmul.f32 %v11061_v11, %v14768_v33  ;;  %v10108_v53 = vunpack.c.l.bf16 %v10192_v4  ;;  %v4945_v44 = vmul.f32 %v11060_v59, %v14768_v33  ;;  %v10109_v24 = vunpack.c.h.bf16 %v10192_v4  ;;  %v9582_v1 = vld [vmem:[%s12320_s5 + $0x12c] ss:$12 sps:$4 sm:$0xff]   ;;  %v11074_v4 = vpop.permute.xlu0 %11073 }
 0x33f   : > { %17293 = vst [vmem:[#allocation19_spill] sm:$0xff] %v15068_v15  ;;  %11363 = vperm.xlu0 %10290, %v11362_v56   ;;  %v4944_v57 = vmul.f32 %v11056_v51, %v14768_v33  ;;  %v10104_v8 = vunpack.c.l.bf16 %v10191_v39  ;;  %v15074_v25 = vadd.f32 %v4939_v36, %v17294_v6  ;;  %v4943_v14 = vmul.f32 %v11055_v37, %v14768_v33  ;;  %v17295_v11 = vld [vmem:[#allocation26_spill] sm:$0xff]  ;;  %v17297_v56 = vld [vmem:[#allocation28_spill] sm:$0xff] }
 0x340   : > { %v10105_v34 = vunpack.c.h.bf16 %v10191_v39  ;;  %v11071_v41 = vunpack.i.h.bf16 %v11069_v42  ;;  %v15080_v62 = vadd.f32 %v4945_v44, %v17295_v11  ;;  %v15083_v15 = vadd.f32 %v4946_v46, %v17297_v56  ;;  %v17301_v46 = vld [vmem:[#allocation29_spill] sm:$0xff] }
 0x341   : > { %v11377_v59 = vpack.i.bf16 %v10109_v24, %v10108_v53  ;;  %v11070_v51 = vunpack.i.l.bf16 %v11069_v42  ;;  %v15086_v55 = vadd.f32 %v4944_v57, %v17299_v52  ;;  %v11066_v39 = vunpack.i.h.bf16 %v11064_v58  ;;  %v10195_v57 = vld [vmem:[%s12320_s5 + $0x148] sm:$0xff]  }
 0x342   : > { %17296 = vst [vmem:[#allocation20_spill] sm:$0xff] %v15080_v62  ;;  %17298 = vst [vmem:[#allocation18_spill] sm:$0xff] %v15083_v15  ;;  %v11372_v36 = vpack.i.bf16 %v10105_v34, %v10104_v8  ;;  %v4950_v37 = vmul.f32 %v11071_v41, %v14768_v33  ;;  %v11065_v44 = vunpack.i.l.bf16 %v11064_v58  ;;  %v10113_v11 = vunpack.c.h.bf16 %v10193_v29  ;;  %v17303_v24 = vld [vmem:[#allocation30_spill] sm:$0xff]  ;;  %v11089_v58 = vpop.permute.xlu1 %11088 }
 0x343   : > { %17300 = vst [vmem:[#allocation23_spill] sm:$0xff] %v15086_v55  ;;  %11378 = vperm.xlu1 %10301, %v11377_v59   ;;  %v4949_v6 = vmul.f32 %v11070_v51, %v14768_v33  ;;  %v6030_v62 = vunpack.c.h.bf16 %v9582_v1  ;;  %v15091_v56 = vadd.f32 %v4943_v14, %v17301_v46  ;;  %v4948_v42 = vmul.f32 %v11066_v39, %v14768_v33  ;;  %v10194_v51 = vld [vmem:[%s12320_s5 + $0x140] sm:$0xff]   ;;  %v17304_v55 = vld [vmem:[#allocation32_spill] sm:$0xff] }
 0x344   : > { %11373 = vperm.xlu0 %10290, %v11372_v36   ;;  %v10112_v53 = vunpack.c.l.bf16 %v10193_v29  ;;  %v6027_v52 = vunpack.c.l.bf16 %v9582_v1  ;;  %v15096_v8 = vadd.f32 %v4950_v37, %v17303_v24  ;;  %v4947_v34 = vmul.f32 %v11065_v44, %v14768_v33  ;;  %v10196_v24 = vld [vmem:[%s12320_s5 + $0x158] sm:$0xff]  }
 0x345   : > { %17302 = vst [vmem:[#allocation21_spill] sm:$0xff] %v15091_v56  ;;  %v11387_v41 = vpack.i.bf16 %v6030_v62, %v10113_v11  ;;  %v11081_v59 = vunpack.i.h.bf16 %v11079_v2  ;;  %v15101_v15 = vadd.f32 %v4949_v6, %v17304_v55  ;;  %v11080_v46 = vunpack.i.l.bf16 %v11079_v2  ;;  %v17305_v56 = vld [vmem:[#allocation53_spill] sm:$0xff]  ;;  %v11084_v62 = vpop.permute.xlu0 %11083 }
 0x346   : > { %v11382_v14 = vpack.i.bf16 %v10112_v53, %v6027_v52  ;;  %v11076_v36 = vunpack.i.h.bf16 %v11074_v4  ;;  %v15104_v29 = vadd.f32 %v4948_v42, %v17305_v56  ;;  %v11075_v37 = vunpack.i.l.bf16 %v11074_v4  ;;  %v17306_v2 = vld [vmem:[#allocation33_spill] sm:$0xff] }
 0x347   : > { %11388 = vperm.xlu1 %10301, %v11387_v41   ;;  %v4954_v1 = vmul.f32 %v11081_v59, %v14768_v33  ;;  %v10120_v39 = vunpack.c.l.bf16 %v10195_v57  ;;  %v4953_v44 = vmul.f32 %v11080_v46, %v14768_v33  ;;  %v10121_v6 = vunpack.c.h.bf16 %v10195_v57  ;;  %v9590_v41 = vld [vmem:[%s12320_s5 + $0x154] ss:$12 sps:$4 sm:$0xff]  }
 0x348   : > { %11383 = vperm.xlu0 %10290, %v11382_v14   ;;  %v4952_v55 = vmul.f32 %v11076_v36, %v14768_v33  ;;  %v10116_v11 = vunpack.c.l.bf16 %v10194_v51  ;;  %v15110_v53 = vadd.f32 %v4947_v34, %v17306_v2  ;;  %v4951_v56 = vmul.f32 %v11075_v37, %v14768_v33 }
 0x349   : > { %v10117_v42 = vunpack.c.h.bf16 %v10194_v51  ;;  %v11091_v52 = vunpack.i.h.bf16 %v11089_v58  ;;  %v15116_v4 = vadd.f32 %v4953_v44, %v14711_v23  ;;  %v15119_v59 = vadd.f32 %v4954_v1, %v14715_v43  ;;  %v11099_v51 = vpop.permute.xlu1 %11098 }
 0x34a   : > { %v11397_v14 = vpack.i.bf16 %v10121_v6, %v10120_v39  ;;  %v11090_v46 = vunpack.i.l.bf16 %v11089_v58  ;;  %v15122_v57 = vadd.f32 %v4952_v55, %v14740_v54  ;;  %v11086_v37 = vunpack.i.h.bf16 %v11084_v62  ;;  %v11094_v39 = vpop.permute.xlu0 %11093  ;;  %v9593_v55 = vld [vmem:[%s12320_s5 + $0x30] sm:$0xf] }
 0x34b   : > { %17307 = vst [vmem:[#allocation22_spill] sm:$0xff] %v15116_v4  ;;  %v11392_v34 = vpack.i.bf16 %v10117_v42, %v10116_v11  ;;  %v4958_v36 = vmul.f32 %v11091_v52, %v14768_v33  ;;  %v11085_v23 = vunpack.i.l.bf16 %v11084_v62  ;;  %v10125_v44 = vunpack.c.h.bf16 %v10196_v24  ;;  %v9594_v52 = vld [vmem:[%s12320_s5 + $0x34] sm:$0xf] }
 0x34c   : > { %17308 = vst [vmem:[#allocation24_spill] sm:$0xff] %v15122_v57  ;;  %11398 = vperm.xlu1 %10301, %v11397_v14   ;;  %v4957_v2 = vmul.f32 %v11090_v46, %v14768_v33  ;;  %v6038_v4 = vunpack.c.h.bf16 %v9590_v41  ;;  %v15127_v43 = vadd.f32 %v4951_v56, %v14718_v40  ;;  %v4956_v54 = vmul.f32 %v11086_v37, %v14768_v33  ;;  %v17310_v14 = vld [vmem:[#allocation35_spill] sm:$0xff] }
 0x34d   : > { %11393 = vperm.xlu0 %10290, %v11392_v34   ;;  %v10124_v58 = vunpack.c.l.bf16 %v10196_v24  ;;  %v6035_v1 = vunpack.c.l.bf16 %v9590_v41  ;;  %v15132_v6 = vadd.f32 %v4958_v36, %v14750_v28  ;;  %v4955_v11 = vmul.f32 %v11085_v23, %v14768_v33  ;;  %v17311_v34 = vld [vmem:[#allocation40_spill] sm:$0xff]  ;;  %v17312_v37 = vld [vmem:[#allocation39_spill] sm:$0xff]  ;;  %v17313_v41 = vld [vmem:[#allocation34_spill] sm:$0xff] }
 0x34e   : > { %v11407_v42 = vpack.i.bf16 %v6038_v4, %v10125_v44  ;;  %v11101_v62 = vunpack.i.h.bf16 %v11099_v51  ;;  %v15137_v46 = vadd.f32 %v4957_v2, %v17310_v14  ;;  %v11100_v56 = vunpack.i.l.bf16 %v11099_v51  ;;  %v9595_v23 = vld [vmem:[%s12320_s5 + $0x38] sm:$0x1] }
 0x34f   : > { %17309 = vst [vmem:[#allocation27_spill] sm:$0xff] %v15132_v6  ;;  %v11402_v40 = vpack.i.bf16 %v10124_v58, %v6035_v1  ;;  %v15141_v24 = vrot.slane %v17312_v37, %v17311_v34  ;;  %v15144_v57 = vadd.f32 %v4956_v54, %v17313_v41  ;;  %v11096_v28 = vunpack.i.h.bf16 %v11094_v39  ;;  %v9591_v37 = vld [vmem:[%s12320_s5 + $0x28] sm:$0xf] }
 0x350   : > { %11408 = vperm.xlu1 %10301, %v11407_v42   ;;  %v11095_v33 = vunpack.i.l.bf16 %v11094_v39  ;;  %v6591_v4 = vshll.u32 %v9593_v55, 16  ;;  %v6595_v51 = vshrl.u32 %v9593_v55, 16  ;;  %v6601_v44 = vshll.u32 %v9594_v52, 16  ;;  %v9592_v42 = vld [vmem:[%s12320_s5 + $0x2c] sm:$0xf] }
 0x351   : > { %17314 = vst [vmem:[#allocation25_spill] sm:$0xff] %v15144_v57  ;;  %11403 = vperm.xlu0 %10290, %v11402_v40   ;;  %v5781_v36 = vmul.f32 %v11100_v56, %v15141_v24  ;;  %v5782_v2 = vmul.f32 %v11101_v62, %v15141_v24  ;;  %v15150_v58 = vadd.f32 %v4955_v11, %v14783_v19  ;;  %v6605_v14 = vshrl.u32 %v9594_v52, 16  ;;  %v11109_v62 = vpop.permute.xlu1 %11108 }
 0x352   : > { %v5779_v1 = vmul.f32 %v11095_v33, %v15141_v24  ;;  %v6593_v54 = vrot.slane %v6591_v4, 5  ;;  %v5780_v40 = vmul.f32 %v11096_v28, %v15141_v24  ;;  %v6597_v56 = vrot.slane %v6595_v51, 4  ;;  %v11104_v51 = vpop.permute.xlu0 %11103 }
 0x353   : > { %17315 = vst [vmem:[#allocation26_spill] sm:$0xff] %v15150_v58  ;;  %v15156_v39 = vadd.f32 %v5781_v36, %v14789_v50  ;;  %v6603_v41 = vrot.slane %v6601_v44, 5  ;;  %v15160_v55 = vadd.f32 %v5782_v2, %v14796_v12  ;;  %v6607_v11 = vrot.slane %v6605_v14, 4 }
 0x354   : > { %v15163_v19 = vadd.f32 %v5779_v1, %v14799_v10  ;;  %v6611_v33 = vshll.u32 %v9595_v23, 16  ;;  %v6598_v4 = vor.u32 %v6597_v56, %v6593_v54  ;;  %v6572_v52 = vshrl.u32 %v9591_v37, 16 }
 0x355   : > { %17316 = vst [vmem:[#allocation28_spill] sm:$0xff] %v15156_v39  ;;  %17317 = vst [vmem:[#allocation31_spill] sm:$0xff] %v15160_v55  ;;  %v6575_v34 = vshll.u32 %v9591_v37, 16  ;;  %v6581_v58 = vshll.u32 %v9592_v42, 16  ;;  %v6608_v57 = vor.u32 %v6607_v11, %v6603_v41  ;;  %v6585_v36 = vshrl.u32 %v9592_v42, 16 }
 0x356   : > { %v6613_v50 = vrot.slane %v6611_v33, 5  ;;  %v11111_v28 = vunpack.i.h.bf16 %v11109_v62  ;;  %v6599_v44 = vrot.slane %v6598_v4, 4  ;;  %v6574_v39 = vrot.slane %v6572_v52, 4  ;;  %v9598_v42 = vld [vmem:[%s12320_s5 + $0x44] sm:$0xf] }
 0x357   : > { %v6577_v6 = vrot.slane %v6575_v34, 5  ;;  %v6583_v12 = vrot.slane %v6581_v58, 5  ;;  %v6609_v2 = vrot.slane %v6608_v57, 4  ;;  %v6587_v55 = vrot.slane %v6585_v36, 4 }
 0x358   : > { %v11110_v10 = vunpack.i.l.bf16 %v11109_v62  ;;  %v5786_v1 = vmul.f32 %v11111_v28, %v15141_v24  ;;  %v6604_v14 = vsel %vm12424_vm2, %v6599_v44, %v6603_v41  ;;  %v11106_v56 = vunpack.i.h.bf16 %v11104_v51 }
 0x359   : > { %v6578_v37 = vor.u32 %v6577_v6, %v6574_v39  ;;  %v11105_v11 = vunpack.i.l.bf16 %v11104_v51  ;;  %v6614_v33 = vsel %vm12424_vm2, %v6609_v2, %v6613_v50  ;;  %v7341_v4 = vunpack.c.l.bf16 %v6604_v14  ;;  %v9599_v50 = vld [vmem:[%s12320_s5 + $0x48] sm:$0xf]  ;;  %v9596_v2 = vld [vmem:[%s12320_s5 + $0x3c] sm:$0xf] }
 0x35a   : > { %v6588_v34 = vor.u32 %v6587_v55, %v6583_v12  ;;  %v5785_v57 = vmul.f32 %v11110_v10, %v15141_v24  ;;  %v15173_v58 = vadd.f32 %v5780_v40, %v14811_v5  ;;  %v7342_v62 = vunpack.c.l.bf16 %v6614_v33  ;;  %v9600_v55 = vld [vmem:[%s12320_s5 + $0x4c] sm:$0x1]  ;;  %v9597_v10 = vld [vmem:[%s12320_s5 + $0x40] sm:$0xf] }
 0x35b   : > { %v6579_v41 = vrot.slane %v6578_v37, 4  ;;  %v5783_v6 = vmul.f32 %v11105_v11, %v15141_v24  ;;  %v15180_v36 = vadd.f32 %v5786_v1, %v14824_v38  ;;  %v6635_v28 = vshll.u32 %v9598_v42, 16 }
 0x35c   : > { %v6589_v39 = vrot.slane %v6588_v34, 4  ;;  %v15177_v52 = vadd.f32 %v5785_v57, %v14816_v32  ;;  %v11417_v51 = vpack.i.bf16 %v7342_v62, %v7341_v4  ;;  %v5784_v5 = vmul.f32 %v11106_v56, %v15141_v24  ;;  %v11119_v57 = vpop.permute.xlu1 %11118 }
 0x35d   : > { %17319 = vst [vmem:[#allocation29_spill] sm:$0xff] %v15180_v36  ;;  %v6584_v44 = vsel %vm12424_vm2, %v6579_v41, %v6583_v12  ;;  %v6639_v40 = vshrl.u32 %v9598_v42, 16  ;;  %v15192_v37 = vadd.f32 %v5783_v6, %v14827_v47  ;;  %v15194_v38 = vrot.slane %v6635_v28, 5 }
 0x35e   : > { %v6594_v14 = vsel %vm12424_vm2, %v6589_v39, %v6593_v54  ;;  %v7339_v32 = vunpack.c.l.bf16 %v6584_v44  ;;  %11418 = vperm.xlu1 %10301, %v11417_v51   ;;  %v6645_v33 = vshll.u32 %v9599_v50, 16  ;;  %v6649_v4 = vshrl.u32 %v9599_v50, 16  ;;  %v11114_v44 = vpop.permute.xlu0 %11113 }
 0x35f   : > { %17320 = vst [vmem:[#allocation30_spill] sm:$0xff] %v15192_v37  ;;  %v7340_v1 = vunpack.c.l.bf16 %v6594_v14  ;;  %v6641_v11 = vrot.slane %v6639_v40, 4  ;;  %v6655_v12 = vshll.u32 %v9600_v55, 16  ;;  %v6616_v34 = vshrl.u32 %v9596_v2, 16 }
 0x360   : > { %v6619_v56 = vshll.u32 %v9596_v2, 16  ;;  %v6625_v42 = vshll.u32 %v9597_v10, 16  ;;  %v6647_v54 = vrot.slane %v6645_v33, 5  ;;  %v6651_v39 = vrot.slane %v6649_v4, 4 }
 0x361   : > { %v11412_v62 = vpack.i.bf16 %v7340_v1, %v7339_v32  ;;  %v6642_v41 = vor.u32 %v6641_v11, %v15194_v38  ;;  %v6657_v47 = vrot.slane %v6655_v12, 5  ;;  %v6618_v6 = vrot.slane %v6616_v34, 4 }
 0x362   : > { %v6621_v28 = vrot.slane %v6619_v56, 5  ;;  %v6627_v37 = vrot.slane %v6625_v42, 5  ;;  %v6652_v40 = vor.u32 %v6651_v39, %v6647_v54  ;;  %v6629_v50 = vshrl.u32 %v9597_v10, 16  ;;  %v9603_v42 = vld [vmem:[%s12320_s5 + $0x58] sm:$0xf] }
 0x363   : > { %11413 = vperm.xlu0 %10290, %v11412_v62   ;;  %v6643_v51 = vrot.slane %v6642_v41, 4  ;;  %v11121_v55 = vunpack.i.h.bf16 %v11119_v57  ;;  %v11120_v2 = vunpack.i.l.bf16 %v11119_v57  ;;  %v11116_v36 = vunpack.i.h.bf16 %v11114_v44  ;;  %v9604_v39 = vld [vmem:[%s12320_s5 + $0x5c] sm:$0xf] }
 0x364   : > { %v6622_v14 = vor.u32 %v6621_v28, %v6618_v6  ;;  %v11115_v32 = vunpack.i.l.bf16 %v11114_v44  ;;  %v6653_v11 = vrot.slane %v6652_v40, 4  ;;  %v6631_v33 = vrot.slane %v6629_v50, 4 }
 0x365   : > { %v6648_v1 = vsel %vm12424_vm2, %v6643_v51, %v6647_v54  ;;  %v5790_v4 = vmul.f32 %v11121_v55, %v15141_v24  ;;  %v5789_v56 = vmul.f32 %v11120_v2, %v15141_v24  ;;  %v15204_v57 = vadd.f32 %v5784_v5, %v14837_v48  ;;  %v9605_v48 = vld [vmem:[%s12320_s5 + $0x60] sm:$0x1]  ;;  %v9601_v5 = vld [vmem:[%s12320_s5 + $0x50] sm:$0xf] }
 0x366   : > { %v7345_v12 = vunpack.c.l.bf16 %v6648_v1  ;;  %v6623_v34 = vrot.slane %v6622_v14, 4  ;;  %v5787_v10 = vmul.f32 %v11115_v32, %v15141_v24  ;;  %v6658_v62 = vsel %vm12424_vm2, %v6653_v11, %v6657_v47  ;;  %v9602_v1 = vld [vmem:[%s12320_s5 + $0x54] sm:$0xf] }
 0x367   : > { %v6632_v41 = vor.u32 %v6631_v33, %v6627_v37  ;;  %v15209_v54 = vadd.f32 %v5790_v4, %v14848_v3  ;;  %v7346_v44 = vunpack.c.l.bf16 %v6658_v62  ;;  %v15215_v28 = vadd.f32 %v5789_v56, %v14845_v20 }
 0x368   : > { %v6628_v6 = vsel %vm12424_vm2, %v6623_v34, %v6627_v37  ;;  %v5788_v51 = vmul.f32 %v11116_v36, %v15141_v24  ;;  %v15221_v47 = vadd.f32 %v5787_v10, %v14852_v30  ;;  %v6679_v3 = vshll.u32 %v9603_v42, 16  ;;  %v11129_v30 = vpop.permute.xlu1 %11128 }
 0x369   : > { %17321 = vst [vmem:[#allocation32_spill] sm:$0xff] %v15209_v54  ;;  %v6633_v40 = vrot.slane %v6632_v41, 4  ;;  %v7343_v50 = vunpack.c.l.bf16 %v6628_v6  ;;  %v11427_v55 = vpack.i.bf16 %v7346_v44, %v7345_v12  ;;  %v6683_v14 = vshrl.u32 %v9603_v42, 16  ;;  %v11124_v41 = vpop.permute.xlu0 %11123 }
 0x36a   : > { %17322 = vst [vmem:[#allocation53_spill] sm:$0xff] %v15221_v47  ;;  %v6689_v2 = vshll.u32 %v9604_v39, 16  ;;  %v6693_v32 = vshrl.u32 %v9604_v39, 16  ;;  %v6681_v37 = vrot.slane %v6679_v3, 5  ;;  %v6699_v11 = vshll.u32 %v9605_v48, 16 }
 0x36b   : > { %v6638_v20 = vsel %vm12424_vm2, %v6633_v40, %v15194_v38  ;;  %v6660_v36 = vshrl.u32 %v9601_v5, 16  ;;  %11428 = vperm.xlu1 %10301, %v11427_v55   ;;  %v6685_v4 = vrot.slane %v6683_v14, 4  ;;  %v6663_v12 = vshll.u32 %v9601_v5, 16 }
 0x36c   : > { %v7344_v33 = vunpack.c.l.bf16 %v6638_v20  ;;  %v6691_v34 = vrot.slane %v6689_v2, 5  ;;  %v6695_v56 = vrot.slane %v6693_v32, 4  ;;  %v6701_v10 = vrot.slane %v6699_v11, 5 }
 0x36d   : > { %v6662_v62 = vrot.slane %v6660_v36, 4  ;;  %v6669_v42 = vshll.u32 %v9602_v1, 16  ;;  %v6686_v44 = vor.u32 %v6685_v4, %v6681_v37  ;;  %v6673_v47 = vshrl.u32 %v9602_v1, 16  ;;  %v9608_v4 = vld [vmem:[%s12320_s5 + $0x6c] sm:$0xf] }
 0x36e   : > { %v11422_v39 = vpack.i.bf16 %v7344_v33, %v7343_v50  ;;  %v6696_v6 = vor.u32 %v6695_v56, %v6691_v34  ;;  %v6665_v54 = vrot.slane %v6663_v12, 5  ;;  %v11131_v48 = vunpack.i.h.bf16 %v11129_v30 }
 0x36f   : > { %v6671_v38 = vrot.slane %v6669_v42, 5  ;;  %v11130_v40 = vunpack.i.l.bf16 %v11129_v30  ;;  %v6687_v3 = vrot.slane %v6686_v44, 4  ;;  %v6675_v14 = vrot.slane %v6673_v47, 4 }
 0x370   : > { %11423 = vperm.xlu0 %10290, %v11422_v39   ;;  %v6697_v55 = vrot.slane %v6696_v6, 4  ;;  %v11126_v2 = vunpack.i.h.bf16 %v11124_v41  ;;  %v6666_v32 = vor.u32 %v6665_v54, %v6662_v62  ;;  %v5794_v20 = vmul.f32 %v11131_v48, %v15141_v24  ;;  %v9609_v62 = vld [vmem:[%s12320_s5 + $0x70] sm:$0xf]  ;;  %v9606_v6 = vld [vmem:[%s12320_s5 + $0x64] sm:$0xf] }
 0x371   : > { %v5793_v5 = vmul.f32 %v11130_v40, %v15141_v24  ;;  %v11125_v50 = vunpack.i.l.bf16 %v11124_v41  ;;  %v6692_v1 = vsel %vm12424_vm2, %v6687_v3, %v6691_v34  ;;  %v6676_v36 = vor.u32 %v6675_v14, %v6671_v38 }
 0x372   : > { %v6702_v11 = vsel %vm12424_vm2, %v6697_v55, %v6701_v10  ;;  %v5792_v33 = vmul.f32 %v11126_v2, %v15141_v24  ;;  %v15236_v47 = vadd.f32 %v5788_v51, %v14861_v31  ;;  %v7349_v54 = vunpack.c.l.bf16 %v6692_v1  ;;  %v9610_v31 = vld [vmem:[%s12320_s5 + $0x74] sm:$0x1]  ;;  %v11139_v1 = vpop.permute.xlu1 %11138 }
 0x373   : > { %v7350_v56 = vunpack.c.l.bf16 %v6702_v11  ;;  %v6667_v30 = vrot.slane %v6666_v32, 4  ;;  %v6677_v12 = vrot.slane %v6676_v36, 4  ;;  %v15240_v34 = vadd.f32 %v5793_v5, %v14874_v49 }
 0x374   : > { %v15243_v42 = vadd.f32 %v5794_v20, %v14868_v61  ;;  %v5791_v10 = vmul.f32 %v11125_v50, %v15141_v24  ;;  %v6723_v51 = vshll.u32 %v9608_v4, 16  ;;  %v6727_v44 = vshrl.u32 %v9608_v4, 16  ;;  %v9607_v61 = vld [vmem:[%s12320_s5 + $0x68] sm:$0xf] }
 0x375   : > { %v11437_v41 = vpack.i.bf16 %v7350_v56, %v7349_v54  ;;  %v6672_v39 = vsel %vm12424_vm2, %v6667_v30, %v6671_v38  ;;  %v6682_v48 = vsel %vm12424_vm2, %v6677_v12, %v6681_v37  ;;  %v15253_v49 = vadd.f32 %v5792_v33, %v14879_v16  ;;  %v11134_v54 = vpop.permute.xlu0 %11133 }
 0x376   : > { %v7347_v40 = vunpack.c.l.bf16 %v6672_v39  ;;  %v6733_v3 = vshll.u32 %v9609_v62, 16  ;;  %v7348_v55 = vunpack.c.l.bf16 %v6682_v48  ;;  %v6725_v14 = vrot.slane %v6723_v51, 5 }
 0x377   : > { %11438 = vperm.xlu1 %10301, %v11437_v41   ;;  %v6729_v2 = vrot.slane %v6727_v44, 4  ;;  %v6737_v32 = vshrl.u32 %v9609_v62, 16  ;;  %v6743_v38 = vshll.u32 %v9610_v31, 16  ;;  %v6704_v20 = vshrl.u32 %v9606_v6, 16 }
 0x378   : > { %v6735_v5 = vrot.slane %v6733_v3, 5  ;;  %v6707_v50 = vshll.u32 %v9606_v6, 16  ;;  %v11432_v11 = vpack.i.bf16 %v7348_v55, %v7347_v40  ;;  %v6713_v37 = vshll.u32 %v9607_v61, 16 }
 0x379   : > { %v6730_v36 = vor.u32 %v6729_v2, %v6725_v14  ;;  %v6739_v4 = vrot.slane %v6737_v32, 4  ;;  %v6745_v56 = vrot.slane %v6743_v38, 5  ;;  %v6706_v16 = vrot.slane %v6704_v20, 4  ;;  %v9613_v20 = vld [vmem:[%s12320_s5 + $0x80] sm:$0xf] }
 0x37a   : > { %v6709_v33 = vrot.slane %v6707_v50, 5  ;;  %v6717_v30 = vshrl.u32 %v9607_v61, 16  ;;  %11433 = vperm.xlu0 %10290, %v11432_v11   ;;  %v6715_v39 = vrot.slane %v6713_v37, 5  ;;  %v11141_v62 = vunpack.i.h.bf16 %v11139_v1 }
 0x37b   : > { %v6731_v12 = vrot.slane %v6730_v36, 4  ;;  %v6740_v41 = vor.u32 %v6739_v4, %v6735_v5  ;;  %v11140_v44 = vunpack.i.l.bf16 %v11139_v1  ;;  %v11136_v6 = vunpack.i.h.bf16 %v11134_v54  ;;  %v9614_v36 = vld [vmem:[%s12320_s5 + $0x84] sm:$0xf] }
 0x37c   : > { %v6710_v51 = vor.u32 %v6709_v33, %v6706_v16  ;;  %v6719_v31 = vrot.slane %v6717_v30, 4  ;;  %v5798_v3 = vmul.f32 %v11141_v62, %v15141_v24  ;;  %v11135_v55 = vunpack.i.l.bf16 %v11134_v54  ;;  %v9615_v33 = vld [vmem:[%s12320_s5 + $0x88] sm:$0x1]  ;;  %v9611_v30 = vld [vmem:[%s12320_s5 + $0x78] sm:$0xf] }
 0x37d   : > { %v6736_v48 = vsel %vm12424_vm2, %v6731_v12, %v6735_v5  ;;  %v6741_v40 = vrot.slane %v6740_v41, 4  ;;  %v5797_v38 = vmul.f32 %v11140_v44, %v15141_v24  ;;  %v15262_v50 = vadd.f32 %v5791_v10, %v14888_v63 }
 0x37e   : > { %v7353_v61 = vunpack.c.l.bf16 %v6736_v48  ;;  %v6711_v2 = vrot.slane %v6710_v51, 4  ;;  %v6720_v32 = vor.u32 %v6719_v31, %v6715_v39  ;;  %v15267_v5 = vadd.f32 %v5798_v3, %v14898_v21 }
 0x37f   : > { %v6746_v1 = vsel %vm12424_vm2, %v6741_v40, %v6745_v56  ;;  %v5795_v11 = vmul.f32 %v11135_v55, %v15141_v24  ;;  %v5796_v16 = vmul.f32 %v11136_v6, %v15141_v24  ;;  %v15276_v10 = vadd.f32 %v5797_v38, %v14895_v17 }
 0x380   : > { %v7354_v4 = vunpack.c.l.bf16 %v6746_v1  ;;  %v6716_v37 = vsel %vm12424_vm2, %v6711_v2, %v6715_v39  ;;  %v6721_v54 = vrot.slane %v6720_v32, 4  ;;  %v6767_v21 = vshll.u32 %v9613_v20, 16  ;;  %v9612_v39 = vld [vmem:[%s12320_s5 + $0x7c] sm:$0xf]  ;;  %v11144_v1 = vpop.permute.xlu0 %11143 }
 0x381   : > { %v7351_v63 = vunpack.c.l.bf16 %v6716_v37  ;;  %v15279_v56 = vadd.f32 %v5795_v11, %v14911_v45  ;;  %v6771_v62 = vshrl.u32 %v9613_v20, 16  ;;  %v6777_v51 = vshll.u32 %v9614_v36, 16  ;;  %v11149_v45 = vpop.permute.xlu1 %11148 }
 0x382   : > { %v11447_v12 = vpack.i.bf16 %v7354_v4, %v7353_v61  ;;  %v6726_v41 = vsel %vm12424_vm2, %v6721_v54, %v6725_v14  ;;  %v6769_v44 = vrot.slane %v6767_v21, 5  ;;  %v6781_v6 = vshrl.u32 %v9614_v36, 16 }
 0x383   : > { %v7352_v31 = vunpack.c.l.bf16 %v6726_v41  ;;  %v6787_v48 = vshll.u32 %v9615_v33, 16  ;;  %v6773_v40 = vrot.slane %v6771_v62, 4  ;;  %v6779_v17 = vrot.slane %v6777_v51, 5 }
 0x384   : > { %11448 = vperm.xlu1 %10301, %v11447_v12   ;;  %v6748_v3 = vshrl.u32 %v9611_v30, 16  ;;  %v6751_v55 = vshll.u32 %v9611_v30, 16  ;;  %v6783_v32 = vrot.slane %v6781_v6, 4  ;;  %v6757_v61 = vshll.u32 %v9612_v39, 16 }
 0x385   : > { %v11442_v2 = vpack.i.bf16 %v7352_v31, %v7351_v63  ;;  %v6789_v38 = vrot.slane %v6787_v48, 5  ;;  %v6774_v11 = vor.u32 %v6773_v40, %v6769_v44  ;;  %v6761_v4 = vshrl.u32 %v9612_v39, 16 }
 0x386   : > { %v6750_v14 = vrot.slane %v6748_v3, 4  ;;  %v6753_v20 = vrot.slane %v6751_v55, 5  ;;  %v6784_v37 = vor.u32 %v6783_v32, %v6779_v17  ;;  %v6759_v36 = vrot.slane %v6757_v61, 5  ;;  %v9618_v3 = vld [vmem:[%s12320_s5 + $0x94] sm:$0xf] }
 0x387   : > { %11443 = vperm.xlu0 %10290, %v11442_v2   ;;  %v11151_v54 = vunpack.i.h.bf16 %v11149_v45  ;;  %v11150_v33 = vunpack.i.l.bf16 %v11149_v45  ;;  %v6775_v21 = vrot.slane %v6774_v11, 4  ;;  %v6763_v30 = vrot.slane %v6761_v4, 4  ;;  %v9619_v61 = vld [vmem:[%s12320_s5 + $0x98] sm:$0xf] }
 0x388   : > { %v6754_v12 = vor.u32 %v6753_v20, %v6750_v14  ;;  %v11146_v41 = vunpack.i.h.bf16 %v11144_v1  ;;  %v6785_v63 = vrot.slane %v6784_v37, 4  ;;  %v11145_v31 = vunpack.i.l.bf16 %v11144_v1  ;;  %v9616_v37 = vld [vmem:[%s12320_s5 + $0x8c] sm:$0xf] }
 0x389   : > { %v5801_v62 = vmul.f32 %v11150_v33, %v15141_v24  ;;  %v5802_v51 = vmul.f32 %v11151_v54, %v15141_v24  ;;  %v6780_v39 = vsel %vm12424_vm2, %v6775_v21, %v6779_v17  ;;  %v6764_v48 = vor.u32 %v6763_v30, %v6759_v36 }
 0x38a   : > { %v6755_v6 = vrot.slane %v6754_v12, 4  ;;  %v5800_v40 = vmul.f32 %v11146_v41, %v15141_v24  ;;  %v15292_v55 = vadd.f32 %v5796_v16, %v14904_v9  ;;  %v6790_v45 = vsel %vm12424_vm2, %v6785_v63, %v6789_v38  ;;  %v9620_v16 = vld [vmem:[%s12320_s5 + $0x9c] sm:$0x1] }
 0x38b   : > { %v7357_v2 = vunpack.c.l.bf16 %v6780_v39  ;;  %v15297_v32 = vadd.f32 %v5801_v62, %v14924_v13  ;;  %v7358_v17 = vunpack.c.l.bf16 %v6790_v45  ;;  %v6765_v11 = vrot.slane %v6764_v48, 4  ;;  %v11159_v39 = vpop.permute.xlu1 %11158 }
 0x38c   : > { %v6760_v1 = vsel %vm12424_vm2, %v6755_v6, %v6759_v36  ;;  %v15303_v14 = vadd.f32 %v5802_v51, %v14916_v27  ;;  %v5799_v9 = vmul.f32 %v11145_v31, %v15141_v24  ;;  %v6811_v4 = vshll.u32 %v9618_v3, 16  ;;  %v9617_v36 = vld [vmem:[%s12320_s5 + $0x90] sm:$0xf] }
 0x38d   : > { %v7355_v20 = vunpack.c.l.bf16 %v6760_v1  ;;  %v6815_v38 = vshrl.u32 %v9618_v3, 16  ;;  %v11457_v54 = vpack.i.bf16 %v7358_v17, %v7357_v2  ;;  %v6770_v13 = vsel %vm12424_vm2, %v6765_v11, %v6769_v44  ;;  %v11154_v44 = vpop.permute.xlu0 %11153 }
 0x38e   : > { %v15311_v33 = vadd.f32 %v5800_v40, %v14929_v7  ;;  %v6821_v21 = vshll.u32 %v9619_v61, 16  ;;  %v7356_v12 = vunpack.c.l.bf16 %v6770_v13  ;;  %v6813_v30 = vrot.slane %v6811_v4, 5 }
 0x38f   : > { %v6817_v27 = vrot.slane %v6815_v38, 4  ;;  %v6825_v41 = vshrl.u32 %v9619_v61, 16  ;;  %11458 = vperm.xlu1 %10301, %v11457_v54   ;;  %v6831_v62 = vshll.u32 %v9620_v16, 16  ;;  %v6792_v51 = vshrl.u32 %v9616_v37, 16 }
 0x390   : > { %v6823_v63 = vrot.slane %v6821_v21, 5  ;;  %v6795_v31 = vshll.u32 %v9616_v37, 16  ;;  %v11452_v6 = vpack.i.bf16 %v7356_v12, %v7355_v20  ;;  %v6801_v45 = vshll.u32 %v9617_v36, 16 }
 0x391   : > { %v6818_v48 = vor.u32 %v6817_v27, %v6813_v30  ;;  %v6827_v3 = vrot.slane %v6825_v41, 4  ;;  %v6833_v2 = vrot.slane %v6831_v62, 5  ;;  %v6794_v7 = vrot.slane %v6792_v51, 4  ;;  %v9623_v51 = vld [vmem:[%s12320_s5 + $0xa8] sm:$0xf] }
 0x392   : > { %v6797_v40 = vrot.slane %v6795_v31, 5  ;;  %v6805_v17 = vshrl.u32 %v9617_v36, 16  ;;  %11453 = vperm.xlu0 %10290, %v11452_v6   ;;  %v6803_v61 = vrot.slane %v6801_v45, 5  ;;  %v11161_v4 = vunpack.i.h.bf16 %v11159_v39 }
 0x393   : > { %v6819_v1 = vrot.slane %v6818_v48, 4  ;;  %v6828_v11 = vor.u32 %v6827_v3, %v6823_v63  ;;  %v11160_v37 = vunpack.i.l.bf16 %v11159_v39  ;;  %v11156_v54 = vunpack.i.h.bf16 %v11154_v44  ;;  %v9624_v48 = vld [vmem:[%s12320_s5 + $0xac] sm:$0xf] }
 0x394   : > { %v6798_v38 = vor.u32 %v6797_v40, %v6794_v7  ;;  %v6807_v16 = vrot.slane %v6805_v17, 4  ;;  %v5806_v21 = vmul.f32 %v11161_v4, %v15141_v24  ;;  %v11155_v12 = vunpack.i.l.bf16 %v11154_v44  ;;  %v9625_v40 = vld [vmem:[%s12320_s5 + $0xb0] sm:$0x1] }
 0x395   : > { %v6824_v20 = vsel %vm12424_vm2, %v6819_v1, %v6823_v63  ;;  %v6829_v13 = vrot.slane %v6828_v11, 4  ;;  %v5805_v62 = vmul.f32 %v11160_v37, %v15141_v24  ;;  %v15320_v31 = vadd.f32 %v5799_v9, %v14938_v18  ;;  %v9621_v1 = vld [vmem:[%s12320_s5 + $0xa0] sm:$0xf] }
 0x396   : > { %v7361_v36 = vunpack.c.l.bf16 %v6824_v20  ;;  %v6799_v27 = vrot.slane %v6798_v38, 4  ;;  %v6808_v41 = vor.u32 %v6807_v16, %v6803_v61  ;;  %v15325_v63 = vadd.f32 %v5806_v21, %v14948_v0 }
 0x397   : > { %v6834_v39 = vsel %vm12424_vm2, %v6829_v13, %v6833_v2  ;;  %v5803_v6 = vmul.f32 %v11155_v12, %v15141_v24  ;;  %v5804_v7 = vmul.f32 %v11156_v54, %v15141_v24  ;;  %v15334_v9 = vadd.f32 %v5805_v62, %v14945_v60  ;;  %v17323_v2 = vld [vmem:[#allocation37_spill] sm:$0xff] }
 0x398   : > { %v7362_v3 = vunpack.c.l.bf16 %v6834_v39  ;;  %v6804_v45 = vsel %vm12424_vm2, %v6799_v27, %v6803_v61  ;;  %v6809_v44 = vrot.slane %v6808_v41, 4  ;;  %v6855_v0 = vshll.u32 %v9623_v51, 16  ;;  %v9622_v61 = vld [vmem:[%s12320_s5 + $0xa4] sm:$0xf]  ;;  %v11169_v41 = vpop.permute.xlu1 %11168 }
 0x399   : > { %v7359_v18 = vunpack.c.l.bf16 %v6804_v45  ;;  %v15337_v17 = vadd.f32 %v5803_v6, %v17323_v2  ;;  %v6859_v38 = vshrl.u32 %v9623_v51, 16  ;;  %v6865_v16 = vshll.u32 %v9624_v48, 16 }
 0x39a   : > { %v11467_v11 = vpack.i.bf16 %v7362_v3, %v7361_v36  ;;  %v6814_v4 = vsel %vm12424_vm2, %v6809_v44, %v6813_v30  ;;  %v6857_v20 = vrot.slane %v6855_v0, 5  ;;  %v6869_v54 = vshrl.u32 %v9624_v48, 16  ;;  %v11164_v3 = vpop.permute.xlu0 %11163 }
 0x39b   : > { %v7360_v37 = vunpack.c.l.bf16 %v6814_v4  ;;  %v6875_v13 = vshll.u32 %v9625_v40, 16  ;;  %v6861_v21 = vrot.slane %v6859_v38, 4  ;;  %v6867_v60 = vrot.slane %v6865_v16, 5 }
 0x39c   : > { %11468 = vperm.xlu1 %10301, %v11467_v11   ;;  %v6836_v12 = vshrl.u32 %v9621_v1, 16  ;;  %v6839_v27 = vshll.u32 %v9621_v1, 16  ;;  %v6871_v39 = vrot.slane %v6869_v54, 4  ;;  %v6845_v36 = vshll.u32 %v9622_v61, 16 }
 0x39d   : > { %v11462_v62 = vpack.i.bf16 %v7360_v37, %v7359_v18  ;;  %v6877_v6 = vrot.slane %v6875_v13, 5  ;;  %v6862_v45 = vor.u32 %v6861_v21, %v6857_v20  ;;  %v6849_v44 = vshrl.u32 %v9622_v61, 16 }
 0x39e   : > { %v6838_v30 = vrot.slane %v6836_v12, 4  ;;  %v6841_v51 = vrot.slane %v6839_v27, 5  ;;  %v6872_v2 = vor.u32 %v6871_v39, %v6867_v60  ;;  %v6847_v48 = vrot.slane %v6845_v36, 5  ;;  %v9628_v27 = vld [vmem:[%s12320_s5 + $0xbc] sm:$0xf] }
 0x39f   : > { %11463 = vperm.xlu0 %10290, %v11462_v62   ;;  %v11171_v40 = vunpack.i.h.bf16 %v11169_v41  ;;  %v11170_v0 = vunpack.i.l.bf16 %v11169_v41  ;;  %v6863_v11 = vrot.slane %v6862_v45, 4  ;;  %v6851_v1 = vrot.slane %v6849_v44, 4  ;;  %v17324_v41 = vld [vmem:[#allocation36_spill] sm:$0xff]  ;;  %v17325_v45 = vld [vmem:[#allocation41_spill] sm:$0xff] }
 0x3a0   : > { %v6842_v4 = vor.u32 %v6841_v51, %v6838_v30  ;;  %v11166_v38 = vunpack.i.h.bf16 %v11164_v3  ;;  %v6873_v18 = vrot.slane %v6872_v2, 4  ;;  %v11165_v54 = vunpack.i.l.bf16 %v11164_v3  ;;  %v9629_v3 = vld [vmem:[%s12320_s5 + $0xc0] sm:$0xf] }
 0x3a1   : > { %v5809_v16 = vmul.f32 %v11170_v0, %v15141_v24  ;;  %v5810_v37 = vmul.f32 %v11171_v40, %v15141_v24  ;;  %v6868_v61 = vsel %vm12424_vm2, %v6863_v11, %v6867_v60  ;;  %v6852_v21 = vor.u32 %v6851_v1, %v6847_v48  ;;  %v17327_v2 = vld [vmem:[#allocation38_spill] sm:$0xff]  ;;  %v9626_v1 = vld [vmem:[%s12320_s5 + $0xb4] sm:$0xf] }
 0x3a2   : > { %v6843_v13 = vrot.slane %v6842_v4, 4  ;;  %v5808_v12 = vmul.f32 %v11166_v38, %v15141_v24  ;;  %v15350_v62 = vadd.f32 %v5804_v7, %v17324_v41  ;;  %v6878_v39 = vsel %vm12424_vm2, %v6873_v18, %v6877_v6  ;;  %v9630_v11 = vld [vmem:[%s12320_s5 + $0xc4] sm:$0x1] }
 0x3a3   : > { %v7365_v36 = vunpack.c.l.bf16 %v6868_v61  ;;  %v15355_v30 = vadd.f32 %v5809_v16, %v17325_v45  ;;  %v7366_v60 = vunpack.c.l.bf16 %v6878_v39  ;;  %v6853_v44 = vrot.slane %v6852_v21, 4  ;;  %v17329_v16 = vld [vmem:[#allocation43_spill] sm:$0xff] }
 0x3a4   : > { %v6848_v51 = vsel %vm12424_vm2, %v6843_v13, %v6847_v48  ;;  %v15361_v40 = vadd.f32 %v5810_v37, %v17327_v2  ;;  %v5807_v7 = vmul.f32 %v11165_v54, %v15141_v24  ;;  %v6899_v4 = vshll.u32 %v9628_v27, 16  ;;  %v9627_v48 = vld [vmem:[%s12320_s5 + $0xb8] sm:$0xf] }
 0x3a5   : > { %17326 = vst [vmem:[#allocation33_spill] sm:$0xff] %v15355_v30  ;;  %v7363_v0 = vunpack.c.l.bf16 %v6848_v51  ;;  %v6903_v6 = vshrl.u32 %v9628_v27, 16  ;;  %v11477_v38 = vpack.i.bf16 %v7366_v60, %v7365_v36  ;;  %v6858_v18 = vsel %vm12424_vm2, %v6853_v44, %v6857_v20  ;;  %v11179_v27 = vpop.permute.xlu1 %11178  ;;  %v11174_v20 = vpop.permute.xlu0 %11173 }
 0x3a6   : > { %17328 = vst [vmem:[#allocation35_spill] sm:$0xff] %v15361_v40  ;;  %v15369_v61 = vadd.f32 %v5808_v12, %v17329_v16  ;;  %v6909_v41 = vshll.u32 %v9629_v3, 16  ;;  %v7364_v13 = vunpack.c.l.bf16 %v6858_v18  ;;  %v6901_v21 = vrot.slane %v6899_v4, 5 }
 0x3a7   : > { %v6905_v37 = vrot.slane %v6903_v6, 4  ;;  %v6913_v39 = vshrl.u32 %v9629_v3, 16  ;;  %11478 = vperm.xlu1 %10301, %v11477_v38   ;;  %v6919_v54 = vshll.u32 %v9630_v11, 16  ;;  %v6880_v51 = vshrl.u32 %v9626_v1, 16 }
 0x3a8   : > { %17330 = vst [vmem:[#allocation39_spill] sm:$0xff] %v15369_v61  ;;  %v6911_v45 = vrot.slane %v6909_v41, 5  ;;  %v6883_v2 = vshll.u32 %v9626_v1, 16  ;;  %v11472_v40 = vpack.i.bf16 %v7364_v13, %v7363_v0  ;;  %v6889_v30 = vshll.u32 %v9627_v48, 16 }
 0x3a9   : > { %v6906_v36 = vor.u32 %v6905_v37, %v6901_v21  ;;  %v6915_v60 = vrot.slane %v6913_v39, 4  ;;  %v6921_v44 = vrot.slane %v6919_v54, 5  ;;  %v6882_v12 = vrot.slane %v6880_v51, 4 }
 0x3aa   : > { %v6885_v16 = vrot.slane %v6883_v2, 5  ;;  %v6893_v61 = vshrl.u32 %v9627_v48, 16  ;;  %11473 = vperm.xlu0 %10290, %v11472_v40   ;;  %v6891_v3 = vrot.slane %v6889_v30, 5  ;;  %v11181_v6 = vunpack.i.h.bf16 %v11179_v27  ;;  %v9633_v30 = vld [vmem:[%s12320_s5 + $0xd0] sm:$0xf]  ;;  %v17331_v2 = vld [vmem:[#allocation42_spill] sm:$0xff] }
 0x3ab   : > { %v6907_v18 = vrot.slane %v6906_v36, 4  ;;  %v6916_v4 = vor.u32 %v6915_v60, %v6911_v45  ;;  %v11180_v1 = vunpack.i.l.bf16 %v11179_v27  ;;  %v11176_v41 = vunpack.i.h.bf16 %v11174_v20  ;;  %v17332_v36 = vld [vmem:[#allocation46_spill] sm:$0xff] }
 0x3ac   : > { %v6886_v38 = vor.u32 %v6885_v16, %v6882_v12  ;;  %v6895_v11 = vrot.slane %v6893_v61, 4  ;;  %v5814_v37 = vmul.f32 %v11181_v6, %v15141_v24  ;;  %v11175_v39 = vunpack.i.l.bf16 %v11174_v20  ;;  %v9634_v20 = vld [vmem:[%s12320_s5 + $0xd4] sm:$0xf]  ;;  %v9635_v6 = vld [vmem:[%s12320_s5 + $0xd8] sm:$0x1] }
 0x3ad   : > { %v6912_v0 = vsel %vm12424_vm2, %v6907_v18, %v6911_v45  ;;  %v6917_v13 = vrot.slane %v6916_v4, 4  ;;  %v5813_v51 = vmul.f32 %v11180_v1, %v15141_v24  ;;  %v15378_v61 = vadd.f32 %v5807_v7, %v17331_v2 }
 0x3ae   : > { %v7369_v48 = vunpack.c.l.bf16 %v6912_v0  ;;  %v6887_v40 = vrot.slane %v6886_v38, 4  ;;  %v6896_v54 = vor.u32 %v6895_v11, %v6891_v3  ;;  %v15383_v45 = vadd.f32 %v5814_v37, %v17332_v36  ;;  %v17334_v38 = vld [vmem:[#allocation44_spill] sm:$0xff]  ;;  %v9631_v0 = vld [vmem:[%s12320_s5 + $0xc8] sm:$0xf] }
 0x3af   : > { %v6922_v27 = vsel %vm12424_vm2, %v6917_v13, %v6921_v44  ;;  %v5811_v60 = vmul.f32 %v11175_v39, %v15141_v24  ;;  %v5812_v4 = vmul.f32 %v11176_v41, %v15141_v24  ;;  %v15392_v11 = vadd.f32 %v5813_v51, %v17334_v38 }
 0x3b0   : > { %17333 = vst [vmem:[#allocation34_spill] sm:$0xff] %v15383_v45  ;;  %v7370_v12 = vunpack.c.l.bf16 %v6922_v27  ;;  %v6892_v16 = vsel %vm12424_vm2, %v6887_v40, %v6891_v3  ;;  %v6897_v18 = vrot.slane %v6896_v54, 4  ;;  %v6943_v1 = vshll.u32 %v9633_v30, 16  ;;  %v9632_v3 = vld [vmem:[%s12320_s5 + $0xcc] sm:$0xf] }
 0x3b1   : > { %v7367_v7 = vunpack.c.l.bf16 %v6892_v16  ;;  %17335 = vst [vmem:[#allocation12_spill] sm:$0xff] %v15392_v11  ;;  %v15395_v44 = vadd.f32 %v5811_v60, %v15011_v22  ;;  %v6947_v39 = vshrl.u32 %v9633_v30, 16  ;;  %v6953_v2 = vshll.u32 %v9634_v20, 16  ;;  %v11189_v22 = vpop.permute.xlu1 %11188 }
 0x3b2   : > { %v11487_v13 = vpack.i.bf16 %v7370_v12, %v7369_v48  ;;  %v6902_v37 = vsel %vm12424_vm2, %v6897_v18, %v6901_v21  ;;  %v6945_v54 = vrot.slane %v6943_v1, 5  ;;  %v6957_v41 = vshrl.u32 %v9634_v20, 16  ;;  %v11184_v12 = vpop.permute.xlu0 %11183 }
 0x3b3   : > { %17336 = vst [vmem:[#allocation37_spill] sm:$0xff] %v15395_v44  ;;  %v7368_v40 = vunpack.c.l.bf16 %v6902_v37  ;;  %v6963_v27 = vshll.u32 %v9635_v6, 16  ;;  %v6949_v36 = vrot.slane %v6947_v39, 4  ;;  %v6955_v51 = vrot.slane %v6953_v2, 5 }
 0x3b4   : > { %11488 = vperm.xlu1 %10301, %v11487_v13   ;;  %v6924_v16 = vshrl.u32 %v9631_v0, 16  ;;  %v6927_v38 = vshll.u32 %v9631_v0, 16  ;;  %v6959_v44 = vrot.slane %v6957_v41, 4  ;;  %v6933_v48 = vshll.u32 %v9632_v3, 16 }
 0x3b5   : > { %v11482_v60 = vpack.i.bf16 %v7368_v40, %v7367_v7  ;;  %v6965_v45 = vrot.slane %v6963_v27, 5  ;;  %v6950_v11 = vor.u32 %v6949_v36, %v6945_v54  ;;  %v6937_v18 = vshrl.u32 %v9632_v3, 16 }
 0x3b6   : > { %v6926_v21 = vrot.slane %v6924_v16, 4  ;;  %v6929_v30 = vrot.slane %v6927_v38, 5  ;;  %v6960_v37 = vor.u32 %v6959_v44, %v6955_v51  ;;  %v6935_v20 = vrot.slane %v6933_v48, 5  ;;  %v17337_v38 = vld [vmem:[#allocation45_spill] sm:$0xff] }
 0x3b7   : > { %11483 = vperm.xlu0 %10290, %v11482_v60   ;;  %v11191_v6 = vunpack.i.h.bf16 %v11189_v22  ;;  %v11190_v1 = vunpack.i.l.bf16 %v11189_v22  ;;  %v6951_v13 = vrot.slane %v6950_v11, 4  ;;  %v6939_v0 = vrot.slane %v6937_v18, 4  ;;  %v9638_v11 = vld [vmem:[%s12320_s5 + $0xe4] sm:$0xf] }
 0x3b8   : > { %v6930_v39 = vor.u32 %v6929_v30, %v6926_v21  ;;  %v11186_v2 = vunpack.i.h.bf16 %v11184_v12  ;;  %v6961_v7 = vrot.slane %v6960_v37, 4  ;;  %v11185_v27 = vunpack.i.l.bf16 %v11184_v12  ;;  %v9639_v12 = vld [vmem:[%s12320_s5 + $0xe8] sm:$0xf] }
 0x3b9   : > { %v5817_v40 = vmul.f32 %v11190_v1, %v15141_v24  ;;  %v5818_v41 = vmul.f32 %v11191_v6, %v15141_v24  ;;  %v6956_v3 = vsel %vm12424_vm2, %v6951_v13, %v6955_v51  ;;  %v6940_v36 = vor.u32 %v6939_v0, %v6935_v20  ;;  %v9640_v1 = vld [vmem:[%s12320_s5 + $0xec] sm:$0x1] }
 0x3ba   : > { %v6931_v44 = vrot.slane %v6930_v39, 4  ;;  %v5816_v16 = vmul.f32 %v11186_v2, %v15141_v24  ;;  %v15408_v22 = vadd.f32 %v5812_v4, %v17337_v38  ;;  %v6966_v60 = vsel %vm12424_vm2, %v6961_v7, %v6965_v45  ;;  %v9636_v39 = vld [vmem:[%s12320_s5 + $0xdc] sm:$0xf]  ;;  %v17339_v2 = vld [vmem:[#allocation47_spill] sm:$0xff] }
 0x3bb   : > { %v7373_v48 = vunpack.c.l.bf16 %v6956_v3  ;;  %v15413_v21 = vadd.f32 %v5817_v40, %v15022_v35  ;;  %v7374_v51 = vunpack.c.l.bf16 %v6966_v60  ;;  %v6941_v18 = vrot.slane %v6940_v36, 4 }
 0x3bc   : > { %v6936_v30 = vsel %vm12424_vm2, %v6931_v44, %v6935_v20  ;;  %v15419_v37 = vadd.f32 %v5818_v41, %v15016_v26  ;;  %v5815_v4 = vmul.f32 %v11185_v27, %v15141_v24  ;;  %v6987_v13 = vshll.u32 %v9638_v11, 16  ;;  %v9637_v20 = vld [vmem:[%s12320_s5 + $0xe0] sm:$0xf] }
 0x3bd   : > { %v7371_v6 = vunpack.c.l.bf16 %v6936_v30  ;;  %v6991_v45 = vshrl.u32 %v9638_v11, 16  ;;  %v11497_v0 = vpack.i.bf16 %v7374_v51, %v7373_v48  ;;  %v6946_v35 = vsel %vm12424_vm2, %v6941_v18, %v6945_v54  ;;  %v11199_v11 = vpop.permute.xlu1 %11198  ;;  %v11194_v54 = vpop.permute.xlu0 %11193 }
 0x3be   : > { %17338 = vst [vmem:[#allocation36_spill] sm:$0xff] %v15419_v37  ;;  %v15427_v7 = vadd.f32 %v5816_v16, %v17339_v2  ;;  %v6997_v40 = vshll.u32 %v9639_v12, 16  ;;  %v7372_v3 = vunpack.c.l.bf16 %v6946_v35  ;;  %v6989_v44 = vrot.slane %v6987_v13, 5 }
 0x3bf   : > { %v6993_v26 = vrot.slane %v6991_v45, 4  ;;  %v7001_v41 = vshrl.u32 %v9639_v12, 16  ;;  %11498 = vperm.xlu1 %10301, %v11497_v0   ;;  %v7007_v27 = vshll.u32 %v9640_v1, 16  ;;  %v6968_v38 = vshrl.u32 %v9636_v39, 16 }
 0x3c0   : > { %17340 = vst [vmem:[#allocation41_spill] sm:$0xff] %v15427_v7  ;;  %v6999_v36 = vrot.slane %v6997_v40, 5  ;;  %v6971_v60 = vshll.u32 %v9636_v39, 16  ;;  %v11492_v30 = vpack.i.bf16 %v7372_v3, %v7371_v6  ;;  %v6977_v37 = vshll.u32 %v9637_v20, 16 }
 0x3c1   : > { %v6994_v48 = vor.u32 %v6993_v26, %v6989_v44  ;;  %v7003_v51 = vrot.slane %v7001_v41, 4  ;;  %v7009_v18 = vrot.slane %v7007_v27, 5  ;;  %v6970_v16 = vrot.slane %v6968_v38, 4 }
 0x3c2   : > { %v6973_v2 = vrot.slane %v6971_v60, 5  ;;  %v6981_v7 = vshrl.u32 %v9637_v20, 16  ;;  %11493 = vperm.xlu0 %10290, %v11492_v30   ;;  %v6979_v12 = vrot.slane %v6977_v37, 5  ;;  %v11201_v45 = vunpack.i.h.bf16 %v11199_v11  ;;  %v9643_v37 = vld [vmem:[%s12320_s5 + $0xf8] sm:$0xf] }
 0x3c3   : > { %v6995_v35 = vrot.slane %v6994_v48, 4  ;;  %v7004_v13 = vor.u32 %v7003_v51, %v6999_v36  ;;  %v11200_v39 = vunpack.i.l.bf16 %v11199_v11  ;;  %v11196_v40 = vunpack.i.h.bf16 %v11194_v54  ;;  %v17341_v30 = vld [vmem:[#allocation13_spill] sm:$0xff]  ;;  %v17343_v48 = vld [vmem:[#allocation51_spill] sm:$0xff] }
 0x3c4   : > { %v6974_v0 = vor.u32 %v6973_v2, %v6970_v16  ;;  %v6983_v1 = vrot.slane %v6981_v7, 4  ;;  %v5822_v26 = vmul.f32 %v11201_v45, %v15141_v24  ;;  %v11195_v41 = vunpack.i.l.bf16 %v11194_v54  ;;  %v9644_v54 = vld [vmem:[%s12320_s5 + $0xfc] sm:$0xf]  ;;  %v9645_v45 = vld [vmem:[%s12320_s5 + $0x100] sm:$0x1] }
 0x3c5   : > { %v7000_v6 = vsel %vm12424_vm2, %v6995_v35, %v6999_v36  ;;  %v7005_v3 = vrot.slane %v7004_v13, 4  ;;  %v5821_v60 = vmul.f32 %v11200_v39, %v15141_v24  ;;  %v15436_v7 = vadd.f32 %v5815_v4, %v17341_v30 }
 0x3c6   : > { %v7377_v20 = vunpack.c.l.bf16 %v7000_v6  ;;  %v6975_v27 = vrot.slane %v6974_v0, 4  ;;  %v6984_v38 = vor.u32 %v6983_v1, %v6979_v12  ;;  %v15441_v36 = vadd.f32 %v5822_v26, %v17343_v48  ;;  %v17345_v0 = vld [vmem:[#allocation48_spill] sm:$0xff] }
 0x3c7   : > { %17342 = vst [vmem:[#allocation38_spill] sm:$0xff] %v15436_v7  ;;  %v7010_v11 = vsel %vm12424_vm2, %v7005_v3, %v7009_v18  ;;  %v5819_v51 = vmul.f32 %v11195_v41, %v15141_v24  ;;  %v5820_v13 = vmul.f32 %v11196_v40, %v15141_v24  ;;  %v15450_v1 = vadd.f32 %v5821_v60, %v17345_v0  ;;  %v17347_v18 = vld [vmem:[#allocation49_spill] sm:$0xff]  ;;  %v9641_v3 = vld [vmem:[%s12320_s5 + $0xf0] sm:$0xf] }
 0x3c8   : > { %17344 = vst [vmem:[#allocation43_spill] sm:$0xff] %v15441_v36  ;;  %v7378_v16 = vunpack.c.l.bf16 %v7010_v11  ;;  %v6980_v2 = vsel %vm12424_vm2, %v6975_v27, %v6979_v12  ;;  %v6985_v35 = vrot.slane %v6984_v38, 4  ;;  %v7031_v6 = vshll.u32 %v9643_v37, 16  ;;  %v9642_v12 = vld [vmem:[%s12320_s5 + $0xf4] sm:$0xf] }
 0x3c9   : > { %v7375_v4 = vunpack.c.l.bf16 %v6980_v2  ;;  %17346 = vst [vmem:[#allocation42_spill] sm:$0xff] %v15450_v1  ;;  %v15453_v39 = vadd.f32 %v5819_v51, %v17347_v18  ;;  %v7035_v30 = vshrl.u32 %v9643_v37, 16  ;;  %v7041_v11 = vshll.u32 %v9644_v54, 16  ;;  %v11209_v51 = vpop.permute.xlu1 %11208 }
 0x3ca   : > { %v11507_v26 = vpack.i.bf16 %v7378_v16, %v7377_v20  ;;  %v6990_v41 = vsel %vm12424_vm2, %v6985_v35, %v6989_v44  ;;  %v7033_v38 = vrot.slane %v7031_v6, 5  ;;  %v7045_v40 = vshrl.u32 %v9644_v54, 16  ;;  %v11204_v16 = vpop.permute.xlu0 %11203 }
 0x3cb   : > { %17348 = vst [vmem:[#allocation46_spill] sm:$0xff] %v15453_v39  ;;  %v7376_v27 = vunpack.c.l.bf16 %v6990_v41  ;;  %v7051_v48 = vshll.u32 %v9645_v45, 16  ;;  %v7037_v2 = vrot.slane %v7035_v30, 4  ;;  %v7043_v60 = vrot.slane %v7041_v11, 5 }
 0x3cc   : > { %11508 = vperm.xlu1 %10301, %v11507_v26   ;;  %v7012_v0 = vshrl.u32 %v9641_v3, 16  ;;  %v7015_v36 = vshll.u32 %v9641_v3, 16  ;;  %v7047_v39 = vrot.slane %v7045_v40, 4  ;;  %v7021_v20 = vshll.u32 %v9642_v12, 16 }
 0x3cd   : > { %v11502_v18 = vpack.i.bf16 %v7376_v27, %v7375_v4  ;;  %v7053_v1 = vrot.slane %v7051_v48, 5  ;;  %v7038_v7 = vor.u32 %v7037_v2, %v7033_v38  ;;  %v7025_v35 = vshrl.u32 %v9642_v12, 16 }
 0x3ce   : > { %v7014_v44 = vrot.slane %v7012_v0, 4  ;;  %v7017_v37 = vrot.slane %v7015_v36, 5  ;;  %v7048_v41 = vor.u32 %v7047_v39, %v7043_v60  ;;  %v7023_v54 = vrot.slane %v7021_v20, 5  ;;  %v17349_v0 = vld [vmem:[#allocation52_spill] sm:$0xff] }
 0x3cf   : > { %11503 = vperm.xlu0 %10290, %v11502_v18   ;;  %v11211_v45 = vunpack.i.h.bf16 %v11209_v51  ;;  %v11210_v6 = vunpack.i.l.bf16 %v11209_v51  ;;  %v7039_v26 = vrot.slane %v7038_v7, 4  ;;  %v7027_v3 = vrot.slane %v7025_v35, 4  ;;  %v9648_v7 = vld [vmem:[%s12320_s5 + $0x10c] sm:$0xf] }
 0x3d0   : > { %v7018_v30 = vor.u32 %v7017_v37, %v7014_v44  ;;  %v11206_v11 = vunpack.i.h.bf16 %v11204_v16  ;;  %v7049_v4 = vrot.slane %v7048_v41, 4  ;;  %v11205_v48 = vunpack.i.l.bf16 %v11204_v16  ;;  %v17351_v44 = vld [vmem:[#allocation17_spill] sm:$0xff]  ;;  %v9649_v16 = vld [vmem:[%s12320_s5 + $0x110] sm:$0xf] }
 0x3d1   : > { %v5825_v27 = vmul.f32 %v11210_v6, %v15141_v24  ;;  %v5826_v40 = vmul.f32 %v11211_v45, %v15141_v24  ;;  %v7044_v36 = vsel %vm12424_vm2, %v7039_v26, %v7043_v60  ;;  %v7028_v12 = vor.u32 %v7027_v3, %v7023_v54  ;;  %v17353_v45 = vld [vmem:[#allocation16_spill] sm:$0xff] }
 0x3d2   : > { %v7019_v39 = vrot.slane %v7018_v30, 4  ;;  %v5824_v2 = vmul.f32 %v11206_v11, %v15141_v24  ;;  %v15466_v51 = vadd.f32 %v5820_v13, %v17349_v0  ;;  %v7054_v18 = vsel %vm12424_vm2, %v7049_v4, %v7053_v1  ;;  %v9650_v30 = vld [vmem:[%s12320_s5 + $0x114] sm:$0x1]  ;;  %v9646_v11 = vld [vmem:[%s12320_s5 + $0x104] sm:$0xf] }
 0x3d3   : > { %v7381_v20 = vunpack.c.l.bf16 %v7044_v36  ;;  %v15471_v37 = vadd.f32 %v5825_v27, %v17351_v44  ;;  %v7382_v60 = vunpack.c.l.bf16 %v7054_v18  ;;  %v7029_v41 = vrot.slane %v7028_v12, 4  ;;  %v17355_v36 = vld [vmem:[#allocation19_spill] sm:$0xff] }
 0x3d4   : > { %17350 = vst [vmem:[#allocation44_spill] sm:$0xff] %v15466_v51  ;;  %v7024_v35 = vsel %vm12424_vm2, %v7019_v39, %v7023_v54  ;;  %v15477_v6 = vadd.f32 %v5826_v40, %v17353_v45  ;;  %v5823_v13 = vmul.f32 %v11205_v48, %v15141_v24  ;;  %v7075_v3 = vshll.u32 %v9648_v7, 16  ;;  %v9647_v54 = vld [vmem:[%s12320_s5 + $0x108] sm:$0xf] }
 0x3d5   : > { %17352 = vst [vmem:[#allocation45_spill] sm:$0xff] %v15471_v37  ;;  %v7379_v26 = vunpack.c.l.bf16 %v7024_v35  ;;  %v7079_v1 = vshrl.u32 %v9648_v7, 16  ;;  %v11517_v4 = vpack.i.bf16 %v7382_v60, %v7381_v20  ;;  %v7034_v27 = vsel %vm12424_vm2, %v7029_v41, %v7033_v38  ;;  %v11219_v7 = vpop.permute.xlu1 %11218  ;;  %v11214_v38 = vpop.permute.xlu0 %11213 }
 0x3d6   : > { %17354 = vst [vmem:[#allocation47_spill] sm:$0xff] %v15477_v6  ;;  %v15485_v0 = vadd.f32 %v5824_v2, %v17355_v36  ;;  %v7085_v18 = vshll.u32 %v9649_v16, 16  ;;  %v7380_v39 = vunpack.c.l.bf16 %v7034_v27  ;;  %v7077_v12 = vrot.slane %v7075_v3, 5 }
 0x3d7   : > { %v7081_v40 = vrot.slane %v7079_v1, 4  ;;  %v7089_v44 = vshrl.u32 %v9649_v16, 16  ;;  %11518 = vperm.xlu1 %10301, %v11517_v4   ;;  %v7095_v48 = vshll.u32 %v9650_v30, 16  ;;  %v7056_v45 = vshrl.u32 %v9646_v11, 16 }
 0x3d8   : > { %17356 = vst [vmem:[#allocation13_spill] sm:$0xff] %v15485_v0  ;;  %v7087_v35 = vrot.slane %v7085_v18, 5  ;;  %v7059_v6 = vshll.u32 %v9646_v11, 16  ;;  %v11512_v37 = vpack.i.bf16 %v7380_v39, %v7379_v26  ;;  %v7065_v51 = vshll.u32 %v9647_v54, 16 }
 0x3d9   : > { %v7082_v20 = vor.u32 %v7081_v40, %v7077_v12  ;;  %v7091_v60 = vrot.slane %v7089_v44, 4  ;;  %v7097_v41 = vrot.slane %v7095_v48, 5  ;;  %v7058_v2 = vrot.slane %v7056_v45, 4  ;;  %v11229_v45 = vpop.permute.xlu1 %11228 }
 0x3da   : > { %v7061_v36 = vrot.slane %v7059_v6, 5  ;;  %v7069_v0 = vshrl.u32 %v9647_v54, 16  ;;  %11513 = vperm.xlu0 %10290, %v11512_v37   ;;  %v7067_v16 = vrot.slane %v7065_v51, 5  ;;  %v11221_v1 = vunpack.i.h.bf16 %v11219_v7  ;;  %v9653_v51 = vld [vmem:[%s12320_s5 + $0x120] sm:$0xf] }
 0x3db   : > { %v7083_v27 = vrot.slane %v7082_v20, 4  ;;  %v7092_v3 = vor.u32 %v7091_v60, %v7087_v35  ;;  %v11220_v18 = vunpack.i.l.bf16 %v11219_v7  ;;  %v11216_v11 = vunpack.i.h.bf16 %v11214_v38 }
 0x3dc   : > { %v7062_v4 = vor.u32 %v7061_v36, %v7058_v2  ;;  %v7071_v30 = vrot.slane %v7069_v0, 4  ;;  %v5830_v40 = vmul.f32 %v11221_v1, %v15141_v24  ;;  %v11215_v44 = vunpack.i.l.bf16 %v11214_v38  ;;  %v9654_v38 = vld [vmem:[%s12320_s5 + $0x124] sm:$0xf]  ;;  %v9655_v1 = vld [vmem:[%s12320_s5 + $0x128] sm:$0x1] }
 0x3dd   : > { %v7088_v26 = vsel %vm12424_vm2, %v7083_v27, %v7087_v35  ;;  %v7093_v39 = vrot.slane %v7092_v3, 4  ;;  %v5829_v48 = vmul.f32 %v11220_v18, %v15141_v24  ;;  %v15494_v0 = vadd.f32 %v5823_v13, %v15074_v25  ;;  %v17358_v35 = vld [vmem:[#allocation18_spill] sm:$0xff]  ;;  %v17360_v13 = vld [vmem:[#allocation20_spill] sm:$0xff] }
 0x3de   : > { %v7385_v6 = vunpack.c.l.bf16 %v7088_v26  ;;  %v7063_v37 = vrot.slane %v7062_v4, 4  ;;  %v7072_v54 = vor.u32 %v7071_v30, %v7067_v16  ;;  %v15499_v20 = vadd.f32 %v5830_v40, %v17358_v35  ;;  %v9651_v26 = vld [vmem:[%s12320_s5 + $0x118] sm:$0xf] }
 0x3df   : > { %17357 = vst [vmem:[#allocation51_spill] sm:$0xff] %v15494_v0  ;;  %v7098_v7 = vsel %vm12424_vm2, %v7093_v39, %v7097_v41  ;;  %v5827_v60 = vmul.f32 %v11215_v44, %v15141_v24  ;;  %v5828_v3 = vmul.f32 %v11216_v11, %v15141_v24  ;;  %v15508_v4 = vadd.f32 %v5829_v48, %v17360_v13  ;;  %v17362_v41 = vld [vmem:[#allocation21_spill] sm:$0xff]  ;;  %v11224_v39 = vpop.permute.xlu0 %11223 }
 0x3e0   : > { %17359 = vst [vmem:[#allocation48_spill] sm:$0xff] %v15499_v20  ;;  %v7386_v2 = vunpack.c.l.bf16 %v7098_v7  ;;  %v7068_v36 = vsel %vm12424_vm2, %v7063_v37, %v7067_v16  ;;  %v7073_v27 = vrot.slane %v7072_v54, 4  ;;  %v7119_v18 = vshll.u32 %v9653_v51, 16  ;;  %v9652_v37 = vld [vmem:[%s12320_s5 + $0x11c] sm:$0xf] }
 0x3e1   : > { %v7383_v25 = vunpack.c.l.bf16 %v7068_v36  ;;  %17361 = vst [vmem:[#allocation49_spill] sm:$0xff] %v15508_v4  ;;  %v15511_v30 = vadd.f32 %v5827_v60, %v17362_v41  ;;  %v7123_v7 = vshrl.u32 %v9653_v51, 16  ;;  %v7129_v16 = vshll.u32 %v9654_v38, 16  ;;  %v15517_v41 = vpop.permute.xlu1 %11238 }
 0x3e2   : > { %v11527_v40 = vpack.i.bf16 %v7386_v2, %v7385_v6  ;;  %v7078_v44 = vsel %vm12424_vm2, %v7073_v27, %v7077_v12  ;;  %v7121_v11 = vrot.slane %v7119_v18, 5  ;;  %v7133_v35 = vshrl.u32 %v9654_v38, 16 }
 0x3e3   : > { %17363 = vst [vmem:[#allocation52_spill] sm:$0xff] %v15511_v30  ;;  %v7384_v54 = vunpack.c.l.bf16 %v7078_v44  ;;  %v7139_v36 = vshll.u32 %v9655_v1, 16  ;;  %v7125_v48 = vrot.slane %v7123_v7, 4  ;;  %v7131_v13 = vrot.slane %v7129_v16, 5 }
 0x3e4   : > { %11528 = vperm.xlu1 %10301, %v11527_v40   ;;  %v7100_v20 = vshrl.u32 %v9651_v26, 16  ;;  %v7103_v60 = vshll.u32 %v9651_v26, 16  ;;  %v7135_v4 = vrot.slane %v7133_v35, 4  ;;  %v7109_v2 = vshll.u32 %v9652_v37, 16  ;;  %v15519_v40 = vpop.permute.xlu0 %11233 }
 0x3e5   : > { %v11522_v30 = vpack.i.bf16 %v7384_v54, %v7383_v25  ;;  %v7141_v6 = vrot.slane %v7139_v36, 5  ;;  %v7126_v0 = vor.u32 %v7125_v48, %v7121_v11  ;;  %v7113_v27 = vshrl.u32 %v9652_v37, 16  ;;  %v9658_v48 = vld [vmem:[%s12320_s5 + $0x134] sm:$0xf] }
 0x3e6   : > { %v7102_v12 = vrot.slane %v7100_v20, 4  ;;  %v7105_v51 = vrot.slane %v7103_v60, 5  ;;  %v7136_v44 = vor.u32 %v7135_v4, %v7131_v13  ;;  %v7111_v18 = vrot.slane %v7109_v2, 5  ;;  %v17364_v60 = vld [vmem:[#allocation23_spill] sm:$0xff] }
 0x3e7   : > { %11523 = vperm.xlu0 %10290, %v11522_v30   ;;  %v11231_v38 = vunpack.i.h.bf16 %v11229_v45  ;;  %v11230_v1 = vunpack.i.l.bf16 %v11229_v45  ;;  %v7127_v7 = vrot.slane %v7126_v0, 4  ;;  %v7115_v16 = vrot.slane %v7113_v27, 4  ;;  %v15527_v0 = vpop.permute.xlu1 %11248 }
 0x3e8   : > { %v7106_v26 = vor.u32 %v7105_v51, %v7102_v12  ;;  %v11226_v25 = vunpack.i.h.bf16 %v11224_v39  ;;  %v7137_v54 = vrot.slane %v7136_v44, 4  ;;  %v11225_v36 = vunpack.i.l.bf16 %v11224_v39 }
 0x3e9   : > { %v5833_v35 = vmul.f32 %v11230_v1, %v15141_v24  ;;  %v5834_v20 = vmul.f32 %v11231_v38, %v15141_v24  ;;  %v7132_v4 = vsel %vm12424_vm2, %v7127_v7, %v7131_v13  ;;  %v7116_v37 = vor.u32 %v7115_v16, %v7111_v18  ;;  %v9659_v13 = vld [vmem:[%s12320_s5 + $0x138] sm:$0xf] }
 0x3ea   : > { %v7107_v30 = vrot.slane %v7106_v26, 4  ;;  %v5832_v45 = vmul.f32 %v11226_v25, %v15141_v24  ;;  %v15530_v2 = vadd.f32 %v5828_v3, %v17364_v60  ;;  %v7142_v12 = vsel %vm12424_vm2, %v7137_v54, %v7141_v6  ;;  %v9660_v26 = vld [vmem:[%s12320_s5 + $0x13c] sm:$0x1]  ;;  %v9656_v25 = vld [vmem:[%s12320_s5 + $0x12c] sm:$0xf]  ;;  %v15546_v54 = vpop.permute.xlu0 %11243 }
 0x3eb   : > { %v7389_v51 = vunpack.c.l.bf16 %v7132_v4  ;;  %v15535_v39 = vadd.f32 %v5833_v35, %v15101_v15  ;;  %v7390_v27 = vunpack.c.l.bf16 %v7142_v12  ;;  %v7117_v38 = vrot.slane %v7116_v37, 4 }
 0x3ec   : > { %v7112_v44 = vsel %vm12424_vm2, %v7107_v30, %v7111_v18  ;;  %v15541_v1 = vadd.f32 %v5834_v20, %v15096_v8  ;;  %v5831_v3 = vmul.f32 %v11225_v36, %v15141_v24  ;;  %v7163_v16 = vshll.u32 %v9658_v48, 16  ;;  %v9657_v30 = vld [vmem:[%s12320_s5 + $0x130] sm:$0xf] }
 0x3ed   : > { %17365 = vst [vmem:[#allocation17_spill] sm:$0xff] %v15535_v39  ;;  %v7387_v7 = vunpack.c.l.bf16 %v7112_v44  ;;  %v7167_v6 = vshrl.u32 %v9658_v48, 16  ;;  %v11537_v15 = vpack.i.bf16 %v7390_v27, %v7389_v51  ;;  %v7122_v35 = vsel %vm12424_vm2, %v7117_v38, %v7121_v11 }
 0x3ee   : > { %17366 = vst [vmem:[#allocation16_spill] sm:$0xff] %v15541_v1  ;;  %v15551_v4 = vadd.f32 %v5832_v45, %v15104_v29  ;;  %v7173_v18 = vshll.u32 %v9659_v13, 16  ;;  %v7388_v8 = vunpack.c.l.bf16 %v7122_v35  ;;  %v7165_v20 = vrot.slane %v7163_v16, 5  ;;  %v15554_v1 = vpop.permute.xlu1 %11258 }
 0x3ef   : > { %v7169_v37 = vrot.slane %v7167_v6, 4  ;;  %v7177_v60 = vshrl.u32 %v9659_v13, 16  ;;  %11538 = vperm.xlu1 %10301, %v11537_v15   ;;  %v7183_v12 = vshll.u32 %v9660_v26, 16  ;;  %v7144_v48 = vshrl.u32 %v9656_v25, 16  ;;  %v15557_v26 = vpop.permute.xlu0 %11253 }
 0x3f0   : > { %17367 = vst [vmem:[#allocation19_spill] sm:$0xff] %v15551_v4  ;;  %v7175_v36 = vrot.slane %v7173_v18, 5  ;;  %v7147_v44 = vshll.u32 %v9656_v25, 16  ;;  %v11532_v51 = vpack.i.bf16 %v7388_v8, %v7387_v7  ;;  %v7153_v11 = vshll.u32 %v9657_v30, 16 }
 0x3f1   : > { %v7170_v27 = vor.u32 %v7169_v37, %v7165_v20  ;;  %v7179_v39 = vrot.slane %v7177_v60, 4  ;;  %v7185_v38 = vrot.slane %v7183_v12, 5  ;;  %v7146_v29 = vrot.slane %v7144_v48, 4 }
 0x3f2   : > { %v7149_v45 = vrot.slane %v7147_v44, 5  ;;  %v7157_v4 = vshrl.u32 %v9657_v30, 16  ;;  %11533 = vperm.xlu0 %10290, %v11532_v51   ;;  %v7155_v13 = vrot.slane %v7153_v11, 5  ;;  %v11241_v6 = vunpack.i.h.bf16 %v15517_v41  ;;  %v9664_v11 = vld [vmem:[%s12320_s5 + $0x14c] sm:$0xf] }
 0x3f3   : > { %v7171_v35 = vrot.slane %v7170_v27, 4  ;;  %v7180_v16 = vor.u32 %v7179_v39, %v7175_v36  ;;  %v11240_v7 = vunpack.i.l.bf16 %v15517_v41  ;;  %v11236_v18 = vunpack.i.h.bf16 %v15519_v40  ;;  %v15567_v41 = vpop.permute.xlu1 %11268 }
 0x3f4   : > { %v7150_v25 = vor.u32 %v7149_v45, %v7146_v29  ;;  %v7159_v15 = vrot.slane %v7157_v4, 4  ;;  %v5838_v37 = vmul.f32 %v11241_v6, %v15141_v24  ;;  %v11235_v39 = vunpack.i.l.bf16 %v15519_v40  ;;  %v9663_v4 = vld [vmem:[%s12320_s5 + $0x148] sm:$0xf]  ;;  %v9665_v6 = vld [vmem:[%s12320_s5 + $0x150] sm:$0x1] }
 0x3f5   : > { %v7176_v8 = vsel %vm12424_vm2, %v7171_v35, %v7175_v36  ;;  %v7181_v30 = vrot.slane %v7180_v16, 4  ;;  %v5837_v44 = vmul.f32 %v11240_v7, %v15141_v24  ;;  %v15570_v51 = vadd.f32 %v5831_v3, %v15110_v53  ;;  %v17370_v3 = vld [vmem:[#allocation22_spill] sm:$0xff]  ;;  %v15590_v7 = vpop.permute.xlu0 %11263 }
 0x3f6   : > { %v7393_v60 = vunpack.c.l.bf16 %v7176_v8  ;;  %v7151_v12 = vrot.slane %v7150_v25, 4  ;;  %v7160_v48 = vor.u32 %v7159_v15, %v7155_v13  ;;  %v15575_v27 = vadd.f32 %v5838_v37, %v15119_v59  ;;  %v9661_v15 = vld [vmem:[%s12320_s5 + $0x140] sm:$0xf] }
 0x3f7   : > { %17368 = vst [vmem:[#allocation18_spill] sm:$0xff] %v15570_v51  ;;  %v7186_v36 = vsel %vm12424_vm2, %v7181_v30, %v7185_v38  ;;  %v5835_v40 = vmul.f32 %v11235_v39, %v15141_v24  ;;  %v5836_v16 = vmul.f32 %v11236_v18, %v15141_v24  ;;  %v15584_v25 = vadd.f32 %v5837_v44, %v17370_v3  ;;  %v9662_v39 = vld [vmem:[%s12320_s5 + $0x144] sm:$0xf]  ;;  %v15595_v3 = vpop.permute.xlu1 %11278 }
 0x3f8   : > { %17369 = vst [vmem:[#allocation20_spill] sm:$0xff] %v15575_v27  ;;  %v7394_v29 = vunpack.c.l.bf16 %v7186_v36  ;;  %v7156_v45 = vsel %vm12424_vm2, %v7151_v12, %v7155_v13  ;;  %v7161_v35 = vrot.slane %v7160_v48, 4  ;;  %v7207_v59 = vshll.u32 %v9663_v4, 16 }
 0x3f9   : > { %v7391_v53 = vunpack.c.l.bf16 %v7156_v45  ;;  %17371 = vst [vmem:[#allocation21_spill] sm:$0xff] %v15584_v25  ;;  %v15587_v38 = vadd.f32 %v5835_v40, %v15127_v43  ;;  %v7211_v13 = vshrl.u32 %v9663_v4, 16  ;;  %v7217_v37 = vshll.u32 %v9664_v11, 16 }
 0x3fa   : > { %v11547_v8 = vpack.i.bf16 %v7394_v29, %v7393_v60  ;;  %v7166_v30 = vsel %vm12424_vm2, %v7161_v35, %v7165_v20  ;;  %v7209_v12 = vrot.slane %v7207_v59, 5  ;;  %v7221_v48 = vshrl.u32 %v9664_v11, 16 }
 0x3fb   : > { %17372 = vst [vmem:[#allocation23_spill] sm:$0xff] %v15587_v38  ;;  %v7392_v18 = vunpack.c.l.bf16 %v7166_v30  ;;  %v7227_v36 = vshll.u32 %v9665_v6, 16  ;;  %v7213_v44 = vrot.slane %v7211_v13, 4  ;;  %v7219_v45 = vrot.slane %v7217_v37, 5 }
 0x3fc   : > { %11548 = vperm.xlu1 %10301, %v11547_v8   ;;  %v7188_v43 = vshrl.u32 %v9661_v15, 16  ;;  %v7191_v40 = vshll.u32 %v9661_v15, 16  ;;  %v7223_v27 = vrot.slane %v7221_v48, 4  ;;  %v7197_v29 = vshll.u32 %v9662_v39, 16  ;;  %v15599_v8 = vpop.permute.xlu0 %11273 }
 0x3fd   : > { %v11542_v38 = vpack.i.bf16 %v7392_v18, %v7391_v53  ;;  %v7229_v60 = vrot.slane %v7227_v36, 5  ;;  %v7214_v25 = vor.u32 %v7213_v44, %v7209_v12  ;;  %v7201_v35 = vshrl.u32 %v9662_v39, 16  ;;  %v9668_v44 = vld [vmem:[%s12320_s5 + $0x15c] sm:$0xf] }
 0x3fe   : > { %v7190_v20 = vrot.slane %v7188_v43, 4  ;;  %v7193_v4 = vrot.slane %v7191_v40, 5  ;;  %v7224_v30 = vor.u32 %v7223_v27, %v7219_v45  ;;  %v7199_v59 = vrot.slane %v7197_v29, 5  ;;  %v15609_v43 = vpop.permute.xlu1 %11288  ;;  %v17373_v40 = vld [vmem:[#allocation24_spill] sm:$0xff] }
 0x3ff   : > { %11543 = vperm.xlu0 %10290, %v11542_v38   ;;  %v11251_v11 = vunpack.i.h.bf16 %v15527_v0  ;;  %v11250_v6 = vunpack.i.l.bf16 %v15527_v0  ;;  %v7215_v15 = vrot.slane %v7214_v25, 4  ;;  %v7203_v53 = vrot.slane %v7201_v35, 4 }
 0x400   : > { %v7194_v13 = vor.u32 %v7193_v4, %v7190_v20  ;;  %v11246_v37 = vunpack.i.h.bf16 %v15546_v54  ;;  %v7225_v18 = vrot.slane %v7224_v30, 4  ;;  %v11245_v27 = vunpack.i.l.bf16 %v15546_v54 }
 0x401   : > { %v5841_v48 = vmul.f32 %v11250_v6, %v15141_v24  ;;  %v5842_v38 = vmul.f32 %v11251_v11, %v15141_v24  ;;  %v7220_v39 = vsel %vm12424_vm2, %v7215_v15, %v7219_v45  ;;  %v7204_v0 = vor.u32 %v7203_v53, %v7199_v59  ;;  %v9669_v45 = vld [vmem:[%s12320_s5 + $0x160] sm:$0xf]  ;;  %v17376_v6 = vld [vmem:[#allocation27_spill] sm:$0xff]  ;;  %v9670_v53 = vld [vmem:[%s12320_s5 + $0x164] sm:$0x1] }
 0x402   : > { %v7195_v36 = vrot.slane %v7194_v13, 4  ;;  %v5840_v25 = vmul.f32 %v11246_v37, %v15141_v24  ;;  %v15612_v29 = vadd.f32 %v5836_v16, %v17373_v40  ;;  %v7230_v20 = vsel %vm12424_vm2, %v7225_v18, %v7229_v60  ;;  %v9666_v18 = vld [vmem:[%s12320_s5 + $0x154] sm:$0xf]  ;;  %v17378_v40 = vld [vmem:[#allocation25_spill] sm:$0xff] }
 0x403   : > { %v7397_v4 = vunpack.c.l.bf16 %v7220_v39  ;;  %v15617_v54 = vadd.f32 %v5841_v48, %v15137_v46  ;;  %v7398_v35 = vunpack.c.l.bf16 %v7230_v20  ;;  %v7205_v11 = vrot.slane %v7204_v0, 4  ;;  %v15628_v39 = vpop.permute.xlu0 %11283 }
 0x404   : > { %17374 = vst [vmem:[#allocation22_spill] sm:$0xff] %v15612_v29  ;;  %v7200_v30 = vsel %vm12424_vm2, %v7195_v36, %v7199_v59  ;;  %v15623_v15 = vadd.f32 %v5842_v38, %v17376_v6  ;;  %v5839_v16 = vmul.f32 %v11245_v27, %v15141_v24  ;;  %v7251_v37 = vshll.u32 %v9668_v44, 16  ;;  %v9667_v36 = vld [vmem:[%s12320_s5 + $0x158] sm:$0xf] }
 0x405   : > { %17375 = vst [vmem:[#allocation24_spill] sm:$0xff] %v15617_v54  ;;  %v7395_v13 = vunpack.c.l.bf16 %v7200_v30  ;;  %v7255_v60 = vshrl.u32 %v9668_v44, 16  ;;  %v11557_v46 = vpack.i.bf16 %v7398_v35, %v7397_v4  ;;  %v7210_v48 = vsel %vm12424_vm2, %v7205_v11, %v7209_v12  ;;  %v15636_v54 = vpop.permute.xlu1 %11298  ;;  %v234_v11 = vld [vmem:[#allocation5 + $0x4] sm:$0x3] }
 0x406   : > { %17377 = vst [vmem:[#allocation27_spill] sm:$0xff] %v15623_v15  ;;  %v15633_v20 = vadd.f32 %v5840_v25, %v17378_v40  ;;  %v7261_v59 = vshll.u32 %v9669_v45, 16  ;;  %v7396_v38 = vunpack.c.l.bf16 %v7210_v48  ;;  %v7253_v0 = vrot.slane %v7251_v37, 5 }
 0x407   : > { %v7257_v30 = vrot.slane %v7255_v60, 4  ;;  %v7265_v6 = vshrl.u32 %v9669_v45, 16  ;;  %11558 = vperm.xlu1 %10301, %v11557_v46   ;;  %v7271_v27 = vshll.u32 %v9670_v53, 16  ;;  %v7232_v44 = vshrl.u32 %v9666_v18, 16  ;;  %v15639_v53 = vpop.permute.xlu0 %11293 }
 0x408   : > { %17379 = vst [vmem:[#allocation25_spill] sm:$0xff] %v15633_v20  ;;  %v7263_v24 = vrot.slane %v7261_v59, 5  ;;  %v7235_v15 = vshll.u32 %v9666_v18, 16  ;;  %v11552_v4 = vpack.i.bf16 %v7396_v38, %v7395_v13  ;;  %v7241_v12 = vshll.u32 %v9667_v36, 16 }
 0x409   : > { %v7258_v35 = vor.u32 %v7257_v30, %v7253_v0  ;;  %v7267_v29 = vrot.slane %v7265_v6, 4  ;;  %v7273_v25 = vrot.slane %v7271_v27, 5  ;;  %v7234_v40 = vrot.slane %v7232_v44, 4  ;;  %v17380_v44 = vld [vmem:[#allocation14_spill] sm:$0xff] }
 0x40a   : > { %v7237_v20 = vrot.slane %v7235_v15, 5  ;;  %v7245_v51 = vshrl.u32 %v9667_v36, 16  ;;  %11553 = vperm.xlu0 %10290, %v11552_v4   ;;  %v7243_v45 = vrot.slane %v7241_v12, 5  ;;  %v11261_v46 = vunpack.i.h.bf16 %v15554_v1 }
 0x40b   : > { %v7259_v37 = vrot.slane %v7258_v35, 4  ;;  %v7268_v60 = vor.u32 %v7267_v29, %v7263_v24  ;;  %v11260_v13 = vunpack.i.l.bf16 %v15554_v1  ;;  %v15642_v59 = vunpack.c.l.bf16 %v234_v11  ;;  %v17381_v1 = vld [vmem:[#allocation26_spill] sm:$0xff]  ;;  %v11860_v35 = vld [vmem:[%s12320_s5 + $0x30] sm:$0xf] }
 0x40c   : > { %v7238_v18 = vor.u32 %v7237_v20, %v7234_v40  ;;  %v7247_v48 = vrot.slane %v7245_v51, 4  ;;  %v11256_v38 = vunpack.i.h.bf16 %v15557_v26  ;;  %v11255_v29 = vunpack.i.l.bf16 %v15557_v26  ;;  %v15652_v20 = vpop.permute.xlu1 %11308  ;;  %v11861_v26 = vld [vmem:[%s12320_s5 + $0x34] sm:$0xf] }
 0x40d   : > { %v7264_v15 = vsel %vm12424_vm2, %v7259_v37, %v7263_v24  ;;  %v7269_v36 = vrot.slane %v7268_v60, 4  ;;  %v15650_v51 = vrot.slane %v15642_v59, %v17380_v44  ;;  %v15655_v4 = vadd.f32 %v5839_v16, %v17381_v1  ;;  %v11862_v44 = vld [vmem:[%s12320_s5 + $0x38] sm:$0x1] }
 0x40e   : > { %v7401_v30 = vunpack.c.l.bf16 %v7264_v15  ;;  %v7239_v6 = vrot.slane %v7238_v18, 4  ;;  %v7248_v27 = vor.u32 %v7247_v48, %v7243_v45  ;;  %v7956_v12 = vrot.slane %v11860_v35, 5 }
 0x40f   : > { %17382 = vst [vmem:[#allocation14_spill] sm:$0xff] %v15655_v4  ;;  %v7274_v24 = vsel %vm12424_vm2, %v7269_v36, %v7273_v25  ;;  %v7959_v11 = vrot.slane %v11861_v26, 5  ;;  %v6365_v18 = vmul.f32 %v11260_v13, %v15650_v51  ;;  %v6366_v15 = vmul.f32 %v11261_v46, %v15650_v51  ;;  %v9671_v25 = vld [vmem:[%s12320_s5 + $0x28] sm:$0xe]  ;;  %v15668_v36 = vpop.permute.xlu0 %11303  ;;  %v17383_v13 = vld [vmem:[#allocation28_spill] sm:$0xff] }
 0x410   : > { %v7402_v40 = vunpack.c.l.bf16 %v7274_v24  ;;  %v7244_v37 = vsel %vm12424_vm2, %v7239_v6, %v7243_v45  ;;  %v7249_v60 = vrot.slane %v7248_v27, 4  ;;  %v6363_v16 = vmul.f32 %v11255_v29, %v15650_v51  ;;  %v17384_v46 = vld [vmem:[#allocation31_spill] sm:$0xff] }
 0x411   : > { %v7399_v48 = vunpack.c.l.bf16 %v7244_v37  ;;  %v7962_v1 = vrot.slane %v11862_v44, 5  ;;  %v6364_v45 = vmul.f32 %v11256_v38, %v15650_v51  ;;  %v7958_v6 = vrot.slane %v7956_v12, 4  ;;  %v15685_v38 = vpop.permute.xlu1 %11318 }
 0x412   : > { %v11567_v35 = vpack.i.bf16 %v7402_v40, %v7401_v30  ;;  %v7254_v24 = vsel %vm12424_vm2, %v7249_v60, %v7253_v0  ;;  %v15674_v26 = vadd.f32 %v6365_v18, %v17383_v13  ;;  %v15677_v37 = vadd.f32 %v6366_v15, %v17384_v46  ;;  %v11863_v0 = vld [vmem:[%s12320_s5 + $0x2c] sm:$0xf] }
 0x413   : > { %v7400_v27 = vunpack.c.l.bf16 %v7254_v24  ;;  %v15680_v29 = vadd.f32 %v6363_v16, %v15163_v19  ;;  %v7960_v30 = vsel %vm12829_vm5, %v7958_v6, %v7959_v11  ;;  %v7961_v40 = vrot.slane %v7959_v11, 4  ;;  %v15696_v13 = vpop.permute.xlu0 %11313 }
 0x414   : > { %11568 = vperm.xlu1 %10301, %v11567_v35   ;;  %v9687_v23 = vrot.slane %v9671_v25, 9  ;;  %v7953_v60 = vrot.slane %v11863_v0, 5  ;;  %v8225_v4 = vunpack.c.l.bf16 %v7960_v30  ;;  %v11271_v18 = vunpack.i.h.bf16 %v15567_v41  ;;  %v11864_v30 = vld [vmem:[%s12320_s5 + $0x44] sm:$0xf] }
 0x415   : > { %17385 = vst [vmem:[#allocation26_spill] sm:$0xff] %v15680_v29  ;;  %v11562_v24 = vpack.i.bf16 %v7400_v27, %v7399_v48  ;;  %v11270_v15 = vunpack.i.l.bf16 %v15567_v41  ;;  %v7963_v19 = vsel %vm12829_vm5, %v7961_v40, %v7962_v1  ;;  %v11266_v25 = vunpack.i.h.bf16 %v15590_v7  ;;  %v11866_v29 = vld [vmem:[%s12320_s5 + $0x4c] sm:$0x1] }
 0x416   : > { %v7954_v16 = vsel %vm12829_vm5, %v9687_v23, %v7953_v60  ;;  %v7955_v11 = vrot.slane %v7953_v60, 4  ;;  %v8226_v35 = vunpack.c.l.bf16 %v7963_v19  ;;  %v6370_v27 = vmul.f32 %v11271_v18, %v15650_v51  ;;  %v9672_v23 = vld [vmem:[%s12320_s5 + $0x3c] sm:$0xe] }
 0x417   : > { %11563 = vperm.xlu0 %10290, %v11562_v24   ;;  %v8223_v6 = vunpack.c.l.bf16 %v7954_v16  ;;  %v6369_v48 = vmul.f32 %v11270_v15, %v15650_v51  ;;  %v11265_v1 = vunpack.i.l.bf16 %v15590_v7  ;;  %v6368_v46 = vmul.f32 %v11266_v25, %v15650_v51  ;;  %v17387_v15 = vld [vmem:[#allocation29_spill] sm:$0xff]  ;;  %v11865_v16 = vld [vmem:[%s12320_s5 + $0x48] sm:$0xf]  ;;  %v15715_v25 = vpop.permute.xlu1 %11328 }
 0x418   : > { %v7957_v41 = vsel %vm12829_vm5, %v7955_v11, %v7956_v12  ;;  %v7969_v40 = vrot.slane %v11864_v30, 5  ;;  %v15705_v0 = vadd.f32 %v6364_v45, %v15173_v58  ;;  %v11577_v60 = vpack.i.bf16 %v8226_v35, %v8225_v4  ;;  %v11867_v4 = vld [vmem:[%s12320_s5 + $0x40] sm:$0xf] }
 0x419   : > { %v8224_v24 = vunpack.c.l.bf16 %v7957_v41  ;;  %v15708_v18 = vadd.f32 %v6369_v48, %v15177_v52  ;;  %v15711_v19 = vadd.f32 %v6370_v27, %v17387_v15  ;;  %v6367_v7 = vmul.f32 %v11265_v1, %v15650_v51 }
 0x41a   : > { %v7971_v12 = vrot.slane %v7969_v40, 4  ;;  %v7972_v11 = vrot.slane %v11865_v16, 5  ;;  %11578 = vperm.xlu1 %10301, %v11577_v60   ;;  %v7975_v58 = vrot.slane %v11866_v29, 5  ;;  %v9688_v45 = vrot.slane %v9672_v23, 9  ;;  %v15728_v23 = vpop.permute.xlu0 %11323 }
 0x41b   : > { %v11572_v30 = vpack.i.bf16 %v8224_v24, %v8223_v6  ;;  %v7966_v35 = vrot.slane %v11867_v4, 5  ;;  %v15720_v52 = vadd.f32 %v6368_v46, %v15204_v57  ;;  %v11281_v41 = vunpack.i.h.bf16 %v15595_v3 }
 0x41c   : > { %v7973_v48 = vsel %vm12829_vm5, %v7971_v12, %v7972_v11  ;;  %v7974_v27 = vrot.slane %v7972_v11, 4  ;;  %v11280_v29 = vunpack.i.l.bf16 %v15595_v3  ;;  %v11276_v15 = vunpack.i.h.bf16 %v15599_v8  ;;  %v17389_v3 = vld [vmem:[#allocation30_spill] sm:$0xff] }
 0x41d   : > { %17388 = vst [vmem:[#allocation28_spill] sm:$0xff] %v15720_v52  ;;  %11573 = vperm.xlu0 %10290, %v11572_v30   ;;  %v8229_v1 = vunpack.c.l.bf16 %v7973_v48  ;;  %v7967_v6 = vsel %vm12829_vm5, %v9688_v45, %v7966_v35  ;;  %v7968_v60 = vrot.slane %v7966_v35, 4  ;;  %v6374_v24 = vmul.f32 %v11281_v41, %v15650_v51  ;;  %v11868_v35 = vld [vmem:[%s12320_s5 + $0x58] sm:$0xf]  ;;  %v15744_v41 = vpop.permute.xlu1 %11338 }
 0x41e   : > { %v7976_v57 = vsel %vm12829_vm5, %v7974_v27, %v7975_v58  ;;  %v8227_v46 = vunpack.c.l.bf16 %v7967_v6  ;;  %v6373_v11 = vmul.f32 %v11280_v29, %v15650_v51  ;;  %v11275_v30 = vunpack.i.l.bf16 %v15599_v8  ;;  %v9673_v27 = vld [vmem:[%s12320_s5 + $0x50] sm:$0xe]  ;;  %v11869_v8 = vld [vmem:[%s12320_s5 + $0x5c] sm:$0xf] }
 0x41f   : > { %v8230_v12 = vunpack.c.l.bf16 %v7976_v57  ;;  %v7970_v16 = vsel %vm12829_vm5, %v7968_v60, %v7969_v40  ;;  %v15739_v45 = vadd.f32 %v6367_v7, %v17389_v3  ;;  %v6372_v58 = vmul.f32 %v11276_v15, %v15650_v51  ;;  %v17391_v60 = vld [vmem:[#allocation32_spill] sm:$0xff]  ;;  %v11870_v15 = vld [vmem:[%s12320_s5 + $0x60] sm:$0x1] }
 0x420   : > { %v8228_v4 = vunpack.c.l.bf16 %v7970_v16  ;;  %v7982_v48 = vrot.slane %v11868_v35, 5  ;;  %v15747_v40 = vadd.f32 %v6373_v11, %v15215_v28  ;;  %v15750_v29 = vadd.f32 %v6374_v24, %v17391_v60  ;;  %v15759_v11 = vpop.permute.xlu0 %11333 }
 0x421   : > { %17390 = vst [vmem:[#allocation31_spill] sm:$0xff] %v15739_v45  ;;  %v11587_v6 = vpack.i.bf16 %v8230_v12, %v8229_v1  ;;  %v7985_v57 = vrot.slane %v11869_v8, 5  ;;  %v6371_v16 = vmul.f32 %v11275_v30, %v15650_v51  ;;  %v7988_v52 = vrot.slane %v11870_v15, 5  ;;  %v11871_v12 = vld [vmem:[%s12320_s5 + $0x54] sm:$0xf] }
 0x422   : > { %17392 = vst [vmem:[#allocation15_spill] sm:$0xff] %v15750_v29  ;;  %v11582_v7 = vpack.i.bf16 %v8228_v4, %v8227_v46  ;;  %v7984_v3 = vrot.slane %v7982_v48, 4  ;;  %v15756_v35 = vadd.f32 %v6372_v58, %v15236_v47  ;;  %v9689_v1 = vrot.slane %v9673_v27, 9  ;;  %v11874_v29 = vld [vmem:[%s12320_s5 + $0x74] sm:$0x1] }
 0x423   : > { %11588 = vperm.xlu1 %10301, %v11587_v6   ;;  %v7987_v45 = vrot.slane %v7985_v57, 4  ;;  %v7979_v28 = vrot.slane %v11871_v12, 5  ;;  %v11291_v46 = vunpack.i.h.bf16 %v15609_v43  ;;  %v11290_v30 = vunpack.i.l.bf16 %v15609_v43  ;;  %v9674_v12 = vld [vmem:[%s12320_s5 + $0x64] sm:$0xe] }
 0x424   : > { %17393 = vst [vmem:[#allocation29_spill] sm:$0xff] %v15756_v35  ;;  %11583 = vperm.xlu0 %10290, %v11582_v7   ;;  %v7986_v24 = vsel %vm12829_vm5, %v7984_v3, %v7985_v57  ;;  %v11286_v4 = vunpack.i.h.bf16 %v15628_v39  ;;  %v15772_v3 = vpop.permute.xlu1 %11348  ;;  %v11285_v15 = vunpack.i.l.bf16 %v15628_v39  ;;  %v15791_v35 = vpop.permute.xlu0 %11343  ;;  %vm9130_vm6 = vcmask 60416  }
 0x425   : > { %v7989_v47 = vsel %vm12829_vm5, %v7987_v45, %v7988_v52  ;;  %v8233_v58 = vunpack.c.l.bf16 %v7986_v24  ;;  %v7980_v27 = vsel %vm12829_vm5, %v9689_v1, %v7979_v28  ;;  %v7981_v6 = vrot.slane %v7979_v28, 4  ;;  %v11872_v45 = vld [vmem:[%s12320_s5 + $0x6c] sm:$0xf]  ;;  %v17394_v28 = vld [vmem:[#allocation53_spill] sm:$0xff] }
 0x426   : > { %v8234_v60 = vunpack.c.l.bf16 %v7989_v47  ;;  %v8231_v8 = vunpack.c.l.bf16 %v7980_v27  ;;  %v6377_v57 = vmul.f32 %v11290_v30, %v15650_v51  ;;  %v6378_v7 = vmul.f32 %v11291_v46, %v15650_v51 }
 0x427   : > { %v7983_v43 = vsel %vm12829_vm5, %v7981_v6, %v7982_v48  ;;  %v6376_v52 = vmul.f32 %v11286_v4, %v15650_v51  ;;  %v7995_v1 = vrot.slane %v11872_v45, 5  ;;  %v15781_v24 = vadd.f32 %v6371_v16, %v17394_v28  ;;  %v11873_v4 = vld [vmem:[%s12320_s5 + $0x70] sm:$0xf] }
 0x428   : > { %v11597_v30 = vpack.i.bf16 %v8234_v60, %v8233_v58  ;;  %v8232_v47 = vunpack.c.l.bf16 %v7983_v43  ;;  %v15784_v46 = vadd.f32 %v6377_v57, %v15240_v34  ;;  %v15787_v27 = vadd.f32 %v6378_v7, %v15243_v42  ;;  %v11875_v58 = vld [vmem:[%s12320_s5 + $0x68] sm:$0xf] }
 0x429   : > { %v6375_v39 = vmul.f32 %v11285_v15, %v15650_v51  ;;  %v7997_v48 = vrot.slane %v7995_v1, 4  ;;  %v7998_v6 = vrot.slane %v11873_v4, 5  ;;  %v8001_v16 = vrot.slane %v11874_v29, 5 }
 0x42a   : > { %11598 = vperm.xlu1 %10301, %v11597_v30   ;;  %v11592_v45 = vpack.i.bf16 %v8232_v47, %v8231_v8  ;;  %v9690_v28 = vrot.slane %v9674_v12, 9  ;;  %v7992_v60 = vrot.slane %v11875_v58, 5  ;;  %v15796_v34 = vadd.f32 %v6376_v52, %v15253_v49  ;;  %v15804_v12 = vpop.permute.xlu1 %11358  ;;  %v11876_v58 = vld [vmem:[%s12320_s5 + $0x80] sm:$0xf] }
 0x42b   : > { %v7999_v42 = vsel %vm12829_vm5, %v7997_v48, %v7998_v6  ;;  %v8000_v57 = vrot.slane %v7998_v6, 4  ;;  %v11301_v7 = vunpack.i.h.bf16 %v15636_v54  ;;  %v11300_v29 = vunpack.i.l.bf16 %v15636_v54 }
 0x42c   : > { %11593 = vperm.xlu0 %10290, %v11592_v45   ;;  %v8237_v43 = vunpack.c.l.bf16 %v7999_v42  ;;  %v7993_v8 = vsel %vm12829_vm5, %v9690_v28, %v7992_v60  ;;  %v7994_v15 = vrot.slane %v7992_v60, 4  ;;  %v11296_v47 = vunpack.i.h.bf16 %v15639_v53  ;;  %v9675_v42 = vld [vmem:[%s12320_s5 + $0x78] sm:$0xe] }
 0x42d   : > { %v8002_v49 = vsel %vm12829_vm5, %v8000_v57, %v8001_v16  ;;  %v8235_v52 = vunpack.c.l.bf16 %v7993_v8  ;;  %v6382_v30 = vmul.f32 %v11301_v7, %v15650_v51  ;;  %v6381_v6 = vmul.f32 %v11300_v29, %v15650_v51  ;;  %v15820_v57 = vpop.permute.xlu0 %11353 }
 0x42e   : > { %v8238_v48 = vunpack.c.l.bf16 %v8002_v49  ;;  %v7996_v4 = vsel %vm12829_vm5, %v7994_v15, %v7995_v1  ;;  %v11295_v45 = vunpack.i.l.bf16 %v15639_v53  ;;  %v15815_v54 = vadd.f32 %v6375_v39, %v15262_v50  ;;  %v11877_v53 = vld [vmem:[%s12320_s5 + $0x84] sm:$0xf]  ;;  %v11878_v49 = vld [vmem:[%s12320_s5 + $0x88] sm:$0x1] }
 0x42f   : > { %v8236_v28 = vunpack.c.l.bf16 %v7996_v4  ;;  %v6380_v16 = vmul.f32 %v11296_v47, %v15650_v51  ;;  %v8008_v60 = vrot.slane %v11876_v58, 5  ;;  %v15823_v1 = vadd.f32 %v6381_v6, %v15276_v10  ;;  %v15835_v6 = vpop.permute.xlu1 %11368 }
 0x430   : > { %v11607_v7 = vpack.i.bf16 %v8238_v48, %v8237_v43  ;;  %v15826_v8 = vadd.f32 %v6382_v30, %v15267_v5  ;;  %v8011_v15 = vrot.slane %v11877_v53, 5  ;;  %v6379_v39 = vmul.f32 %v11295_v45, %v15650_v51  ;;  %v11879_v48 = vld [vmem:[%s12320_s5 + $0x7c] sm:$0xf] }
 0x431   : > { %v11602_v50 = vpack.i.bf16 %v8236_v28, %v8235_v52  ;;  %v8010_v29 = vrot.slane %v8008_v60, 4  ;;  %v8014_v47 = vrot.slane %v11878_v49, 5  ;;  %v15832_v4 = vadd.f32 %v6380_v16, %v15292_v55 }
 0x432   : > { %11608 = vperm.xlu1 %10301, %v11607_v7   ;;  %v8013_v58 = vrot.slane %v8011_v15, 4  ;;  %v9691_v43 = vrot.slane %v9675_v42, 9  ;;  %v8005_v10 = vrot.slane %v11879_v48, 5  ;;  %v11311_v52 = vunpack.i.h.bf16 %v15652_v20  ;;  %v9676_v48 = vld [vmem:[%s12320_s5 + $0x8c] sm:$0xe] }
 0x433   : > { %17395 = vst [vmem:[#allocation30_spill] sm:$0xff] %v15832_v4  ;;  %11603 = vperm.xlu0 %10290, %v11602_v50   ;;  %v8012_v5 = vsel %vm12829_vm5, %v8010_v29, %v8011_v15  ;;  %v11310_v30 = vunpack.i.l.bf16 %v15652_v20  ;;  %v11306_v45 = vunpack.i.h.bf16 %v15668_v36  ;;  %v15848_v29 = vpop.permute.xlu0 %11363  ;;  %v11305_v49 = vunpack.i.l.bf16 %v15668_v36  ;;  %v11882_v4 = vld [vmem:[%s12320_s5 + $0x9c] sm:$0x1] }
 0x434   : > { %v8015_v55 = vsel %vm12829_vm5, %v8013_v58, %v8014_v47  ;;  %v8241_v28 = vunpack.c.l.bf16 %v8012_v5  ;;  %v8006_v16 = vsel %vm12829_vm5, %v9691_v43, %v8005_v10  ;;  %v8007_v42 = vrot.slane %v8005_v10, 4  ;;  %v11880_v58 = vld [vmem:[%s12320_s5 + $0x94] sm:$0xf] }
 0x435   : > { %v8242_v7 = vunpack.c.l.bf16 %v8015_v55  ;;  %v8239_v53 = vunpack.c.l.bf16 %v8006_v16  ;;  %v6385_v15 = vmul.f32 %v11310_v30, %v15650_v51  ;;  %v6386_v50 = vmul.f32 %v11311_v52, %v15650_v51 }
 0x436   : > { %v8009_v20 = vsel %vm12829_vm5, %v8007_v42, %v8008_v60  ;;  %v6384_v47 = vmul.f32 %v11306_v45, %v15650_v51  ;;  %v8021_v43 = vrot.slane %v11880_v58, 5  ;;  %v15857_v10 = vadd.f32 %v6379_v39, %v15279_v56  ;;  %v11881_v45 = vld [vmem:[%s12320_s5 + $0x98] sm:$0xf]  ;;  %v15867_v42 = vpop.permute.xlu1 %11378 }
 0x437   : > { %v11617_v5 = vpack.i.bf16 %v8242_v7, %v8241_v28  ;;  %v8240_v30 = vunpack.c.l.bf16 %v8009_v20  ;;  %v15860_v52 = vadd.f32 %v6385_v15, %v15297_v32  ;;  %v15863_v55 = vadd.f32 %v6386_v50, %v15303_v14  ;;  %v11883_v28 = vld [vmem:[%s12320_s5 + $0x90] sm:$0xf] }
 0x438   : > { %v6383_v36 = vmul.f32 %v11305_v49, %v15650_v51  ;;  %v8023_v60 = vrot.slane %v8021_v43, 4  ;;  %v8024_v16 = vrot.slane %v11881_v45, 5  ;;  %v8027_v56 = vrot.slane %v11882_v4, 5 }
 0x439   : > { %11618 = vperm.xlu1 %10301, %v11617_v5   ;;  %v11612_v58 = vpack.i.bf16 %v8240_v30, %v8239_v53  ;;  %v9692_v39 = vrot.slane %v9676_v48, 9  ;;  %v8018_v7 = vrot.slane %v11883_v28, 5  ;;  %v15872_v32 = vadd.f32 %v6384_v47, %v15311_v33  ;;  %v15880_v48 = vpop.permute.xlu0 %11373  ;;  %v11884_v28 = vld [vmem:[%s12320_s5 + $0xa8] sm:$0xf] }
 0x43a   : > { %v8025_v14 = vsel %vm12829_vm5, %v8023_v60, %v8024_v16  ;;  %v8026_v15 = vrot.slane %v8024_v16, 4  ;;  %v11321_v50 = vunpack.i.h.bf16 %v15685_v38  ;;  %v11320_v4 = vunpack.i.l.bf16 %v15685_v38 }
 0x43b   : > { %11613 = vperm.xlu0 %10290, %v11612_v58   ;;  %v8245_v20 = vunpack.c.l.bf16 %v8025_v14  ;;  %v8019_v53 = vsel %vm12829_vm5, %v9692_v39, %v8018_v7  ;;  %v8020_v49 = vrot.slane %v8018_v7, 4  ;;  %v11316_v30 = vunpack.i.h.bf16 %v15696_v13  ;;  %v9677_v14 = vld [vmem:[%s12320_s5 + $0xa0] sm:$0xe] }
 0x43c   : > { %v8028_v33 = vsel %vm12829_vm5, %v8026_v15, %v8027_v56  ;;  %v8243_v47 = vunpack.c.l.bf16 %v8019_v53  ;;  %v6390_v5 = vmul.f32 %v11321_v50, %v15650_v51  ;;  %v6389_v16 = vmul.f32 %v11320_v4, %v15650_v51  ;;  %v15896_v15 = vpop.permute.xlu1 %11388 }
 0x43d   : > { %v8246_v60 = vunpack.c.l.bf16 %v8028_v33  ;;  %v8022_v45 = vsel %vm12829_vm5, %v8020_v49, %v8021_v43  ;;  %v11315_v58 = vunpack.i.l.bf16 %v15696_v13  ;;  %v15891_v38 = vadd.f32 %v6383_v36, %v15320_v31  ;;  %v11885_v13 = vld [vmem:[%s12320_s5 + $0xac] sm:$0xf]  ;;  %v11886_v33 = vld [vmem:[%s12320_s5 + $0xb0] sm:$0x1] }
 0x43e   : > { %v8244_v39 = vunpack.c.l.bf16 %v8022_v45  ;;  %v6388_v56 = vmul.f32 %v11316_v30, %v15650_v51  ;;  %v8034_v7 = vrot.slane %v11884_v28, 5  ;;  %v15899_v43 = vadd.f32 %v6389_v16, %v15334_v9  ;;  %v15911_v16 = vpop.permute.xlu0 %11383 }
 0x43f   : > { %v11627_v50 = vpack.i.bf16 %v8246_v60, %v8245_v20  ;;  %v15902_v53 = vadd.f32 %v6390_v5, %v15325_v63  ;;  %v8037_v49 = vrot.slane %v11885_v13, 5  ;;  %v6387_v36 = vmul.f32 %v11315_v58, %v15650_v51  ;;  %v11887_v60 = vld [vmem:[%s12320_s5 + $0xa4] sm:$0xf] }
 0x440   : > { %17396 = vst [vmem:[#allocation32_spill] sm:$0xff] %v15899_v43  ;;  %v11622_v31 = vpack.i.bf16 %v8244_v39, %v8243_v47  ;;  %v8036_v4 = vrot.slane %v8034_v7, 4  ;;  %v8040_v30 = vrot.slane %v11886_v33, 5  ;;  %v15908_v45 = vadd.f32 %v6388_v56, %v15350_v62  ;;  %v11890_v43 = vld [vmem:[%s12320_s5 + $0xc4] sm:$0x1] }
 0x441   : > { %17397 = vst [vmem:[#allocation53_spill] sm:$0xff] %v15902_v53  ;;  %11628 = vperm.xlu1 %10301, %v11627_v50   ;;  %v8039_v28 = vrot.slane %v8037_v49, 4  ;;  %v9693_v20 = vrot.slane %v9677_v14, 9  ;;  %v8031_v9 = vrot.slane %v11887_v60, 5  ;;  %v11331_v47 = vunpack.i.h.bf16 %v15715_v25  ;;  %v9678_v60 = vld [vmem:[%s12320_s5 + $0xb4] sm:$0xe] }
 0x442   : > { %17398 = vst [vmem:[#allocation54_spill] sm:$0xff] %v15908_v45  ;;  %11623 = vperm.xlu0 %10290, %v11622_v31   ;;  %v8038_v63 = vsel %vm12829_vm5, %v8036_v4, %v8037_v49  ;;  %v11330_v5 = vunpack.i.l.bf16 %v15715_v25  ;;  %v11326_v58 = vunpack.i.h.bf16 %v15728_v23  ;;  %v15924_v4 = vpop.permute.xlu1 %11398  ;;  %v11325_v33 = vunpack.i.l.bf16 %v15728_v23  ;;  %v15943_v53 = vpop.permute.xlu0 %11393 }
 0x443   : > { %v8041_v62 = vsel %vm12829_vm5, %v8039_v28, %v8040_v30  ;;  %v8249_v39 = vunpack.c.l.bf16 %v8038_v63  ;;  %v8032_v56 = vsel %vm12829_vm5, %v9693_v20, %v8031_v9  ;;  %v8033_v14 = vrot.slane %v8031_v9, 4  ;;  %v11888_v28 = vld [vmem:[%s12320_s5 + $0xbc] sm:$0xf] }
 0x444   : > { %v8250_v50 = vunpack.c.l.bf16 %v8041_v62  ;;  %v8247_v13 = vunpack.c.l.bf16 %v8032_v56  ;;  %v6393_v49 = vmul.f32 %v11330_v5, %v15650_v51  ;;  %v6394_v31 = vmul.f32 %v11331_v47, %v15650_v51  ;;  %v17399_v47 = vld [vmem:[#allocation33_spill] sm:$0xff]  ;;  %v17401_v56 = vld [vmem:[#allocation35_spill] sm:$0xff] }
 0x445   : > { %v8035_v25 = vsel %vm12829_vm5, %v8033_v14, %v8034_v7  ;;  %v6392_v30 = vmul.f32 %v11326_v58, %v15650_v51  ;;  %v8047_v20 = vrot.slane %v11888_v28, 5  ;;  %v15933_v9 = vadd.f32 %v6387_v36, %v15337_v17  ;;  %v11889_v58 = vld [vmem:[%s12320_s5 + $0xc0] sm:$0xf] }
 0x446   : > { %v11637_v63 = vpack.i.bf16 %v8250_v50, %v8249_v39  ;;  %v8248_v5 = vunpack.c.l.bf16 %v8035_v25  ;;  %v15936_v62 = vadd.f32 %v6393_v49, %v17399_v47  ;;  %v15939_v45 = vadd.f32 %v6394_v31, %v17401_v56  ;;  %v11891_v39 = vld [vmem:[%s12320_s5 + $0xb8] sm:$0xf]  ;;  %v17403_v25 = vld [vmem:[#allocation39_spill] sm:$0xff] }
 0x447   : > { %v6391_v23 = vmul.f32 %v11325_v33, %v15650_v51  ;;  %v8049_v7 = vrot.slane %v8047_v20, 4  ;;  %v8050_v14 = vrot.slane %v11889_v58, 5  ;;  %v8053_v17 = vrot.slane %v11890_v43, 5 }
 0x448   : > { %17400 = vst [vmem:[#allocation33_spill] sm:$0xff] %v15936_v62  ;;  %17402 = vst [vmem:[#allocation35_spill] sm:$0xff] %v15939_v45  ;;  %11638 = vperm.xlu1 %10301, %v11637_v63   ;;  %v11632_v28 = vpack.i.bf16 %v8248_v5, %v8247_v13  ;;  %v9694_v36 = vrot.slane %v9678_v60, 9  ;;  %v8044_v50 = vrot.slane %v11891_v39, 5  ;;  %v15948_v49 = vadd.f32 %v6392_v30, %v17403_v25  ;;  %v15956_v60 = vpop.permute.xlu1 %11408  ;;  %v11892_v25 = vld [vmem:[%s12320_s5 + $0xd0] sm:$0xf] }
 0x449   : > { %v8051_v31 = vsel %vm12829_vm5, %v8049_v7, %v8050_v14  ;;  %v8052_v47 = vrot.slane %v8050_v14, 4  ;;  %v11341_v33 = vunpack.i.h.bf16 %v15744_v41  ;;  %v11340_v43 = vunpack.i.l.bf16 %v15744_v41  ;;  %v11906_v45 = vld [vmem:[%s12320_s5 + $0x114] sm:$0x1] }
 0x44a   : > { %17404 = vst [vmem:[#allocation39_spill] sm:$0xff] %v15948_v49  ;;  %11633 = vperm.xlu0 %10290, %v11632_v28   ;;  %v8253_v56 = vunpack.c.l.bf16 %v8051_v31  ;;  %v8045_v13 = vsel %vm12829_vm5, %v9694_v36, %v8044_v50  ;;  %v8046_v63 = vrot.slane %v8044_v50, 4  ;;  %v11336_v58 = vunpack.i.h.bf16 %v15759_v11 }
 0x44b   : > { %v8054_v30 = vsel %vm12829_vm5, %v8052_v47, %v8053_v17  ;;  %v8251_v5 = vunpack.c.l.bf16 %v8045_v13  ;;  %v6398_v7 = vmul.f32 %v11341_v33, %v15650_v51  ;;  %v6397_v36 = vmul.f32 %v11340_v43, %v15650_v51  ;;  %v9679_v47 = vld [vmem:[%s12320_s5 + $0xc8] sm:$0xe]  ;;  %v15972_v33 = vpop.permute.xlu0 %11403 }
 0x44c   : > { %v8254_v14 = vunpack.c.l.bf16 %v8054_v30  ;;  %v8048_v28 = vsel %vm12829_vm5, %v8046_v63, %v8047_v20  ;;  %v11335_v39 = vunpack.i.l.bf16 %v15759_v11  ;;  %v15967_v41 = vadd.f32 %v6391_v23, %v15378_v61  ;;  %v17406_v30 = vld [vmem:[#allocation12_spill] sm:$0xff]  ;;  %v17408_v63 = vld [vmem:[#allocation34_spill] sm:$0xff] }
 0x44d   : > { %v8252_v50 = vunpack.c.l.bf16 %v8048_v28  ;;  %v6396_v17 = vmul.f32 %v11336_v58, %v15650_v51  ;;  %v8060_v31 = vrot.slane %v11892_v25, 5  ;;  %v15975_v20 = vadd.f32 %v6397_v36, %v17406_v30  ;;  %v11893_v11 = vld [vmem:[%s12320_s5 + $0xd4] sm:$0xf]  ;;  %v11894_v58 = vld [vmem:[%s12320_s5 + $0xd8] sm:$0x1]  ;;  %v15987_v30 = vpop.permute.xlu1 %11418 }
 0x44e   : > { %17405 = vst [vmem:[#allocation55_spill] sm:$0xff] %v15967_v41  ;;  %v11647_v13 = vpack.i.bf16 %v8254_v14, %v8253_v56  ;;  %v15978_v43 = vadd.f32 %v6398_v7, %v17408_v63  ;;  %v8063_v49 = vrot.slane %v11893_v11, 5  ;;  %v6395_v23 = vmul.f32 %v11335_v39, %v15650_v51  ;;  %v11895_v14 = vld [vmem:[%s12320_s5 + $0xcc] sm:$0xf] }
 0x44f   : > { %17407 = vst [vmem:[#allocation12_spill] sm:$0xff] %v15975_v20  ;;  %v11642_v61 = vpack.i.bf16 %v8252_v50, %v8251_v5  ;;  %v8062_v28 = vrot.slane %v8060_v31, 4  ;;  %v8066_v41 = vrot.slane %v11894_v58, 5  ;;  %v15984_v25 = vadd.f32 %v6396_v17, %v15408_v22  ;;  %v11898_v20 = vld [vmem:[%s12320_s5 + $0xec] sm:$0x1] }
 0x450   : > { %17409 = vst [vmem:[#allocation34_spill] sm:$0xff] %v15978_v43  ;;  %11648 = vperm.xlu1 %10301, %v11647_v13   ;;  %v8065_v62 = vrot.slane %v8063_v49, 4  ;;  %v9695_v56 = vrot.slane %v9679_v47, 9  ;;  %v8057_v36 = vrot.slane %v11895_v14, 5  ;;  %v11351_v5 = vunpack.i.h.bf16 %v15772_v3  ;;  %v9680_v14 = vld [vmem:[%s12320_s5 + $0xdc] sm:$0xe] }
 0x451   : > { %17410 = vst [vmem:[#allocation56_spill] sm:$0xff] %v15984_v25  ;;  %11643 = vperm.xlu0 %10290, %v11642_v61   ;;  %v8064_v7 = vsel %vm12829_vm5, %v8062_v28, %v8063_v49  ;;  %v11350_v39 = vunpack.i.l.bf16 %v15772_v3  ;;  %v11346_v50 = vunpack.i.h.bf16 %v15791_v35  ;;  %v16000_v28 = vpop.permute.xlu0 %11413  ;;  %v11345_v58 = vunpack.i.l.bf16 %v15791_v35  ;;  %v16019_v43 = vpop.permute.xlu1 %11428 }
 0x452   : > { %v8067_v22 = vsel %vm12829_vm5, %v8065_v62, %v8066_v41  ;;  %v8257_v17 = vunpack.c.l.bf16 %v8064_v7  ;;  %v8058_v47 = vsel %vm12829_vm5, %v9695_v56, %v8057_v36  ;;  %v8059_v13 = vrot.slane %v8057_v36, 4  ;;  %v11896_v41 = vld [vmem:[%s12320_s5 + $0xe4] sm:$0xf] }
 0x453   : > { %v8258_v63 = vunpack.c.l.bf16 %v8067_v22  ;;  %v8255_v11 = vunpack.c.l.bf16 %v8058_v47  ;;  %v6401_v49 = vmul.f32 %v11350_v39, %v15650_v51  ;;  %v6402_v61 = vmul.f32 %v11351_v5, %v15650_v51  ;;  %v17411_v36 = vld [vmem:[#allocation37_spill] sm:$0xff]  ;;  %v17414_v47 = vld [vmem:[#allocation36_spill] sm:$0xff] }
 0x454   : > { %v8061_v3 = vsel %vm12829_vm5, %v8059_v13, %v8060_v31  ;;  %v6400_v62 = vmul.f32 %v11346_v50, %v15650_v51  ;;  %v8073_v56 = vrot.slane %v11896_v41, 5  ;;  %v16009_v7 = vadd.f32 %v6395_v23, %v17411_v36  ;;  %v11897_v50 = vld [vmem:[%s12320_s5 + $0xe8] sm:$0xf] }
 0x455   : > { %v11657_v39 = vpack.i.bf16 %v8258_v63, %v8257_v17  ;;  %v8256_v22 = vunpack.c.l.bf16 %v8061_v3  ;;  %v16012_v5 = vadd.f32 %v6401_v49, %v15413_v21  ;;  %v16015_v25 = vadd.f32 %v6402_v61, %v17414_v47  ;;  %v11899_v17 = vld [vmem:[%s12320_s5 + $0xe0] sm:$0xf] }
 0x456   : > { %17412 = vst [vmem:[#allocation37_spill] sm:$0xff] %v16009_v7  ;;  %v6399_v35 = vmul.f32 %v11345_v58, %v15650_v51  ;;  %v8075_v31 = vrot.slane %v8073_v56, 4  ;;  %v8076_v13 = vrot.slane %v11897_v50, 5  ;;  %v8079_v23 = vrot.slane %v11898_v20, 5  ;;  %v17416_v3 = vld [vmem:[#allocation41_spill] sm:$0xff] }
 0x457   : > { %17413 = vst [vmem:[#allocation57_spill] sm:$0xff] %v16012_v5  ;;  %17415 = vst [vmem:[#allocation36_spill] sm:$0xff] %v16015_v25  ;;  %11658 = vperm.xlu1 %10301, %v11657_v39   ;;  %v11652_v41 = vpack.i.bf16 %v8256_v22, %v8255_v11  ;;  %v9696_v36 = vrot.slane %v9680_v14, 9  ;;  %v8070_v63 = vrot.slane %v11899_v17, 5  ;;  %v16024_v21 = vadd.f32 %v6400_v62, %v17416_v3  ;;  %v16032_v14 = vpop.permute.xlu0 %11423 }
 0x458   : > { %v8077_v49 = vsel %vm12829_vm5, %v8075_v31, %v8076_v13  ;;  %v8078_v61 = vrot.slane %v8076_v13, 4  ;;  %v11361_v58 = vunpack.i.h.bf16 %v15804_v12  ;;  %v11360_v20 = vunpack.i.l.bf16 %v15804_v12  ;;  %v17418_v12 = vld [vmem:[#allocation38_spill] sm:$0xff] }
 0x459   : > { %17417 = vst [vmem:[#allocation41_spill] sm:$0xff] %v16024_v21  ;;  %11653 = vperm.xlu0 %10290, %v11652_v41   ;;  %v8261_v47 = vunpack.c.l.bf16 %v8077_v49  ;;  %v8071_v11 = vsel %vm12829_vm5, %v9696_v36, %v8070_v63  ;;  %v8072_v39 = vrot.slane %v8070_v63, 4  ;;  %v11356_v50 = vunpack.i.h.bf16 %v15820_v57  ;;  %v11900_v49 = vld [vmem:[%s12320_s5 + $0xf8] sm:$0xf]  ;;  %v17420_v21 = vld [vmem:[#allocation42_spill] sm:$0xff] }
 0x45a   : > { %v8080_v62 = vsel %vm12829_vm5, %v8078_v61, %v8079_v23  ;;  %v8259_v22 = vunpack.c.l.bf16 %v8071_v11  ;;  %v6406_v31 = vmul.f32 %v11361_v58, %v15650_v51  ;;  %v6405_v36 = vmul.f32 %v11360_v20, %v15650_v51  ;;  %v9681_v58 = vld [vmem:[%s12320_s5 + $0xf0] sm:$0xe]  ;;  %v16048_v11 = vpop.permute.xlu1 %11438 }
 0x45b   : > { %v8262_v13 = vunpack.c.l.bf16 %v8080_v62  ;;  %v8074_v41 = vsel %vm12829_vm5, %v8072_v39, %v8073_v56  ;;  %v11355_v17 = vunpack.i.l.bf16 %v15820_v57  ;;  %v16043_v63 = vadd.f32 %v6399_v35, %v17418_v12  ;;  %v17422_v39 = vld [vmem:[#allocation43_spill] sm:$0xff]  ;;  %v11901_v57 = vld [vmem:[%s12320_s5 + $0xfc] sm:$0xf] }
 0x45c   : > { %v8260_v3 = vunpack.c.l.bf16 %v8074_v41  ;;  %v6404_v23 = vmul.f32 %v11356_v50, %v15650_v51  ;;  %v8086_v61 = vrot.slane %v11900_v49, 5  ;;  %v16051_v56 = vadd.f32 %v6405_v36, %v17420_v21  ;;  %v11902_v50 = vld [vmem:[%s12320_s5 + $0x100] sm:$0x1]  ;;  %v17424_v49 = vld [vmem:[#allocation44_spill] sm:$0xff]  ;;  %v16063_v36 = vpop.permute.xlu0 %11433 }
 0x45d   : > { %17419 = vst [vmem:[#allocation38_spill] sm:$0xff] %v16043_v63  ;;  %v11667_v62 = vpack.i.bf16 %v8262_v13, %v8261_v47  ;;  %v16054_v20 = vadd.f32 %v6406_v31, %v17422_v39  ;;  %v8089_v5 = vrot.slane %v11901_v57, 5  ;;  %v6403_v41 = vmul.f32 %v11355_v17, %v15650_v51  ;;  %v11903_v13 = vld [vmem:[%s12320_s5 + $0xf4] sm:$0xf] }
 0x45e   : > { %17421 = vst [vmem:[#allocation42_spill] sm:$0xff] %v16051_v56  ;;  %v11662_v35 = vpack.i.bf16 %v8260_v3, %v8259_v22  ;;  %v8088_v12 = vrot.slane %v8086_v61, 4  ;;  %v8092_v63 = vrot.slane %v11902_v50, 5  ;;  %v16060_v25 = vadd.f32 %v6404_v23, %v17424_v49  ;;  %v16076_v50 = vpop.permute.xlu1 %11448 }
 0x45f   : > { %17423 = vst [vmem:[#allocation43_spill] sm:$0xff] %v16054_v20  ;;  %11668 = vperm.xlu1 %10301, %v11667_v62   ;;  %v8091_v7 = vrot.slane %v8089_v5, 4  ;;  %v9697_v47 = vrot.slane %v9681_v58, 9  ;;  %v8083_v21 = vrot.slane %v11903_v13, 5  ;;  %v11371_v22 = vunpack.i.h.bf16 %v15835_v6  ;;  %v9682_v13 = vld [vmem:[%s12320_s5 + $0x104] sm:$0xe] }
 0x460   : > { %17425 = vst [vmem:[#allocation44_spill] sm:$0xff] %v16060_v25  ;;  %11663 = vperm.xlu0 %10290, %v11662_v35   ;;  %v8090_v31 = vsel %vm12829_vm5, %v8088_v12, %v8089_v5  ;;  %v11370_v17 = vunpack.i.l.bf16 %v15835_v6  ;;  %v11366_v3 = vunpack.i.h.bf16 %v15848_v29  ;;  %v11365_v49 = vunpack.i.l.bf16 %v15848_v29  ;;  %v17430_v25 = vld [vmem:[#allocation47_spill] sm:$0xff]  ;;  %v16095_v56 = vpop.permute.xlu0 %11443 }
 0x461   : > { %v8093_v23 = vsel %vm12829_vm5, %v8091_v7, %v8092_v63  ;;  %v8265_v58 = vunpack.c.l.bf16 %v8090_v31  ;;  %v8084_v62 = vsel %vm12829_vm5, %v9697_v47, %v8083_v21  ;;  %v8085_v39 = vrot.slane %v8083_v21, 4  ;;  %v11904_v63 = vld [vmem:[%s12320_s5 + $0x10c] sm:$0xf] }
 0x462   : > { %v8266_v57 = vunpack.c.l.bf16 %v8093_v23  ;;  %v8263_v35 = vunpack.c.l.bf16 %v8084_v62  ;;  %v6409_v5 = vmul.f32 %v11370_v17, %v15650_v51  ;;  %v6410_v12 = vmul.f32 %v11371_v22, %v15650_v51  ;;  %v17426_v21 = vld [vmem:[#allocation46_spill] sm:$0xff]  ;;  %v17428_v22 = vld [vmem:[#allocation45_spill] sm:$0xff] }
 0x463   : > { %v8087_v6 = vsel %vm12829_vm5, %v8085_v39, %v8086_v61  ;;  %v6408_v7 = vmul.f32 %v11366_v3, %v15650_v51  ;;  %v8099_v47 = vrot.slane %v11904_v63, 5  ;;  %v16085_v31 = vadd.f32 %v6403_v41, %v17426_v21  ;;  %v11905_v3 = vld [vmem:[%s12320_s5 + $0x110] sm:$0xf] }
 0x464   : > { %v11677_v17 = vpack.i.bf16 %v8266_v57, %v8265_v58  ;;  %v8264_v23 = vunpack.c.l.bf16 %v8087_v6  ;;  %v16088_v62 = vadd.f32 %v6409_v5, %v17428_v22  ;;  %v16091_v20 = vadd.f32 %v6410_v12, %v17430_v25  ;;  %v11907_v58 = vld [vmem:[%s12320_s5 + $0x108] sm:$0xf]  ;;  %v17432_v6 = vld [vmem:[#allocation13_spill] sm:$0xff] }
 0x465   : > { %17427 = vst [vmem:[#allocation46_spill] sm:$0xff] %v16085_v31  ;;  %v6407_v29 = vmul.f32 %v11365_v49, %v15650_v51  ;;  %v8101_v61 = vrot.slane %v8099_v47, 4  ;;  %v8102_v39 = vrot.slane %v11905_v3, 5  ;;  %v8105_v41 = vrot.slane %v11906_v45, 5  ;;  %v11914_v31 = vld [vmem:[%s12320_s5 + $0x13c] sm:$0x1] }
 0x466   : > { %17429 = vst [vmem:[#allocation45_spill] sm:$0xff] %v16088_v62  ;;  %17431 = vst [vmem:[#allocation47_spill] sm:$0xff] %v16091_v20  ;;  %11678 = vperm.xlu1 %10301, %v11677_v17   ;;  %v11672_v63 = vpack.i.bf16 %v8264_v23, %v8263_v35  ;;  %v9698_v21 = vrot.slane %v9682_v13, 9  ;;  %v8096_v57 = vrot.slane %v11907_v58, 5  ;;  %v16100_v5 = vadd.f32 %v6408_v7, %v17432_v6  ;;  %v16108_v13 = vpop.permute.xlu1 %11458 }
 0x467   : > { %v8103_v25 = vsel %vm12829_vm5, %v8101_v61, %v8102_v39  ;;  %v8104_v12 = vrot.slane %v8102_v39, 4  ;;  %v11381_v49 = vunpack.i.h.bf16 %v15867_v42  ;;  %v11380_v45 = vunpack.i.l.bf16 %v15867_v42  ;;  %v17434_v42 = vld [vmem:[#allocation51_spill] sm:$0xff] }
 0x468   : > { %17433 = vst [vmem:[#allocation13_spill] sm:$0xff] %v16100_v5  ;;  %11673 = vperm.xlu0 %10290, %v11672_v63   ;;  %v8269_v22 = vunpack.c.l.bf16 %v8103_v25  ;;  %v8097_v35 = vsel %vm12829_vm5, %v9698_v21, %v8096_v57  ;;  %v8098_v17 = vrot.slane %v8096_v57, 4  ;;  %v11376_v3 = vunpack.i.h.bf16 %v15880_v48  ;;  %v11908_v25 = vld [vmem:[%s12320_s5 + $0x120] sm:$0xf] }
 0x469   : > { %v8106_v7 = vsel %vm12829_vm5, %v8104_v12, %v8105_v41  ;;  %v8267_v23 = vunpack.c.l.bf16 %v8097_v35  ;;  %v6414_v61 = vmul.f32 %v11381_v49, %v15650_v51  ;;  %v6413_v21 = vmul.f32 %v11380_v45, %v15650_v51  ;;  %v9683_v49 = vld [vmem:[%s12320_s5 + $0x118] sm:$0xe]  ;;  %v16124_v35 = vpop.permute.xlu0 %11453 }
 0x46a   : > { %v8270_v39 = vunpack.c.l.bf16 %v8106_v7  ;;  %v8100_v63 = vsel %vm12829_vm5, %v8098_v17, %v8099_v47  ;;  %v11375_v58 = vunpack.i.l.bf16 %v15880_v48  ;;  %v16119_v57 = vadd.f32 %v6407_v29, %v17434_v42  ;;  %v17436_v5 = vld [vmem:[#allocation49_spill] sm:$0xff]  ;;  %v17438_v17 = vld [vmem:[#allocation48_spill] sm:$0xff] }
 0x46b   : > { %v8268_v6 = vunpack.c.l.bf16 %v8100_v63  ;;  %v6412_v41 = vmul.f32 %v11376_v3, %v15650_v51  ;;  %v8112_v12 = vrot.slane %v11908_v25, 5  ;;  %v16127_v47 = vadd.f32 %v6413_v21, %v17436_v5  ;;  %v11909_v48 = vld [vmem:[%s12320_s5 + $0x124] sm:$0xf]  ;;  %v11910_v3 = vld [vmem:[%s12320_s5 + $0x128] sm:$0x1]  ;;  %v16139_v21 = vpop.permute.xlu1 %11468 }
 0x46c   : > { %17435 = vst [vmem:[#allocation51_spill] sm:$0xff] %v16119_v57  ;;  %v11687_v7 = vpack.i.bf16 %v8270_v39, %v8269_v22  ;;  %v16130_v45 = vadd.f32 %v6414_v61, %v17438_v17  ;;  %v8115_v62 = vrot.slane %v11909_v48, 5  ;;  %v6411_v63 = vmul.f32 %v11375_v58, %v15650_v51  ;;  %v11911_v39 = vld [vmem:[%s12320_s5 + $0x11c] sm:$0xf] }
 0x46d   : > { %17437 = vst [vmem:[#allocation49_spill] sm:$0xff] %v16127_v47  ;;  %v11682_v29 = vpack.i.bf16 %v8268_v6, %v8267_v23  ;;  %v8114_v42 = vrot.slane %v8112_v12, 4  ;;  %v8118_v57 = vrot.slane %v11910_v3, 5  ;;  %v16136_v25 = vadd.f32 %v6412_v41, %v15530_v2 }
 0x46e   : > { %17439 = vst [vmem:[#allocation48_spill] sm:$0xff] %v16130_v45  ;;  %11688 = vperm.xlu1 %10301, %v11687_v7   ;;  %v8117_v20 = vrot.slane %v8115_v62, 4  ;;  %v9699_v22 = vrot.slane %v9683_v49, 9  ;;  %v8109_v5 = vrot.slane %v11911_v39, 5  ;;  %v11391_v23 = vunpack.i.h.bf16 %v15896_v15  ;;  %v9684_v39 = vld [vmem:[%s12320_s5 + $0x12c] sm:$0xe] }
 0x46f   : > { %17440 = vst [vmem:[#allocation58_spill] sm:$0xff] %v16136_v25  ;;  %11683 = vperm.xlu0 %10290, %v11682_v29   ;;  %v8116_v61 = vsel %vm12829_vm5, %v8114_v42, %v8115_v62  ;;  %v11390_v58 = vunpack.i.l.bf16 %v15896_v15  ;;  %v11386_v6 = vunpack.i.h.bf16 %v15911_v16  ;;  %v16152_v42 = vpop.permute.xlu0 %11463  ;;  %v11385_v3 = vunpack.i.l.bf16 %v15911_v16  ;;  %v17445_v25 = vld [vmem:[#allocation16_spill] sm:$0xff]  ;;  %v16171_v47 = vpop.permute.xlu1 %11478 }
 0x470   : > { %v8119_v2 = vsel %vm12829_vm5, %v8117_v20, %v8118_v57  ;;  %v8273_v41 = vunpack.c.l.bf16 %v8116_v61  ;;  %v8110_v49 = vsel %vm12829_vm5, %v9699_v22, %v8109_v5  ;;  %v8111_v7 = vrot.slane %v8109_v5, 4  ;;  %v11912_v57 = vld [vmem:[%s12320_s5 + $0x134] sm:$0xf] }
 0x471   : > { %v8274_v17 = vunpack.c.l.bf16 %v8119_v2  ;;  %v8271_v48 = vunpack.c.l.bf16 %v8110_v49  ;;  %v6417_v62 = vmul.f32 %v11390_v58, %v15650_v51  ;;  %v6418_v29 = vmul.f32 %v11391_v23, %v15650_v51  ;;  %v17441_v5 = vld [vmem:[#allocation52_spill] sm:$0xff]  ;;  %v17443_v23 = vld [vmem:[#allocation17_spill] sm:$0xff] }
 0x472   : > { %v8113_v15 = vsel %vm12829_vm5, %v8111_v7, %v8112_v12  ;;  %v6416_v20 = vmul.f32 %v11386_v6, %v15650_v51  ;;  %v8125_v22 = vrot.slane %v11912_v57, 5  ;;  %v16161_v61 = vadd.f32 %v6411_v63, %v17441_v5  ;;  %v11913_v6 = vld [vmem:[%s12320_s5 + $0x138] sm:$0xf] }
 0x473   : > { %v11697_v58 = vpack.i.bf16 %v8274_v17, %v8273_v41  ;;  %v8272_v2 = vunpack.c.l.bf16 %v8113_v15  ;;  %v16164_v49 = vadd.f32 %v6417_v62, %v17443_v23  ;;  %v16167_v45 = vadd.f32 %v6418_v29, %v17445_v25  ;;  %v11915_v41 = vld [vmem:[%s12320_s5 + $0x130] sm:$0xf] }
 0x474   : > { %17442 = vst [vmem:[#allocation52_spill] sm:$0xff] %v16161_v61  ;;  %v6415_v16 = vmul.f32 %v11385_v3, %v15650_v51  ;;  %v8127_v12 = vrot.slane %v8125_v22, 4  ;;  %v8128_v7 = vrot.slane %v11913_v6, 5  ;;  %v8131_v63 = vrot.slane %v11914_v31, 5  ;;  %v17447_v15 = vld [vmem:[#allocation19_spill] sm:$0xff] }
 0x475   : > { %17444 = vst [vmem:[#allocation17_spill] sm:$0xff] %v16164_v49  ;;  %17446 = vst [vmem:[#allocation16_spill] sm:$0xff] %v16167_v45  ;;  %11698 = vperm.xlu1 %10301, %v11697_v58   ;;  %v11692_v57 = vpack.i.bf16 %v8272_v2, %v8271_v48  ;;  %v9700_v5 = vrot.slane %v9684_v39, 9  ;;  %v8122_v17 = vrot.slane %v11915_v41, 5  ;;  %v16176_v62 = vadd.f32 %v6416_v20, %v17447_v15  ;;  %v16184_v39 = vpop.permute.xlu0 %11473 }
 0x476   : > { %v8129_v25 = vsel %vm12829_vm5, %v8127_v12, %v8128_v7  ;;  %v8130_v29 = vrot.slane %v8128_v7, 4  ;;  %v11401_v3 = vunpack.i.h.bf16 %v15924_v4  ;;  %v11400_v31 = vunpack.i.l.bf16 %v15924_v4  ;;  %v17449_v4 = vld [vmem:[#allocation18_spill] sm:$0xff] }
 0x477   : > { %17448 = vst [vmem:[#allocation19_spill] sm:$0xff] %v16176_v62  ;;  %11693 = vperm.xlu0 %10290, %v11692_v57   ;;  %v8277_v23 = vunpack.c.l.bf16 %v8129_v25  ;;  %v8123_v48 = vsel %vm12829_vm5, %v9700_v5, %v8122_v17  ;;  %v8124_v58 = vrot.slane %v8122_v17, 4  ;;  %v11396_v6 = vunpack.i.h.bf16 %v15943_v53  ;;  %v11916_v25 = vld [vmem:[%s12320_s5 + $0x148] sm:$0xf]  ;;  %v17451_v62 = vld [vmem:[#allocation21_spill] sm:$0xff] }
 0x478   : > { %v8132_v20 = vsel %vm12829_vm5, %v8130_v29, %v8131_v63  ;;  %v8275_v2 = vunpack.c.l.bf16 %v8123_v48  ;;  %v6422_v12 = vmul.f32 %v11401_v3, %v15650_v51  ;;  %v6421_v5 = vmul.f32 %v11400_v31, %v15650_v51  ;;  %v9685_v3 = vld [vmem:[%s12320_s5 + $0x140] sm:$0xe]  ;;  %v16200_v48 = vpop.permute.xlu1 %11488 }
 0x479   : > { %v8278_v7 = vunpack.c.l.bf16 %v8132_v20  ;;  %v8126_v57 = vsel %vm12829_vm5, %v8124_v58, %v8125_v22  ;;  %v11395_v41 = vunpack.i.l.bf16 %v15943_v53  ;;  %v16195_v17 = vadd.f32 %v6415_v16, %v17449_v4  ;;  %v17453_v58 = vld [vmem:[#allocation20_spill] sm:$0xff]  ;;  %v11917_v53 = vld [vmem:[%s12320_s5 + $0x14c] sm:$0xf] }
 0x47a   : > { %v8276_v15 = vunpack.c.l.bf16 %v8126_v57  ;;  %v6420_v63 = vmul.f32 %v11396_v6, %v15650_v51  ;;  %v8138_v29 = vrot.slane %v11916_v25, 5  ;;  %v16203_v22 = vadd.f32 %v6421_v5, %v17451_v62  ;;  %v11918_v6 = vld [vmem:[%s12320_s5 + $0x150] sm:$0x1]  ;;  %v17455_v25 = vld [vmem:[#allocation22_spill] sm:$0xff]  ;;  %v16215_v5 = vpop.permute.xlu0 %11483 }
 0x47b   : > { %17450 = vst [vmem:[#allocation18_spill] sm:$0xff] %v16195_v17  ;;  %v11707_v20 = vpack.i.bf16 %v8278_v7, %v8277_v23  ;;  %v16206_v31 = vadd.f32 %v6422_v12, %v17453_v58  ;;  %v8141_v49 = vrot.slane %v11917_v53, 5  ;;  %v6419_v57 = vmul.f32 %v11395_v41, %v15650_v51  ;;  %v11919_v7 = vld [vmem:[%s12320_s5 + $0x144] sm:$0xf] }
 0x47c   : > { %17452 = vst [vmem:[#allocation21_spill] sm:$0xff] %v16203_v22  ;;  %v11702_v16 = vpack.i.bf16 %v8276_v15, %v8275_v2  ;;  %v8140_v4 = vrot.slane %v8138_v29, 4  ;;  %v8144_v17 = vrot.slane %v11918_v6, 5  ;;  %v16212_v45 = vadd.f32 %v6420_v63, %v17455_v25  ;;  %v16228_v6 = vpop.permute.xlu1 %11498 }
 0x47d   : > { %17454 = vst [vmem:[#allocation20_spill] sm:$0xff] %v16206_v31  ;;  %11708 = vperm.xlu1 %10301, %v11707_v20   ;;  %v8143_v61 = vrot.slane %v8141_v49, 4  ;;  %v9701_v23 = vrot.slane %v9685_v3, 9  ;;  %v8135_v62 = vrot.slane %v11919_v7, 5  ;;  %v11411_v2 = vunpack.i.h.bf16 %v15956_v60  ;;  %17457 = vst [vmem:[#allocation59_spill] sm:$0xff] %v16228_v6 }
 0x47e   : > { %17456 = vst [vmem:[#allocation22_spill] sm:$0xff] %v16212_v45  ;;  %11703 = vperm.xlu0 %10290, %v11702_v16   ;;  %v8142_v12 = vsel %vm12829_vm5, %v8140_v4, %v8141_v49  ;;  %v11410_v41 = vunpack.i.l.bf16 %v15956_v60  ;;  %v11406_v15 = vunpack.i.h.bf16 %v15972_v33  ;;  %v11405_v25 = vunpack.i.l.bf16 %v15972_v33  ;;  %v9686_v7 = vld [vmem:[%s12320_s5 + $0x154] sm:$0xe]  ;;  %v16247_v22 = vpop.permute.xlu0 %11493  ;;  %v11922_v6 = vld [vmem:[%s12320_s5 + $0x164] sm:$0x1] }
 0x47f   : > { %v8145_v63 = vsel %vm12829_vm5, %v8143_v61, %v8144_v17  ;;  %v8281_v3 = vunpack.c.l.bf16 %v8142_v12  ;;  %v8136_v20 = vsel %vm12829_vm5, %v9701_v23, %v8135_v62  ;;  %v8137_v58 = vrot.slane %v8135_v62, 4  ;;  %v11920_v17 = vld [vmem:[%s12320_s5 + $0x15c] sm:$0xf]  ;;  %v17458_v62 = vld [vmem:[#allocation23_spill] sm:$0xff] }
 0x480   : > { %v8282_v53 = vunpack.c.l.bf16 %v8145_v63  ;;  %v8279_v16 = vunpack.c.l.bf16 %v8136_v20  ;;  %v6425_v49 = vmul.f32 %v11410_v41, %v15650_v51  ;;  %v6426_v4 = vmul.f32 %v11411_v2, %v15650_v51  ;;  %v17459_v2 = vld [vmem:[#allocation24_spill] sm:$0xff]  ;;  %v17460_v45 = vld [vmem:[#allocation27_spill] sm:$0xff] }
 0x481   : > { %v8139_v60 = vsel %vm12829_vm5, %v8137_v58, %v8138_v29  ;;  %v6424_v61 = vmul.f32 %v11406_v15, %v15650_v51  ;;  %v8151_v23 = vrot.slane %v11920_v17, 5  ;;  %v16237_v12 = vadd.f32 %v6419_v57, %v17458_v62  ;;  %v11921_v15 = vld [vmem:[%s12320_s5 + $0x160] sm:$0xf] }
 0x482   : > { %v11717_v41 = vpack.i.bf16 %v8282_v53, %v8281_v3  ;;  %v8280_v63 = vunpack.c.l.bf16 %v8139_v60  ;;  %v16240_v20 = vadd.f32 %v6425_v49, %v17459_v2  ;;  %v16243_v31 = vadd.f32 %v6426_v4, %v17460_v45  ;;  %v11923_v3 = vld [vmem:[%s12320_s5 + $0x158] sm:$0xf]  ;;  %v17462_v2 = vld [vmem:[#allocation50_spill] sm:$0xff] }
 0x483   : > { %v6423_v33 = vmul.f32 %v11405_v25, %v15650_v51  ;;  %v8153_v29 = vrot.slane %v8151_v23, 4  ;;  %v8154_v58 = vrot.slane %v11921_v15, 5  ;;  %v8157_v57 = vrot.slane %v11922_v6, 5  ;;  %v17461_v60 = vld [vmem:[#allocation25_spill] sm:$0xff] }
 0x484   : > { %11718 = vperm.xlu1 %10301, %v11717_v41   ;;  %v11712_v17 = vpack.i.bf16 %v8280_v63, %v8279_v16  ;;  %v9702_v62 = vrot.slane %v9686_v7, 9  ;;  %v8148_v53 = vrot.slane %v11923_v3, 5  ;;  %v16252_v49 = vadd.f32 %v6424_v61, %v17461_v60  ;;  %v16260_v7 = vpop.permute.xlu1 %11508 }
 0x485   : > { %v8155_v45 = vsel %vm12829_vm5, %v8153_v29, %v8154_v58  ;;  %v8156_v4 = vrot.slane %v8154_v58, 4  ;;  %v11421_v51 = vunpack.i.h.bf16 %v15987_v30  ;;  %v11420_v6 = vunpack.i.l.bf16 %v15987_v30 }
 0x486   : > { %11713 = vperm.xlu0 %10290, %v11712_v17   ;;  %v8285_v25 = vunpack.c.l.bf16 %v8155_v45  ;;  %v8149_v41 = vsel %vm12829_vm5, %v9702_v62, %v8148_v53  ;;  %v8150_v16 = vrot.slane %v8148_v53, 4  ;;  %v16266_v29 = vrot.slane %v15642_v59, %v17462_v2  ;;  %v16276_v45 = vpop.permute.xlu0 %11503 }
 0x487   : > { %v8158_v61 = vsel %vm12829_vm5, %v8156_v4, %v8157_v57  ;;  %v8283_v63 = vunpack.c.l.bf16 %v8149_v41  ;;  %v11416_v15 = vunpack.i.h.bf16 %v16000_v28  ;;  %v11415_v62 = vunpack.i.l.bf16 %v16000_v28 }
 0x488   : > { %v8286_v58 = vunpack.c.l.bf16 %v8158_v61  ;;  %v8152_v17 = vsel %vm12829_vm5, %v8150_v16, %v8151_v23  ;;  %v11431_v30 = vunpack.i.h.bf16 %v16019_v43  ;;  %v7729_v53 = vmul.f32 %v11420_v6, %v16266_v29  ;;  %v17463_v23 = vld [vmem:[#allocation14_spill] sm:$0xff] }
 0x489   : > { %v8284_v3 = vunpack.c.l.bf16 %v8152_v17  ;;  %v7730_v57 = vmul.f32 %v11421_v51, %v16266_v29  ;;  %v7728_v60 = vmul.f32 %v11416_v15, %v16266_v29  ;;  %v7727_v41 = vmul.f32 %v11415_v62, %v16266_v29  ;;  %v17464_v6 = vld [vmem:[#allocation26_spill] sm:$0xff] }
 0x48a   : > { %v11727_v4 = vpack.i.bf16 %v8286_v58, %v8285_v25  ;;  %v11430_v61 = vunpack.i.l.bf16 %v16019_v43  ;;  %v7734_v44 = vmul.f32 %v11431_v30, %v16266_v29  ;;  %v16282_v28 = vadd.f32 %v6423_v33, %v17463_v23  ;;  %v16298_v33 = vpop.permute.xlu1 %11518  ;;  %v17466_v23 = vld [vmem:[#allocation28_spill] sm:$0xff] }
 0x48b   : > { %v11722_v16 = vpack.i.bf16 %v8284_v3, %v8283_v63  ;;  %v16285_v2 = vadd.f32 %v7729_v53, %v15674_v26  ;;  %v16288_v51 = vadd.f32 %v7730_v57, %v15677_v37  ;;  %v16291_v15 = vadd.f32 %v7727_v41, %v17464_v6 }
 0x48c   : > { %11728 = vperm.xlu1 %10301, %v11727_v4   ;;  %v16294_v25 = vadd.f32 %v7728_v60, %v15705_v0  ;;  %v7733_v43 = vmul.f32 %v11430_v61, %v16266_v29  ;;  %v11426_v58 = vunpack.i.h.bf16 %v16032_v14  ;;  %v11425_v26 = vunpack.i.l.bf16 %v16032_v14  ;;  %v17465_v61 = vld [vmem:[#allocation31_spill] sm:$0xff] }
 0x48d   : > { %11723 = vperm.xlu0 %10290, %v11722_v16   ;;  %v11441_v63 = vunpack.i.h.bf16 %v16048_v11  ;;  %v11440_v37 = vunpack.i.l.bf16 %v16048_v11  ;;  %v11436_v17 = vunpack.i.h.bf16 %v16063_v36  ;;  %v16305_v62 = vadd.f32 %v7734_v44, %v15711_v19  ;;  %v16314_v11 = vpop.permute.xlu0 %11513 }
 0x48e   : > { %v7732_v0 = vmul.f32 %v11426_v58, %v16266_v29  ;;  %v11435_v30 = vunpack.i.l.bf16 %v16063_v36  ;;  %v11451_v3 = vunpack.i.h.bf16 %v16076_v50  ;;  %v7731_v53 = vmul.f32 %v11425_v26, %v16266_v29  ;;  %v17467_v58 = vld [vmem:[#allocation15_spill] sm:$0xff] }
 0x48f   : > { %v7737_v57 = vmul.f32 %v11440_v37, %v16266_v29  ;;  %v7738_v14 = vmul.f32 %v11441_v63, %v16266_v29  ;;  %v7736_v60 = vmul.f32 %v11436_v17, %v16266_v29  ;;  %v16317_v4 = vadd.f32 %v7733_v43, %v15708_v18  ;;  %v17468_v43 = vld [vmem:[#allocation29_spill] sm:$0xff]  ;;  %v16342_v17 = vpop.permute.xlu1 %11528 }
 0x490   : > { %v7735_v19 = vmul.f32 %v11435_v30, %v16266_v29  ;;  %v11450_v41 = vunpack.i.l.bf16 %v16076_v50  ;;  %v7742_v36 = vmul.f32 %v11451_v3, %v16266_v29  ;;  %v16323_v44 = vadd.f32 %v7731_v53, %v17465_v61 }
 0x491   : > { %v16326_v16 = vadd.f32 %v7732_v0, %v17466_v23  ;;  %v16329_v6 = vadd.f32 %v7737_v57, %v15747_v40  ;;  %v16332_v26 = vadd.f32 %v7738_v14, %v17467_v58  ;;  %v16338_v63 = vadd.f32 %v7736_v60, %v17468_v43 }
 0x492   : > { %v16335_v18 = vadd.f32 %v7735_v19, %v15781_v24  ;;  %v7741_v50 = vmul.f32 %v11450_v41, %v16266_v29  ;;  %v11446_v37 = vunpack.i.h.bf16 %v16095_v56  ;;  %v11445_v0 = vunpack.i.l.bf16 %v16095_v56 }
 0x493   : > { %v11461_v40 = vunpack.i.h.bf16 %v16108_v13  ;;  %v11460_v30 = vunpack.i.l.bf16 %v16108_v13  ;;  %v11456_v3 = vunpack.i.h.bf16 %v16124_v35  ;;  %v16349_v24 = vadd.f32 %v7742_v36, %v15787_v27  ;;  %v16358_v13 = vpop.permute.xlu0 %11523 }
 0x494   : > { %v7740_v53 = vmul.f32 %v11446_v37, %v16266_v29  ;;  %v11455_v57 = vunpack.i.l.bf16 %v16124_v35  ;;  %v11471_v14 = vunpack.i.h.bf16 %v16139_v21  ;;  %v7739_v60 = vmul.f32 %v11445_v0, %v16266_v29 }
 0x495   : > { %v7745_v19 = vmul.f32 %v11460_v30, %v16266_v29  ;;  %v7746_v56 = vmul.f32 %v11461_v40, %v16266_v29  ;;  %v7744_v41 = vmul.f32 %v11456_v3, %v16266_v29  ;;  %v16361_v61 = vadd.f32 %v7741_v50, %v15784_v46  ;;  %v17469_v50 = vld [vmem:[#allocation30_spill] sm:$0xff]  ;;  %v16386_v40 = vpop.permute.xlu1 %11538 }
 0x496   : > { %v7743_v27 = vmul.f32 %v11455_v57, %v16266_v29  ;;  %v11470_v36 = vunpack.i.l.bf16 %v16139_v21  ;;  %v7750_v35 = vmul.f32 %v11471_v14, %v16266_v29  ;;  %v16367_v23 = vadd.f32 %v7739_v60, %v15815_v54 }
 0x497   : > { %v16370_v58 = vadd.f32 %v7740_v53, %v15796_v34  ;;  %v16373_v43 = vadd.f32 %v7745_v19, %v15823_v1  ;;  %v16376_v37 = vadd.f32 %v7746_v56, %v15826_v8  ;;  %v16382_v0 = vadd.f32 %v7744_v41, %v17469_v50 }
 0x498   : > { %v16379_v46 = vadd.f32 %v7743_v27, %v15857_v10  ;;  %v7749_v21 = vmul.f32 %v11470_v36, %v16266_v29  ;;  %v11466_v54 = vunpack.i.h.bf16 %v16152_v42  ;;  %v11465_v34 = vunpack.i.l.bf16 %v16152_v42 }
 0x499   : > { %v11481_v1 = vunpack.i.h.bf16 %v16171_v47  ;;  %v11480_v30 = vunpack.i.l.bf16 %v16171_v47  ;;  %v11476_v8 = vunpack.i.h.bf16 %v16184_v39  ;;  %v16393_v10 = vadd.f32 %v7750_v35, %v15863_v55  ;;  %v16402_v47 = vpop.permute.xlu0 %11533  ;;  %v17470_v35 = vld [vmem:[#allocation32_spill] sm:$0xff] }
 0x49a   : > { %v7748_v3 = vmul.f32 %v11466_v54, %v16266_v29  ;;  %v11475_v53 = vunpack.i.l.bf16 %v16184_v39  ;;  %v11491_v57 = vunpack.i.h.bf16 %v16200_v48  ;;  %v7747_v14 = vmul.f32 %v11465_v34, %v16266_v29  ;;  %v17471_v54 = vld [vmem:[#allocation53_spill] sm:$0xff] }
 0x49b   : > { %v7753_v60 = vmul.f32 %v11480_v30, %v16266_v29  ;;  %v7754_v42 = vmul.f32 %v11481_v1, %v16266_v29  ;;  %v7752_v19 = vmul.f32 %v11476_v8, %v16266_v29  ;;  %v16405_v56 = vadd.f32 %v7749_v21, %v15860_v52  ;;  %v17473_v21 = vld [vmem:[#allocation54_spill] sm:$0xff]  ;;  %v16430_v30 = vpop.permute.xlu1 %11548  ;;  %v17475_v8 = vld [vmem:[#allocation59_spill] sm:$0xff] }
 0x49c   : > { %v7751_v55 = vmul.f32 %v11475_v53, %v16266_v29  ;;  %v11490_v41 = vunpack.i.l.bf16 %v16200_v48  ;;  %v7758_v39 = vmul.f32 %v11491_v57, %v16266_v29  ;;  %v16411_v27 = vadd.f32 %v7747_v14, %v15891_v38  ;;  %v17476_v14 = vld [vmem:[#allocation35_spill] sm:$0xff] }
 0x49d   : > { %v16414_v36 = vadd.f32 %v7748_v3, %v15872_v32  ;;  %v16417_v50 = vadd.f32 %v7753_v60, %v17470_v35  ;;  %v16420_v34 = vadd.f32 %v7754_v42, %v17471_v54  ;;  %v16426_v1 = vadd.f32 %v7752_v19, %v17473_v21  ;;  %v16446_v54 = vpop.permute.xlu0 %11543  ;;  %v17478_v21 = vld [vmem:[#allocation33_spill] sm:$0xff] }
 0x49e   : > { %v16423_v52 = vadd.f32 %v7751_v55, %v15933_v9  ;;  %v7757_v48 = vmul.f32 %v11490_v41, %v16266_v29  ;;  %v11486_v38 = vunpack.i.h.bf16 %v16215_v5  ;;  %v11485_v32 = vunpack.i.l.bf16 %v16215_v5 }
 0x49f   : > { %17474 = vst [vmem:[#allocation24_spill] sm:$0xff] %v16426_v1  ;;  %v11501_v3 = vunpack.i.h.bf16 %v17475_v8  ;;  %v11500_v53 = vunpack.i.l.bf16 %v17475_v8  ;;  %v11496_v57 = vunpack.i.h.bf16 %v16247_v22  ;;  %v16437_v9 = vadd.f32 %v7758_v39, %v17476_v14  ;;  %v17480_v14 = vld [vmem:[#allocation55_spill] sm:$0xff] }
 0x4a0   : > { %17472 = vst [vmem:[#allocation23_spill] sm:$0xff] %v16423_v52  ;;  %v7756_v60 = vmul.f32 %v11486_v38, %v16266_v29  ;;  %v11495_v42 = vunpack.i.l.bf16 %v16247_v22  ;;  %v11511_v19 = vunpack.i.h.bf16 %v16260_v7  ;;  %v7755_v55 = vmul.f32 %v11485_v32, %v16266_v29  ;;  %v17481_v32 = vld [vmem:[#allocation39_spill] sm:$0xff] }
 0x4a1   : > { %17477 = vst [vmem:[#allocation27_spill] sm:$0xff] %v16437_v9  ;;  %v7761_v41 = vmul.f32 %v11500_v53, %v16266_v29  ;;  %v7762_v5 = vmul.f32 %v11501_v3, %v16266_v29  ;;  %v7760_v35 = vmul.f32 %v11496_v57, %v16266_v29  ;;  %v16449_v8 = vadd.f32 %v7757_v48, %v17478_v21  ;;  %v17482_v3 = vld [vmem:[#allocation12_spill] sm:$0xff]  ;;  %v17484_v57 = vld [vmem:[#allocation34_spill] sm:$0xff]  ;;  %v17486_v48 = vld [vmem:[#allocation37_spill] sm:$0xff] }
 0x4a2   : > { %v7759_v39 = vmul.f32 %v11495_v42, %v16266_v29  ;;  %v11510_v38 = vunpack.i.l.bf16 %v16260_v7  ;;  %v7766_v22 = vmul.f32 %v11511_v19, %v16266_v29  ;;  %v16455_v9 = vadd.f32 %v7755_v55, %v17480_v14  ;;  %v17488_v42 = vld [vmem:[#allocation56_spill] sm:$0xff]  ;;  %v16474_v55 = vpop.permute.xlu1 %11558 }
 0x4a3   : > { %17479 = vst [vmem:[#allocation25_spill] sm:$0xff] %v16449_v8  ;;  %v16458_v53 = vadd.f32 %v7756_v60, %v17481_v32  ;;  %v16461_v52 = vadd.f32 %v7761_v41, %v17482_v3  ;;  %v16464_v1 = vadd.f32 %v7762_v5, %v17484_v57  ;;  %v16470_v8 = vadd.f32 %v7760_v35, %v17488_v42  ;;  %v17490_v32 = vld [vmem:[#allocation36_spill] sm:$0xff] }
 0x4a4   : > { %v16467_v21 = vadd.f32 %v7759_v39, %v17486_v48  ;;  %v7765_v7 = vmul.f32 %v11510_v38, %v16266_v29  ;;  %v11506_v19 = vunpack.i.h.bf16 %v16276_v45  ;;  %v11505_v60 = vunpack.i.l.bf16 %v16276_v45 }
 0x4a5   : > { %17483 = vst [vmem:[#allocation50_spill] sm:$0xff] %v16461_v52  ;;  %17485 = vst [vmem:[#allocation14_spill] sm:$0xff] %v16464_v1  ;;  %v11521_v41 = vunpack.i.h.bf16 %v16298_v33  ;;  %v11520_v14 = vunpack.i.l.bf16 %v16298_v33  ;;  %v11516_v5 = vunpack.i.h.bf16 %v16314_v11  ;;  %v16481_v39 = vadd.f32 %v7766_v22, %v17490_v32  ;;  %v11554_v33 = vpop.permute.xlu0 %11553  ;;  %v17494_v32 = vld [vmem:[#allocation38_spill] sm:$0xff] }
 0x4a6   : > { %17487 = vst [vmem:[#allocation26_spill] sm:$0xff] %v16467_v21  ;;  %17489 = vst [vmem:[#allocation31_spill] sm:$0xff] %v16470_v8  ;;  %v7764_v35 = vmul.f32 %v11506_v19, %v16266_v29  ;;  %v11515_v3 = vunpack.i.l.bf16 %v16314_v11  ;;  %v11531_v38 = vunpack.i.h.bf16 %v16342_v17  ;;  %v7763_v57 = vmul.f32 %v11505_v60, %v16266_v29  ;;  %v17492_v21 = vld [vmem:[#allocation57_spill] sm:$0xff] }
 0x4a7   : > { %17491 = vst [vmem:[#allocation28_spill] sm:$0xff] %v16481_v39  ;;  %v7769_v48 = vmul.f32 %v11520_v14, %v16266_v29  ;;  %v7770_v45 = vmul.f32 %v11521_v41, %v16266_v29  ;;  %v7768_v42 = vmul.f32 %v11516_v5, %v16266_v29  ;;  %v16491_v8 = vadd.f32 %v7765_v7, %v17492_v21  ;;  %v17495_v60 = vld [vmem:[#allocation41_spill] sm:$0xff]  ;;  %v17496_v14 = vld [vmem:[#allocation42_spill] sm:$0xff]  ;;  %v17498_v5 = vld [vmem:[#allocation43_spill] sm:$0xff] }
 0x4a8   : > { %v7767_v22 = vmul.f32 %v11515_v3, %v16266_v29  ;;  %v11530_v19 = vunpack.i.l.bf16 %v16342_v17  ;;  %v7774_v11 = vmul.f32 %v11531_v38, %v16266_v29  ;;  %v16497_v39 = vadd.f32 %v7763_v57, %v17494_v32  ;;  %v17500_v21 = vld [vmem:[#allocation46_spill] sm:$0xff]  ;;  %v17502_v3 = vld [vmem:[#allocation44_spill] sm:$0xff]  ;;  %v11569_v57 = vpop.permute.xlu1 %11568 }
 0x4a9   : > { %17493 = vst [vmem:[#allocation15_spill] sm:$0xff] %v16491_v8  ;;  %v16500_v1 = vadd.f32 %v7764_v35, %v17495_v60  ;;  %v16503_v41 = vadd.f32 %v7769_v48, %v17496_v14  ;;  %v16506_v52 = vadd.f32 %v7770_v45, %v17498_v5  ;;  %v16512_v8 = vadd.f32 %v7768_v42, %v17502_v3  ;;  %v17504_v60 = vld [vmem:[#allocation47_spill] sm:$0xff] }
 0x4aa   : > { %v16509_v7 = vadd.f32 %v7767_v22, %v17500_v21  ;;  %v7773_v17 = vmul.f32 %v11530_v19, %v16266_v29  ;;  %v11526_v38 = vunpack.i.h.bf16 %v16358_v13  ;;  %v11525_v35 = vunpack.i.l.bf16 %v16358_v13 }
 0x4ab   : > { %17497 = vst [vmem:[#allocation29_spill] sm:$0xff] %v16503_v41  ;;  %17499 = vst [vmem:[#allocation30_spill] sm:$0xff] %v16506_v52  ;;  %v11541_v32 = vunpack.i.h.bf16 %v16386_v40  ;;  %v11540_v48 = vunpack.i.l.bf16 %v16386_v40  ;;  %v11536_v45 = vunpack.i.h.bf16 %v16402_v47  ;;  %v16521_v14 = vadd.f32 %v7774_v11, %v17504_v60  ;;  %v11564_v40 = vpop.permute.xlu0 %11563  ;;  %v17508_v60 = vld [vmem:[#allocation51_spill] sm:$0xff] }
 0x4ac   : > { %17501 = vst [vmem:[#allocation32_spill] sm:$0xff] %v16509_v7  ;;  %17503 = vst [vmem:[#allocation53_spill] sm:$0xff] %v16512_v8  ;;  %v7772_v22 = vmul.f32 %v11526_v38, %v16266_v29  ;;  %v11535_v42 = vunpack.i.l.bf16 %v16402_v47  ;;  %v11551_v19 = vunpack.i.h.bf16 %v16430_v30  ;;  %v7771_v5 = vmul.f32 %v11525_v35, %v16266_v29  ;;  %v17506_v7 = vld [vmem:[#allocation45_spill] sm:$0xff] }
 0x4ad   : > { %17505 = vst [vmem:[#allocation54_spill] sm:$0xff] %v16521_v14  ;;  %v7777_v21 = vmul.f32 %v11540_v48, %v16266_v29  ;;  %v7778_v13 = vmul.f32 %v11541_v32, %v16266_v29  ;;  %v7776_v3 = vmul.f32 %v11536_v45, %v16266_v29  ;;  %v16531_v8 = vadd.f32 %v7773_v17, %v17506_v7  ;;  %v17509_v35 = vld [vmem:[#allocation13_spill] sm:$0xff]  ;;  %v17512_v45 = vld [vmem:[#allocation48_spill] sm:$0xff] }
 0x4ae   : > { %v7775_v11 = vmul.f32 %v11535_v42, %v16266_v29  ;;  %v11550_v38 = vunpack.i.l.bf16 %v16430_v30  ;;  %v7782_v47 = vmul.f32 %v11551_v19, %v16266_v29  ;;  %v16537_v14 = vadd.f32 %v7771_v5, %v17508_v60  ;;  %v17510_v48 = vld [vmem:[#allocation49_spill] sm:$0xff]  ;;  %v17514_v7 = vld [vmem:[#allocation52_spill] sm:$0xff]  ;;  %v17516_v42 = vld [vmem:[#allocation58_spill] sm:$0xff]  ;;  %v11579_v5 = vpop.permute.xlu1 %11578 }
 0x4af   : > { %17507 = vst [vmem:[#allocation59_spill] sm:$0xff] %v16531_v8  ;;  %v16540_v52 = vadd.f32 %v7772_v22, %v17509_v35  ;;  %v16543_v32 = vadd.f32 %v7777_v21, %v17510_v48  ;;  %v16546_v41 = vadd.f32 %v7778_v13, %v17512_v45  ;;  %v16552_v8 = vadd.f32 %v7776_v3, %v17516_v42  ;;  %v17518_v13 = vld [vmem:[#allocation16_spill] sm:$0xff] }
 0x4b0   : > { %v16549_v17 = vadd.f32 %v7775_v11, %v17514_v7  ;;  %v7781_v30 = vmul.f32 %v11550_v38, %v16266_v29  ;;  %v11546_v19 = vunpack.i.h.bf16 %v16446_v54  ;;  %v11545_v22 = vunpack.i.l.bf16 %v16446_v54 }
 0x4b1   : > { %17511 = vst [vmem:[#allocation35_spill] sm:$0xff] %v16543_v32  ;;  %17513 = vst [vmem:[#allocation33_spill] sm:$0xff] %v16546_v41  ;;  %v11561_v60 = vunpack.i.h.bf16 %v16474_v55  ;;  %v11560_v21 = vunpack.i.l.bf16 %v16474_v55  ;;  %v11556_v35 = vunpack.i.h.bf16 %v11554_v33  ;;  %v16560_v48 = vadd.f32 %v7782_v47, %v17518_v13 }
 0x4b2   : > { %17515 = vst [vmem:[#allocation55_spill] sm:$0xff] %v16549_v17  ;;  %17517 = vst [vmem:[#allocation39_spill] sm:$0xff] %v16552_v8  ;;  %v7780_v11 = vmul.f32 %v11546_v19, %v16266_v29  ;;  %v11555_v45 = vunpack.i.l.bf16 %v11554_v33  ;;  %v11571_v3 = vunpack.i.h.bf16 %v11569_v57  ;;  %v7779_v7 = vmul.f32 %v11545_v22, %v16266_v29  ;;  %v11574_v17 = vpop.permute.xlu0 %11573  ;;  %v17520_v8 = vld [vmem:[#allocation17_spill] sm:$0xff]  ;;  %v17521_v19 = vld [vmem:[#allocation18_spill] sm:$0xff] }
 0x4b3   : > { %17519 = vst [vmem:[#allocation12_spill] sm:$0xff] %v16560_v48  ;;  %v7785_v38 = vmul.f32 %v11560_v21, %v16266_v29  ;;  %v7786_v42 = vmul.f32 %v11561_v60, %v16266_v29  ;;  %v7784_v54 = vmul.f32 %v11556_v35, %v16266_v29  ;;  %v16568_v41 = vadd.f32 %v7781_v30, %v17520_v8  ;;  %v17522_v48 = vld [vmem:[#allocation19_spill] sm:$0xff]  ;;  %v17523_v21 = vld [vmem:[#allocation21_spill] sm:$0xff]  ;;  %v17524_v60 = vld [vmem:[#allocation20_spill] sm:$0xff] }
 0x4b4   : > { %v7783_v55 = vmul.f32 %v11555_v45, %v16266_v29  ;;  %v11570_v47 = vunpack.i.l.bf16 %v11569_v57  ;;  %v7790_v13 = vmul.f32 %v11571_v3, %v16266_v29  ;;  %v16573_v33 = vadd.f32 %v7779_v7, %v17521_v19  ;;  %v17525_v30 = vld [vmem:[#allocation22_spill] sm:$0xff]  ;;  %v11589_v7 = vpop.permute.xlu1 %11588 }
 0x4b5   : > { %v16576_v22 = vadd.f32 %v7780_v11, %v17522_v48  ;;  %v16579_v32 = vadd.f32 %v7785_v38, %v17523_v21  ;;  %v16582_v35 = vadd.f32 %v7786_v42, %v17524_v60  ;;  %v16588_v45 = vadd.f32 %v7784_v54, %v17525_v30 }
 0x4b6   : > { %v16585_v8 = vadd.f32 %v7783_v55, %v16237_v12  ;;  %v7789_v57 = vmul.f32 %v11570_v47, %v16266_v29  ;;  %v11566_v3 = vunpack.i.h.bf16 %v11564_v40  ;;  %v16592_v19 = vadd.f32 %v7790_v13, %v16243_v31  ;;  %v17526_v12 = vld [vmem:[#allocation40_spill] sm:$0xff]  ;;  %v11584_v13 = vpop.permute.xlu0 %11583 }
 0x4b7   : > { %v11565_v48 = vunpack.i.l.bf16 %v11564_v40  ;;  %v11581_v11 = vunpack.i.h.bf16 %v11579_v5  ;;  %v11580_v38 = vunpack.i.l.bf16 %v11579_v5  ;;  %v16600_v55 = vrot.slane %v15642_v59, %v17526_v12 }
 0x4b8   : > { %v16595_v21 = vadd.f32 %v7789_v57, %v16240_v20  ;;  %v7788_v42 = vmul.f32 %v11566_v3, %v16266_v29  ;;  %v11576_v54 = vunpack.i.h.bf16 %v11574_v17  ;;  %v11575_v60 = vunpack.i.l.bf16 %v11574_v17  ;;  %v16612_v3 = vld [vmem:[#allocation7] ss:$0 sm:$0xff] }
 0x4b9   : > { %v7787_v47 = vmul.f32 %v11565_v48, %v16266_v29  ;;  %v11591_v30 = vunpack.i.h.bf16 %v11589_v7  ;;  %v11590_v31 = vunpack.i.l.bf16 %v11589_v7  ;;  %v8613_v20 = vmul.f32 %v11580_v38, %v16600_v55 }
 0x4ba   : > { %v16604_v40 = vadd.f32 %v7788_v42, %v16252_v49  ;;  %v8614_v5 = vmul.f32 %v11581_v11, %v16600_v55  ;;  %v8612_v57 = vmul.f32 %v11576_v54, %v16600_v55  ;;  %v8611_v29 = vmul.f32 %v11575_v60, %v16600_v55  ;;  %v11599_v42 = vpop.permute.xlu1 %11598 }
 0x4bb   : > { %v16610_v59 = vadd.f32 %v7787_v47, %v16282_v28  ;;  %v8617_v17 = vmul.f32 %v11590_v31, %v16600_v55  ;;  %v8618_v7 = vmul.f32 %v11591_v30, %v16600_v55  ;;  %v8677_v49 = vadd.f32 %v8613_v20, %v16285_v2  ;;  %v11594_v20 = vpop.permute.xlu0 %11593 }
 0x4bc   : > { %v8678_v48 = vadd.f32 %v8614_v5, %v16288_v51  ;;  %v8676_v11 = vadd.f32 %v8612_v57, %v16294_v25  ;;  %v11586_v38 = vunpack.i.h.bf16 %v11584_v13  ;;  %v8675_v12 = vadd.f32 %v8611_v29, %v16291_v15 }
 0x4bd   : > { %17527 = vst [vmem:[#allocation34_spill] sm:$0xff] %v16610_v59  ;;  %v8681_v28 = vadd.f32 %v8617_v17, %v16317_v4  ;;  %v8682_v54 = vadd.f32 %v8618_v7, %v16305_v62  ;;  %v11585_v47 = vunpack.i.l.bf16 %v11584_v13  ;;  %v8748_v60 = vadd.f32 %v16612_v3, %v8677_v49 }
 0x4be   : > { %v8749_v30 = vadd.f32 %v16612_v3, %v8678_v48  ;;  %v8747_v2 = vadd.f32 %v16612_v3, %v8676_v11  ;;  %v8616_v51 = vmul.f32 %v11586_v38, %v16600_v55  ;;  %v8746_v25 = vadd.f32 %v16612_v3, %v8675_v12 }
 0x4bf   : > { %v8752_v31 = vadd.f32 %v16612_v3, %v8681_v28  ;;  %v8753_v15 = vadd.f32 %v16612_v3, %v8682_v54  ;;  %v8615_v4 = vmul.f32 %v11585_v47, %v16600_v55  ;;  %v8812_v62 = vmax.f32 %v8748_v60, 0.0  ;;  %v11609_v28 = vpop.permute.xlu1 %11608 }
 0x4c0   : > { %v8813_v13 = vmax.f32 %v8749_v30, 0.0  ;;  %v8811_v5 = vmax.f32 %v8747_v2, 0.0  ;;  %v8680_v57 = vadd.f32 %v8616_v51, %v16326_v16  ;;  %v8810_v29 = vmax.f32 %v8746_v25, 0.0 }
 0x4c1   : > { %v8816_v17 = vmax.f32 %v8752_v31, 0.0  ;;  %v8817_v7 = vmax.f32 %v8753_v15, 0.0  ;;  %v8679_v49 = vadd.f32 %v8615_v4, %v16323_v44  ;;  %v9775_v48 = vpack.c.bf16 %v8812_v62, %v8812_v62  ;;  %v11604_v4 = vpop.permute.xlu0 %11603 }
 0x4c2   : > { %v9776_v11 = vpack.c.bf16 %v8813_v13, %v8813_v13  ;;  %v9774_v38 = vpack.c.bf16 %v8811_v5, %v8811_v5  ;;  %v8751_v12 = vadd.f32 %v16612_v3, %v8680_v57  ;;  %v9773_v54 = vpack.c.bf16 %v8810_v29, %v8810_v29 }
 0x4c3   : > { %v9779_v59 = vpack.c.bf16 %v8816_v17, %v8816_v17  ;;  %v9780_v47 = vpack.c.bf16 %v8817_v7, %v8817_v7  ;;  %v8750_v60 = vadd.f32 %v16612_v3, %v8679_v49  ;;  %9133 = vst.msk [vmem:[%s16636_s22 + $0x8] sm:$0xf] %vm9130_vm6, %v9775_v48  ;;  %v11601_v16 = vunpack.i.h.bf16 %v11599_v42 }
 0x4c4   : > { %9134 = vst.msk [vmem:[%s16636_s22 + $0xc] sm:$0xf] %vm9130_vm6, %v9776_v11  ;;  %9132 = vst.msk [vmem:[%s16636_s22 + $0x4] sm:$0xf] %vm9130_vm6, %v9774_v38  ;;  %v8815_v44 = vmax.f32 %v8751_v12, 0.0  ;;  %v11600_v30 = vunpack.i.l.bf16 %v11599_v42  ;;  %v11596_v2 = vunpack.i.h.bf16 %v11594_v20  ;;  %v11595_v25 = vunpack.i.l.bf16 %v11594_v20  ;;  %v11619_v11 = vpop.permute.xlu1 %11618 }
 0x4c5   : > { %9131 = vst.msk [vmem:[%s16636_s22] sm:$0xf] %vm9130_vm6, %v9773_v54  ;;  %9137 = vst.msk [vmem:[%s16636_s22 + $0x18] sm:$0xf] %vm9130_vm6, %v9779_v59  ;;  %v8814_v51 = vmax.f32 %v8750_v60, 0.0  ;;  %v11611_v31 = vunpack.i.h.bf16 %v11609_v28  ;;  %v11610_v15 = vunpack.i.l.bf16 %v11609_v28  ;;  %v8622_v5 = vmul.f32 %v11601_v16, %v16600_v55 }
 0x4c6   : > { %9138 = vst.msk [vmem:[%s16636_s22 + $0x1c] sm:$0xf] %vm9130_vm6, %v9780_v47  ;;  %v9778_v62 = vpack.c.bf16 %v8815_v44, %v8815_v44  ;;  %v8621_v13 = vmul.f32 %v11600_v30, %v16600_v55  ;;  %v8620_v42 = vmul.f32 %v11596_v2, %v16600_v55  ;;  %v8619_v29 = vmul.f32 %v11595_v25, %v16600_v55 }
 0x4c7   : > { %v9777_v57 = vpack.c.bf16 %v8814_v51, %v8814_v51  ;;  %v8625_v59 = vmul.f32 %v11610_v15, %v16600_v55  ;;  %v8626_v17 = vmul.f32 %v11611_v31, %v16600_v55  ;;  %v8686_v7 = vadd.f32 %v8622_v5, %v16332_v26 }
 0x4c8   : > { %9136 = vst.msk [vmem:[%s16636_s22 + $0x14] sm:$0xf] %vm9130_vm6, %v9778_v62  ;;  %v8685_v20 = vadd.f32 %v8621_v13, %v16329_v6  ;;  %v8684_v49 = vadd.f32 %v8620_v42, %v16338_v63  ;;  %v11606_v48 = vunpack.i.h.bf16 %v11604_v4  ;;  %v8683_v38 = vadd.f32 %v8619_v29, %v16335_v18 }
 0x4c9   : > { %9135 = vst.msk [vmem:[%s16636_s22 + $0x10] sm:$0xf] %vm9130_vm6, %v9777_v57  ;;  %v8689_v12 = vadd.f32 %v8625_v59, %v16361_v61  ;;  %v8690_v28 = vadd.f32 %v8626_v17, %v16349_v24  ;;  %v11605_v54 = vunpack.i.l.bf16 %v11604_v4  ;;  %v8757_v60 = vadd.f32 %v16612_v3, %v8686_v7  ;;  %v11614_v61 = vpop.permute.xlu0 %11613  ;;  %v11629_v57 = vpop.permute.xlu1 %11628 }
 0x4ca   : > { %v8756_v47 = vadd.f32 %v16612_v3, %v8685_v20  ;;  %v8755_v6 = vadd.f32 %v16612_v3, %v8684_v49  ;;  %v8624_v26 = vmul.f32 %v11606_v48, %v16600_v55  ;;  %v8754_v63 = vadd.f32 %v16612_v3, %v8683_v38 }
 0x4cb   : > { %v8760_v44 = vadd.f32 %v16612_v3, %v8689_v12  ;;  %v8761_v16 = vadd.f32 %v16612_v3, %v8690_v28  ;;  %v8623_v18 = vmul.f32 %v11605_v54, %v16600_v55  ;;  %v8821_v24 = vmax.f32 %v8757_v60, 0.0 }
 0x4cc   : > { %v8820_v30 = vmax.f32 %v8756_v47, 0.0  ;;  %v8819_v2 = vmax.f32 %v8755_v6, 0.0  ;;  %v8688_v51 = vadd.f32 %v8624_v26, %v16370_v58  ;;  %v8818_v25 = vmax.f32 %v8754_v63, 0.0 }
 0x4cd   : > { %v8824_v31 = vmax.f32 %v8760_v44, 0.0  ;;  %v8825_v15 = vmax.f32 %v8761_v16, 0.0  ;;  %v8687_v4 = vadd.f32 %v8623_v18, %v16367_v23  ;;  %v9784_v13 = vpack.c.bf16 %v8821_v24, %v8821_v24  ;;  %v11624_v54 = vpop.permute.xlu0 %11623 }
 0x4ce   : > { %v9783_v62 = vpack.c.bf16 %v8820_v30, %v8820_v30  ;;  %v9782_v5 = vpack.c.bf16 %v8819_v2, %v8819_v2  ;;  %v8759_v42 = vadd.f32 %v16612_v3, %v8688_v51  ;;  %v9781_v29 = vpack.c.bf16 %v8818_v25, %v8818_v25  ;;  %v11639_v2 = vpop.permute.xlu1 %11638 }
 0x4cf   : > { %v9787_v59 = vpack.c.bf16 %v8824_v31, %v8824_v31  ;;  %v9788_v17 = vpack.c.bf16 %v8825_v15, %v8825_v15  ;;  %v8758_v58 = vadd.f32 %v16612_v3, %v8687_v4  ;;  %9142 = vst.msk [vmem:[%s16636_s22 + $0x2c] sm:$0xf] %vm9130_vm6, %v9784_v13  ;;  %v11621_v20 = vunpack.i.h.bf16 %v11619_v11 }
 0x4d0   : > { %9141 = vst.msk [vmem:[%s16636_s22 + $0x28] sm:$0xf] %vm9130_vm6, %v9783_v62  ;;  %9140 = vst.msk [vmem:[%s16636_s22 + $0x24] sm:$0xf] %vm9130_vm6, %v9782_v5  ;;  %v8823_v23 = vmax.f32 %v8759_v42, 0.0  ;;  %v11620_v7 = vunpack.i.l.bf16 %v11619_v11  ;;  %v11616_v49 = vunpack.i.h.bf16 %v11614_v61  ;;  %v11615_v38 = vunpack.i.l.bf16 %v11614_v61 }
 0x4d1   : > { %9139 = vst.msk [vmem:[%s16636_s22 + $0x20] sm:$0xf] %vm9130_vm6, %v9781_v29  ;;  %9145 = vst.msk [vmem:[%s16636_s22 + $0x38] sm:$0xf] %vm9130_vm6, %v9787_v59  ;;  %v8822_v48 = vmax.f32 %v8758_v58, 0.0  ;;  %v11631_v12 = vunpack.i.h.bf16 %v11629_v57  ;;  %v11630_v28 = vunpack.i.l.bf16 %v11629_v57  ;;  %v8630_v6 = vmul.f32 %v11621_v20, %v16600_v55 }
 0x4d2   : > { %9146 = vst.msk [vmem:[%s16636_s22 + $0x3c] sm:$0xf] %vm9130_vm6, %v9788_v17  ;;  %v9786_v47 = vpack.c.bf16 %v8823_v23, %v8823_v23  ;;  %v8629_v60 = vmul.f32 %v11620_v7, %v16600_v55  ;;  %v8628_v11 = vmul.f32 %v11616_v49, %v16600_v55  ;;  %v8627_v63 = vmul.f32 %v11615_v38, %v16600_v55  ;;  %v11649_v38 = vpop.permute.xlu1 %11648 }
 0x4d3   : > { %v9785_v26 = vpack.c.bf16 %v8822_v48, %v8822_v48  ;;  %v8633_v44 = vmul.f32 %v11630_v28, %v16600_v55  ;;  %v8634_v16 = vmul.f32 %v11631_v12, %v16600_v55  ;;  %v8694_v61 = vadd.f32 %v8630_v6, %v16376_v37 }
 0x4d4   : > { %9144 = vst.msk [vmem:[%s16636_s22 + $0x34] sm:$0xf] %vm9130_vm6, %v9786_v47  ;;  %v8693_v18 = vadd.f32 %v8629_v60, %v16373_v43  ;;  %v8692_v30 = vadd.f32 %v8628_v11, %v16382_v0  ;;  %v11626_v24 = vunpack.i.h.bf16 %v11624_v54  ;;  %v8691_v51 = vadd.f32 %v8627_v63, %v16379_v46 }
 0x4d5   : > { %9143 = vst.msk [vmem:[%s16636_s22 + $0x30] sm:$0xf] %vm9130_vm6, %v9785_v26  ;;  %v8697_v25 = vadd.f32 %v8633_v44, %v16405_v56  ;;  %v8698_v31 = vadd.f32 %v8634_v16, %v16393_v10  ;;  %v11625_v15 = vunpack.i.l.bf16 %v11624_v54  ;;  %v8765_v62 = vadd.f32 %v16612_v3, %v8694_v61  ;;  %v11634_v56 = vpop.permute.xlu0 %11633 }
 0x4d6   : > { %v8764_v4 = vadd.f32 %v16612_v3, %v8693_v18  ;;  %v8763_v43 = vadd.f32 %v16612_v3, %v8692_v30  ;;  %v8632_v37 = vmul.f32 %v11626_v24, %v16600_v55  ;;  %v8762_v0 = vadd.f32 %v16612_v3, %v8691_v51 }
 0x4d7   : > { %v8768_v13 = vadd.f32 %v16612_v3, %v8697_v25  ;;  %v8769_v5 = vadd.f32 %v16612_v3, %v8698_v31  ;;  %v8631_v46 = vmul.f32 %v11625_v15, %v16600_v55  ;;  %v8829_v10 = vmax.f32 %v8765_v62, 0.0  ;;  %v17528_v62 = vld [vmem:[#allocation24_spill] sm:$0xff] }
 0x4d8   : > { %v8828_v42 = vmax.f32 %v8764_v4, 0.0  ;;  %v8827_v57 = vmax.f32 %v8763_v43, 0.0  ;;  %v8696_v29 = vadd.f32 %v8632_v37, %v16414_v36  ;;  %v8826_v59 = vmax.f32 %v8762_v0, 0.0  ;;  %v11659_v0 = vpop.permute.xlu1 %11658 }
 0x4d9   : > { %v8832_v17 = vmax.f32 %v8768_v13, 0.0  ;;  %v8833_v58 = vmax.f32 %v8769_v5, 0.0  ;;  %v8695_v23 = vadd.f32 %v8631_v46, %v16411_v27  ;;  %v9792_v7 = vpack.c.bf16 %v8829_v10, %v8829_v10  ;;  %v11644_v16 = vpop.permute.xlu0 %11643  ;;  %v17529_v13 = vld [vmem:[#allocation23_spill] sm:$0xff]  ;;  %v17530_v46 = vld [vmem:[#allocation25_spill] sm:$0xff] }
 0x4da   : > { %v9791_v20 = vpack.c.bf16 %v8828_v42, %v8828_v42  ;;  %v9790_v49 = vpack.c.bf16 %v8827_v57, %v8827_v57  ;;  %v8767_v48 = vadd.f32 %v16612_v3, %v8696_v29  ;;  %v9789_v12 = vpack.c.bf16 %v8826_v59, %v8826_v59  ;;  %v17531_v42 = vld [vmem:[#allocation27_spill] sm:$0xff] }
 0x4db   : > { %v9795_v28 = vpack.c.bf16 %v8832_v17, %v8832_v17  ;;  %v9796_v54 = vpack.c.bf16 %v8833_v58, %v8833_v58  ;;  %v8766_v36 = vadd.f32 %v16612_v3, %v8695_v23  ;;  %9150 = vst.msk [vmem:[%s16636_s22 + $0x4c] sm:$0xf] %vm9130_vm6, %v9792_v7  ;;  %v11641_v47 = vunpack.i.h.bf16 %v11639_v2 }
 0x4dc   : > { %9149 = vst.msk [vmem:[%s16636_s22 + $0x48] sm:$0xf] %vm9130_vm6, %v9791_v20  ;;  %9148 = vst.msk [vmem:[%s16636_s22 + $0x44] sm:$0xf] %vm9130_vm6, %v9790_v49  ;;  %v8831_v27 = vmax.f32 %v8767_v48, 0.0  ;;  %v11640_v60 = vunpack.i.l.bf16 %v11639_v2  ;;  %v11636_v6 = vunpack.i.h.bf16 %v11634_v56  ;;  %v11635_v26 = vunpack.i.l.bf16 %v11634_v56 }
 0x4dd   : > { %9147 = vst.msk [vmem:[%s16636_s22 + $0x40] sm:$0xf] %vm9130_vm6, %v9789_v12  ;;  %9153 = vst.msk [vmem:[%s16636_s22 + $0x58] sm:$0xf] %vm9130_vm6, %v9795_v28  ;;  %v8830_v11 = vmax.f32 %v8766_v36, 0.0  ;;  %v11651_v63 = vunpack.i.h.bf16 %v11649_v38  ;;  %v11650_v44 = vunpack.i.l.bf16 %v11649_v38  ;;  %v8638_v30 = vmul.f32 %v11641_v47, %v16600_v55  ;;  %v11654_v7 = vpop.permute.xlu0 %11653 }
 0x4de   : > { %9154 = vst.msk [vmem:[%s16636_s22 + $0x5c] sm:$0xf] %vm9130_vm6, %v9796_v54  ;;  %v9794_v18 = vpack.c.bf16 %v8831_v27, %v8831_v27  ;;  %v8637_v61 = vmul.f32 %v11640_v60, %v16600_v55  ;;  %v8636_v24 = vmul.f32 %v11636_v6, %v16600_v55  ;;  %v8635_v51 = vmul.f32 %v11635_v26, %v16600_v55  ;;  %v11669_v26 = vpop.permute.xlu1 %11668 }
 0x4df   : > { %v9793_v2 = vpack.c.bf16 %v8830_v11, %v8830_v11  ;;  %v8641_v25 = vmul.f32 %v11650_v44, %v16600_v55  ;;  %v8642_v31 = vmul.f32 %v11651_v63, %v16600_v55  ;;  %v8702_v4 = vadd.f32 %v8638_v30, %v16420_v34 }
 0x4e0   : > { %9152 = vst.msk [vmem:[%s16636_s22 + $0x54] sm:$0xf] %vm9130_vm6, %v9794_v18  ;;  %v8701_v15 = vadd.f32 %v8637_v61, %v16417_v50  ;;  %v8700_v43 = vadd.f32 %v8636_v24, %v17528_v62  ;;  %v11646_v37 = vunpack.i.h.bf16 %v11644_v16  ;;  %v8699_v5 = vadd.f32 %v8635_v51, %v17529_v13 }
 0x4e1   : > { %9151 = vst.msk [vmem:[%s16636_s22 + $0x50] sm:$0xf] %vm9130_vm6, %v9793_v2  ;;  %v8705_v56 = vadd.f32 %v8641_v25, %v17530_v46  ;;  %v8706_v10 = vadd.f32 %v8642_v31, %v17531_v42  ;;  %v11645_v57 = vunpack.i.l.bf16 %v11644_v16  ;;  %v8773_v59 = vadd.f32 %v16612_v3, %v8702_v4  ;;  %v11664_v31 = vpop.permute.xlu0 %11663  ;;  %v17532_v46 = vld [vmem:[#allocation50_spill] sm:$0xff] }
 0x4e2   : > { %v8772_v29 = vadd.f32 %v16612_v3, %v8701_v15  ;;  %v8771_v50 = vadd.f32 %v16612_v3, %v8700_v43  ;;  %v8640_v34 = vmul.f32 %v11646_v37, %v16600_v55  ;;  %v8770_v17 = vadd.f32 %v16612_v3, %v8699_v5  ;;  %v17533_v42 = vld [vmem:[#allocation14_spill] sm:$0xff] }
 0x4e3   : > { %v8776_v58 = vadd.f32 %v16612_v3, %v8705_v56  ;;  %v8777_v23 = vadd.f32 %v16612_v3, %v8706_v10  ;;  %v8639_v20 = vmul.f32 %v11645_v57, %v16600_v55  ;;  %v8837_v48 = vmax.f32 %v8773_v59, 0.0  ;;  %v17534_v57 = vld [vmem:[#allocation31_spill] sm:$0xff] }
 0x4e4   : > { %v8836_v49 = vmax.f32 %v8772_v29, 0.0  ;;  %v8835_v38 = vmax.f32 %v8771_v50, 0.0  ;;  %v8704_v12 = vadd.f32 %v8640_v34, %v16458_v53  ;;  %v8834_v28 = vmax.f32 %v8770_v17, 0.0  ;;  %v17535_v34 = vld [vmem:[#allocation26_spill] sm:$0xff] }
 0x4e5   : > { %v8840_v54 = vmax.f32 %v8776_v58, 0.0  ;;  %v8841_v36 = vmax.f32 %v8777_v23, 0.0  ;;  %v8703_v27 = vadd.f32 %v8639_v20, %v16455_v9  ;;  %v9800_v60 = vpack.c.bf16 %v8837_v48, %v8837_v48  ;;  %v11679_v50 = vpop.permute.xlu1 %11678  ;;  %v17536_v58 = vld [vmem:[#allocation15_spill] sm:$0xff]  ;;  %v17537_v20 = vld [vmem:[#allocation28_spill] sm:$0xff] }
 0x4e6   : > { %v9799_v47 = vpack.c.bf16 %v8836_v49, %v8836_v49  ;;  %v9798_v6 = vpack.c.bf16 %v8835_v38, %v8835_v38  ;;  %v8775_v11 = vadd.f32 %v16612_v3, %v8704_v12  ;;  %v9797_v63 = vpack.c.bf16 %v8834_v28, %v8834_v28 }
 0x4e7   : > { %v9803_v44 = vpack.c.bf16 %v8840_v54, %v8840_v54  ;;  %v9804_v16 = vpack.c.bf16 %v8841_v36, %v8841_v36  ;;  %v8774_v53 = vadd.f32 %v16612_v3, %v8703_v27  ;;  %9158 = vst.msk [vmem:[%s16636_s22 + $0x6c] sm:$0xf] %vm9130_vm6, %v9800_v60  ;;  %v11661_v18 = vunpack.i.h.bf16 %v11659_v0  ;;  %v11674_v60 = vpop.permute.xlu0 %11673 }
 0x4e8   : > { %9157 = vst.msk [vmem:[%s16636_s22 + $0x68] sm:$0xf] %vm9130_vm6, %v9799_v47  ;;  %9156 = vst.msk [vmem:[%s16636_s22 + $0x64] sm:$0xf] %vm9130_vm6, %v9798_v6  ;;  %v8839_v9 = vmax.f32 %v8775_v11, 0.0  ;;  %v11660_v61 = vunpack.i.l.bf16 %v11659_v0  ;;  %v11656_v30 = vunpack.i.h.bf16 %v11654_v7  ;;  %v11655_v2 = vunpack.i.l.bf16 %v11654_v7 }
 0x4e9   : > { %9155 = vst.msk [vmem:[%s16636_s22 + $0x60] sm:$0xf] %vm9130_vm6, %v9797_v63  ;;  %9161 = vst.msk [vmem:[%s16636_s22 + $0x78] sm:$0xf] %vm9130_vm6, %v9803_v44  ;;  %v8838_v24 = vmax.f32 %v8774_v53, 0.0  ;;  %v11671_v51 = vunpack.i.h.bf16 %v11669_v26  ;;  %v11670_v25 = vunpack.i.l.bf16 %v11669_v26  ;;  %v8646_v62 = vmul.f32 %v11661_v18, %v16600_v55 }
 0x4ea   : > { %9162 = vst.msk [vmem:[%s16636_s22 + $0x7c] sm:$0xf] %vm9130_vm6, %v9804_v16  ;;  %v9802_v15 = vpack.c.bf16 %v8839_v9, %v8839_v9  ;;  %v8645_v4 = vmul.f32 %v11660_v61, %v16600_v55  ;;  %v8644_v43 = vmul.f32 %v11656_v30, %v16600_v55  ;;  %v8643_v0 = vmul.f32 %v11655_v2, %v16600_v55 }
 0x4eb   : > { %v9801_v37 = vpack.c.bf16 %v8838_v24, %v8838_v24  ;;  %v8649_v13 = vmul.f32 %v11670_v25, %v16600_v55  ;;  %v8650_v5 = vmul.f32 %v11671_v51, %v16600_v55  ;;  %v8710_v10 = vadd.f32 %v8646_v62, %v17533_v42 }
 0x4ec   : > { %9160 = vst.msk [vmem:[%s16636_s22 + $0x74] sm:$0xf] %vm9130_vm6, %v9802_v15  ;;  %v8709_v56 = vadd.f32 %v8645_v4, %v17532_v46  ;;  %v8708_v29 = vadd.f32 %v8644_v43, %v17534_v57  ;;  %v11666_v59 = vunpack.i.h.bf16 %v11664_v31  ;;  %v8707_v17 = vadd.f32 %v8643_v0, %v17535_v34  ;;  %v17538_v34 = vld [vmem:[#allocation29_spill] sm:$0xff] }
 0x4ed   : > { %9159 = vst.msk [vmem:[%s16636_s22 + $0x70] sm:$0xf] %vm9130_vm6, %v9801_v37  ;;  %v8713_v23 = vadd.f32 %v8649_v13, %v17536_v58  ;;  %v8714_v7 = vadd.f32 %v8650_v5, %v17537_v20  ;;  %v11665_v49 = vunpack.i.l.bf16 %v11664_v31  ;;  %v8781_v38 = vadd.f32 %v16612_v3, %v8710_v10  ;;  %v11689_v2 = vpop.permute.xlu1 %11688  ;;  %v17539_v58 = vld [vmem:[#allocation30_spill] sm:$0xff]  ;;  %v17540_v20 = vld [vmem:[#allocation53_spill] sm:$0xff] }
 0x4ee   : > { %v8780_v48 = vadd.f32 %v16612_v3, %v8709_v56  ;;  %v8779_v12 = vadd.f32 %v16612_v3, %v8708_v29  ;;  %v8648_v28 = vmul.f32 %v11666_v59, %v16600_v55  ;;  %v8778_v54 = vadd.f32 %v16612_v3, %v8707_v17  ;;  %v11684_v5 = vpop.permute.xlu0 %11683 }
 0x4ef   : > { %v8784_v36 = vadd.f32 %v16612_v3, %v8713_v23  ;;  %v8785_v27 = vadd.f32 %v16612_v3, %v8714_v7  ;;  %v8647_v47 = vmul.f32 %v11665_v49, %v16600_v55  ;;  %v8845_v11 = vmax.f32 %v8781_v38, 0.0  ;;  %v17541_v38 = vld [vmem:[#allocation32_spill] sm:$0xff] }
 0x4f0   : > { %v8844_v6 = vmax.f32 %v8780_v48, 0.0  ;;  %v8843_v26 = vmax.f32 %v8779_v12, 0.0  ;;  %v8712_v63 = vadd.f32 %v8648_v28, %v16500_v1  ;;  %v8842_v44 = vmax.f32 %v8778_v54, 0.0  ;;  %v17542_v28 = vld [vmem:[#allocation59_spill] sm:$0xff] }
 0x4f1   : > { %v8848_v16 = vmax.f32 %v8784_v36, 0.0  ;;  %v8849_v53 = vmax.f32 %v8785_v27, 0.0  ;;  %v8711_v9 = vadd.f32 %v8647_v47, %v16497_v39  ;;  %v9808_v61 = vpack.c.bf16 %v8845_v11, %v8845_v11  ;;  %v17543_v36 = vld [vmem:[#allocation54_spill] sm:$0xff] }
 0x4f2   : > { %v9807_v18 = vpack.c.bf16 %v8844_v6, %v8844_v6  ;;  %v9806_v30 = vpack.c.bf16 %v8843_v26, %v8843_v26  ;;  %v8783_v24 = vadd.f32 %v16612_v3, %v8712_v63  ;;  %v9805_v51 = vpack.c.bf16 %v8842_v44, %v8842_v44 }
 0x4f3   : > { %v9811_v25 = vpack.c.bf16 %v8848_v16, %v8848_v16  ;;  %v9812_v31 = vpack.c.bf16 %v8849_v53, %v8849_v53  ;;  %v8782_v1 = vadd.f32 %v16612_v3, %v8711_v9  ;;  %9166 = vst.msk [vmem:[%s16636_s22 + $0x8c] sm:$0xf] %vm9130_vm6, %v9808_v61  ;;  %v11681_v15 = vunpack.i.h.bf16 %v11679_v50 }
 0x4f4   : > { %9165 = vst.msk [vmem:[%s16636_s22 + $0x88] sm:$0xf] %vm9130_vm6, %v9807_v18  ;;  %9164 = vst.msk [vmem:[%s16636_s22 + $0x84] sm:$0xf] %vm9130_vm6, %v9806_v30  ;;  %v8847_v39 = vmax.f32 %v8783_v24, 0.0  ;;  %v11680_v4 = vunpack.i.l.bf16 %v11679_v50  ;;  %v11676_v62 = vunpack.i.h.bf16 %v11674_v60  ;;  %v11675_v37 = vunpack.i.l.bf16 %v11674_v60  ;;  %v11699_v48 = vpop.permute.xlu1 %11698 }
 0x4f5   : > { %9163 = vst.msk [vmem:[%s16636_s22 + $0x80] sm:$0xf] %vm9130_vm6, %v9805_v51  ;;  %9169 = vst.msk [vmem:[%s16636_s22 + $0x98] sm:$0xf] %vm9130_vm6, %v9811_v25  ;;  %v8846_v43 = vmax.f32 %v8782_v1, 0.0  ;;  %v11691_v0 = vunpack.i.h.bf16 %v11689_v2  ;;  %v11690_v13 = vunpack.i.l.bf16 %v11689_v2  ;;  %v8654_v42 = vmul.f32 %v11681_v15, %v16600_v55 }
 0x4f6   : > { %9170 = vst.msk [vmem:[%s16636_s22 + $0x9c] sm:$0xf] %vm9130_vm6, %v9812_v31  ;;  %v9810_v46 = vpack.c.bf16 %v8847_v39, %v8847_v39  ;;  %v8653_v56 = vmul.f32 %v11680_v4, %v16600_v55  ;;  %v8652_v10 = vmul.f32 %v11676_v62, %v16600_v55  ;;  %v8651_v29 = vmul.f32 %v11675_v37, %v16600_v55  ;;  %v11694_v9 = vpop.permute.xlu0 %11693 }
 0x4f7   : > { %v9809_v57 = vpack.c.bf16 %v8846_v43, %v8846_v43  ;;  %v8657_v59 = vmul.f32 %v11690_v13, %v16600_v55  ;;  %v8658_v50 = vmul.f32 %v11691_v0, %v16600_v55  ;;  %v8718_v23 = vadd.f32 %v8654_v42, %v17539_v58 }
 0x4f8   : > { %9168 = vst.msk [vmem:[%s16636_s22 + $0x94] sm:$0xf] %vm9130_vm6, %v9810_v46  ;;  %v8717_v17 = vadd.f32 %v8653_v56, %v17538_v34  ;;  %v8716_v7 = vadd.f32 %v8652_v10, %v17540_v20  ;;  %v11686_v49 = vunpack.i.h.bf16 %v11684_v5  ;;  %v8715_v12 = vadd.f32 %v8651_v29, %v17541_v38  ;;  %v17545_v38 = vld [vmem:[#allocation33_spill] sm:$0xff] }
 0x4f9   : > { %9167 = vst.msk [vmem:[%s16636_s22 + $0x90] sm:$0xf] %vm9130_vm6, %v9809_v57  ;;  %v8721_v54 = vadd.f32 %v8657_v59, %v17542_v28  ;;  %v8722_v27 = vadd.f32 %v8658_v50, %v17543_v36  ;;  %v11685_v47 = vunpack.i.l.bf16 %v11684_v5  ;;  %v8789_v6 = vadd.f32 %v16612_v3, %v8718_v23  ;;  %v17546_v28 = vld [vmem:[#allocation39_spill] sm:$0xff] }
 0x4fa   : > { %v8788_v60 = vadd.f32 %v16612_v3, %v8717_v17  ;;  %v8787_v11 = vadd.f32 %v16612_v3, %v8716_v7  ;;  %v8656_v26 = vmul.f32 %v11686_v49, %v16600_v55  ;;  %v8786_v63 = vadd.f32 %v16612_v3, %v8715_v12  ;;  %v17544_v49 = vld [vmem:[#allocation35_spill] sm:$0xff] }
 0x4fb   : > { %v8792_v44 = vadd.f32 %v16612_v3, %v8721_v54  ;;  %v8793_v16 = vadd.f32 %v16612_v3, %v8722_v27  ;;  %v8655_v53 = vmul.f32 %v11685_v47, %v16600_v55  ;;  %v8853_v61 = vmax.f32 %v8789_v6, 0.0  ;;  %v17547_v27 = vld [vmem:[#allocation55_spill] sm:$0xff]  ;;  %v17548_v6 = vld [vmem:[#allocation12_spill] sm:$0xff] }
 0x4fc   : > { %v8852_v18 = vmax.f32 %v8788_v60, 0.0  ;;  %v8851_v30 = vmax.f32 %v8787_v11, 0.0  ;;  %v8720_v24 = vadd.f32 %v8656_v26, %v16540_v52  ;;  %v8850_v2 = vmax.f32 %v8786_v63, 0.0  ;;  %v11709_v62 = vpop.permute.xlu1 %11708 }
 0x4fd   : > { %v8856_v51 = vmax.f32 %v8792_v44, 0.0  ;;  %v8857_v25 = vmax.f32 %v8793_v16, 0.0  ;;  %v8719_v31 = vadd.f32 %v8655_v53, %v16537_v14  ;;  %v9816_v39 = vpack.c.bf16 %v8853_v61, %v8853_v61  ;;  %v11704_v29 = vpop.permute.xlu0 %11703 }
 0x4fe   : > { %v9815_v1 = vpack.c.bf16 %v8852_v18, %v8852_v18  ;;  %v9814_v15 = vpack.c.bf16 %v8851_v30, %v8851_v30  ;;  %v8791_v4 = vadd.f32 %v16612_v3, %v8720_v24  ;;  %v9813_v43 = vpack.c.bf16 %v8850_v2, %v8850_v2 }
 0x4ff   : > { %v9819_v37 = vpack.c.bf16 %v8856_v51, %v8856_v51  ;;  %v9820_v0 = vpack.c.bf16 %v8857_v25, %v8857_v25  ;;  %v8790_v52 = vadd.f32 %v16612_v3, %v8719_v31  ;;  %9174 = vst.msk [vmem:[%s16636_s22 + $0xac] sm:$0xf] %vm9130_vm6, %v9816_v39  ;;  %v11701_v13 = vunpack.i.h.bf16 %v11699_v48 }
 0x500   : > { %9173 = vst.msk [vmem:[%s16636_s22 + $0xa8] sm:$0xf] %vm9130_vm6, %v9815_v1  ;;  %9172 = vst.msk [vmem:[%s16636_s22 + $0xa4] sm:$0xf] %vm9130_vm6, %v9814_v15  ;;  %v8855_v14 = vmax.f32 %v8791_v4, 0.0  ;;  %v11700_v5 = vunpack.i.l.bf16 %v11699_v48  ;;  %v11696_v46 = vunpack.i.h.bf16 %v11694_v9  ;;  %v11695_v42 = vunpack.i.l.bf16 %v11694_v9 }
 0x501   : > { %9171 = vst.msk [vmem:[%s16636_s22 + $0xa0] sm:$0xf] %vm9130_vm6, %v9813_v43  ;;  %9177 = vst.msk [vmem:[%s16636_s22 + $0xb8] sm:$0xf] %vm9130_vm6, %v9819_v37  ;;  %v8854_v56 = vmax.f32 %v8790_v52, 0.0  ;;  %v11711_v10 = vunpack.i.h.bf16 %v11709_v62  ;;  %v11710_v57 = vunpack.i.l.bf16 %v11709_v62  ;;  %v8662_v34 = vmul.f32 %v11701_v13, %v16600_v55 }
 0x502   : > { %9178 = vst.msk [vmem:[%s16636_s22 + $0xbc] sm:$0xf] %vm9130_vm6, %v9820_v0  ;;  %v9818_v59 = vpack.c.bf16 %v8855_v14, %v8855_v14  ;;  %v8661_v50 = vmul.f32 %v11700_v5, %v16600_v55  ;;  %v8660_v17 = vmul.f32 %v11696_v46, %v16600_v55  ;;  %v8659_v23 = vmul.f32 %v11695_v42, %v16600_v55 }
 0x503   : > { %v9817_v58 = vpack.c.bf16 %v8854_v56, %v8854_v56  ;;  %v8665_v20 = vmul.f32 %v11710_v57, %v16600_v55  ;;  %v8666_v7 = vmul.f32 %v11711_v10, %v16600_v55  ;;  %v8726_v12 = vadd.f32 %v8662_v34, %v17545_v38  ;;  %v11719_v63 = vpop.permute.xlu1 %11718 }
 0x504   : > { %9176 = vst.msk [vmem:[%s16636_s22 + $0xb4] sm:$0xf] %vm9130_vm6, %v9818_v59  ;;  %v8725_v48 = vadd.f32 %v8661_v50, %v17544_v49  ;;  %v8724_v54 = vadd.f32 %v8660_v17, %v17546_v28  ;;  %v11706_v36 = vunpack.i.h.bf16 %v11704_v29  ;;  %v8723_v47 = vadd.f32 %v8659_v23, %v17547_v27 }
 0x505   : > { %9175 = vst.msk [vmem:[%s16636_s22 + $0xb0] sm:$0xf] %vm9130_vm6, %v9817_v58  ;;  %v8729_v60 = vadd.f32 %v8665_v20, %v16568_v41  ;;  %v8730_v11 = vadd.f32 %v8666_v7, %v17548_v6  ;;  %v11705_v26 = vunpack.i.l.bf16 %v11704_v29  ;;  %v8797_v16 = vadd.f32 %v16612_v3, %v8726_v12  ;;  %v11714_v24 = vpop.permute.xlu0 %11713 }
 0x506   : > { %v8796_v44 = vadd.f32 %v16612_v3, %v8725_v48  ;;  %v8795_v53 = vadd.f32 %v16612_v3, %v8724_v54  ;;  %v8664_v9 = vmul.f32 %v11706_v36, %v16600_v55  ;;  %v8794_v18 = vadd.f32 %v16612_v3, %v8723_v47 }
 0x507   : > { %v8800_v61 = vadd.f32 %v16612_v3, %v8729_v60  ;;  %v8801_v30 = vadd.f32 %v16612_v3, %v8730_v11  ;;  %v8663_v41 = vmul.f32 %v11705_v26, %v16600_v55  ;;  %v8861_v51 = vmax.f32 %v8797_v16, 0.0 }
 0x508   : > { %v8860_v2 = vmax.f32 %v8796_v44, 0.0  ;;  %v8859_v25 = vmax.f32 %v8795_v53, 0.0  ;;  %v8728_v31 = vadd.f32 %v8664_v9, %v16576_v22  ;;  %v8858_v1 = vmax.f32 %v8794_v18, 0.0 }
 0x509   : > { %v8864_v39 = vmax.f32 %v8800_v61, 0.0  ;;  %v8865_v15 = vmax.f32 %v8801_v30, 0.0  ;;  %v8727_v4 = vadd.f32 %v8663_v41, %v16573_v33  ;;  %v9824_v43 = vpack.c.bf16 %v8861_v51, %v8861_v51  ;;  %v17549_v61 = vld [vmem:[#allocation34_spill] sm:$0xff] }
 0x50a   : > { %v9823_v62 = vpack.c.bf16 %v8860_v2, %v8860_v2  ;;  %v9822_v37 = vpack.c.bf16 %v8859_v25, %v8859_v25  ;;  %v8799_v0 = vadd.f32 %v16612_v3, %v8728_v31  ;;  %v9821_v52 = vpack.c.bf16 %v8858_v1, %v8858_v1 }
 0x50b   : > { %v9827_v14 = vpack.c.bf16 %v8864_v39, %v8864_v39  ;;  %v9828_v13 = vpack.c.bf16 %v8865_v15, %v8865_v15  ;;  %v8798_v5 = vadd.f32 %v16612_v3, %v8727_v4  ;;  %v11729_v22 = vpop.permute.xlu1 %11728  ;;  %9182 = vst.msk [vmem:[%s16636_s22 + $0xcc] sm:$0xf] %vm9130_vm6, %v9824_v43  ;;  %v11721_v46 = vunpack.i.h.bf16 %v11719_v63 }
 0x50c   : > { %9181 = vst.msk [vmem:[%s16636_s22 + $0xc8] sm:$0xf] %vm9130_vm6, %v9823_v62  ;;  %9180 = vst.msk [vmem:[%s16636_s22 + $0xc4] sm:$0xf] %vm9130_vm6, %v9822_v37  ;;  %v8863_v33 = vmax.f32 %v8799_v0, 0.0  ;;  %v11720_v56 = vunpack.i.l.bf16 %v11719_v63  ;;  %v11716_v42 = vunpack.i.h.bf16 %v11714_v24  ;;  %v11715_v57 = vunpack.i.l.bf16 %v11714_v24  ;;  %v11724_v50 = vpop.permute.xlu0 %11723 }
 0x50d   : > { %9179 = vst.msk [vmem:[%s16636_s22 + $0xc0] sm:$0xf] %vm9130_vm6, %v9821_v52  ;;  %9185 = vst.msk [vmem:[%s16636_s22 + $0xd8] sm:$0xf] %vm9130_vm6, %v9827_v14  ;;  %v8862_v10 = vmax.f32 %v8798_v5, 0.0  ;;  %v11731_v29 = vunpack.i.h.bf16 %v11729_v22  ;;  %v11730_v59 = vunpack.i.l.bf16 %v11729_v22  ;;  %v8670_v58 = vmul.f32 %v11721_v46, %v16600_v55 }
 0x50e   : > { %9186 = vst.msk [vmem:[%s16636_s22 + $0xdc] sm:$0xf] %vm9130_vm6, %v9828_v13  ;;  %v9826_v34 = vpack.c.bf16 %v8863_v33, %v8863_v33  ;;  %v8669_v17 = vmul.f32 %v11720_v56, %v16600_v55  ;;  %v8668_v23 = vmul.f32 %v11716_v42, %v16600_v55  ;;  %v8667_v7 = vmul.f32 %v11715_v57, %v16600_v55 }
 0x50f   : > { %v9825_v20 = vpack.c.bf16 %v8862_v10, %v8862_v10  ;;  %v8673_v49 = vmul.f32 %v11730_v59, %v16600_v55  ;;  %v8674_v48 = vmul.f32 %v11731_v29, %v16600_v55  ;;  %v8734_v12 = vadd.f32 %v8670_v58, %v16582_v35 }
 0x510   : > { %9184 = vst.msk [vmem:[%s16636_s22 + $0xd4] sm:$0xf] %vm9130_vm6, %v9826_v34  ;;  %v8733_v38 = vadd.f32 %v8669_v17, %v16579_v32  ;;  %v8732_v28 = vadd.f32 %v8668_v23, %v16588_v45  ;;  %v11726_v54 = vunpack.i.h.bf16 %v11724_v50  ;;  %v8731_v36 = vadd.f32 %v8667_v7, %v16585_v8 }
 0x511   : > { %9183 = vst.msk [vmem:[%s16636_s22 + $0xd0] sm:$0xf] %vm9130_vm6, %v9825_v20  ;;  %v8737_v27 = vadd.f32 %v8673_v49, %v16595_v21  ;;  %v8738_v47 = vadd.f32 %v8674_v48, %v16592_v19  ;;  %v11725_v60 = vunpack.i.l.bf16 %v11724_v50  ;;  %v8805_v11 = vadd.f32 %v16612_v3, %v8734_v12 }
 0x512   : > { %v8804_v6 = vadd.f32 %v16612_v3, %v8733_v38  ;;  %v8803_v32 = vadd.f32 %v16612_v3, %v8732_v28  ;;  %v8672_v35 = vmul.f32 %v11726_v54, %v16600_v55  ;;  %v8802_v45 = vadd.f32 %v16612_v3, %v8731_v36 }
 0x513   : > { %v8808_v26 = vadd.f32 %v16612_v3, %v8737_v27  ;;  %v8809_v63 = vadd.f32 %v16612_v3, %v8738_v47  ;;  %v8671_v8 = vmul.f32 %v11725_v60, %v16600_v55  ;;  %v8869_v19 = vmax.f32 %v8805_v11, 0.0 }
 0x514   : > { %v8868_v21 = vmax.f32 %v8804_v6, 0.0  ;;  %v8867_v44 = vmax.f32 %v8803_v32, 0.0  ;;  %v8736_v16 = vadd.f32 %v8672_v35, %v16604_v40  ;;  %v8866_v53 = vmax.f32 %v8802_v45, 0.0 }
 0x515   : > { %v8872_v9 = vmax.f32 %v8808_v26, 0.0  ;;  %v8873_v18 = vmax.f32 %v8809_v63, 0.0  ;;  %v8735_v30 = vadd.f32 %v8671_v8, %v17549_v61  ;;  %v9832_v55 = vpack.c.bf16 %v8869_v19, %v8869_v19 }
 0x516   : > { %v9831_v41 = vpack.c.bf16 %v8868_v21, %v8868_v21  ;;  %v9830_v24 = vpack.c.bf16 %v8867_v44, %v8867_v44  ;;  %v8807_v2 = vadd.f32 %v16612_v3, %v8736_v16  ;;  %v9829_v51 = vpack.c.bf16 %v8866_v53, %v8866_v53 }
 0x517   : > { %v9835_v25 = vpack.c.bf16 %v8872_v9, %v8872_v9  ;;  %v9836_v31 = vpack.c.bf16 %v8873_v18, %v8873_v18  ;;  %v8806_v40 = vadd.f32 %v16612_v3, %v8735_v30  ;;  %9190 = vst.msk [vmem:[%s16636_s22 + $0xec] sm:$0xf] %vm9130_vm6, %v9832_v55 }
 0x518   : > { %9189 = vst.msk [vmem:[%s16636_s22 + $0xe8] sm:$0xf] %vm9130_vm6, %v9831_v41  ;;  %9188 = vst.msk [vmem:[%s16636_s22 + $0xe4] sm:$0xf] %vm9130_vm6, %v9830_v24  ;;  %v8871_v1 = vmax.f32 %v8807_v2, 0.0 }
 0x519   : > { %9187 = vst.msk [vmem:[%s16636_s22 + $0xe0] sm:$0xf] %vm9130_vm6, %v9829_v51  ;;  %9193 = vst.msk [vmem:[%s16636_s22 + $0xf8] sm:$0xf] %vm9130_vm6, %v9835_v25  ;;  %v8870_v39 = vmax.f32 %v8806_v40, 0.0 }
 0x51a   : > { %9194 = vst.msk [vmem:[%s16636_s22 + $0xfc] sm:$0xf] %vm9130_vm6, %v9836_v31  ;;  %v9834_v3 = vpack.c.bf16 %v8871_v1, %v8871_v1 }
 0x51b   : > { %v9833_v15 = vpack.c.bf16 %v8870_v39, %v8870_v39 }
 0x51c   : > { %9192 = vst.msk [vmem:[%s16636_s22 + $0xf4] sm:$0xf] %vm9130_vm6, %v9834_v3 }
 0x51d   : > { %9191 = vst.msk [vmem:[%s16636_s22 + $0xf0] sm:$0xf] %vm9130_vm6, %v9833_v15 }
 0x51e   : > { %12023 = shalt.err (!%p12020_p2)
}
 0x51f   : > { %s12024_s10 = scalar_lea.hbm %s16935_s26, 4096  ;;  %s12028_s29 = scalar_lea.hbm %s16993_s3, 8192 }
 0x520   : > { %p12025_p0 = scmp.ne.s32.totalorder %s16935_s26, %s12024_s10  ;;  %p12029_p6 = scmp.lt.u32.totalorder %s16935_s26, %s16993_s3 }
 0x521   : > { %p12030_p7 = scmp.lt.u32.totalorder %s12028_s29, %s12024_s10  ;;  %p12032_p8 = scmp.lt.u32.totalorder %s12024_s10, %s16935_s26 }
 0x522   : > { %p12026_p4 = pnand %p12025_p0, %p17550_p12 }
 0x523   : > { %p12031_p11 = por %p12030_p7, %p12029_p6 }
 0x524   : > { %p12027_p13 = pneg %p12026_p4 }
 0x525   : > { %p12033_p1 = por %p12032_p8, %p12031_p11 }
 0x527   : > { %p12034_p10 = pnand %p12033_p1, %p12027_p13 }
 0x529   : > { %12037 = shalt.err (!%p12034_p10)
}
 0x52a   : > { %s12107_s22 = smov 64   ;;  %s12108_s24 = smov 4  }
 0x52b   : > { %10210 = dma.vmem_to_hbm [thread:$0]  (%p17550_p12), %s16937_s30, 4096, %s16935_s26, %s9196_s9, %s12107_s22, %s12107_s22, %s12108_s24  }
 0x52c PF: > { %s9226_s7 = sand.u32 1, %s12076_s12   ;;  %p17551_p3 = scmp.ne.s32.totalorder %s17016_s23, 0 }
 0x52d   : > { %p17552_p5 = scmp.ge.s32.totalorder %s12096_s17, 2  ;;  %s9227_s15 = scalar_lea.sflag [#allocation4], %s9226_s7 }
 0x52f   : > { %p10224_p9 = pnand %p17552_p5, %p17551_p3 }
 0x531   : > { %12071 = dma.done.wait (!%p10224_p9), %s9227_s15, 4096  }
 0x532   : > { %12073 = vsyncadd (!%p10224_p9), %s9227_s15, 4294963200  ;;  %s20_s17 = sadd.s32 1, %s12096_s17   ;;  %s17553_s12 = smov %s12080_s13 }
 0x533   : > { %p17_p2 = scmp.ge.s32.totalorder %s20_s17, 4   ;;  %s17554_s13 = smov %s12084_s14 }
 0x534   : > { %s17555_s14 = smov %s12275_s4  ;;  %s17556_s15 = smov %s12092_s16 }
 0x535   : > { %s17557_s16 = smov %s17559_s18  ;;  %19 = sbr.rel (!%p17_p2) target bundleno = 7 (0x7), region = 88 }
 0x53c   :  { %9232 = vsyncpa [#allocation3], 1 }
 0x53d   :  { %9234 = vsyncpa [#allocation3 + $0x1], 1 }
 0x53e   :  { %9235 = vsyncpa [#allocation6], 1 }
 0x53f   :  { %9236 = vsyncpa [#allocation4], 1 }
 0x540   :  { %9238 = vsyncpa [#allocation4 + $0x1], 1 }

</bundles_post_ra>
